<compile_context>
chip_gen: v7x
topology: tpu7x:2x2x1
jax: 0.10.0
libtpu: 0.0.40
codegen_flags: <defaults>
</compile_context>

<pallas_src>
import jax
import jax.numpy as jnp
import numpy as np
from jax.experimental import pallas as pl
from jax.experimental.pallas import tpu as pltpu


def _cider_kernel(cap_ref, tabf_ref, tabb_ref, img_ref, whh_ref,
                  w1_ref, b1_ref, w2_ref, b2_ref, wfv_ref, bf_ref,
                  out_ref, xg_scr):
    T, Bb, G = xg_scr.shape            # G = 8H (fused gate width, both dirs)
    H2 = whh_ref.shape[0]              # 2H  ([fwd | bwd] carry width)
    base = pl.program_id(0) * Bb       # batch offset of this block

    # ---- fused embedding gather + LSTM input projection -------------------
    # xg[s, b, :] = tab_f[cap[b, s]] + tab_b[cap[b, T-1-s]]
    # tab_f / tab_b have disjoint (fwd / bwd) gate columns with biases folded
    # in, so this single add also folds the backward time reversal: nothing
    # direction-related remains on the serial recurrence path.
    for t in range(T):
        for b in range(Bb):
            v_f = cap_ref[base + b, t]
            v_b = cap_ref[base + b, T - 1 - t]
            xg_scr[t, pl.ds(b, 1), :] = (tabf_ref[pl.ds(v_f, 1), :]
                                         + tabb_ref[pl.ds(v_b, 1), :])

    # ---- interleaved bidirectional recurrence (serial critical path) ------
    # carry layout: h = [h_fwd | h_bwd], c = [c_fwd | c_bwd]   -> (Bb, 2H)
    # per step: one (Bb,2H)@(2H,8H) MXU matmul (block-diagonal W_hh over the
    # two directions) + one 6H-wide sigmoid + one 2H-wide tanh
    # (gate blocks grouped [i | f | o | g], fwd/bwd interleaved inside each).
    whh = whh_ref[...]                 # (2H, 8H)
    h0 = jnp.zeros((Bb, H2), jnp.float32)
    c0 = jnp.zeros((Bb, H2), jnp.float32)

    def step(s, carry):
        h, c = carry
        gates = xg_scr[s] + jnp.dot(h, whh, preferred_element_type=jnp.float32)
        sig = jax.nn.sigmoid(gates[:, :3 * H2])       # [i | f | o]
        i_g = sig[:, :H2]
        f_g = sig[:, H2:2 * H2]
        o_g = sig[:, 2 * H2:]
        g_g = jnp.tanh(gates[:, 3 * H2:])             # [g]
        c = f_g * c + i_g * g_g
        h = o_g * jnp.tanh(c)
        return h, c

    h, _ = jax.lax.fori_loop(0, T, step, (h0, c0), unroll=(T <= 8))
    hn = h                              # == concat(h_fwd, h_bwd)   (Bb, 2H)

    # ---- attention (small R/F: VPU multiply + reduce, no M=1 matmuls) -----
    img = img_ref[...]                                       # (Bb, R, F)
    lin = jnp.maximum(
        jnp.dot(hn, w1_ref[...], preferred_element_type=jnp.float32)
        + b1_ref[...], 0.0)                                  # (Bb, F)

    scores = jnp.sum(img * lin[:, None, :], axis=-1)         # (Bb, R)
    m = jnp.max(scores, axis=-1, keepdims=True)
    e = jnp.exp(scores - m)
    w = e / jnp.sum(e, axis=-1, keepdims=True)               # exact softmax
    att = jnp.sum(img * w[:, :, None], axis=1)               # (Bb, F)

    att2 = jnp.maximum(
        jnp.dot(att, w2_ref[...], preferred_element_type=jnp.float32)
        + b2_ref[...], 0.0)                                  # (Bb, 2H)

    # ---- fusion + final Linear(2H, 1): VPU multiply + lane reduce ---------
    fusion = att2 * hn
    out = jnp.sum(fusion * wfv_ref[...], axis=-1, keepdims=True) + bf_ref[...]
    out_ref[...] = jnp.maximum(out, 0.0)                     # (Bb, 1)


def _fuse_lstm_params(params):
    """Fuse per-direction LSTM weights into MXU-friendly fused blocks.

    Fused 8H column layout (H columns per chunk):
        [ i_f i_b | f_f f_b | o_f o_b | g_f g_b ]
    i.e. gate order i, f, o, g (tanh gate last so one contiguous 6H sigmoid +
    one 2H tanh per step), directions interleaved inside each gate block so
    each 2H gate slice lines up with the [fwd | bwd] carry.  W_hh becomes
    block-diagonal over the two directions (rows [fwd H ; bwd H]).
    """
    wih_f, wih_b = params["wih_f"], params["wih_b"]    # (D, 4H), source i,f,g,o
    whh_f, whh_b = params["whh_f"], params["whh_b"]    # (H, 4H)
    b_f, b_b = params["b_f"], params["b_b"]            # (1, 4H)
    H = whh_f.shape[0]
    z = jnp.zeros((H, H), jnp.float32)

    order = (0, 1, 3, 2)                               # pick i, f, o, g
    wih_cols, b_cols, whh_cols = [], [], []
    for g in order:
        sl = slice(g * H, (g + 1) * H)
        wih_cols += [wih_f[:, sl], wih_b[:, sl]]
        b_cols += [b_f[:, sl], b_b[:, sl]]
        whh_cols += [jnp.concatenate([whh_f[:, sl], z], axis=0),
                     jnp.concatenate([z, whh_b[:, sl]], axis=0)]
    wih_g = jnp.concatenate(wih_cols, axis=1)          # (D, 8H)
    b_g = jnp.concatenate(b_cols, axis=1)              # (1, 8H)
    whh_g = jnp.concatenate(whh_cols, axis=1)          # (2H, 8H)
    return wih_g, whh_g, b_g


def _pick_block_b(B):
    """grid=(1,) on single-TC chips (v5e/v6e); one block per TensorCore on
    v7x.  Small grids avoid the ~0.35us/step overhead and keep the MXU's M
    dimension as full as possible."""
    try:
        kind = jax.devices()[0].device_kind.lower()
    except Exception:
        kind = ""
    two_tc = ("v7" in kind) or ("tpu7" in kind)
    if two_tc and B % 2 == 0 and (B // 2) % 8 == 0:
        return B // 2
    return B


def cider_predictor(image_regions, captions, params, *, block_b=None):
    B, T = captions.shape
    R, F = image_regions.shape[1], image_regions.shape[2]
    H = params["whh_f"].shape[0]
    G = 8 * H
    vocab = params["embedding"].shape[0]

    wih_g, whh_g, b_g = _fuse_lstm_params(params)

    # Fold embedding lookup + input projection into one token->gate table
    # (constant-folded under jit when params are static). Split into disjoint
    # fwd/bwd column halves so the in-kernel direction merge is a plain add.
    table = jnp.dot(params["embedding"].astype(jnp.float32), wih_g,
                    preferred_element_type=jnp.float32) + b_g      # (vocab, 8H)
    fwd_cols = (((jnp.arange(G) // H) % 2) == 0).astype(jnp.float32)[None, :]
    tab_f = table * fwd_cols
    tab_b = table * (1.0 - fwd_cols)

    wfv = params["wf"].T                                           # (1, 2H)

    if block_b is None:
        block_b = _pick_block_b(B)
    assert B % block_b == 0 and (block_b == B or block_b % 8 == 0)
    grid = (B // block_b,)

    # VMEM budget: tables 2*vocab*8H*4B + weights + Bb*R*F*4B (double-buffered)
    # + T*Bb*8H*4B scratch — far under every generation's limit at these sizes;
    # re-budget against v7x's 64 MiB (and raise vmem_limit_bytes) when scaling.
    const = lambda i, cap: (0, 0)   # resident weights: same block every step
    grid_spec = pltpu.PrefetchScalarGridSpec(
        num_scalar_prefetch=1,                    # captions -> SMEM
        grid=grid,
        in_specs=[
            pl.BlockSpec((vocab, G), const),                      # tab_f
            pl.BlockSpec((vocab, G), const),                      # tab_b
            pl.BlockSpec((block_b, R, F), lambda i, cap: (i, 0, 0)),  # regions
            pl.BlockSpec((2 * H, G), const),                      # fused W_hh
            pl.BlockSpec((2 * H, F), const),                      # attention_linear W
            pl.BlockSpec((1, F), const),                          # attention_linear b
            pl.BlockSpec((F, 2 * H), const),                      # attention_layer_2 W
            pl.BlockSpec((1, 2 * H), const),                      # attention_layer_2 b
            pl.BlockSpec((1, 2 * H), const),                      # final_layer W (row)
            pl.BlockSpec((1, 1), const),                          # final_layer b
        ],
        out_specs=pl.BlockSpec((block_b, 1), lambda i, cap: (i, 0)),
        scratch_shapes=[pltpu.VMEM((T, block_b, G), jnp.float32)],
    )
    out = pl.pallas_call(
        _cider_kernel,
        out_shape=jax.ShapeDtypeStruct((B, 1), jnp.float32),
        grid_spec=grid_spec,
        compiler_params=pltpu.CompilerParams(
            dimension_semantics=("parallel",)),   # both TCs on v7x
    )(captions.astype(jnp.int32), tab_f, tab_b, image_regions,
      whh_g, params["w1"], params["b1"], params["w2"], params["b2"],
      wfv, params["bf"])
    return out[:, 0]   # squeeze(-1) -> (B,)


def cider_reference(image_regions, captions, params):
    """Pure-JAX reference with the original (unfused) PyTorch semantics."""
    emb = params["embedding"][captions]                # (B, T, D)
    B, T, _ = emb.shape
    H = params["whh_f"].shape[0]

    def run(wih, whh, b, order):
        h = jnp.zeros((B, H), jnp.float32)
        c = jnp.zeros((B, H), jnp.float32)
        for t in order:
            g = emb[:, t, :] @ wih + h @ whh + b
            i = jax.nn.sigmoid(g[:, :H])
            f = jax.nn.sigmoid(g[:, H:2 * H])
            gg = jnp.tanh(g[:, 2 * H:3 * H])
            o = jax.nn.sigmoid(g[:, 3 * H:])
            c = f * c + i * gg
            h = o * jnp.tanh(c)
        return h

    h_f = run(params["wih_f"], params["whh_f"], params["b_f"], range(T))
    h_b = run(params["wih_b"], params["whh_b"], params["b_b"],
              range(T - 1, -1, -1))
    hn = jnp.concatenate([h_f, h_b], axis=1)           # (B, 2H)
    lin = jax.nn.relu(hn @ params["w1"] + params["b1"])
    scores = jnp.einsum('brf,bf->br', image_regions, lin)
    w = jax.nn.softmax(scores, axis=1)
    att = jnp.einsum('br,brf->bf', w, image_regions)
    att2 = jax.nn.relu(att @ params["w2"] + params["b2"])
    out = jax.nn.relu((att2 * hn) @ params["wf"] + params["bf"])
    return out[:, 0]


def init_params(key, vocab=64, D=32, H=32, F=64):
    # Deterministic synthetic weights (shapes follow the nn.Module __init__,
    # scaled down: embed_dim=lstm_dim=D=H, image_feature_dim=F).
    ks = jax.random.split(key, 13)

    def u(k, shape, scale=0.1):
        return jax.random.uniform(k, shape, jnp.float32, -scale, scale)

    return dict(
        embedding=u(ks[0], (vocab, D)),
        # LSTM weights pre-transposed to (in, 4H); biases b_ih + b_hh folded.
        wih_f=u(ks[1], (D, 4 * H)), whh_f=u(ks[2], (H, 4 * H)),
        b_f=u(ks[3], (1, 4 * H)),
        wih_b=u(ks[4], (D, 4 * H)), whh_b=u(ks[5], (H, 4 * H)),
        b_b=u(ks[6], (1, 4 * H)),
        # attention_linear: Linear(2H, F)
        w1=u(ks[7], (2 * H, F)), b1=u(ks[8], (1, F)),
        # attention_layer_2: Linear(F, 2H)
        w2=u(ks[9], (F, 2 * H)), b2=u(ks[10], (1, 2 * H)),
        # final_layer: Linear(2H, 1)
        wf=u(ks[11], (2 * H, 1)), bf=u(ks[12], (1, 1)),
    )


if __name__ == "__main__":
    key = jax.random.PRNGKey(0)
    k_p, k_cap, k_img = jax.random.split(key, 3)

    B, T, R = 16, 8, 8          # batch, caption length, num image regions
    VOCAB, D, H, F = 64, 32, 32, 64

    params = init_params(k_p, vocab=VOCAB, D=D, H=H, F=F)
    captions = jax.random.randint(k_cap, (B, T), 0, VOCAB, dtype=jnp.int32)
    image_regions = jax.random.normal(k_img, (B, R, F), dtype=jnp.float32)

    fn = jax.jit(lambda img, cap: cider_predictor(img, cap, params))
    out = jax.block_until_ready(fn(image_regions, captions))
    assert out.shape == (B,), out.shape

    # Cross-check against the pure-JAX reference (exact softmax now; tolerance
    # only needs to cover MXU default-precision / summation-order differences).
    ref = cider_reference(image_regions, captions, params)
    np.testing.assert_allclose(np.asarray(out), np.asarray(ref),
                               rtol=2e-3, atol=2e-4)
    print("KERNEL_OK")
</pallas_src>

<mosaic_0001>
module attributes {stable_mosaic.version = 11 : i64} {
  func.func @_cider_kernel(%arg0: i32, %arg1: memref<16x8xi32, #tpu.memory_space<smem>>, %arg2: memref<64x256xf32, #tpu.memory_space<vmem>>, %arg3: memref<64x256xf32, #tpu.memory_space<vmem>>, %arg4: memref<16x8x64xf32, #tpu.memory_space<vmem>>, %arg5: memref<64x256xf32, #tpu.memory_space<vmem>>, %arg6: memref<64x64xf32, #tpu.memory_space<vmem>>, %arg7: memref<1x64xf32, #tpu.memory_space<vmem>>, %arg8: memref<64x64xf32, #tpu.memory_space<vmem>>, %arg9: memref<1x64xf32, #tpu.memory_space<vmem>>, %arg10: memref<1x64xf32, #tpu.memory_space<vmem>>, %arg11: memref<1x1xf32, #tpu.memory_space<vmem>>, %arg12: memref<16x1xf32, #tpu.memory_space<vmem>>, %arg13: memref<8x16x256xf32, #tpu.memory_space<vmem>>) attributes {dimension_semantics = [#tpu.dimension_semantics<parallel>], iteration_bounds = array<i64: 1>, scalar_prefetch = 1 : i64, scratch_operands = 1 : i64, tpu.core_type = #tpu.core_type<tc>, window_params = [{pipeline_mode = #tpu.pipeline_mode<synchronous>, transform_indices = @transform_0, window_bounds = array<i64: 64, 256>}, {pipeline_mode = #tpu.pipeline_mode<synchronous>, transform_indices = @transform_1, window_bounds = array<i64: 64, 256>}, {transform_indices = @transform_2, window_bounds = array<i64: 16, 8, 64>}, {pipeline_mode = #tpu.pipeline_mode<synchronous>, transform_indices = @transform_3, window_bounds = array<i64: 64, 256>}, {pipeline_mode = #tpu.pipeline_mode<synchronous>, transform_indices = @transform_4, window_bounds = array<i64: 64, 64>}, {pipeline_mode = #tpu.pipeline_mode<synchronous>, transform_indices = @transform_5, window_bounds = array<i64: 1, 64>}, {pipeline_mode = #tpu.pipeline_mode<synchronous>, transform_indices = @transform_6, window_bounds = array<i64: 64, 64>}, {pipeline_mode = #tpu.pipeline_mode<synchronous>, transform_indices = @transform_7, window_bounds = array<i64: 1, 64>}, {pipeline_mode = #tpu.pipeline_mode<synchronous>, transform_indices = @transform_8, window_bounds = array<i64: 1, 64>}, {pipeline_mode = #tpu.pipeline_mode<synchronous>, transform_indices = @transform_9, window_bounds = array<i64: 1, 1>}, {transform_indices = @transform_10, window_bounds = array<i64: 16, 1>}]} {
    %c16_i32 = arith.constant 16 : i32
    %0 = arith.muli %arg0, %c16_i32 : i32
    %c0_i32 = arith.constant 0 : i32
    %1 = arith.addi %0, %c0_i32 : i32
    %2 = arith.index_cast %1 : i32 to index
    %c0 = arith.constant 0 : index
    %3 = memref.load %arg1[%2, %c0] : memref<16x8xi32, #tpu.memory_space<smem>>
    %c0_i32_0 = arith.constant 0 : i32
    %4 = arith.addi %0, %c0_i32_0 : i32
    %5 = arith.index_cast %4 : i32 to index
    %c7 = arith.constant 7 : index
    %6 = memref.load %arg1[%5, %c7] : memref<16x8xi32, #tpu.memory_space<smem>>
    %7 = arith.index_cast %3 : i32 to index
    %c0_1 = arith.constant 0 : index
    %8 = vector.load %arg2[%7, %c0_1] : memref<64x256xf32, #tpu.memory_space<vmem>>, vector<1x256xf32>
    %9 = arith.index_cast %6 : i32 to index
    %c0_2 = arith.constant 0 : index
    %10 = vector.load %arg3[%9, %c0_2] : memref<64x256xf32, #tpu.memory_space<vmem>>, vector<1x256xf32>
    %11 = arith.addf %8, %10 : vector<1x256xf32>
    %c0_3 = arith.constant 0 : index
    %c0_4 = arith.constant 0 : index
    %c0_5 = arith.constant 0 : index
    %12 = vector.load %arg13[%c0_3, %c0_4, %c0_5] : memref<8x16x256xf32, #tpu.memory_space<vmem>>, vector<1x1x256xf32>
    %13 = vector.shape_cast %12 : vector<1x1x256xf32> to vector<1x256xf32>
    %14 = vector.shape_cast %11 : vector<1x256xf32> to vector<1x1x256xf32>
    tpu.vector_store %arg13[%c0_3, %c0_4, %c0_5], %14 {strides = array<i32>} : memref<8x16x256xf32, #tpu.memory_space<vmem>>, vector<1x1x256xf32>,
    %c1_i32 = arith.constant 1 : i32
    %15 = arith.addi %0, %c1_i32 : i32
    %16 = arith.index_cast %15 : i32 to index
    %c0_6 = arith.constant 0 : index
    %17 = memref.load %arg1[%16, %c0_6] : memref<16x8xi32, #tpu.memory_space<smem>>
    %c1_i32_7 = arith.constant 1 : i32
    %18 = arith.addi %0, %c1_i32_7 : i32
    %19 = arith.index_cast %18 : i32 to index
    %c7_8 = arith.constant 7 : index
    %20 = memref.load %arg1[%19, %c7_8] : memref<16x8xi32, #tpu.memory_space<smem>>
    %21 = arith.index_cast %17 : i32 to index
    %c0_9 = arith.constant 0 : index
    %22 = vector.load %arg2[%21, %c0_9] : memref<64x256xf32, #tpu.memory_space<vmem>>, vector<1x256xf32>
    %23 = arith.index_cast %20 : i32 to index
    %c0_10 = arith.constant 0 : index
    %24 = vector.load %arg3[%23, %c0_10] : memref<64x256xf32, #tpu.memory_space<vmem>>, vector<1x256xf32>
    %25 = arith.addf %22, %24 : vector<1x256xf32>
    %c0_11 = arith.constant 0 : index
    %c1 = arith.constant 1 : index
    %c0_12 = arith.constant 0 : index
    %26 = vector.load %arg13[%c0_11, %c1, %c0_12] : memref<8x16x256xf32, #tpu.memory_space<vmem>>, vector<1x1x256xf32>
    %27 = vector.shape_cast %26 : vector<1x1x256xf32> to vector<1x256xf32>
    %28 = vector.shape_cast %25 : vector<1x256xf32> to vector<1x1x256xf32>
    tpu.vector_store %arg13[%c0_11, %c1, %c0_12], %28 {strides = array<i32>} : memref<8x16x256xf32, #tpu.memory_space<vmem>>, vector<1x1x256xf32>,
    %c2_i32 = arith.constant 2 : i32
    %29 = arith.addi %0, %c2_i32 : i32
    %30 = arith.index_cast %29 : i32 to index
    %c0_13 = arith.constant 0 : index
    %31 = memref.load %arg1[%30, %c0_13] : memref<16x8xi32, #tpu.memory_space<smem>>
    %c2_i32_14 = arith.constant 2 : i32
    %32 = arith.addi %0, %c2_i32_14 : i32
    %33 = arith.index_cast %32 : i32 to index
    %c7_15 = arith.constant 7 : index
    %34 = memref.load %arg1[%33, %c7_15] : memref<16x8xi32, #tpu.memory_space<smem>>
    %35 = arith.index_cast %31 : i32 to index
    %c0_16 = arith.constant 0 : index
    %36 = vector.load %arg2[%35, %c0_16] : memref<64x256xf32, #tpu.memory_space<vmem>>, vector<1x256xf32>
    %37 = arith.index_cast %34 : i32 to index
    %c0_17 = arith.constant 0 : index
    %38 = vector.load %arg3[%37, %c0_17] : memref<64x256xf32, #tpu.memory_space<vmem>>, vector<1x256xf32>
    %39 = arith.addf %36, %38 : vector<1x256xf32>
    %c0_18 = arith.constant 0 : index
    %c2 = arith.constant 2 : index
    %c0_19 = arith.constant 0 : index
    %40 = vector.load %arg13[%c0_18, %c2, %c0_19] : memref<8x16x256xf32, #tpu.memory_space<vmem>>, vector<1x1x256xf32>
    %41 = vector.shape_cast %40 : vector<1x1x256xf32> to vector<1x256xf32>
    %42 = vector.shape_cast %39 : vector<1x256xf32> to vector<1x1x256xf32>
    tpu.vector_store %arg13[%c0_18, %c2, %c0_19], %42 {strides = array<i32>} : memref<8x16x256xf32, #tpu.memory_space<vmem>>, vector<1x1x256xf32>,
    %c3_i32 = arith.constant 3 : i32
    %43 = arith.addi %0, %c3_i32 : i32
    %44 = arith.index_cast %43 : i32 to index
    %c0_20 = arith.constant 0 : index
    %45 = memref.load %arg1[%44, %c0_20] : memref<16x8xi32, #tpu.memory_space<smem>>
    %c3_i32_21 = arith.constant 3 : i32
    %46 = arith.addi %0, %c3_i32_21 : i32
    %47 = arith.index_cast %46 : i32 to index
    %c7_22 = arith.constant 7 : index
    %48 = memref.load %arg1[%47, %c7_22] : memref<16x8xi32, #tpu.memory_space<smem>>
    %49 = arith.index_cast %45 : i32 to index
    %c0_23 = arith.constant 0 : index
    %50 = vector.load %arg2[%49, %c0_23] : memref<64x256xf32, #tpu.memory_space<vmem>>, vector<1x256xf32>
    %51 = arith.index_cast %48 : i32 to index
    %c0_24 = arith.constant 0 : index
    %52 = vector.load %arg3[%51, %c0_24] : memref<64x256xf32, #tpu.memory_space<vmem>>, vector<1x256xf32>
    %53 = arith.addf %50, %52 : vector<1x256xf32>
    %c0_25 = arith.constant 0 : index
    %c3 = arith.constant 3 : index
    %c0_26 = arith.constant 0 : index
    %54 = vector.load %arg13[%c0_25, %c3, %c0_26] : memref<8x16x256xf32, #tpu.memory_space<vmem>>, vector<1x1x256xf32>
    %55 = vector.shape_cast %54 : vector<1x1x256xf32> to vector<1x256xf32>
    %56 = vector.shape_cast %53 : vector<1x256xf32> to vector<1x1x256xf32>
    tpu.vector_store %arg13[%c0_25, %c3, %c0_26], %56 {strides = array<i32>} : memref<8x16x256xf32, #tpu.memory_space<vmem>>, vector<1x1x256xf32>,
    %c4_i32 = arith.constant 4 : i32
    %57 = arith.addi %0, %c4_i32 : i32
    %58 = arith.index_cast %57 : i32 to index
    %c0_27 = arith.constant 0 : index
    %59 = memref.load %arg1[%58, %c0_27] : memref<16x8xi32, #tpu.memory_space<smem>>
    %c4_i32_28 = arith.constant 4 : i32
    %60 = arith.addi %0, %c4_i32_28 : i32
    %61 = arith.index_cast %60 : i32 to index
    %c7_29 = arith.constant 7 : index
    %62 = memref.load %arg1[%61, %c7_29] : memref<16x8xi32, #tpu.memory_space<smem>>
    %63 = arith.index_cast %59 : i32 to index
    %c0_30 = arith.constant 0 : index
    %64 = vector.load %arg2[%63, %c0_30] : memref<64x256xf32, #tpu.memory_space<vmem>>, vector<1x256xf32>
    %65 = arith.index_cast %62 : i32 to index
    %c0_31 = arith.constant 0 : index
    %66 = vector.load %arg3[%65, %c0_31] : memref<64x256xf32, #tpu.memory_space<vmem>>, vector<1x256xf32>
    %67 = arith.addf %64, %66 : vector<1x256xf32>
    %c0_32 = arith.constant 0 : index
    %c4 = arith.constant 4 : index
    %c0_33 = arith.constant 0 : index
    %68 = vector.load %arg13[%c0_32, %c4, %c0_33] : memref<8x16x256xf32, #tpu.memory_space<vmem>>, vector<1x1x256xf32>
    %69 = vector.shape_cast %68 : vector<1x1x256xf32> to vector<1x256xf32>
    %70 = vector.shape_cast %67 : vector<1x256xf32> to vector<1x1x256xf32>
    tpu.vector_store %arg13[%c0_32, %c4, %c0_33], %70 {strides = array<i32>} : memref<8x16x256xf32, #tpu.memory_space<vmem>>, vector<1x1x256xf32>,
    %c5_i32 = arith.constant 5 : i32
    %71 = arith.addi %0, %c5_i32 : i32
    %72 = arith.index_cast %71 : i32 to index
    %c0_34 = arith.constant 0 : index
    %73 = memref.load %arg1[%72, %c0_34] : memref<16x8xi32, #tpu.memory_space<smem>>
    %c5_i32_35 = arith.constant 5 : i32
    %74 = arith.addi %0, %c5_i32_35 : i32
    %75 = arith.index_cast %74 : i32 to index
    %c7_36 = arith.constant 7 : index
    %76 = memref.load %arg1[%75, %c7_36] : memref<16x8xi32, #tpu.memory_space<smem>>
    %77 = arith.index_cast %73 : i32 to index
    %c0_37 = arith.constant 0 : index
    %78 = vector.load %arg2[%77, %c0_37] : memref<64x256xf32, #tpu.memory_space<vmem>>, vector<1x256xf32>
    %79 = arith.index_cast %76 : i32 to index
    %c0_38 = arith.constant 0 : index
    %80 = vector.load %arg3[%79, %c0_38] : memref<64x256xf32, #tpu.memory_space<vmem>>, vector<1x256xf32>
    %81 = arith.addf %78, %80 : vector<1x256xf32>
    %c0_39 = arith.constant 0 : index
    %c5 = arith.constant 5 : index
    %c0_40 = arith.constant 0 : index
    %82 = vector.load %arg13[%c0_39, %c5, %c0_40] : memref<8x16x256xf32, #tpu.memory_space<vmem>>, vector<1x1x256xf32>
    %83 = vector.shape_cast %82 : vector<1x1x256xf32> to vector<1x256xf32>
    %84 = vector.shape_cast %81 : vector<1x256xf32> to vector<1x1x256xf32>
    tpu.vector_store %arg13[%c0_39, %c5, %c0_40], %84 {strides = array<i32>} : memref<8x16x256xf32, #tpu.memory_space<vmem>>, vector<1x1x256xf32>,
    %c6_i32 = arith.constant 6 : i32
    %85 = arith.addi %0, %c6_i32 : i32
    %86 = arith.index_cast %85 : i32 to index
    %c0_41 = arith.constant 0 : index
    %87 = memref.load %arg1[%86, %c0_41] : memref<16x8xi32, #tpu.memory_space<smem>>
    %c6_i32_42 = arith.constant 6 : i32
    %88 = arith.addi %0, %c6_i32_42 : i32
    %89 = arith.index_cast %88 : i32 to index
    %c7_43 = arith.constant 7 : index
    %90 = memref.load %arg1[%89, %c7_43] : memref<16x8xi32, #tpu.memory_space<smem>>
    %91 = arith.index_cast %87 : i32 to index
    %c0_44 = arith.constant 0 : index
    %92 = vector.load %arg2[%91, %c0_44] : memref<64x256xf32, #tpu.memory_space<vmem>>, vector<1x256xf32>
    %93 = arith.index_cast %90 : i32 to index
    %c0_45 = arith.constant 0 : index
    %94 = vector.load %arg3[%93, %c0_45] : memref<64x256xf32, #tpu.memory_space<vmem>>, vector<1x256xf32>
    %95 = arith.addf %92, %94 : vector<1x256xf32>
    %c0_46 = arith.constant 0 : index
    %c6 = arith.constant 6 : index
    %c0_47 = arith.constant 0 : index
    %96 = vector.load %arg13[%c0_46, %c6, %c0_47] : memref<8x16x256xf32, #tpu.memory_space<vmem>>, vector<1x1x256xf32>
    %97 = vector.shape_cast %96 : vector<1x1x256xf32> to vector<1x256xf32>
    %98 = vector.shape_cast %95 : vector<1x256xf32> to vector<1x1x256xf32>
    tpu.vector_store %arg13[%c0_46, %c6, %c0_47], %98 {strides = array<i32>} : memref<8x16x256xf32, #tpu.memory_space<vmem>>, vector<1x1x256xf32>,
    %c7_i32 = arith.constant 7 : i32
    %99 = arith.addi %0, %c7_i32 : i32
    %100 = arith.index_cast %99 : i32 to index
    %c0_48 = arith.constant 0 : index
    %101 = memref.load %arg1[%100, %c0_48] : memref<16x8xi32, #tpu.memory_space<smem>>
    %c7_i32_49 = arith.constant 7 : i32
    %102 = arith.addi %0, %c7_i32_49 : i32
    %103 = arith.index_cast %102 : i32 to index
    %c7_50 = arith.constant 7 : index
    %104 = memref.load %arg1[%103, %c7_50] : memref<16x8xi32, #tpu.memory_space<smem>>
    %105 = arith.index_cast %101 : i32 to index
    %c0_51 = arith.constant 0 : index
    %106 = vector.load %arg2[%105, %c0_51] : memref<64x256xf32, #tpu.memory_space<vmem>>, vector<1x256xf32>
    %107 = arith.index_cast %104 : i32 to index
    %c0_52 = arith.constant 0 : index
    %108 = vector.load %arg3[%107, %c0_52] : memref<64x256xf32, #tpu.memory_space<vmem>>, vector<1x256xf32>
    %109 = arith.addf %106, %108 : vector<1x256xf32>
    %c0_53 = arith.constant 0 : index
    %c7_54 = arith.constant 7 : index
    %c0_55 = arith.constant 0 : index
    %110 = vector.load %arg13[%c0_53, %c7_54, %c0_55] : memref<8x16x256xf32, #tpu.memory_space<vmem>>, vector<1x1x256xf32>
    %111 = vector.shape_cast %110 : vector<1x1x256xf32> to vector<1x256xf32>
    %112 = vector.shape_cast %109 : vector<1x256xf32> to vector<1x1x256xf32>
    tpu.vector_store %arg13[%c0_53, %c7_54, %c0_55], %112 {strides = array<i32>} : memref<8x16x256xf32, #tpu.memory_space<vmem>>, vector<1x1x256xf32>,
    %c8_i32 = arith.constant 8 : i32
    %113 = arith.addi %0, %c8_i32 : i32
    %114 = arith.index_cast %113 : i32 to index
    %c0_56 = arith.constant 0 : index
    %115 = memref.load %arg1[%114, %c0_56] : memref<16x8xi32, #tpu.memory_space<smem>>
    %c8_i32_57 = arith.constant 8 : i32
    %116 = arith.addi %0, %c8_i32_57 : i32
    %117 = arith.index_cast %116 : i32 to index
    %c7_58 = arith.constant 7 : index
    %118 = memref.load %arg1[%117, %c7_58] : memref<16x8xi32, #tpu.memory_space<smem>>
    %119 = arith.index_cast %115 : i32 to index
    %c0_59 = arith.constant 0 : index
    %120 = vector.load %arg2[%119, %c0_59] : memref<64x256xf32, #tpu.memory_space<vmem>>, vector<1x256xf32>
    %121 = arith.index_cast %118 : i32 to index
    %c0_60 = arith.constant 0 : index
    %122 = vector.load %arg3[%121, %c0_60] : memref<64x256xf32, #tpu.memory_space<vmem>>, vector<1x256xf32>
    %123 = arith.addf %120, %122 : vector<1x256xf32>
    %c0_61 = arith.constant 0 : index
    %c8 = arith.constant 8 : index
    %c0_62 = arith.constant 0 : index
    %124 = vector.load %arg13[%c0_61, %c8, %c0_62] : memref<8x16x256xf32, #tpu.memory_space<vmem>>, vector<1x1x256xf32>
    %125 = vector.shape_cast %124 : vector<1x1x256xf32> to vector<1x256xf32>
    %126 = vector.shape_cast %123 : vector<1x256xf32> to vector<1x1x256xf32>
    tpu.vector_store %arg13[%c0_61, %c8, %c0_62], %126 {strides = array<i32>} : memref<8x16x256xf32, #tpu.memory_space<vmem>>, vector<1x1x256xf32>,
    %c9_i32 = arith.constant 9 : i32
    %127 = arith.addi %0, %c9_i32 : i32
    %128 = arith.index_cast %127 : i32 to index
    %c0_63 = arith.constant 0 : index
    %129 = memref.load %arg1[%128, %c0_63] : memref<16x8xi32, #tpu.memory_space<smem>>
    %c9_i32_64 = arith.constant 9 : i32
    %130 = arith.addi %0, %c9_i32_64 : i32
    %131 = arith.index_cast %130 : i32 to index
    %c7_65 = arith.constant 7 : index
    %132 = memref.load %arg1[%131, %c7_65] : memref<16x8xi32, #tpu.memory_space<smem>>
    %133 = arith.index_cast %129 : i32 to index
    %c0_66 = arith.constant 0 : index
    %134 = vector.load %arg2[%133, %c0_66] : memref<64x256xf32, #tpu.memory_space<vmem>>, vector<1x256xf32>
    %135 = arith.index_cast %132 : i32 to index
    %c0_67 = arith.constant 0 : index
    %136 = vector.load %arg3[%135, %c0_67] : memref<64x256xf32, #tpu.memory_space<vmem>>, vector<1x256xf32>
    %137 = arith.addf %134, %136 : vector<1x256xf32>
    %c0_68 = arith.constant 0 : index
    %c9 = arith.constant 9 : index
    %c0_69 = arith.constant 0 : index
    %138 = vector.load %arg13[%c0_68, %c9, %c0_69] : memref<8x16x256xf32, #tpu.memory_space<vmem>>, vector<1x1x256xf32>
    %139 = vector.shape_cast %138 : vector<1x1x256xf32> to vector<1x256xf32>
    %140 = vector.shape_cast %137 : vector<1x256xf32> to vector<1x1x256xf32>
    tpu.vector_store %arg13[%c0_68, %c9, %c0_69], %140 {strides = array<i32>} : memref<8x16x256xf32, #tpu.memory_space<vmem>>, vector<1x1x256xf32>,
    %c10_i32 = arith.constant 10 : i32
    %141 = arith.addi %0, %c10_i32 : i32
    %142 = arith.index_cast %141 : i32 to index
    %c0_70 = arith.constant 0 : index
    %143 = memref.load %arg1[%142, %c0_70] : memref<16x8xi32, #tpu.memory_space<smem>>
    %c10_i32_71 = arith.constant 10 : i32
    %144 = arith.addi %0, %c10_i32_71 : i32
    %145 = arith.index_cast %144 : i32 to index
    %c7_72 = arith.constant 7 : index
    %146 = memref.load %arg1[%145, %c7_72] : memref<16x8xi32, #tpu.memory_space<smem>>
    %147 = arith.index_cast %143 : i32 to index
    %c0_73 = arith.constant 0 : index
    %148 = vector.load %arg2[%147, %c0_73] : memref<64x256xf32, #tpu.memory_space<vmem>>, vector<1x256xf32>
    %149 = arith.index_cast %146 : i32 to index
    %c0_74 = arith.constant 0 : index
    %150 = vector.load %arg3[%149, %c0_74] : memref<64x256xf32, #tpu.memory_space<vmem>>, vector<1x256xf32>
    %151 = arith.addf %148, %150 : vector<1x256xf32>
    %c0_75 = arith.constant 0 : index
    %c10 = arith.constant 10 : index
    %c0_76 = arith.constant 0 : index
    %152 = vector.load %arg13[%c0_75, %c10, %c0_76] : memref<8x16x256xf32, #tpu.memory_space<vmem>>, vector<1x1x256xf32>
    %153 = vector.shape_cast %152 : vector<1x1x256xf32> to vector<1x256xf32>
    %154 = vector.shape_cast %151 : vector<1x256xf32> to vector<1x1x256xf32>
    tpu.vector_store %arg13[%c0_75, %c10, %c0_76], %154 {strides = array<i32>} : memref<8x16x256xf32, #tpu.memory_space<vmem>>, vector<1x1x256xf32>,
    %c11_i32 = arith.constant 11 : i32
    %155 = arith.addi %0, %c11_i32 : i32
    %156 = arith.index_cast %155 : i32 to index
    %c0_77 = arith.constant 0 : index
    %157 = memref.load %arg1[%156, %c0_77] : memref<16x8xi32, #tpu.memory_space<smem>>
    %c11_i32_78 = arith.constant 11 : i32
    %158 = arith.addi %0, %c11_i32_78 : i32
    %159 = arith.index_cast %158 : i32 to index
    %c7_79 = arith.constant 7 : index
    %160 = memref.load %arg1[%159, %c7_79] : memref<16x8xi32, #tpu.memory_space<smem>>
    %161 = arith.index_cast %157 : i32 to index
    %c0_80 = arith.constant 0 : index
    %162 = vector.load %arg2[%161, %c0_80] : memref<64x256xf32, #tpu.memory_space<vmem>>, vector<1x256xf32>
    %163 = arith.index_cast %160 : i32 to index
    %c0_81 = arith.constant 0 : index
    %164 = vector.load %arg3[%163, %c0_81] : memref<64x256xf32, #tpu.memory_space<vmem>>, vector<1x256xf32>
    %165 = arith.addf %162, %164 : vector<1x256xf32>
    %c0_82 = arith.constant 0 : index
    %c11 = arith.constant 11 : index
    %c0_83 = arith.constant 0 : index
    %166 = vector.load %arg13[%c0_82, %c11, %c0_83] : memref<8x16x256xf32, #tpu.memory_space<vmem>>, vector<1x1x256xf32>
    %167 = vector.shape_cast %166 : vector<1x1x256xf32> to vector<1x256xf32>
    %168 = vector.shape_cast %165 : vector<1x256xf32> to vector<1x1x256xf32>
    tpu.vector_store %arg13[%c0_82, %c11, %c0_83], %168 {strides = array<i32>} : memref<8x16x256xf32, #tpu.memory_space<vmem>>, vector<1x1x256xf32>,
    %c12_i32 = arith.constant 12 : i32
    %169 = arith.addi %0, %c12_i32 : i32
    %170 = arith.index_cast %169 : i32 to index
    %c0_84 = arith.constant 0 : index
    %171 = memref.load %arg1[%170, %c0_84] : memref<16x8xi32, #tpu.memory_space<smem>>
    %c12_i32_85 = arith.constant 12 : i32
    %172 = arith.addi %0, %c12_i32_85 : i32
    %173 = arith.index_cast %172 : i32 to index
    %c7_86 = arith.constant 7 : index
    %174 = memref.load %arg1[%173, %c7_86] : memref<16x8xi32, #tpu.memory_space<smem>>
    %175 = arith.index_cast %171 : i32 to index
    %c0_87 = arith.constant 0 : index
    %176 = vector.load %arg2[%175, %c0_87] : memref<64x256xf32, #tpu.memory_space<vmem>>, vector<1x256xf32>
    %177 = arith.index_cast %174 : i32 to index
    %c0_88 = arith.constant 0 : index
    %178 = vector.load %arg3[%177, %c0_88] : memref<64x256xf32, #tpu.memory_space<vmem>>, vector<1x256xf32>
    %179 = arith.addf %176, %178 : vector<1x256xf32>
    %c0_89 = arith.constant 0 : index
    %c12 = arith.constant 12 : index
    %c0_90 = arith.constant 0 : index
    %180 = vector.load %arg13[%c0_89, %c12, %c0_90] : memref<8x16x256xf32, #tpu.memory_space<vmem>>, vector<1x1x256xf32>
    %181 = vector.shape_cast %180 : vector<1x1x256xf32> to vector<1x256xf32>
    %182 = vector.shape_cast %179 : vector<1x256xf32> to vector<1x1x256xf32>
    tpu.vector_store %arg13[%c0_89, %c12, %c0_90], %182 {strides = array<i32>} : memref<8x16x256xf32, #tpu.memory_space<vmem>>, vector<1x1x256xf32>,
    %c13_i32 = arith.constant 13 : i32
    %183 = arith.addi %0, %c13_i32 : i32
    %184 = arith.index_cast %183 : i32 to index
    %c0_91 = arith.constant 0 : index
    %185 = memref.load %arg1[%184, %c0_91] : memref<16x8xi32, #tpu.memory_space<smem>>
    %c13_i32_92 = arith.constant 13 : i32
    %186 = arith.addi %0, %c13_i32_92 : i32
    %187 = arith.index_cast %186 : i32 to index
    %c7_93 = arith.constant 7 : index
    %188 = memref.load %arg1[%187, %c7_93] : memref<16x8xi32, #tpu.memory_space<smem>>
    %189 = arith.index_cast %185 : i32 to index
    %c0_94 = arith.constant 0 : index
    %190 = vector.load %arg2[%189, %c0_94] : memref<64x256xf32, #tpu.memory_space<vmem>>, vector<1x256xf32>
    %191 = arith.index_cast %188 : i32 to index
    %c0_95 = arith.constant 0 : index
    %192 = vector.load %arg3[%191, %c0_95] : memref<64x256xf32, #tpu.memory_space<vmem>>, vector<1x256xf32>
    %193 = arith.addf %190, %192 : vector<1x256xf32>
    %c0_96 = arith.constant 0 : index
    %c13 = arith.constant 13 : index
    %c0_97 = arith.constant 0 : index
    %194 = vector.load %arg13[%c0_96, %c13, %c0_97] : memref<8x16x256xf32, #tpu.memory_space<vmem>>, vector<1x1x256xf32>
    %195 = vector.shape_cast %194 : vector<1x1x256xf32> to vector<1x256xf32>
    %196 = vector.shape_cast %193 : vector<1x256xf32> to vector<1x1x256xf32>
    tpu.vector_store %arg13[%c0_96, %c13, %c0_97], %196 {strides = array<i32>} : memref<8x16x256xf32, #tpu.memory_space<vmem>>, vector<1x1x256xf32>,
    %c14_i32 = arith.constant 14 : i32
    %197 = arith.addi %0, %c14_i32 : i32
    %198 = arith.index_cast %197 : i32 to index
    %c0_98 = arith.constant 0 : index
    %199 = memref.load %arg1[%198, %c0_98] : memref<16x8xi32, #tpu.memory_space<smem>>
    %c14_i32_99 = arith.constant 14 : i32
    %200 = arith.addi %0, %c14_i32_99 : i32
    %201 = arith.index_cast %200 : i32 to index
    %c7_100 = arith.constant 7 : index
    %202 = memref.load %arg1[%201, %c7_100] : memref<16x8xi32, #tpu.memory_space<smem>>
    %203 = arith.index_cast %199 : i32 to index
    %c0_101 = arith.constant 0 : index
    %204 = vector.load %arg2[%203, %c0_101] : memref<64x256xf32, #tpu.memory_space<vmem>>, vector<1x256xf32>
    %205 = arith.index_cast %202 : i32 to index
    %c0_102 = arith.constant 0 : index
    %206 = vector.load %arg3[%205, %c0_102] : memref<64x256xf32, #tpu.memory_space<vmem>>, vector<1x256xf32>
    %207 = arith.addf %204, %206 : vector<1x256xf32>
    %c0_103 = arith.constant 0 : index
    %c14 = arith.constant 14 : index
    %c0_104 = arith.constant 0 : index
    %208 = vector.load %arg13[%c0_103, %c14, %c0_104] : memref<8x16x256xf32, #tpu.memory_space<vmem>>, vector<1x1x256xf32>
    %209 = vector.shape_cast %208 : vector<1x1x256xf32> to vector<1x256xf32>
    %210 = vector.shape_cast %207 : vector<1x256xf32> to vector<1x1x256xf32>
    tpu.vector_store %arg13[%c0_103, %c14, %c0_104], %210 {strides = array<i32>} : memref<8x16x256xf32, #tpu.memory_space<vmem>>, vector<1x1x256xf32>,
    %c15_i32 = arith.constant 15 : i32
    %211 = arith.addi %0, %c15_i32 : i32
    %212 = arith.index_cast %211 : i32 to index
    %c0_105 = arith.constant 0 : index
    %213 = memref.load %arg1[%212, %c0_105] : memref<16x8xi32, #tpu.memory_space<smem>>
    %c15_i32_106 = arith.constant 15 : i32
    %214 = arith.addi %0, %c15_i32_106 : i32
    %215 = arith.index_cast %214 : i32 to index
    %c7_107 = arith.constant 7 : index
    %216 = memref.load %arg1[%215, %c7_107] : memref<16x8xi32, #tpu.memory_space<smem>>
    %217 = arith.index_cast %213 : i32 to index
    %c0_108 = arith.constant 0 : index
    %218 = vector.load %arg2[%217, %c0_108] : memref<64x256xf32, #tpu.memory_space<vmem>>, vector<1x256xf32>
    %219 = arith.index_cast %216 : i32 to index
    %c0_109 = arith.constant 0 : index
    %220 = vector.load %arg3[%219, %c0_109] : memref<64x256xf32, #tpu.memory_space<vmem>>, vector<1x256xf32>
    %221 = arith.addf %218, %220 : vector<1x256xf32>
    %c0_110 = arith.constant 0 : index
    %c15 = arith.constant 15 : index
    %c0_111 = arith.constant 0 : index
    %222 = vector.load %arg13[%c0_110, %c15, %c0_111] : memref<8x16x256xf32, #tpu.memory_space<vmem>>, vector<1x1x256xf32>
    %223 = vector.shape_cast %222 : vector<1x1x256xf32> to vector<1x256xf32>
    %224 = vector.shape_cast %221 : vector<1x256xf32> to vector<1x1x256xf32>
    tpu.vector_store %arg13[%c0_110, %c15, %c0_111], %224 {strides = array<i32>} : memref<8x16x256xf32, #tpu.memory_space<vmem>>, vector<1x1x256xf32>,
    %c0_i32_112 = arith.constant 0 : i32
    %225 = arith.addi %0, %c0_i32_112 : i32
    %226 = arith.index_cast %225 : i32 to index
    %c1_113 = arith.constant 1 : index
    %227 = memref.load %arg1[%226, %c1_113] : memref<16x8xi32, #tpu.memory_space<smem>>
    %c0_i32_114 = arith.constant 0 : i32
    %228 = arith.addi %0, %c0_i32_114 : i32
    %229 = arith.index_cast %228 : i32 to index
    %c6_115 = arith.constant 6 : index
    %230 = memref.load %arg1[%229, %c6_115] : memref<16x8xi32, #tpu.memory_space<smem>>
    %231 = arith.index_cast %227 : i32 to index
    %c0_116 = arith.constant 0 : index
    %232 = vector.load %arg2[%231, %c0_116] : memref<64x256xf32, #tpu.memory_space<vmem>>, vector<1x256xf32>
    %233 = arith.index_cast %230 : i32 to index
    %c0_117 = arith.constant 0 : index
    %234 = vector.load %arg3[%233, %c0_117] : memref<64x256xf32, #tpu.memory_space<vmem>>, vector<1x256xf32>
    %235 = arith.addf %232, %234 : vector<1x256xf32>
    %c1_118 = arith.constant 1 : index
    %c0_119 = arith.constant 0 : index
    %c0_120 = arith.constant 0 : index
    %236 = vector.load %arg13[%c1_118, %c0_119, %c0_120] : memref<8x16x256xf32, #tpu.memory_space<vmem>>, vector<1x1x256xf32>
    %237 = vector.shape_cast %236 : vector<1x1x256xf32> to vector<1x256xf32>
    %238 = vector.shape_cast %235 : vector<1x256xf32> to vector<1x1x256xf32>
    tpu.vector_store %arg13[%c1_118, %c0_119, %c0_120], %238 {strides = array<i32>} : memref<8x16x256xf32, #tpu.memory_space<vmem>>, vector<1x1x256xf32>,
    %c1_i32_121 = arith.constant 1 : i32
    %239 = arith.addi %0, %c1_i32_121 : i32
    %240 = arith.index_cast %239 : i32 to index
    %c1_122 = arith.constant 1 : index
    %241 = memref.load %arg1[%240, %c1_122] : memref<16x8xi32, #tpu.memory_space<smem>>
    %c1_i32_123 = arith.constant 1 : i32
    %242 = arith.addi %0, %c1_i32_123 : i32
    %243 = arith.index_cast %242 : i32 to index
    %c6_124 = arith.constant 6 : index
    %244 = memref.load %arg1[%243, %c6_124] : memref<16x8xi32, #tpu.memory_space<smem>>
    %245 = arith.index_cast %241 : i32 to index
    %c0_125 = arith.constant 0 : index
    %246 = vector.load %arg2[%245, %c0_125] : memref<64x256xf32, #tpu.memory_space<vmem>>, vector<1x256xf32>
    %247 = arith.index_cast %244 : i32 to index
    %c0_126 = arith.constant 0 : index
    %248 = vector.load %arg3[%247, %c0_126] : memref<64x256xf32, #tpu.memory_space<vmem>>, vector<1x256xf32>
    %249 = arith.addf %246, %248 : vector<1x256xf32>
    %c1_127 = arith.constant 1 : index
    %c1_128 = arith.constant 1 : index
    %c0_129 = arith.constant 0 : index
    %250 = vector.load %arg13[%c1_127, %c1_128, %c0_129] : memref<8x16x256xf32, #tpu.memory_space<vmem>>, vector<1x1x256xf32>
    %251 = vector.shape_cast %250 : vector<1x1x256xf32> to vector<1x256xf32>
    %252 = vector.shape_cast %249 : vector<1x256xf32> to vector<1x1x256xf32>
    tpu.vector_store %arg13[%c1_127, %c1_128, %c0_129], %252 {strides = array<i32>} : memref<8x16x256xf32, #tpu.memory_space<vmem>>, vector<1x1x256xf32>,
    %c2_i32_130 = arith.constant 2 : i32
    %253 = arith.addi %0, %c2_i32_130 : i32
    %254 = arith.index_cast %253 : i32 to index
    %c1_131 = arith.constant 1 : index
    %255 = memref.load %arg1[%254, %c1_131] : memref<16x8xi32, #tpu.memory_space<smem>>
    %c2_i32_132 = arith.constant 2 : i32
    %256 = arith.addi %0, %c2_i32_132 : i32
    %257 = arith.index_cast %256 : i32 to index
    %c6_133 = arith.constant 6 : index
    %258 = memref.load %arg1[%257, %c6_133] : memref<16x8xi32, #tpu.memory_space<smem>>
    %259 = arith.index_cast %255 : i32 to index
    %c0_134 = arith.constant 0 : index
    %260 = vector.load %arg2[%259, %c0_134] : memref<64x256xf32, #tpu.memory_space<vmem>>, vector<1x256xf32>
    %261 = arith.index_cast %258 : i32 to index
    %c0_135 = arith.constant 0 : index
    %262 = vector.load %arg3[%261, %c0_135] : memref<64x256xf32, #tpu.memory_space<vmem>>, vector<1x256xf32>
    %263 = arith.addf %260, %262 : vector<1x256xf32>
    %c1_136 = arith.constant 1 : index
    %c2_137 = arith.constant 2 : index
    %c0_138 = arith.constant 0 : index
    %264 = vector.load %arg13[%c1_136, %c2_137, %c0_138] : memref<8x16x256xf32, #tpu.memory_space<vmem>>, vector<1x1x256xf32>
    %265 = vector.shape_cast %264 : vector<1x1x256xf32> to vector<1x256xf32>
    %266 = vector.shape_cast %263 : vector<1x256xf32> to vector<1x1x256xf32>
    tpu.vector_store %arg13[%c1_136, %c2_137, %c0_138], %266 {strides = array<i32>} : memref<8x16x256xf32, #tpu.memory_space<vmem>>, vector<1x1x256xf32>,
    %c3_i32_139 = arith.constant 3 : i32
    %267 = arith.addi %0, %c3_i32_139 : i32
    %268 = arith.index_cast %267 : i32 to index
    %c1_140 = arith.constant 1 : index
    %269 = memref.load %arg1[%268, %c1_140] : memref<16x8xi32, #tpu.memory_space<smem>>
    %c3_i32_141 = arith.constant 3 : i32
    %270 = arith.addi %0, %c3_i32_141 : i32
    %271 = arith.index_cast %270 : i32 to index
    %c6_142 = arith.constant 6 : index
    %272 = memref.load %arg1[%271, %c6_142] : memref<16x8xi32, #tpu.memory_space<smem>>
    %273 = arith.index_cast %269 : i32 to index
    %c0_143 = arith.constant 0 : index
    %274 = vector.load %arg2[%273, %c0_143] : memref<64x256xf32, #tpu.memory_space<vmem>>, vector<1x256xf32>
    %275 = arith.index_cast %272 : i32 to index
    %c0_144 = arith.constant 0 : index
    %276 = vector.load %arg3[%275, %c0_144] : memref<64x256xf32, #tpu.memory_space<vmem>>, vector<1x256xf32>
    %277 = arith.addf %274, %276 : vector<1x256xf32>
    %c1_145 = arith.constant 1 : index
    %c3_146 = arith.constant 3 : index
    %c0_147 = arith.constant 0 : index
    %278 = vector.load %arg13[%c1_145, %c3_146, %c0_147] : memref<8x16x256xf32, #tpu.memory_space<vmem>>, vector<1x1x256xf32>
    %279 = vector.shape_cast %278 : vector<1x1x256xf32> to vector<1x256xf32>
    %280 = vector.shape_cast %277 : vector<1x256xf32> to vector<1x1x256xf32>
    tpu.vector_store %arg13[%c1_145, %c3_146, %c0_147], %280 {strides = array<i32>} : memref<8x16x256xf32, #tpu.memory_space<vmem>>, vector<1x1x256xf32>,
    %c4_i32_148 = arith.constant 4 : i32
    %281 = arith.addi %0, %c4_i32_148 : i32
    %282 = arith.index_cast %281 : i32 to index
    %c1_149 = arith.constant 1 : index
    %283 = memref.load %arg1[%282, %c1_149] : memref<16x8xi32, #tpu.memory_space<smem>>
    %c4_i32_150 = arith.constant 4 : i32
    %284 = arith.addi %0, %c4_i32_150 : i32
    %285 = arith.index_cast %284 : i32 to index
    %c6_151 = arith.constant 6 : index
    %286 = memref.load %arg1[%285, %c6_151] : memref<16x8xi32, #tpu.memory_space<smem>>
    %287 = arith.index_cast %283 : i32 to index
    %c0_152 = arith.constant 0 : index
    %288 = vector.load %arg2[%287, %c0_152] : memref<64x256xf32, #tpu.memory_space<vmem>>, vector<1x256xf32>
    %289 = arith.index_cast %286 : i32 to index
    %c0_153 = arith.constant 0 : index
    %290 = vector.load %arg3[%289, %c0_153] : memref<64x256xf32, #tpu.memory_space<vmem>>, vector<1x256xf32>
    %291 = arith.addf %288, %290 : vector<1x256xf32>
    %c1_154 = arith.constant 1 : index
    %c4_155 = arith.constant 4 : index
    %c0_156 = arith.constant 0 : index
    %292 = vector.load %arg13[%c1_154, %c4_155, %c0_156] : memref<8x16x256xf32, #tpu.memory_space<vmem>>, vector<1x1x256xf32>
    %293 = vector.shape_cast %292 : vector<1x1x256xf32> to vector<1x256xf32>
    %294 = vector.shape_cast %291 : vector<1x256xf32> to vector<1x1x256xf32>
    tpu.vector_store %arg13[%c1_154, %c4_155, %c0_156], %294 {strides = array<i32>} : memref<8x16x256xf32, #tpu.memory_space<vmem>>, vector<1x1x256xf32>,
    %c5_i32_157 = arith.constant 5 : i32
    %295 = arith.addi %0, %c5_i32_157 : i32
    %296 = arith.index_cast %295 : i32 to index
    %c1_158 = arith.constant 1 : index
    %297 = memref.load %arg1[%296, %c1_158] : memref<16x8xi32, #tpu.memory_space<smem>>
    %c5_i32_159 = arith.constant 5 : i32
    %298 = arith.addi %0, %c5_i32_159 : i32
    %299 = arith.index_cast %298 : i32 to index
    %c6_160 = arith.constant 6 : index
    %300 = memref.load %arg1[%299, %c6_160] : memref<16x8xi32, #tpu.memory_space<smem>>
    %301 = arith.index_cast %297 : i32 to index
    %c0_161 = arith.constant 0 : index
    %302 = vector.load %arg2[%301, %c0_161] : memref<64x256xf32, #tpu.memory_space<vmem>>, vector<1x256xf32>
    %303 = arith.index_cast %300 : i32 to index
    %c0_162 = arith.constant 0 : index
    %304 = vector.load %arg3[%303, %c0_162] : memref<64x256xf32, #tpu.memory_space<vmem>>, vector<1x256xf32>
    %305 = arith.addf %302, %304 : vector<1x256xf32>
    %c1_163 = arith.constant 1 : index
    %c5_164 = arith.constant 5 : index
    %c0_165 = arith.constant 0 : index
    %306 = vector.load %arg13[%c1_163, %c5_164, %c0_165] : memref<8x16x256xf32, #tpu.memory_space<vmem>>, vector<1x1x256xf32>
    %307 = vector.shape_cast %306 : vector<1x1x256xf32> to vector<1x256xf32>
    %308 = vector.shape_cast %305 : vector<1x256xf32> to vector<1x1x256xf32>
    tpu.vector_store %arg13[%c1_163, %c5_164, %c0_165], %308 {strides = array<i32>} : memref<8x16x256xf32, #tpu.memory_space<vmem>>, vector<1x1x256xf32>,
    %c6_i32_166 = arith.constant 6 : i32
    %309 = arith.addi %0, %c6_i32_166 : i32
    %310 = arith.index_cast %309 : i32 to index
    %c1_167 = arith.constant 1 : index
    %311 = memref.load %arg1[%310, %c1_167] : memref<16x8xi32, #tpu.memory_space<smem>>
    %c6_i32_168 = arith.constant 6 : i32
    %312 = arith.addi %0, %c6_i32_168 : i32
    %313 = arith.index_cast %312 : i32 to index
    %c6_169 = arith.constant 6 : index
    %314 = memref.load %arg1[%313, %c6_169] : memref<16x8xi32, #tpu.memory_space<smem>>
    %315 = arith.index_cast %311 : i32 to index
    %c0_170 = arith.constant 0 : index
    %316 = vector.load %arg2[%315, %c0_170] : memref<64x256xf32, #tpu.memory_space<vmem>>, vector<1x256xf32>
    %317 = arith.index_cast %314 : i32 to index
    %c0_171 = arith.constant 0 : index
    %318 = vector.load %arg3[%317, %c0_171] : memref<64x256xf32, #tpu.memory_space<vmem>>, vector<1x256xf32>
    %319 = arith.addf %316, %318 : vector<1x256xf32>
    %c1_172 = arith.constant 1 : index
    %c6_173 = arith.constant 6 : index
    %c0_174 = arith.constant 0 : index
    %320 = vector.load %arg13[%c1_172, %c6_173, %c0_174] : memref<8x16x256xf32, #tpu.memory_space<vmem>>, vector<1x1x256xf32>
    %321 = vector.shape_cast %320 : vector<1x1x256xf32> to vector<1x256xf32>
    %322 = vector.shape_cast %319 : vector<1x256xf32> to vector<1x1x256xf32>
    tpu.vector_store %arg13[%c1_172, %c6_173, %c0_174], %322 {strides = array<i32>} : memref<8x16x256xf32, #tpu.memory_space<vmem>>, vector<1x1x256xf32>,
    %c7_i32_175 = arith.constant 7 : i32
    %323 = arith.addi %0, %c7_i32_175 : i32
    %324 = arith.index_cast %323 : i32 to index
    %c1_176 = arith.constant 1 : index
    %325 = memref.load %arg1[%324, %c1_176] : memref<16x8xi32, #tpu.memory_space<smem>>
    %c7_i32_177 = arith.constant 7 : i32
    %326 = arith.addi %0, %c7_i32_177 : i32
    %327 = arith.index_cast %326 : i32 to index
    %c6_178 = arith.constant 6 : index
    %328 = memref.load %arg1[%327, %c6_178] : memref<16x8xi32, #tpu.memory_space<smem>>
    %329 = arith.index_cast %325 : i32 to index
    %c0_179 = arith.constant 0 : index
    %330 = vector.load %arg2[%329, %c0_179] : memref<64x256xf32, #tpu.memory_space<vmem>>, vector<1x256xf32>
    %331 = arith.index_cast %328 : i32 to index
    %c0_180 = arith.constant 0 : index
    %332 = vector.load %arg3[%331, %c0_180] : memref<64x256xf32, #tpu.memory_space<vmem>>, vector<1x256xf32>
    %333 = arith.addf %330, %332 : vector<1x256xf32>
    %c1_181 = arith.constant 1 : index
    %c7_182 = arith.constant 7 : index
    %c0_183 = arith.constant 0 : index
    %334 = vector.load %arg13[%c1_181, %c7_182, %c0_183] : memref<8x16x256xf32, #tpu.memory_space<vmem>>, vector<1x1x256xf32>
    %335 = vector.shape_cast %334 : vector<1x1x256xf32> to vector<1x256xf32>
    %336 = vector.shape_cast %333 : vector<1x256xf32> to vector<1x1x256xf32>
    tpu.vector_store %arg13[%c1_181, %c7_182, %c0_183], %336 {strides = array<i32>} : memref<8x16x256xf32, #tpu.memory_space<vmem>>, vector<1x1x256xf32>,
    %c8_i32_184 = arith.constant 8 : i32
    %337 = arith.addi %0, %c8_i32_184 : i32
    %338 = arith.index_cast %337 : i32 to index
    %c1_185 = arith.constant 1 : index
    %339 = memref.load %arg1[%338, %c1_185] : memref<16x8xi32, #tpu.memory_space<smem>>
    %c8_i32_186 = arith.constant 8 : i32
    %340 = arith.addi %0, %c8_i32_186 : i32
    %341 = arith.index_cast %340 : i32 to index
    %c6_187 = arith.constant 6 : index
    %342 = memref.load %arg1[%341, %c6_187] : memref<16x8xi32, #tpu.memory_space<smem>>
    %343 = arith.index_cast %339 : i32 to index
    %c0_188 = arith.constant 0 : index
    %344 = vector.load %arg2[%343, %c0_188] : memref<64x256xf32, #tpu.memory_space<vmem>>, vector<1x256xf32>
    %345 = arith.index_cast %342 : i32 to index
    %c0_189 = arith.constant 0 : index
    %346 = vector.load %arg3[%345, %c0_189] : memref<64x256xf32, #tpu.memory_space<vmem>>, vector<1x256xf32>
    %347 = arith.addf %344, %346 : vector<1x256xf32>
    %c1_190 = arith.constant 1 : index
    %c8_191 = arith.constant 8 : index
    %c0_192 = arith.constant 0 : index
    %348 = vector.load %arg13[%c1_190, %c8_191, %c0_192] : memref<8x16x256xf32, #tpu.memory_space<vmem>>, vector<1x1x256xf32>
    %349 = vector.shape_cast %348 : vector<1x1x256xf32> to vector<1x256xf32>
    %350 = vector.shape_cast %347 : vector<1x256xf32> to vector<1x1x256xf32>
    tpu.vector_store %arg13[%c1_190, %c8_191, %c0_192], %350 {strides = array<i32>} : memref<8x16x256xf32, #tpu.memory_space<vmem>>, vector<1x1x256xf32>,
    %c9_i32_193 = arith.constant 9 : i32
    %351 = arith.addi %0, %c9_i32_193 : i32
    %352 = arith.index_cast %351 : i32 to index
    %c1_194 = arith.constant 1 : index
    %353 = memref.load %arg1[%352, %c1_194] : memref<16x8xi32, #tpu.memory_space<smem>>
    %c9_i32_195 = arith.constant 9 : i32
    %354 = arith.addi %0, %c9_i32_195 : i32
    %355 = arith.index_cast %354 : i32 to index
    %c6_196 = arith.constant 6 : index
    %356 = memref.load %arg1[%355, %c6_196] : memref<16x8xi32, #tpu.memory_space<smem>>
    %357 = arith.index_cast %353 : i32 to index
    %c0_197 = arith.constant 0 : index
    %358 = vector.load %arg2[%357, %c0_197] : memref<64x256xf32, #tpu.memory_space<vmem>>, vector<1x256xf32>
    %359 = arith.index_cast %356 : i32 to index
    %c0_198 = arith.constant 0 : index
    %360 = vector.load %arg3[%359, %c0_198] : memref<64x256xf32, #tpu.memory_space<vmem>>, vector<1x256xf32>
    %361 = arith.addf %358, %360 : vector<1x256xf32>
    %c1_199 = arith.constant 1 : index
    %c9_200 = arith.constant 9 : index
    %c0_201 = arith.constant 0 : index
    %362 = vector.load %arg13[%c1_199, %c9_200, %c0_201] : memref<8x16x256xf32, #tpu.memory_space<vmem>>, vector<1x1x256xf32>
    %363 = vector.shape_cast %362 : vector<1x1x256xf32> to vector<1x256xf32>
    %364 = vector.shape_cast %361 : vector<1x256xf32> to vector<1x1x256xf32>
    tpu.vector_store %arg13[%c1_199, %c9_200, %c0_201], %364 {strides = array<i32>} : memref<8x16x256xf32, #tpu.memory_space<vmem>>, vector<1x1x256xf32>,
    %c10_i32_202 = arith.constant 10 : i32
    %365 = arith.addi %0, %c10_i32_202 : i32
    %366 = arith.index_cast %365 : i32 to index
    %c1_203 = arith.constant 1 : index
    %367 = memref.load %arg1[%366, %c1_203] : memref<16x8xi32, #tpu.memory_space<smem>>
    %c10_i32_204 = arith.constant 10 : i32
    %368 = arith.addi %0, %c10_i32_204 : i32
    %369 = arith.index_cast %368 : i32 to index
    %c6_205 = arith.constant 6 : index
    %370 = memref.load %arg1[%369, %c6_205] : memref<16x8xi32, #tpu.memory_space<smem>>
    %371 = arith.index_cast %367 : i32 to index
    %c0_206 = arith.constant 0 : index
    %372 = vector.load %arg2[%371, %c0_206] : memref<64x256xf32, #tpu.memory_space<vmem>>, vector<1x256xf32>
    %373 = arith.index_cast %370 : i32 to index
    %c0_207 = arith.constant 0 : index
    %374 = vector.load %arg3[%373, %c0_207] : memref<64x256xf32, #tpu.memory_space<vmem>>, vector<1x256xf32>
    %375 = arith.addf %372, %374 : vector<1x256xf32>
    %c1_208 = arith.constant 1 : index
    %c10_209 = arith.constant 10 : index
    %c0_210 = arith.constant 0 : index
    %376 = vector.load %arg13[%c1_208, %c10_209, %c0_210] : memref<8x16x256xf32, #tpu.memory_space<vmem>>, vector<1x1x256xf32>
    %377 = vector.shape_cast %376 : vector<1x1x256xf32> to vector<1x256xf32>
    %378 = vector.shape_cast %375 : vector<1x256xf32> to vector<1x1x256xf32>
    tpu.vector_store %arg13[%c1_208, %c10_209, %c0_210], %378 {strides = array<i32>} : memref<8x16x256xf32, #tpu.memory_space<vmem>>, vector<1x1x256xf32>,
    %c11_i32_211 = arith.constant 11 : i32
    %379 = arith.addi %0, %c11_i32_211 : i32
    %380 = arith.index_cast %379 : i32 to index
    %c1_212 = arith.constant 1 : index
    %381 = memref.load %arg1[%380, %c1_212] : memref<16x8xi32, #tpu.memory_space<smem>>
    %c11_i32_213 = arith.constant 11 : i32
    %382 = arith.addi %0, %c11_i32_213 : i32
    %383 = arith.index_cast %382 : i32 to index
    %c6_214 = arith.constant 6 : index
    %384 = memref.load %arg1[%383, %c6_214] : memref<16x8xi32, #tpu.memory_space<smem>>
    %385 = arith.index_cast %381 : i32 to index
    %c0_215 = arith.constant 0 : index
    %386 = vector.load %arg2[%385, %c0_215] : memref<64x256xf32, #tpu.memory_space<vmem>>, vector<1x256xf32>
    %387 = arith.index_cast %384 : i32 to index
    %c0_216 = arith.constant 0 : index
    %388 = vector.load %arg3[%387, %c0_216] : memref<64x256xf32, #tpu.memory_space<vmem>>, vector<1x256xf32>
    %389 = arith.addf %386, %388 : vector<1x256xf32>
    %c1_217 = arith.constant 1 : index
    %c11_218 = arith.constant 11 : index
    %c0_219 = arith.constant 0 : index
    %390 = vector.load %arg13[%c1_217, %c11_218, %c0_219] : memref<8x16x256xf32, #tpu.memory_space<vmem>>, vector<1x1x256xf32>
    %391 = vector.shape_cast %390 : vector<1x1x256xf32> to vector<1x256xf32>
    %392 = vector.shape_cast %389 : vector<1x256xf32> to vector<1x1x256xf32>
    tpu.vector_store %arg13[%c1_217, %c11_218, %c0_219], %392 {strides = array<i32>} : memref<8x16x256xf32, #tpu.memory_space<vmem>>, vector<1x1x256xf32>,
    %c12_i32_220 = arith.constant 12 : i32
    %393 = arith.addi %0, %c12_i32_220 : i32
    %394 = arith.index_cast %393 : i32 to index
    %c1_221 = arith.constant 1 : index
    %395 = memref.load %arg1[%394, %c1_221] : memref<16x8xi32, #tpu.memory_space<smem>>
    %c12_i32_222 = arith.constant 12 : i32
    %396 = arith.addi %0, %c12_i32_222 : i32
    %397 = arith.index_cast %396 : i32 to index
    %c6_223 = arith.constant 6 : index
    %398 = memref.load %arg1[%397, %c6_223] : memref<16x8xi32, #tpu.memory_space<smem>>
    %399 = arith.index_cast %395 : i32 to index
    %c0_224 = arith.constant 0 : index
    %400 = vector.load %arg2[%399, %c0_224] : memref<64x256xf32, #tpu.memory_space<vmem>>, vector<1x256xf32>
    %401 = arith.index_cast %398 : i32 to index
    %c0_225 = arith.constant 0 : index
    %402 = vector.load %arg3[%401, %c0_225] : memref<64x256xf32, #tpu.memory_space<vmem>>, vector<1x256xf32>
    %403 = arith.addf %400, %402 : vector<1x256xf32>
    %c1_226 = arith.constant 1 : index
    %c12_227 = arith.constant 12 : index
    %c0_228 = arith.constant 0 : index
    %404 = vector.load %arg13[%c1_226, %c12_227, %c0_228] : memref<8x16x256xf32, #tpu.memory_space<vmem>>, vector<1x1x256xf32>
    %405 = vector.shape_cast %404 : vector<1x1x256xf32> to vector<1x256xf32>
    %406 = vector.shape_cast %403 : vector<1x256xf32> to vector<1x1x256xf32>
    tpu.vector_store %arg13[%c1_226, %c12_227, %c0_228], %406 {strides = array<i32>} : memref<8x16x256xf32, #tpu.memory_space<vmem>>, vector<1x1x256xf32>,
    %c13_i32_229 = arith.constant 13 : i32
    %407 = arith.addi %0, %c13_i32_229 : i32
    %408 = arith.index_cast %407 : i32 to index
    %c1_230 = arith.constant 1 : index
    %409 = memref.load %arg1[%408, %c1_230] : memref<16x8xi32, #tpu.memory_space<smem>>
    %c13_i32_231 = arith.constant 13 : i32
    %410 = arith.addi %0, %c13_i32_231 : i32
    %411 = arith.index_cast %410 : i32 to index
    %c6_232 = arith.constant 6 : index
    %412 = memref.load %arg1[%411, %c6_232] : memref<16x8xi32, #tpu.memory_space<smem>>
    %413 = arith.index_cast %409 : i32 to index
    %c0_233 = arith.constant 0 : index
    %414 = vector.load %arg2[%413, %c0_233] : memref<64x256xf32, #tpu.memory_space<vmem>>, vector<1x256xf32>
    %415 = arith.index_cast %412 : i32 to index
    %c0_234 = arith.constant 0 : index
    %416 = vector.load %arg3[%415, %c0_234] : memref<64x256xf32, #tpu.memory_space<vmem>>, vector<1x256xf32>
    %417 = arith.addf %414, %416 : vector<1x256xf32>
    %c1_235 = arith.constant 1 : index
    %c13_236 = arith.constant 13 : index
    %c0_237 = arith.constant 0 : index
    %418 = vector.load %arg13[%c1_235, %c13_236, %c0_237] : memref<8x16x256xf32, #tpu.memory_space<vmem>>, vector<1x1x256xf32>
    %419 = vector.shape_cast %418 : vector<1x1x256xf32> to vector<1x256xf32>
    %420 = vector.shape_cast %417 : vector<1x256xf32> to vector<1x1x256xf32>
    tpu.vector_store %arg13[%c1_235, %c13_236, %c0_237], %420 {strides = array<i32>} : memref<8x16x256xf32, #tpu.memory_space<vmem>>, vector<1x1x256xf32>,
    %c14_i32_238 = arith.constant 14 : i32
    %421 = arith.addi %0, %c14_i32_238 : i32
    %422 = arith.index_cast %421 : i32 to index
    %c1_239 = arith.constant 1 : index
    %423 = memref.load %arg1[%422, %c1_239] : memref<16x8xi32, #tpu.memory_space<smem>>
    %c14_i32_240 = arith.constant 14 : i32
    %424 = arith.addi %0, %c14_i32_240 : i32
    %425 = arith.index_cast %424 : i32 to index
    %c6_241 = arith.constant 6 : index
    %426 = memref.load %arg1[%425, %c6_241] : memref<16x8xi32, #tpu.memory_space<smem>>
    %427 = arith.index_cast %423 : i32 to index
    %c0_242 = arith.constant 0 : index
    %428 = vector.load %arg2[%427, %c0_242] : memref<64x256xf32, #tpu.memory_space<vmem>>, vector<1x256xf32>
    %429 = arith.index_cast %426 : i32 to index
    %c0_243 = arith.constant 0 : index
    %430 = vector.load %arg3[%429, %c0_243] : memref<64x256xf32, #tpu.memory_space<vmem>>, vector<1x256xf32>
    %431 = arith.addf %428, %430 : vector<1x256xf32>
    %c1_244 = arith.constant 1 : index
    %c14_245 = arith.constant 14 : index
    %c0_246 = arith.constant 0 : index
    %432 = vector.load %arg13[%c1_244, %c14_245, %c0_246] : memref<8x16x256xf32, #tpu.memory_space<vmem>>, vector<1x1x256xf32>
    %433 = vector.shape_cast %432 : vector<1x1x256xf32> to vector<1x256xf32>
    %434 = vector.shape_cast %431 : vector<1x256xf32> to vector<1x1x256xf32>
    tpu.vector_store %arg13[%c1_244, %c14_245, %c0_246], %434 {strides = array<i32>} : memref<8x16x256xf32, #tpu.memory_space<vmem>>, vector<1x1x256xf32>,
    %c15_i32_247 = arith.constant 15 : i32
    %435 = arith.addi %0, %c15_i32_247 : i32
    %436 = arith.index_cast %435 : i32 to index
    %c1_248 = arith.constant 1 : index
    %437 = memref.load %arg1[%436, %c1_248] : memref<16x8xi32, #tpu.memory_space<smem>>
    %c15_i32_249 = arith.constant 15 : i32
    %438 = arith.addi %0, %c15_i32_249 : i32
    %439 = arith.index_cast %438 : i32 to index
    %c6_250 = arith.constant 6 : index
    %440 = memref.load %arg1[%439, %c6_250] : memref<16x8xi32, #tpu.memory_space<smem>>
    %441 = arith.index_cast %437 : i32 to index
    %c0_251 = arith.constant 0 : index
    %442 = vector.load %arg2[%441, %c0_251] : memref<64x256xf32, #tpu.memory_space<vmem>>, vector<1x256xf32>
    %443 = arith.index_cast %440 : i32 to index
    %c0_252 = arith.constant 0 : index
    %444 = vector.load %arg3[%443, %c0_252] : memref<64x256xf32, #tpu.memory_space<vmem>>, vector<1x256xf32>
    %445 = arith.addf %442, %444 : vector<1x256xf32>
    %c1_253 = arith.constant 1 : index
    %c15_254 = arith.constant 15 : index
    %c0_255 = arith.constant 0 : index
    %446 = vector.load %arg13[%c1_253, %c15_254, %c0_255] : memref<8x16x256xf32, #tpu.memory_space<vmem>>, vector<1x1x256xf32>
    %447 = vector.shape_cast %446 : vector<1x1x256xf32> to vector<1x256xf32>
    %448 = vector.shape_cast %445 : vector<1x256xf32> to vector<1x1x256xf32>
    tpu.vector_store %arg13[%c1_253, %c15_254, %c0_255], %448 {strides = array<i32>} : memref<8x16x256xf32, #tpu.memory_space<vmem>>, vector<1x1x256xf32>,
    %c0_i32_256 = arith.constant 0 : i32
    %449 = arith.addi %0, %c0_i32_256 : i32
    %450 = arith.index_cast %449 : i32 to index
    %c2_257 = arith.constant 2 : index
    %451 = memref.load %arg1[%450, %c2_257] : memref<16x8xi32, #tpu.memory_space<smem>>
    %c0_i32_258 = arith.constant 0 : i32
    %452 = arith.addi %0, %c0_i32_258 : i32
    %453 = arith.index_cast %452 : i32 to index
    %c5_259 = arith.constant 5 : index
    %454 = memref.load %arg1[%453, %c5_259] : memref<16x8xi32, #tpu.memory_space<smem>>
    %455 = arith.index_cast %451 : i32 to index
    %c0_260 = arith.constant 0 : index
    %456 = vector.load %arg2[%455, %c0_260] : memref<64x256xf32, #tpu.memory_space<vmem>>, vector<1x256xf32>
    %457 = arith.index_cast %454 : i32 to index
    %c0_261 = arith.constant 0 : index
    %458 = vector.load %arg3[%457, %c0_261] : memref<64x256xf32, #tpu.memory_space<vmem>>, vector<1x256xf32>
    %459 = arith.addf %456, %458 : vector<1x256xf32>
    %c2_262 = arith.constant 2 : index
    %c0_263 = arith.constant 0 : index
    %c0_264 = arith.constant 0 : index
    %460 = vector.load %arg13[%c2_262, %c0_263, %c0_264] : memref<8x16x256xf32, #tpu.memory_space<vmem>>, vector<1x1x256xf32>
    %461 = vector.shape_cast %460 : vector<1x1x256xf32> to vector<1x256xf32>
    %462 = vector.shape_cast %459 : vector<1x256xf32> to vector<1x1x256xf32>
    tpu.vector_store %arg13[%c2_262, %c0_263, %c0_264], %462 {strides = array<i32>} : memref<8x16x256xf32, #tpu.memory_space<vmem>>, vector<1x1x256xf32>,
    %c1_i32_265 = arith.constant 1 : i32
    %463 = arith.addi %0, %c1_i32_265 : i32
    %464 = arith.index_cast %463 : i32 to index
    %c2_266 = arith.constant 2 : index
    %465 = memref.load %arg1[%464, %c2_266] : memref<16x8xi32, #tpu.memory_space<smem>>
    %c1_i32_267 = arith.constant 1 : i32
    %466 = arith.addi %0, %c1_i32_267 : i32
    %467 = arith.index_cast %466 : i32 to index
    %c5_268 = arith.constant 5 : index
    %468 = memref.load %arg1[%467, %c5_268] : memref<16x8xi32, #tpu.memory_space<smem>>
    %469 = arith.index_cast %465 : i32 to index
    %c0_269 = arith.constant 0 : index
    %470 = vector.load %arg2[%469, %c0_269] : memref<64x256xf32, #tpu.memory_space<vmem>>, vector<1x256xf32>
    %471 = arith.index_cast %468 : i32 to index
    %c0_270 = arith.constant 0 : index
    %472 = vector.load %arg3[%471, %c0_270] : memref<64x256xf32, #tpu.memory_space<vmem>>, vector<1x256xf32>
    %473 = arith.addf %470, %472 : vector<1x256xf32>
    %c2_271 = arith.constant 2 : index
    %c1_272 = arith.constant 1 : index
    %c0_273 = arith.constant 0 : index
    %474 = vector.load %arg13[%c2_271, %c1_272, %c0_273] : memref<8x16x256xf32, #tpu.memory_space<vmem>>, vector<1x1x256xf32>
    %475 = vector.shape_cast %474 : vector<1x1x256xf32> to vector<1x256xf32>
    %476 = vector.shape_cast %473 : vector<1x256xf32> to vector<1x1x256xf32>
    tpu.vector_store %arg13[%c2_271, %c1_272, %c0_273], %476 {strides = array<i32>} : memref<8x16x256xf32, #tpu.memory_space<vmem>>, vector<1x1x256xf32>,
    %c2_i32_274 = arith.constant 2 : i32
    %477 = arith.addi %0, %c2_i32_274 : i32
    %478 = arith.index_cast %477 : i32 to index
    %c2_275 = arith.constant 2 : index
    %479 = memref.load %arg1[%478, %c2_275] : memref<16x8xi32, #tpu.memory_space<smem>>
    %c2_i32_276 = arith.constant 2 : i32
    %480 = arith.addi %0, %c2_i32_276 : i32
    %481 = arith.index_cast %480 : i32 to index
    %c5_277 = arith.constant 5 : index
    %482 = memref.load %arg1[%481, %c5_277] : memref<16x8xi32, #tpu.memory_space<smem>>
    %483 = arith.index_cast %479 : i32 to index
    %c0_278 = arith.constant 0 : index
    %484 = vector.load %arg2[%483, %c0_278] : memref<64x256xf32, #tpu.memory_space<vmem>>, vector<1x256xf32>
    %485 = arith.index_cast %482 : i32 to index
    %c0_279 = arith.constant 0 : index
    %486 = vector.load %arg3[%485, %c0_279] : memref<64x256xf32, #tpu.memory_space<vmem>>, vector<1x256xf32>
    %487 = arith.addf %484, %486 : vector<1x256xf32>
    %c2_280 = arith.constant 2 : index
    %c2_281 = arith.constant 2 : index
    %c0_282 = arith.constant 0 : index
    %488 = vector.load %arg13[%c2_280, %c2_281, %c0_282] : memref<8x16x256xf32, #tpu.memory_space<vmem>>, vector<1x1x256xf32>
    %489 = vector.shape_cast %488 : vector<1x1x256xf32> to vector<1x256xf32>
    %490 = vector.shape_cast %487 : vector<1x256xf32> to vector<1x1x256xf32>
    tpu.vector_store %arg13[%c2_280, %c2_281, %c0_282], %490 {strides = array<i32>} : memref<8x16x256xf32, #tpu.memory_space<vmem>>, vector<1x1x256xf32>,
    %c3_i32_283 = arith.constant 3 : i32
    %491 = arith.addi %0, %c3_i32_283 : i32
    %492 = arith.index_cast %491 : i32 to index
    %c2_284 = arith.constant 2 : index
    %493 = memref.load %arg1[%492, %c2_284] : memref<16x8xi32, #tpu.memory_space<smem>>
    %c3_i32_285 = arith.constant 3 : i32
    %494 = arith.addi %0, %c3_i32_285 : i32
    %495 = arith.index_cast %494 : i32 to index
    %c5_286 = arith.constant 5 : index
    %496 = memref.load %arg1[%495, %c5_286] : memref<16x8xi32, #tpu.memory_space<smem>>
    %497 = arith.index_cast %493 : i32 to index
    %c0_287 = arith.constant 0 : index
    %498 = vector.load %arg2[%497, %c0_287] : memref<64x256xf32, #tpu.memory_space<vmem>>, vector<1x256xf32>
    %499 = arith.index_cast %496 : i32 to index
    %c0_288 = arith.constant 0 : index
    %500 = vector.load %arg3[%499, %c0_288] : memref<64x256xf32, #tpu.memory_space<vmem>>, vector<1x256xf32>
    %501 = arith.addf %498, %500 : vector<1x256xf32>
    %c2_289 = arith.constant 2 : index
    %c3_290 = arith.constant 3 : index
    %c0_291 = arith.constant 0 : index
    %502 = vector.load %arg13[%c2_289, %c3_290, %c0_291] : memref<8x16x256xf32, #tpu.memory_space<vmem>>, vector<1x1x256xf32>
    %503 = vector.shape_cast %502 : vector<1x1x256xf32> to vector<1x256xf32>
    %504 = vector.shape_cast %501 : vector<1x256xf32> to vector<1x1x256xf32>
    tpu.vector_store %arg13[%c2_289, %c3_290, %c0_291], %504 {strides = array<i32>} : memref<8x16x256xf32, #tpu.memory_space<vmem>>, vector<1x1x256xf32>,
    %c4_i32_292 = arith.constant 4 : i32
    %505 = arith.addi %0, %c4_i32_292 : i32
    %506 = arith.index_cast %505 : i32 to index
    %c2_293 = arith.constant 2 : index
    %507 = memref.load %arg1[%506, %c2_293] : memref<16x8xi32, #tpu.memory_space<smem>>
    %c4_i32_294 = arith.constant 4 : i32
    %508 = arith.addi %0, %c4_i32_294 : i32
    %509 = arith.index_cast %508 : i32 to index
    %c5_295 = arith.constant 5 : index
    %510 = memref.load %arg1[%509, %c5_295] : memref<16x8xi32, #tpu.memory_space<smem>>
    %511 = arith.index_cast %507 : i32 to index
    %c0_296 = arith.constant 0 : index
    %512 = vector.load %arg2[%511, %c0_296] : memref<64x256xf32, #tpu.memory_space<vmem>>, vector<1x256xf32>
    %513 = arith.index_cast %510 : i32 to index
    %c0_297 = arith.constant 0 : index
    %514 = vector.load %arg3[%513, %c0_297] : memref<64x256xf32, #tpu.memory_space<vmem>>, vector<1x256xf32>
    %515 = arith.addf %512, %514 : vector<1x256xf32>
    %c2_298 = arith.constant 2 : index
    %c4_299 = arith.constant 4 : index
    %c0_300 = arith.constant 0 : index
    %516 = vector.load %arg13[%c2_298, %c4_299, %c0_300] : memref<8x16x256xf32, #tpu.memory_space<vmem>>, vector<1x1x256xf32>
    %517 = vector.shape_cast %516 : vector<1x1x256xf32> to vector<1x256xf32>
    %518 = vector.shape_cast %515 : vector<1x256xf32> to vector<1x1x256xf32>
    tpu.vector_store %arg13[%c2_298, %c4_299, %c0_300], %518 {strides = array<i32>} : memref<8x16x256xf32, #tpu.memory_space<vmem>>, vector<1x1x256xf32>,
    %c5_i32_301 = arith.constant 5 : i32
    %519 = arith.addi %0, %c5_i32_301 : i32
    %520 = arith.index_cast %519 : i32 to index
    %c2_302 = arith.constant 2 : index
    %521 = memref.load %arg1[%520, %c2_302] : memref<16x8xi32, #tpu.memory_space<smem>>
    %c5_i32_303 = arith.constant 5 : i32
    %522 = arith.addi %0, %c5_i32_303 : i32
    %523 = arith.index_cast %522 : i32 to index
    %c5_304 = arith.constant 5 : index
    %524 = memref.load %arg1[%523, %c5_304] : memref<16x8xi32, #tpu.memory_space<smem>>
    %525 = arith.index_cast %521 : i32 to index
    %c0_305 = arith.constant 0 : index
    %526 = vector.load %arg2[%525, %c0_305] : memref<64x256xf32, #tpu.memory_space<vmem>>, vector<1x256xf32>
    %527 = arith.index_cast %524 : i32 to index
    %c0_306 = arith.constant 0 : index
    %528 = vector.load %arg3[%527, %c0_306] : memref<64x256xf32, #tpu.memory_space<vmem>>, vector<1x256xf32>
    %529 = arith.addf %526, %528 : vector<1x256xf32>
    %c2_307 = arith.constant 2 : index
    %c5_308 = arith.constant 5 : index
    %c0_309 = arith.constant 0 : index
    %530 = vector.load %arg13[%c2_307, %c5_308, %c0_309] : memref<8x16x256xf32, #tpu.memory_space<vmem>>, vector<1x1x256xf32>
    %531 = vector.shape_cast %530 : vector<1x1x256xf32> to vector<1x256xf32>
    %532 = vector.shape_cast %529 : vector<1x256xf32> to vector<1x1x256xf32>
    tpu.vector_store %arg13[%c2_307, %c5_308, %c0_309], %532 {strides = array<i32>} : memref<8x16x256xf32, #tpu.memory_space<vmem>>, vector<1x1x256xf32>,
    %c6_i32_310 = arith.constant 6 : i32
    %533 = arith.addi %0, %c6_i32_310 : i32
    %534 = arith.index_cast %533 : i32 to index
    %c2_311 = arith.constant 2 : index
    %535 = memref.load %arg1[%534, %c2_311] : memref<16x8xi32, #tpu.memory_space<smem>>
    %c6_i32_312 = arith.constant 6 : i32
    %536 = arith.addi %0, %c6_i32_312 : i32
    %537 = arith.index_cast %536 : i32 to index
    %c5_313 = arith.constant 5 : index
    %538 = memref.load %arg1[%537, %c5_313] : memref<16x8xi32, #tpu.memory_space<smem>>
    %539 = arith.index_cast %535 : i32 to index
    %c0_314 = arith.constant 0 : index
    %540 = vector.load %arg2[%539, %c0_314] : memref<64x256xf32, #tpu.memory_space<vmem>>, vector<1x256xf32>
    %541 = arith.index_cast %538 : i32 to index
    %c0_315 = arith.constant 0 : index
    %542 = vector.load %arg3[%541, %c0_315] : memref<64x256xf32, #tpu.memory_space<vmem>>, vector<1x256xf32>
    %543 = arith.addf %540, %542 : vector<1x256xf32>
    %c2_316 = arith.constant 2 : index
    %c6_317 = arith.constant 6 : index
    %c0_318 = arith.constant 0 : index
    %544 = vector.load %arg13[%c2_316, %c6_317, %c0_318] : memref<8x16x256xf32, #tpu.memory_space<vmem>>, vector<1x1x256xf32>
    %545 = vector.shape_cast %544 : vector<1x1x256xf32> to vector<1x256xf32>
    %546 = vector.shape_cast %543 : vector<1x256xf32> to vector<1x1x256xf32>
    tpu.vector_store %arg13[%c2_316, %c6_317, %c0_318], %546 {strides = array<i32>} : memref<8x16x256xf32, #tpu.memory_space<vmem>>, vector<1x1x256xf32>,
    %c7_i32_319 = arith.constant 7 : i32
    %547 = arith.addi %0, %c7_i32_319 : i32
    %548 = arith.index_cast %547 : i32 to index
    %c2_320 = arith.constant 2 : index
    %549 = memref.load %arg1[%548, %c2_320] : memref<16x8xi32, #tpu.memory_space<smem>>
    %c7_i32_321 = arith.constant 7 : i32
    %550 = arith.addi %0, %c7_i32_321 : i32
    %551 = arith.index_cast %550 : i32 to index
    %c5_322 = arith.constant 5 : index
    %552 = memref.load %arg1[%551, %c5_322] : memref<16x8xi32, #tpu.memory_space<smem>>
    %553 = arith.index_cast %549 : i32 to index
    %c0_323 = arith.constant 0 : index
    %554 = vector.load %arg2[%553, %c0_323] : memref<64x256xf32, #tpu.memory_space<vmem>>, vector<1x256xf32>
    %555 = arith.index_cast %552 : i32 to index
    %c0_324 = arith.constant 0 : index
    %556 = vector.load %arg3[%555, %c0_324] : memref<64x256xf32, #tpu.memory_space<vmem>>, vector<1x256xf32>
    %557 = arith.addf %554, %556 : vector<1x256xf32>
    %c2_325 = arith.constant 2 : index
    %c7_326 = arith.constant 7 : index
    %c0_327 = arith.constant 0 : index
    %558 = vector.load %arg13[%c2_325, %c7_326, %c0_327] : memref<8x16x256xf32, #tpu.memory_space<vmem>>, vector<1x1x256xf32>
    %559 = vector.shape_cast %558 : vector<1x1x256xf32> to vector<1x256xf32>
    %560 = vector.shape_cast %557 : vector<1x256xf32> to vector<1x1x256xf32>
    tpu.vector_store %arg13[%c2_325, %c7_326, %c0_327], %560 {strides = array<i32>} : memref<8x16x256xf32, #tpu.memory_space<vmem>>, vector<1x1x256xf32>,
    %c8_i32_328 = arith.constant 8 : i32
    %561 = arith.addi %0, %c8_i32_328 : i32
    %562 = arith.index_cast %561 : i32 to index
    %c2_329 = arith.constant 2 : index
    %563 = memref.load %arg1[%562, %c2_329] : memref<16x8xi32, #tpu.memory_space<smem>>
    %c8_i32_330 = arith.constant 8 : i32
    %564 = arith.addi %0, %c8_i32_330 : i32
    %565 = arith.index_cast %564 : i32 to index
    %c5_331 = arith.constant 5 : index
    %566 = memref.load %arg1[%565, %c5_331] : memref<16x8xi32, #tpu.memory_space<smem>>
    %567 = arith.index_cast %563 : i32 to index
    %c0_332 = arith.constant 0 : index
    %568 = vector.load %arg2[%567, %c0_332] : memref<64x256xf32, #tpu.memory_space<vmem>>, vector<1x256xf32>
    %569 = arith.index_cast %566 : i32 to index
    %c0_333 = arith.constant 0 : index
    %570 = vector.load %arg3[%569, %c0_333] : memref<64x256xf32, #tpu.memory_space<vmem>>, vector<1x256xf32>
    %571 = arith.addf %568, %570 : vector<1x256xf32>
    %c2_334 = arith.constant 2 : index
    %c8_335 = arith.constant 8 : index
    %c0_336 = arith.constant 0 : index
    %572 = vector.load %arg13[%c2_334, %c8_335, %c0_336] : memref<8x16x256xf32, #tpu.memory_space<vmem>>, vector<1x1x256xf32>
    %573 = vector.shape_cast %572 : vector<1x1x256xf32> to vector<1x256xf32>
    %574 = vector.shape_cast %571 : vector<1x256xf32> to vector<1x1x256xf32>
    tpu.vector_store %arg13[%c2_334, %c8_335, %c0_336], %574 {strides = array<i32>} : memref<8x16x256xf32, #tpu.memory_space<vmem>>, vector<1x1x256xf32>,
    %c9_i32_337 = arith.constant 9 : i32
    %575 = arith.addi %0, %c9_i32_337 : i32
    %576 = arith.index_cast %575 : i32 to index
    %c2_338 = arith.constant 2 : index
    %577 = memref.load %arg1[%576, %c2_338] : memref<16x8xi32, #tpu.memory_space<smem>>
    %c9_i32_339 = arith.constant 9 : i32
    %578 = arith.addi %0, %c9_i32_339 : i32
    %579 = arith.index_cast %578 : i32 to index
    %c5_340 = arith.constant 5 : index
    %580 = memref.load %arg1[%579, %c5_340] : memref<16x8xi32, #tpu.memory_space<smem>>
    %581 = arith.index_cast %577 : i32 to index
    %c0_341 = arith.constant 0 : index
    %582 = vector.load %arg2[%581, %c0_341] : memref<64x256xf32, #tpu.memory_space<vmem>>, vector<1x256xf32>
    %583 = arith.index_cast %580 : i32 to index
    %c0_342 = arith.constant 0 : index
    %584 = vector.load %arg3[%583, %c0_342] : memref<64x256xf32, #tpu.memory_space<vmem>>, vector<1x256xf32>
    %585 = arith.addf %582, %584 : vector<1x256xf32>
    %c2_343 = arith.constant 2 : index
    %c9_344 = arith.constant 9 : index
    %c0_345 = arith.constant 0 : index
    %586 = vector.load %arg13[%c2_343, %c9_344, %c0_345] : memref<8x16x256xf32, #tpu.memory_space<vmem>>, vector<1x1x256xf32>
    %587 = vector.shape_cast %586 : vector<1x1x256xf32> to vector<1x256xf32>
    %588 = vector.shape_cast %585 : vector<1x256xf32> to vector<1x1x256xf32>
    tpu.vector_store %arg13[%c2_343, %c9_344, %c0_345], %588 {strides = array<i32>} : memref<8x16x256xf32, #tpu.memory_space<vmem>>, vector<1x1x256xf32>,
    %c10_i32_346 = arith.constant 10 : i32
    %589 = arith.addi %0, %c10_i32_346 : i32
    %590 = arith.index_cast %589 : i32 to index
    %c2_347 = arith.constant 2 : index
    %591 = memref.load %arg1[%590, %c2_347] : memref<16x8xi32, #tpu.memory_space<smem>>
    %c10_i32_348 = arith.constant 10 : i32
    %592 = arith.addi %0, %c10_i32_348 : i32
    %593 = arith.index_cast %592 : i32 to index
    %c5_349 = arith.constant 5 : index
    %594 = memref.load %arg1[%593, %c5_349] : memref<16x8xi32, #tpu.memory_space<smem>>
    %595 = arith.index_cast %591 : i32 to index
    %c0_350 = arith.constant 0 : index
    %596 = vector.load %arg2[%595, %c0_350] : memref<64x256xf32, #tpu.memory_space<vmem>>, vector<1x256xf32>
    %597 = arith.index_cast %594 : i32 to index
    %c0_351 = arith.constant 0 : index
    %598 = vector.load %arg3[%597, %c0_351] : memref<64x256xf32, #tpu.memory_space<vmem>>, vector<1x256xf32>
    %599 = arith.addf %596, %598 : vector<1x256xf32>
    %c2_352 = arith.constant 2 : index
    %c10_353 = arith.constant 10 : index
    %c0_354 = arith.constant 0 : index
    %600 = vector.load %arg13[%c2_352, %c10_353, %c0_354] : memref<8x16x256xf32, #tpu.memory_space<vmem>>, vector<1x1x256xf32>
    %601 = vector.shape_cast %600 : vector<1x1x256xf32> to vector<1x256xf32>
    %602 = vector.shape_cast %599 : vector<1x256xf32> to vector<1x1x256xf32>
    tpu.vector_store %arg13[%c2_352, %c10_353, %c0_354], %602 {strides = array<i32>} : memref<8x16x256xf32, #tpu.memory_space<vmem>>, vector<1x1x256xf32>,
    %c11_i32_355 = arith.constant 11 : i32
    %603 = arith.addi %0, %c11_i32_355 : i32
    %604 = arith.index_cast %603 : i32 to index
    %c2_356 = arith.constant 2 : index
    %605 = memref.load %arg1[%604, %c2_356] : memref<16x8xi32, #tpu.memory_space<smem>>
    %c11_i32_357 = arith.constant 11 : i32
    %606 = arith.addi %0, %c11_i32_357 : i32
    %607 = arith.index_cast %606 : i32 to index
    %c5_358 = arith.constant 5 : index
    %608 = memref.load %arg1[%607, %c5_358] : memref<16x8xi32, #tpu.memory_space<smem>>
    %609 = arith.index_cast %605 : i32 to index
    %c0_359 = arith.constant 0 : index
    %610 = vector.load %arg2[%609, %c0_359] : memref<64x256xf32, #tpu.memory_space<vmem>>, vector<1x256xf32>
    %611 = arith.index_cast %608 : i32 to index
    %c0_360 = arith.constant 0 : index
    %612 = vector.load %arg3[%611, %c0_360] : memref<64x256xf32, #tpu.memory_space<vmem>>, vector<1x256xf32>
    %613 = arith.addf %610, %612 : vector<1x256xf32>
    %c2_361 = arith.constant 2 : index
    %c11_362 = arith.constant 11 : index
    %c0_363 = arith.constant 0 : index
    %614 = vector.load %arg13[%c2_361, %c11_362, %c0_363] : memref<8x16x256xf32, #tpu.memory_space<vmem>>, vector<1x1x256xf32>
    %615 = vector.shape_cast %614 : vector<1x1x256xf32> to vector<1x256xf32>
    %616 = vector.shape_cast %613 : vector<1x256xf32> to vector<1x1x256xf32>
    tpu.vector_store %arg13[%c2_361, %c11_362, %c0_363], %616 {strides = array<i32>} : memref<8x16x256xf32, #tpu.memory_space<vmem>>, vector<1x1x256xf32>,
    %c12_i32_364 = arith.constant 12 : i32
    %617 = arith.addi %0, %c12_i32_364 : i32
    %618 = arith.index_cast %617 : i32 to index
    %c2_365 = arith.constant 2 : index
    %619 = memref.load %arg1[%618, %c2_365] : memref<16x8xi32, #tpu.memory_space<smem>>
    %c12_i32_366 = arith.constant 12 : i32
    %620 = arith.addi %0, %c12_i32_366 : i32
    %621 = arith.index_cast %620 : i32 to index
    %c5_367 = arith.constant 5 : index
    %622 = memref.load %arg1[%621, %c5_367] : memref<16x8xi32, #tpu.memory_space<smem>>
    %623 = arith.index_cast %619 : i32 to index
    %c0_368 = arith.constant 0 : index
    %624 = vector.load %arg2[%623, %c0_368] : memref<64x256xf32, #tpu.memory_space<vmem>>, vector<1x256xf32>
    %625 = arith.index_cast %622 : i32 to index
    %c0_369 = arith.constant 0 : index
    %626 = vector.load %arg3[%625, %c0_369] : memref<64x256xf32, #tpu.memory_space<vmem>>, vector<1x256xf32>
    %627 = arith.addf %624, %626 : vector<1x256xf32>
    %c2_370 = arith.constant 2 : index
    %c12_371 = arith.constant 12 : index
    %c0_372 = arith.constant 0 : index
    %628 = vector.load %arg13[%c2_370, %c12_371, %c0_372] : memref<8x16x256xf32, #tpu.memory_space<vmem>>, vector<1x1x256xf32>
    %629 = vector.shape_cast %628 : vector<1x1x256xf32> to vector<1x256xf32>
    %630 = vector.shape_cast %627 : vector<1x256xf32> to vector<1x1x256xf32>
    tpu.vector_store %arg13[%c2_370, %c12_371, %c0_372], %630 {strides = array<i32>} : memref<8x16x256xf32, #tpu.memory_space<vmem>>, vector<1x1x256xf32>,
    %c13_i32_373 = arith.constant 13 : i32
    %631 = arith.addi %0, %c13_i32_373 : i32
    %632 = arith.index_cast %631 : i32 to index
    %c2_374 = arith.constant 2 : index
    %633 = memref.load %arg1[%632, %c2_374] : memref<16x8xi32, #tpu.memory_space<smem>>
    %c13_i32_375 = arith.constant 13 : i32
    %634 = arith.addi %0, %c13_i32_375 : i32
    %635 = arith.index_cast %634 : i32 to index
    %c5_376 = arith.constant 5 : index
    %636 = memref.load %arg1[%635, %c5_376] : memref<16x8xi32, #tpu.memory_space<smem>>
    %637 = arith.index_cast %633 : i32 to index
    %c0_377 = arith.constant 0 : index
    %638 = vector.load %arg2[%637, %c0_377] : memref<64x256xf32, #tpu.memory_space<vmem>>, vector<1x256xf32>
    %639 = arith.index_cast %636 : i32 to index
    %c0_378 = arith.constant 0 : index
    %640 = vector.load %arg3[%639, %c0_378] : memref<64x256xf32, #tpu.memory_space<vmem>>, vector<1x256xf32>
    %641 = arith.addf %638, %640 : vector<1x256xf32>
    %c2_379 = arith.constant 2 : index
    %c13_380 = arith.constant 13 : index
    %c0_381 = arith.constant 0 : index
    %642 = vector.load %arg13[%c2_379, %c13_380, %c0_381] : memref<8x16x256xf32, #tpu.memory_space<vmem>>, vector<1x1x256xf32>
    %643 = vector.shape_cast %642 : vector<1x1x256xf32> to vector<1x256xf32>
    %644 = vector.shape_cast %641 : vector<1x256xf32> to vector<1x1x256xf32>
    tpu.vector_store %arg13[%c2_379, %c13_380, %c0_381], %644 {strides = array<i32>} : memref<8x16x256xf32, #tpu.memory_space<vmem>>, vector<1x1x256xf32>,
    %c14_i32_382 = arith.constant 14 : i32
    %645 = arith.addi %0, %c14_i32_382 : i32
    %646 = arith.index_cast %645 : i32 to index
    %c2_383 = arith.constant 2 : index
    %647 = memref.load %arg1[%646, %c2_383] : memref<16x8xi32, #tpu.memory_space<smem>>
    %c14_i32_384 = arith.constant 14 : i32
    %648 = arith.addi %0, %c14_i32_384 : i32
    %649 = arith.index_cast %648 : i32 to index
    %c5_385 = arith.constant 5 : index
    %650 = memref.load %arg1[%649, %c5_385] : memref<16x8xi32, #tpu.memory_space<smem>>
    %651 = arith.index_cast %647 : i32 to index
    %c0_386 = arith.constant 0 : index
    %652 = vector.load %arg2[%651, %c0_386] : memref<64x256xf32, #tpu.memory_space<vmem>>, vector<1x256xf32>
    %653 = arith.index_cast %650 : i32 to index
    %c0_387 = arith.constant 0 : index
    %654 = vector.load %arg3[%653, %c0_387] : memref<64x256xf32, #tpu.memory_space<vmem>>, vector<1x256xf32>
    %655 = arith.addf %652, %654 : vector<1x256xf32>
    %c2_388 = arith.constant 2 : index
    %c14_389 = arith.constant 14 : index
    %c0_390 = arith.constant 0 : index
    %656 = vector.load %arg13[%c2_388, %c14_389, %c0_390] : memref<8x16x256xf32, #tpu.memory_space<vmem>>, vector<1x1x256xf32>
    %657 = vector.shape_cast %656 : vector<1x1x256xf32> to vector<1x256xf32>
    %658 = vector.shape_cast %655 : vector<1x256xf32> to vector<1x1x256xf32>
    tpu.vector_store %arg13[%c2_388, %c14_389, %c0_390], %658 {strides = array<i32>} : memref<8x16x256xf32, #tpu.memory_space<vmem>>, vector<1x1x256xf32>,
    %c15_i32_391 = arith.constant 15 : i32
    %659 = arith.addi %0, %c15_i32_391 : i32
    %660 = arith.index_cast %659 : i32 to index
    %c2_392 = arith.constant 2 : index
    %661 = memref.load %arg1[%660, %c2_392] : memref<16x8xi32, #tpu.memory_space<smem>>
    %c15_i32_393 = arith.constant 15 : i32
    %662 = arith.addi %0, %c15_i32_393 : i32
    %663 = arith.index_cast %662 : i32 to index
    %c5_394 = arith.constant 5 : index
    %664 = memref.load %arg1[%663, %c5_394] : memref<16x8xi32, #tpu.memory_space<smem>>
    %665 = arith.index_cast %661 : i32 to index
    %c0_395 = arith.constant 0 : index
    %666 = vector.load %arg2[%665, %c0_395] : memref<64x256xf32, #tpu.memory_space<vmem>>, vector<1x256xf32>
    %667 = arith.index_cast %664 : i32 to index
    %c0_396 = arith.constant 0 : index
    %668 = vector.load %arg3[%667, %c0_396] : memref<64x256xf32, #tpu.memory_space<vmem>>, vector<1x256xf32>
    %669 = arith.addf %666, %668 : vector<1x256xf32>
    %c2_397 = arith.constant 2 : index
    %c15_398 = arith.constant 15 : index
    %c0_399 = arith.constant 0 : index
    %670 = vector.load %arg13[%c2_397, %c15_398, %c0_399] : memref<8x16x256xf32, #tpu.memory_space<vmem>>, vector<1x1x256xf32>
    %671 = vector.shape_cast %670 : vector<1x1x256xf32> to vector<1x256xf32>
    %672 = vector.shape_cast %669 : vector<1x256xf32> to vector<1x1x256xf32>
    tpu.vector_store %arg13[%c2_397, %c15_398, %c0_399], %672 {strides = array<i32>} : memref<8x16x256xf32, #tpu.memory_space<vmem>>, vector<1x1x256xf32>,
    %c0_i32_400 = arith.constant 0 : i32
    %673 = arith.addi %0, %c0_i32_400 : i32
    %674 = arith.index_cast %673 : i32 to index
    %c3_401 = arith.constant 3 : index
    %675 = memref.load %arg1[%674, %c3_401] : memref<16x8xi32, #tpu.memory_space<smem>>
    %c0_i32_402 = arith.constant 0 : i32
    %676 = arith.addi %0, %c0_i32_402 : i32
    %677 = arith.index_cast %676 : i32 to index
    %c4_403 = arith.constant 4 : index
    %678 = memref.load %arg1[%677, %c4_403] : memref<16x8xi32, #tpu.memory_space<smem>>
    %679 = arith.index_cast %675 : i32 to index
    %c0_404 = arith.constant 0 : index
    %680 = vector.load %arg2[%679, %c0_404] : memref<64x256xf32, #tpu.memory_space<vmem>>, vector<1x256xf32>
    %681 = arith.index_cast %678 : i32 to index
    %c0_405 = arith.constant 0 : index
    %682 = vector.load %arg3[%681, %c0_405] : memref<64x256xf32, #tpu.memory_space<vmem>>, vector<1x256xf32>
    %683 = arith.addf %680, %682 : vector<1x256xf32>
    %c3_406 = arith.constant 3 : index
    %c0_407 = arith.constant 0 : index
    %c0_408 = arith.constant 0 : index
    %684 = vector.load %arg13[%c3_406, %c0_407, %c0_408] : memref<8x16x256xf32, #tpu.memory_space<vmem>>, vector<1x1x256xf32>
    %685 = vector.shape_cast %684 : vector<1x1x256xf32> to vector<1x256xf32>
    %686 = vector.shape_cast %683 : vector<1x256xf32> to vector<1x1x256xf32>
    tpu.vector_store %arg13[%c3_406, %c0_407, %c0_408], %686 {strides = array<i32>} : memref<8x16x256xf32, #tpu.memory_space<vmem>>, vector<1x1x256xf32>,
    %c1_i32_409 = arith.constant 1 : i32
    %687 = arith.addi %0, %c1_i32_409 : i32
    %688 = arith.index_cast %687 : i32 to index
    %c3_410 = arith.constant 3 : index
    %689 = memref.load %arg1[%688, %c3_410] : memref<16x8xi32, #tpu.memory_space<smem>>
    %c1_i32_411 = arith.constant 1 : i32
    %690 = arith.addi %0, %c1_i32_411 : i32
    %691 = arith.index_cast %690 : i32 to index
    %c4_412 = arith.constant 4 : index
    %692 = memref.load %arg1[%691, %c4_412] : memref<16x8xi32, #tpu.memory_space<smem>>
    %693 = arith.index_cast %689 : i32 to index
    %c0_413 = arith.constant 0 : index
    %694 = vector.load %arg2[%693, %c0_413] : memref<64x256xf32, #tpu.memory_space<vmem>>, vector<1x256xf32>
    %695 = arith.index_cast %692 : i32 to index
    %c0_414 = arith.constant 0 : index
    %696 = vector.load %arg3[%695, %c0_414] : memref<64x256xf32, #tpu.memory_space<vmem>>, vector<1x256xf32>
    %697 = arith.addf %694, %696 : vector<1x256xf32>
    %c3_415 = arith.constant 3 : index
    %c1_416 = arith.constant 1 : index
    %c0_417 = arith.constant 0 : index
    %698 = vector.load %arg13[%c3_415, %c1_416, %c0_417] : memref<8x16x256xf32, #tpu.memory_space<vmem>>, vector<1x1x256xf32>
    %699 = vector.shape_cast %698 : vector<1x1x256xf32> to vector<1x256xf32>
    %700 = vector.shape_cast %697 : vector<1x256xf32> to vector<1x1x256xf32>
    tpu.vector_store %arg13[%c3_415, %c1_416, %c0_417], %700 {strides = array<i32>} : memref<8x16x256xf32, #tpu.memory_space<vmem>>, vector<1x1x256xf32>,
    %c2_i32_418 = arith.constant 2 : i32
    %701 = arith.addi %0, %c2_i32_418 : i32
    %702 = arith.index_cast %701 : i32 to index
    %c3_419 = arith.constant 3 : index
    %703 = memref.load %arg1[%702, %c3_419] : memref<16x8xi32, #tpu.memory_space<smem>>
    %c2_i32_420 = arith.constant 2 : i32
    %704 = arith.addi %0, %c2_i32_420 : i32
    %705 = arith.index_cast %704 : i32 to index
    %c4_421 = arith.constant 4 : index
    %706 = memref.load %arg1[%705, %c4_421] : memref<16x8xi32, #tpu.memory_space<smem>>
    %707 = arith.index_cast %703 : i32 to index
    %c0_422 = arith.constant 0 : index
    %708 = vector.load %arg2[%707, %c0_422] : memref<64x256xf32, #tpu.memory_space<vmem>>, vector<1x256xf32>
    %709 = arith.index_cast %706 : i32 to index
    %c0_423 = arith.constant 0 : index
    %710 = vector.load %arg3[%709, %c0_423] : memref<64x256xf32, #tpu.memory_space<vmem>>, vector<1x256xf32>
    %711 = arith.addf %708, %710 : vector<1x256xf32>
    %c3_424 = arith.constant 3 : index
    %c2_425 = arith.constant 2 : index
    %c0_426 = arith.constant 0 : index
    %712 = vector.load %arg13[%c3_424, %c2_425, %c0_426] : memref<8x16x256xf32, #tpu.memory_space<vmem>>, vector<1x1x256xf32>
    %713 = vector.shape_cast %712 : vector<1x1x256xf32> to vector<1x256xf32>
    %714 = vector.shape_cast %711 : vector<1x256xf32> to vector<1x1x256xf32>
    tpu.vector_store %arg13[%c3_424, %c2_425, %c0_426], %714 {strides = array<i32>} : memref<8x16x256xf32, #tpu.memory_space<vmem>>, vector<1x1x256xf32>,
    %c3_i32_427 = arith.constant 3 : i32
    %715 = arith.addi %0, %c3_i32_427 : i32
    %716 = arith.index_cast %715 : i32 to index
    %c3_428 = arith.constant 3 : index
    %717 = memref.load %arg1[%716, %c3_428] : memref<16x8xi32, #tpu.memory_space<smem>>
    %c3_i32_429 = arith.constant 3 : i32
    %718 = arith.addi %0, %c3_i32_429 : i32
    %719 = arith.index_cast %718 : i32 to index
    %c4_430 = arith.constant 4 : index
    %720 = memref.load %arg1[%719, %c4_430] : memref<16x8xi32, #tpu.memory_space<smem>>
    %721 = arith.index_cast %717 : i32 to index
    %c0_431 = arith.constant 0 : index
    %722 = vector.load %arg2[%721, %c0_431] : memref<64x256xf32, #tpu.memory_space<vmem>>, vector<1x256xf32>
    %723 = arith.index_cast %720 : i32 to index
    %c0_432 = arith.constant 0 : index
    %724 = vector.load %arg3[%723, %c0_432] : memref<64x256xf32, #tpu.memory_space<vmem>>, vector<1x256xf32>
    %725 = arith.addf %722, %724 : vector<1x256xf32>
    %c3_433 = arith.constant 3 : index
    %c3_434 = arith.constant 3 : index
    %c0_435 = arith.constant 0 : index
    %726 = vector.load %arg13[%c3_433, %c3_434, %c0_435] : memref<8x16x256xf32, #tpu.memory_space<vmem>>, vector<1x1x256xf32>
    %727 = vector.shape_cast %726 : vector<1x1x256xf32> to vector<1x256xf32>
    %728 = vector.shape_cast %725 : vector<1x256xf32> to vector<1x1x256xf32>
    tpu.vector_store %arg13[%c3_433, %c3_434, %c0_435], %728 {strides = array<i32>} : memref<8x16x256xf32, #tpu.memory_space<vmem>>, vector<1x1x256xf32>,
    %c4_i32_436 = arith.constant 4 : i32
    %729 = arith.addi %0, %c4_i32_436 : i32
    %730 = arith.index_cast %729 : i32 to index
    %c3_437 = arith.constant 3 : index
    %731 = memref.load %arg1[%730, %c3_437] : memref<16x8xi32, #tpu.memory_space<smem>>
    %c4_i32_438 = arith.constant 4 : i32
    %732 = arith.addi %0, %c4_i32_438 : i32
    %733 = arith.index_cast %732 : i32 to index
    %c4_439 = arith.constant 4 : index
    %734 = memref.load %arg1[%733, %c4_439] : memref<16x8xi32, #tpu.memory_space<smem>>
    %735 = arith.index_cast %731 : i32 to index
    %c0_440 = arith.constant 0 : index
    %736 = vector.load %arg2[%735, %c0_440] : memref<64x256xf32, #tpu.memory_space<vmem>>, vector<1x256xf32>
    %737 = arith.index_cast %734 : i32 to index
    %c0_441 = arith.constant 0 : index
    %738 = vector.load %arg3[%737, %c0_441] : memref<64x256xf32, #tpu.memory_space<vmem>>, vector<1x256xf32>
    %739 = arith.addf %736, %738 : vector<1x256xf32>
    %c3_442 = arith.constant 3 : index
    %c4_443 = arith.constant 4 : index
    %c0_444 = arith.constant 0 : index
    %740 = vector.load %arg13[%c3_442, %c4_443, %c0_444] : memref<8x16x256xf32, #tpu.memory_space<vmem>>, vector<1x1x256xf32>
    %741 = vector.shape_cast %740 : vector<1x1x256xf32> to vector<1x256xf32>
    %742 = vector.shape_cast %739 : vector<1x256xf32> to vector<1x1x256xf32>
    tpu.vector_store %arg13[%c3_442, %c4_443, %c0_444], %742 {strides = array<i32>} : memref<8x16x256xf32, #tpu.memory_space<vmem>>, vector<1x1x256xf32>,
    %c5_i32_445 = arith.constant 5 : i32
    %743 = arith.addi %0, %c5_i32_445 : i32
    %744 = arith.index_cast %743 : i32 to index
    %c3_446 = arith.constant 3 : index
    %745 = memref.load %arg1[%744, %c3_446] : memref<16x8xi32, #tpu.memory_space<smem>>
    %c5_i32_447 = arith.constant 5 : i32
    %746 = arith.addi %0, %c5_i32_447 : i32
    %747 = arith.index_cast %746 : i32 to index
    %c4_448 = arith.constant 4 : index
    %748 = memref.load %arg1[%747, %c4_448] : memref<16x8xi32, #tpu.memory_space<smem>>
    %749 = arith.index_cast %745 : i32 to index
    %c0_449 = arith.constant 0 : index
    %750 = vector.load %arg2[%749, %c0_449] : memref<64x256xf32, #tpu.memory_space<vmem>>, vector<1x256xf32>
    %751 = arith.index_cast %748 : i32 to index
    %c0_450 = arith.constant 0 : index
    %752 = vector.load %arg3[%751, %c0_450] : memref<64x256xf32, #tpu.memory_space<vmem>>, vector<1x256xf32>
    %753 = arith.addf %750, %752 : vector<1x256xf32>
    %c3_451 = arith.constant 3 : index
    %c5_452 = arith.constant 5 : index
    %c0_453 = arith.constant 0 : index
    %754 = vector.load %arg13[%c3_451, %c5_452, %c0_453] : memref<8x16x256xf32, #tpu.memory_space<vmem>>, vector<1x1x256xf32>
    %755 = vector.shape_cast %754 : vector<1x1x256xf32> to vector<1x256xf32>
    %756 = vector.shape_cast %753 : vector<1x256xf32> to vector<1x1x256xf32>
    tpu.vector_store %arg13[%c3_451, %c5_452, %c0_453], %756 {strides = array<i32>} : memref<8x16x256xf32, #tpu.memory_space<vmem>>, vector<1x1x256xf32>,
    %c6_i32_454 = arith.constant 6 : i32
    %757 = arith.addi %0, %c6_i32_454 : i32
    %758 = arith.index_cast %757 : i32 to index
    %c3_455 = arith.constant 3 : index
    %759 = memref.load %arg1[%758, %c3_455] : memref<16x8xi32, #tpu.memory_space<smem>>
    %c6_i32_456 = arith.constant 6 : i32
    %760 = arith.addi %0, %c6_i32_456 : i32
    %761 = arith.index_cast %760 : i32 to index
    %c4_457 = arith.constant 4 : index
    %762 = memref.load %arg1[%761, %c4_457] : memref<16x8xi32, #tpu.memory_space<smem>>
    %763 = arith.index_cast %759 : i32 to index
    %c0_458 = arith.constant 0 : index
    %764 = vector.load %arg2[%763, %c0_458] : memref<64x256xf32, #tpu.memory_space<vmem>>, vector<1x256xf32>
    %765 = arith.index_cast %762 : i32 to index
    %c0_459 = arith.constant 0 : index
    %766 = vector.load %arg3[%765, %c0_459] : memref<64x256xf32, #tpu.memory_space<vmem>>, vector<1x256xf32>
    %767 = arith.addf %764, %766 : vector<1x256xf32>
    %c3_460 = arith.constant 3 : index
    %c6_461 = arith.constant 6 : index
    %c0_462 = arith.constant 0 : index
    %768 = vector.load %arg13[%c3_460, %c6_461, %c0_462] : memref<8x16x256xf32, #tpu.memory_space<vmem>>, vector<1x1x256xf32>
    %769 = vector.shape_cast %768 : vector<1x1x256xf32> to vector<1x256xf32>
    %770 = vector.shape_cast %767 : vector<1x256xf32> to vector<1x1x256xf32>
    tpu.vector_store %arg13[%c3_460, %c6_461, %c0_462], %770 {strides = array<i32>} : memref<8x16x256xf32, #tpu.memory_space<vmem>>, vector<1x1x256xf32>,
    %c7_i32_463 = arith.constant 7 : i32
    %771 = arith.addi %0, %c7_i32_463 : i32
    %772 = arith.index_cast %771 : i32 to index
    %c3_464 = arith.constant 3 : index
    %773 = memref.load %arg1[%772, %c3_464] : memref<16x8xi32, #tpu.memory_space<smem>>
    %c7_i32_465 = arith.constant 7 : i32
    %774 = arith.addi %0, %c7_i32_465 : i32
    %775 = arith.index_cast %774 : i32 to index
    %c4_466 = arith.constant 4 : index
    %776 = memref.load %arg1[%775, %c4_466] : memref<16x8xi32, #tpu.memory_space<smem>>
    %777 = arith.index_cast %773 : i32 to index
    %c0_467 = arith.constant 0 : index
    %778 = vector.load %arg2[%777, %c0_467] : memref<64x256xf32, #tpu.memory_space<vmem>>, vector<1x256xf32>
    %779 = arith.index_cast %776 : i32 to index
    %c0_468 = arith.constant 0 : index
    %780 = vector.load %arg3[%779, %c0_468] : memref<64x256xf32, #tpu.memory_space<vmem>>, vector<1x256xf32>
    %781 = arith.addf %778, %780 : vector<1x256xf32>
    %c3_469 = arith.constant 3 : index
    %c7_470 = arith.constant 7 : index
    %c0_471 = arith.constant 0 : index
    %782 = vector.load %arg13[%c3_469, %c7_470, %c0_471] : memref<8x16x256xf32, #tpu.memory_space<vmem>>, vector<1x1x256xf32>
    %783 = vector.shape_cast %782 : vector<1x1x256xf32> to vector<1x256xf32>
    %784 = vector.shape_cast %781 : vector<1x256xf32> to vector<1x1x256xf32>
    tpu.vector_store %arg13[%c3_469, %c7_470, %c0_471], %784 {strides = array<i32>} : memref<8x16x256xf32, #tpu.memory_space<vmem>>, vector<1x1x256xf32>,
    %c8_i32_472 = arith.constant 8 : i32
    %785 = arith.addi %0, %c8_i32_472 : i32
    %786 = arith.index_cast %785 : i32 to index
    %c3_473 = arith.constant 3 : index
    %787 = memref.load %arg1[%786, %c3_473] : memref<16x8xi32, #tpu.memory_space<smem>>
    %c8_i32_474 = arith.constant 8 : i32
    %788 = arith.addi %0, %c8_i32_474 : i32
    %789 = arith.index_cast %788 : i32 to index
    %c4_475 = arith.constant 4 : index
    %790 = memref.load %arg1[%789, %c4_475] : memref<16x8xi32, #tpu.memory_space<smem>>
    %791 = arith.index_cast %787 : i32 to index
    %c0_476 = arith.constant 0 : index
    %792 = vector.load %arg2[%791, %c0_476] : memref<64x256xf32, #tpu.memory_space<vmem>>, vector<1x256xf32>
    %793 = arith.index_cast %790 : i32 to index
    %c0_477 = arith.constant 0 : index
    %794 = vector.load %arg3[%793, %c0_477] : memref<64x256xf32, #tpu.memory_space<vmem>>, vector<1x256xf32>
    %795 = arith.addf %792, %794 : vector<1x256xf32>
    %c3_478 = arith.constant 3 : index
    %c8_479 = arith.constant 8 : index
    %c0_480 = arith.constant 0 : index
    %796 = vector.load %arg13[%c3_478, %c8_479, %c0_480] : memref<8x16x256xf32, #tpu.memory_space<vmem>>, vector<1x1x256xf32>
    %797 = vector.shape_cast %796 : vector<1x1x256xf32> to vector<1x256xf32>
    %798 = vector.shape_cast %795 : vector<1x256xf32> to vector<1x1x256xf32>
    tpu.vector_store %arg13[%c3_478, %c8_479, %c0_480], %798 {strides = array<i32>} : memref<8x16x256xf32, #tpu.memory_space<vmem>>, vector<1x1x256xf32>,
    %c9_i32_481 = arith.constant 9 : i32
    %799 = arith.addi %0, %c9_i32_481 : i32
    %800 = arith.index_cast %799 : i32 to index
    %c3_482 = arith.constant 3 : index
    %801 = memref.load %arg1[%800, %c3_482] : memref<16x8xi32, #tpu.memory_space<smem>>
    %c9_i32_483 = arith.constant 9 : i32
    %802 = arith.addi %0, %c9_i32_483 : i32
    %803 = arith.index_cast %802 : i32 to index
    %c4_484 = arith.constant 4 : index
    %804 = memref.load %arg1[%803, %c4_484] : memref<16x8xi32, #tpu.memory_space<smem>>
    %805 = arith.index_cast %801 : i32 to index
    %c0_485 = arith.constant 0 : index
    %806 = vector.load %arg2[%805, %c0_485] : memref<64x256xf32, #tpu.memory_space<vmem>>, vector<1x256xf32>
    %807 = arith.index_cast %804 : i32 to index
    %c0_486 = arith.constant 0 : index
    %808 = vector.load %arg3[%807, %c0_486] : memref<64x256xf32, #tpu.memory_space<vmem>>, vector<1x256xf32>
    %809 = arith.addf %806, %808 : vector<1x256xf32>
    %c3_487 = arith.constant 3 : index
    %c9_488 = arith.constant 9 : index
    %c0_489 = arith.constant 0 : index
    %810 = vector.load %arg13[%c3_487, %c9_488, %c0_489] : memref<8x16x256xf32, #tpu.memory_space<vmem>>, vector<1x1x256xf32>
    %811 = vector.shape_cast %810 : vector<1x1x256xf32> to vector<1x256xf32>
    %812 = vector.shape_cast %809 : vector<1x256xf32> to vector<1x1x256xf32>
    tpu.vector_store %arg13[%c3_487, %c9_488, %c0_489], %812 {strides = array<i32>} : memref<8x16x256xf32, #tpu.memory_space<vmem>>, vector<1x1x256xf32>,
    %c10_i32_490 = arith.constant 10 : i32
    %813 = arith.addi %0, %c10_i32_490 : i32
    %814 = arith.index_cast %813 : i32 to index
    %c3_491 = arith.constant 3 : index
    %815 = memref.load %arg1[%814, %c3_491] : memref<16x8xi32, #tpu.memory_space<smem>>
    %c10_i32_492 = arith.constant 10 : i32
    %816 = arith.addi %0, %c10_i32_492 : i32
    %817 = arith.index_cast %816 : i32 to index
    %c4_493 = arith.constant 4 : index
    %818 = memref.load %arg1[%817, %c4_493] : memref<16x8xi32, #tpu.memory_space<smem>>
    %819 = arith.index_cast %815 : i32 to index
    %c0_494 = arith.constant 0 : index
    %820 = vector.load %arg2[%819, %c0_494] : memref<64x256xf32, #tpu.memory_space<vmem>>, vector<1x256xf32>
    %821 = arith.index_cast %818 : i32 to index
    %c0_495 = arith.constant 0 : index
    %822 = vector.load %arg3[%821, %c0_495] : memref<64x256xf32, #tpu.memory_space<vmem>>, vector<1x256xf32>
    %823 = arith.addf %820, %822 : vector<1x256xf32>
    %c3_496 = arith.constant 3 : index
    %c10_497 = arith.constant 10 : index
    %c0_498 = arith.constant 0 : index
    %824 = vector.load %arg13[%c3_496, %c10_497, %c0_498] : memref<8x16x256xf32, #tpu.memory_space<vmem>>, vector<1x1x256xf32>
    %825 = vector.shape_cast %824 : vector<1x1x256xf32> to vector<1x256xf32>
    %826 = vector.shape_cast %823 : vector<1x256xf32> to vector<1x1x256xf32>
    tpu.vector_store %arg13[%c3_496, %c10_497, %c0_498], %826 {strides = array<i32>} : memref<8x16x256xf32, #tpu.memory_space<vmem>>, vector<1x1x256xf32>,
    %c11_i32_499 = arith.constant 11 : i32
    %827 = arith.addi %0, %c11_i32_499 : i32
    %828 = arith.index_cast %827 : i32 to index
    %c3_500 = arith.constant 3 : index
    %829 = memref.load %arg1[%828, %c3_500] : memref<16x8xi32, #tpu.memory_space<smem>>
    %c11_i32_501 = arith.constant 11 : i32
    %830 = arith.addi %0, %c11_i32_501 : i32
    %831 = arith.index_cast %830 : i32 to index
    %c4_502 = arith.constant 4 : index
    %832 = memref.load %arg1[%831, %c4_502] : memref<16x8xi32, #tpu.memory_space<smem>>
    %833 = arith.index_cast %829 : i32 to index
    %c0_503 = arith.constant 0 : index
    %834 = vector.load %arg2[%833, %c0_503] : memref<64x256xf32, #tpu.memory_space<vmem>>, vector<1x256xf32>
    %835 = arith.index_cast %832 : i32 to index
    %c0_504 = arith.constant 0 : index
    %836 = vector.load %arg3[%835, %c0_504] : memref<64x256xf32, #tpu.memory_space<vmem>>, vector<1x256xf32>
    %837 = arith.addf %834, %836 : vector<1x256xf32>
    %c3_505 = arith.constant 3 : index
    %c11_506 = arith.constant 11 : index
    %c0_507 = arith.constant 0 : index
    %838 = vector.load %arg13[%c3_505, %c11_506, %c0_507] : memref<8x16x256xf32, #tpu.memory_space<vmem>>, vector<1x1x256xf32>
    %839 = vector.shape_cast %838 : vector<1x1x256xf32> to vector<1x256xf32>
    %840 = vector.shape_cast %837 : vector<1x256xf32> to vector<1x1x256xf32>
    tpu.vector_store %arg13[%c3_505, %c11_506, %c0_507], %840 {strides = array<i32>} : memref<8x16x256xf32, #tpu.memory_space<vmem>>, vector<1x1x256xf32>,
    %c12_i32_508 = arith.constant 12 : i32
    %841 = arith.addi %0, %c12_i32_508 : i32
    %842 = arith.index_cast %841 : i32 to index
    %c3_509 = arith.constant 3 : index
    %843 = memref.load %arg1[%842, %c3_509] : memref<16x8xi32, #tpu.memory_space<smem>>
    %c12_i32_510 = arith.constant 12 : i32
    %844 = arith.addi %0, %c12_i32_510 : i32
    %845 = arith.index_cast %844 : i32 to index
    %c4_511 = arith.constant 4 : index
    %846 = memref.load %arg1[%845, %c4_511] : memref<16x8xi32, #tpu.memory_space<smem>>
    %847 = arith.index_cast %843 : i32 to index
    %c0_512 = arith.constant 0 : index
    %848 = vector.load %arg2[%847, %c0_512] : memref<64x256xf32, #tpu.memory_space<vmem>>, vector<1x256xf32>
    %849 = arith.index_cast %846 : i32 to index
    %c0_513 = arith.constant 0 : index
    %850 = vector.load %arg3[%849, %c0_513] : memref<64x256xf32, #tpu.memory_space<vmem>>, vector<1x256xf32>
    %851 = arith.addf %848, %850 : vector<1x256xf32>
    %c3_514 = arith.constant 3 : index
    %c12_515 = arith.constant 12 : index
    %c0_516 = arith.constant 0 : index
    %852 = vector.load %arg13[%c3_514, %c12_515, %c0_516] : memref<8x16x256xf32, #tpu.memory_space<vmem>>, vector<1x1x256xf32>
    %853 = vector.shape_cast %852 : vector<1x1x256xf32> to vector<1x256xf32>
    %854 = vector.shape_cast %851 : vector<1x256xf32> to vector<1x1x256xf32>
    tpu.vector_store %arg13[%c3_514, %c12_515, %c0_516], %854 {strides = array<i32>} : memref<8x16x256xf32, #tpu.memory_space<vmem>>, vector<1x1x256xf32>,
    %c13_i32_517 = arith.constant 13 : i32
    %855 = arith.addi %0, %c13_i32_517 : i32
    %856 = arith.index_cast %855 : i32 to index
    %c3_518 = arith.constant 3 : index
    %857 = memref.load %arg1[%856, %c3_518] : memref<16x8xi32, #tpu.memory_space<smem>>
    %c13_i32_519 = arith.constant 13 : i32
    %858 = arith.addi %0, %c13_i32_519 : i32
    %859 = arith.index_cast %858 : i32 to index
    %c4_520 = arith.constant 4 : index
    %860 = memref.load %arg1[%859, %c4_520] : memref<16x8xi32, #tpu.memory_space<smem>>
    %861 = arith.index_cast %857 : i32 to index
    %c0_521 = arith.constant 0 : index
    %862 = vector.load %arg2[%861, %c0_521] : memref<64x256xf32, #tpu.memory_space<vmem>>, vector<1x256xf32>
    %863 = arith.index_cast %860 : i32 to index
    %c0_522 = arith.constant 0 : index
    %864 = vector.load %arg3[%863, %c0_522] : memref<64x256xf32, #tpu.memory_space<vmem>>, vector<1x256xf32>
    %865 = arith.addf %862, %864 : vector<1x256xf32>
    %c3_523 = arith.constant 3 : index
    %c13_524 = arith.constant 13 : index
    %c0_525 = arith.constant 0 : index
    %866 = vector.load %arg13[%c3_523, %c13_524, %c0_525] : memref<8x16x256xf32, #tpu.memory_space<vmem>>, vector<1x1x256xf32>
    %867 = vector.shape_cast %866 : vector<1x1x256xf32> to vector<1x256xf32>
    %868 = vector.shape_cast %865 : vector<1x256xf32> to vector<1x1x256xf32>
    tpu.vector_store %arg13[%c3_523, %c13_524, %c0_525], %868 {strides = array<i32>} : memref<8x16x256xf32, #tpu.memory_space<vmem>>, vector<1x1x256xf32>,
    %c14_i32_526 = arith.constant 14 : i32
    %869 = arith.addi %0, %c14_i32_526 : i32
    %870 = arith.index_cast %869 : i32 to index
    %c3_527 = arith.constant 3 : index
    %871 = memref.load %arg1[%870, %c3_527] : memref<16x8xi32, #tpu.memory_space<smem>>
    %c14_i32_528 = arith.constant 14 : i32
    %872 = arith.addi %0, %c14_i32_528 : i32
    %873 = arith.index_cast %872 : i32 to index
    %c4_529 = arith.constant 4 : index
    %874 = memref.load %arg1[%873, %c4_529] : memref<16x8xi32, #tpu.memory_space<smem>>
    %875 = arith.index_cast %871 : i32 to index
    %c0_530 = arith.constant 0 : index
    %876 = vector.load %arg2[%875, %c0_530] : memref<64x256xf32, #tpu.memory_space<vmem>>, vector<1x256xf32>
    %877 = arith.index_cast %874 : i32 to index
    %c0_531 = arith.constant 0 : index
    %878 = vector.load %arg3[%877, %c0_531] : memref<64x256xf32, #tpu.memory_space<vmem>>, vector<1x256xf32>
    %879 = arith.addf %876, %878 : vector<1x256xf32>
    %c3_532 = arith.constant 3 : index
    %c14_533 = arith.constant 14 : index
    %c0_534 = arith.constant 0 : index
    %880 = vector.load %arg13[%c3_532, %c14_533, %c0_534] : memref<8x16x256xf32, #tpu.memory_space<vmem>>, vector<1x1x256xf32>
    %881 = vector.shape_cast %880 : vector<1x1x256xf32> to vector<1x256xf32>
    %882 = vector.shape_cast %879 : vector<1x256xf32> to vector<1x1x256xf32>
    tpu.vector_store %arg13[%c3_532, %c14_533, %c0_534], %882 {strides = array<i32>} : memref<8x16x256xf32, #tpu.memory_space<vmem>>, vector<1x1x256xf32>,
    %c15_i32_535 = arith.constant 15 : i32
    %883 = arith.addi %0, %c15_i32_535 : i32
    %884 = arith.index_cast %883 : i32 to index
    %c3_536 = arith.constant 3 : index
    %885 = memref.load %arg1[%884, %c3_536] : memref<16x8xi32, #tpu.memory_space<smem>>
    %c15_i32_537 = arith.constant 15 : i32
    %886 = arith.addi %0, %c15_i32_537 : i32
    %887 = arith.index_cast %886 : i32 to index
    %c4_538 = arith.constant 4 : index
    %888 = memref.load %arg1[%887, %c4_538] : memref<16x8xi32, #tpu.memory_space<smem>>
    %889 = arith.index_cast %885 : i32 to index
    %c0_539 = arith.constant 0 : index
    %890 = vector.load %arg2[%889, %c0_539] : memref<64x256xf32, #tpu.memory_space<vmem>>, vector<1x256xf32>
    %891 = arith.index_cast %888 : i32 to index
    %c0_540 = arith.constant 0 : index
    %892 = vector.load %arg3[%891, %c0_540] : memref<64x256xf32, #tpu.memory_space<vmem>>, vector<1x256xf32>
    %893 = arith.addf %890, %892 : vector<1x256xf32>
    %c3_541 = arith.constant 3 : index
    %c15_542 = arith.constant 15 : index
    %c0_543 = arith.constant 0 : index
    %894 = vector.load %arg13[%c3_541, %c15_542, %c0_543] : memref<8x16x256xf32, #tpu.memory_space<vmem>>, vector<1x1x256xf32>
    %895 = vector.shape_cast %894 : vector<1x1x256xf32> to vector<1x256xf32>
    %896 = vector.shape_cast %893 : vector<1x256xf32> to vector<1x1x256xf32>
    tpu.vector_store %arg13[%c3_541, %c15_542, %c0_543], %896 {strides = array<i32>} : memref<8x16x256xf32, #tpu.memory_space<vmem>>, vector<1x1x256xf32>,
    %c0_i32_544 = arith.constant 0 : i32
    %897 = arith.addi %0, %c0_i32_544 : i32
    %898 = arith.index_cast %897 : i32 to index
    %c4_545 = arith.constant 4 : index
    %899 = memref.load %arg1[%898, %c4_545] : memref<16x8xi32, #tpu.memory_space<smem>>
    %c0_i32_546 = arith.constant 0 : i32
    %900 = arith.addi %0, %c0_i32_546 : i32
    %901 = arith.index_cast %900 : i32 to index
    %c3_547 = arith.constant 3 : index
    %902 = memref.load %arg1[%901, %c3_547] : memref<16x8xi32, #tpu.memory_space<smem>>
    %903 = arith.index_cast %899 : i32 to index
    %c0_548 = arith.constant 0 : index
    %904 = vector.load %arg2[%903, %c0_548] : memref<64x256xf32, #tpu.memory_space<vmem>>, vector<1x256xf32>
    %905 = arith.index_cast %902 : i32 to index
    %c0_549 = arith.constant 0 : index
    %906 = vector.load %arg3[%905, %c0_549] : memref<64x256xf32, #tpu.memory_space<vmem>>, vector<1x256xf32>
    %907 = arith.addf %904, %906 : vector<1x256xf32>
    %c4_550 = arith.constant 4 : index
    %c0_551 = arith.constant 0 : index
    %c0_552 = arith.constant 0 : index
    %908 = vector.load %arg13[%c4_550, %c0_551, %c0_552] : memref<8x16x256xf32, #tpu.memory_space<vmem>>, vector<1x1x256xf32>
    %909 = vector.shape_cast %908 : vector<1x1x256xf32> to vector<1x256xf32>
    %910 = vector.shape_cast %907 : vector<1x256xf32> to vector<1x1x256xf32>
    tpu.vector_store %arg13[%c4_550, %c0_551, %c0_552], %910 {strides = array<i32>} : memref<8x16x256xf32, #tpu.memory_space<vmem>>, vector<1x1x256xf32>,
    %c1_i32_553 = arith.constant 1 : i32
    %911 = arith.addi %0, %c1_i32_553 : i32
    %912 = arith.index_cast %911 : i32 to index
    %c4_554 = arith.constant 4 : index
    %913 = memref.load %arg1[%912, %c4_554] : memref<16x8xi32, #tpu.memory_space<smem>>
    %c1_i32_555 = arith.constant 1 : i32
    %914 = arith.addi %0, %c1_i32_555 : i32
    %915 = arith.index_cast %914 : i32 to index
    %c3_556 = arith.constant 3 : index
    %916 = memref.load %arg1[%915, %c3_556] : memref<16x8xi32, #tpu.memory_space<smem>>
    %917 = arith.index_cast %913 : i32 to index
    %c0_557 = arith.constant 0 : index
    %918 = vector.load %arg2[%917, %c0_557] : memref<64x256xf32, #tpu.memory_space<vmem>>, vector<1x256xf32>
    %919 = arith.index_cast %916 : i32 to index
    %c0_558 = arith.constant 0 : index
    %920 = vector.load %arg3[%919, %c0_558] : memref<64x256xf32, #tpu.memory_space<vmem>>, vector<1x256xf32>
    %921 = arith.addf %918, %920 : vector<1x256xf32>
    %c4_559 = arith.constant 4 : index
    %c1_560 = arith.constant 1 : index
    %c0_561 = arith.constant 0 : index
    %922 = vector.load %arg13[%c4_559, %c1_560, %c0_561] : memref<8x16x256xf32, #tpu.memory_space<vmem>>, vector<1x1x256xf32>
    %923 = vector.shape_cast %922 : vector<1x1x256xf32> to vector<1x256xf32>
    %924 = vector.shape_cast %921 : vector<1x256xf32> to vector<1x1x256xf32>
    tpu.vector_store %arg13[%c4_559, %c1_560, %c0_561], %924 {strides = array<i32>} : memref<8x16x256xf32, #tpu.memory_space<vmem>>, vector<1x1x256xf32>,
    %c2_i32_562 = arith.constant 2 : i32
    %925 = arith.addi %0, %c2_i32_562 : i32
    %926 = arith.index_cast %925 : i32 to index
    %c4_563 = arith.constant 4 : index
    %927 = memref.load %arg1[%926, %c4_563] : memref<16x8xi32, #tpu.memory_space<smem>>
    %c2_i32_564 = arith.constant 2 : i32
    %928 = arith.addi %0, %c2_i32_564 : i32
    %929 = arith.index_cast %928 : i32 to index
    %c3_565 = arith.constant 3 : index
    %930 = memref.load %arg1[%929, %c3_565] : memref<16x8xi32, #tpu.memory_space<smem>>
    %931 = arith.index_cast %927 : i32 to index
    %c0_566 = arith.constant 0 : index
    %932 = vector.load %arg2[%931, %c0_566] : memref<64x256xf32, #tpu.memory_space<vmem>>, vector<1x256xf32>
    %933 = arith.index_cast %930 : i32 to index
    %c0_567 = arith.constant 0 : index
    %934 = vector.load %arg3[%933, %c0_567] : memref<64x256xf32, #tpu.memory_space<vmem>>, vector<1x256xf32>
    %935 = arith.addf %932, %934 : vector<1x256xf32>
    %c4_568 = arith.constant 4 : index
    %c2_569 = arith.constant 2 : index
    %c0_570 = arith.constant 0 : index
    %936 = vector.load %arg13[%c4_568, %c2_569, %c0_570] : memref<8x16x256xf32, #tpu.memory_space<vmem>>, vector<1x1x256xf32>
    %937 = vector.shape_cast %936 : vector<1x1x256xf32> to vector<1x256xf32>
    %938 = vector.shape_cast %935 : vector<1x256xf32> to vector<1x1x256xf32>
    tpu.vector_store %arg13[%c4_568, %c2_569, %c0_570], %938 {strides = array<i32>} : memref<8x16x256xf32, #tpu.memory_space<vmem>>, vector<1x1x256xf32>,
    %c3_i32_571 = arith.constant 3 : i32
    %939 = arith.addi %0, %c3_i32_571 : i32
    %940 = arith.index_cast %939 : i32 to index
    %c4_572 = arith.constant 4 : index
    %941 = memref.load %arg1[%940, %c4_572] : memref<16x8xi32, #tpu.memory_space<smem>>
    %c3_i32_573 = arith.constant 3 : i32
    %942 = arith.addi %0, %c3_i32_573 : i32
    %943 = arith.index_cast %942 : i32 to index
    %c3_574 = arith.constant 3 : index
    %944 = memref.load %arg1[%943, %c3_574] : memref<16x8xi32, #tpu.memory_space<smem>>
    %945 = arith.index_cast %941 : i32 to index
    %c0_575 = arith.constant 0 : index
    %946 = vector.load %arg2[%945, %c0_575] : memref<64x256xf32, #tpu.memory_space<vmem>>, vector<1x256xf32>
    %947 = arith.index_cast %944 : i32 to index
    %c0_576 = arith.constant 0 : index
    %948 = vector.load %arg3[%947, %c0_576] : memref<64x256xf32, #tpu.memory_space<vmem>>, vector<1x256xf32>
    %949 = arith.addf %946, %948 : vector<1x256xf32>
    %c4_577 = arith.constant 4 : index
    %c3_578 = arith.constant 3 : index
    %c0_579 = arith.constant 0 : index
    %950 = vector.load %arg13[%c4_577, %c3_578, %c0_579] : memref<8x16x256xf32, #tpu.memory_space<vmem>>, vector<1x1x256xf32>
    %951 = vector.shape_cast %950 : vector<1x1x256xf32> to vector<1x256xf32>
    %952 = vector.shape_cast %949 : vector<1x256xf32> to vector<1x1x256xf32>
    tpu.vector_store %arg13[%c4_577, %c3_578, %c0_579], %952 {strides = array<i32>} : memref<8x16x256xf32, #tpu.memory_space<vmem>>, vector<1x1x256xf32>,
    %c4_i32_580 = arith.constant 4 : i32
    %953 = arith.addi %0, %c4_i32_580 : i32
    %954 = arith.index_cast %953 : i32 to index
    %c4_581 = arith.constant 4 : index
    %955 = memref.load %arg1[%954, %c4_581] : memref<16x8xi32, #tpu.memory_space<smem>>
    %c4_i32_582 = arith.constant 4 : i32
    %956 = arith.addi %0, %c4_i32_582 : i32
    %957 = arith.index_cast %956 : i32 to index
    %c3_583 = arith.constant 3 : index
    %958 = memref.load %arg1[%957, %c3_583] : memref<16x8xi32, #tpu.memory_space<smem>>
    %959 = arith.index_cast %955 : i32 to index
    %c0_584 = arith.constant 0 : index
    %960 = vector.load %arg2[%959, %c0_584] : memref<64x256xf32, #tpu.memory_space<vmem>>, vector<1x256xf32>
    %961 = arith.index_cast %958 : i32 to index
    %c0_585 = arith.constant 0 : index
    %962 = vector.load %arg3[%961, %c0_585] : memref<64x256xf32, #tpu.memory_space<vmem>>, vector<1x256xf32>
    %963 = arith.addf %960, %962 : vector<1x256xf32>
    %c4_586 = arith.constant 4 : index
    %c4_587 = arith.constant 4 : index
    %c0_588 = arith.constant 0 : index
    %964 = vector.load %arg13[%c4_586, %c4_587, %c0_588] : memref<8x16x256xf32, #tpu.memory_space<vmem>>, vector<1x1x256xf32>
    %965 = vector.shape_cast %964 : vector<1x1x256xf32> to vector<1x256xf32>
    %966 = vector.shape_cast %963 : vector<1x256xf32> to vector<1x1x256xf32>
    tpu.vector_store %arg13[%c4_586, %c4_587, %c0_588], %966 {strides = array<i32>} : memref<8x16x256xf32, #tpu.memory_space<vmem>>, vector<1x1x256xf32>,
    %c5_i32_589 = arith.constant 5 : i32
    %967 = arith.addi %0, %c5_i32_589 : i32
    %968 = arith.index_cast %967 : i32 to index
    %c4_590 = arith.constant 4 : index
    %969 = memref.load %arg1[%968, %c4_590] : memref<16x8xi32, #tpu.memory_space<smem>>
    %c5_i32_591 = arith.constant 5 : i32
    %970 = arith.addi %0, %c5_i32_591 : i32
    %971 = arith.index_cast %970 : i32 to index
    %c3_592 = arith.constant 3 : index
    %972 = memref.load %arg1[%971, %c3_592] : memref<16x8xi32, #tpu.memory_space<smem>>
    %973 = arith.index_cast %969 : i32 to index
    %c0_593 = arith.constant 0 : index
    %974 = vector.load %arg2[%973, %c0_593] : memref<64x256xf32, #tpu.memory_space<vmem>>, vector<1x256xf32>
    %975 = arith.index_cast %972 : i32 to index
    %c0_594 = arith.constant 0 : index
    %976 = vector.load %arg3[%975, %c0_594] : memref<64x256xf32, #tpu.memory_space<vmem>>, vector<1x256xf32>
    %977 = arith.addf %974, %976 : vector<1x256xf32>
    %c4_595 = arith.constant 4 : index
    %c5_596 = arith.constant 5 : index
    %c0_597 = arith.constant 0 : index
    %978 = vector.load %arg13[%c4_595, %c5_596, %c0_597] : memref<8x16x256xf32, #tpu.memory_space<vmem>>, vector<1x1x256xf32>
    %979 = vector.shape_cast %978 : vector<1x1x256xf32> to vector<1x256xf32>
    %980 = vector.shape_cast %977 : vector<1x256xf32> to vector<1x1x256xf32>
    tpu.vector_store %arg13[%c4_595, %c5_596, %c0_597], %980 {strides = array<i32>} : memref<8x16x256xf32, #tpu.memory_space<vmem>>, vector<1x1x256xf32>,
    %c6_i32_598 = arith.constant 6 : i32
    %981 = arith.addi %0, %c6_i32_598 : i32
    %982 = arith.index_cast %981 : i32 to index
    %c4_599 = arith.constant 4 : index
    %983 = memref.load %arg1[%982, %c4_599] : memref<16x8xi32, #tpu.memory_space<smem>>
    %c6_i32_600 = arith.constant 6 : i32
    %984 = arith.addi %0, %c6_i32_600 : i32
    %985 = arith.index_cast %984 : i32 to index
    %c3_601 = arith.constant 3 : index
    %986 = memref.load %arg1[%985, %c3_601] : memref<16x8xi32, #tpu.memory_space<smem>>
    %987 = arith.index_cast %983 : i32 to index
    %c0_602 = arith.constant 0 : index
    %988 = vector.load %arg2[%987, %c0_602] : memref<64x256xf32, #tpu.memory_space<vmem>>, vector<1x256xf32>
    %989 = arith.index_cast %986 : i32 to index
    %c0_603 = arith.constant 0 : index
    %990 = vector.load %arg3[%989, %c0_603] : memref<64x256xf32, #tpu.memory_space<vmem>>, vector<1x256xf32>
    %991 = arith.addf %988, %990 : vector<1x256xf32>
    %c4_604 = arith.constant 4 : index
    %c6_605 = arith.constant 6 : index
    %c0_606 = arith.constant 0 : index
    %992 = vector.load %arg13[%c4_604, %c6_605, %c0_606] : memref<8x16x256xf32, #tpu.memory_space<vmem>>, vector<1x1x256xf32>
    %993 = vector.shape_cast %992 : vector<1x1x256xf32> to vector<1x256xf32>
    %994 = vector.shape_cast %991 : vector<1x256xf32> to vector<1x1x256xf32>
    tpu.vector_store %arg13[%c4_604, %c6_605, %c0_606], %994 {strides = array<i32>} : memref<8x16x256xf32, #tpu.memory_space<vmem>>, vector<1x1x256xf32>,
    %c7_i32_607 = arith.constant 7 : i32
    %995 = arith.addi %0, %c7_i32_607 : i32
    %996 = arith.index_cast %995 : i32 to index
    %c4_608 = arith.constant 4 : index
    %997 = memref.load %arg1[%996, %c4_608] : memref<16x8xi32, #tpu.memory_space<smem>>
    %c7_i32_609 = arith.constant 7 : i32
    %998 = arith.addi %0, %c7_i32_609 : i32
    %999 = arith.index_cast %998 : i32 to index
    %c3_610 = arith.constant 3 : index
    %1000 = memref.load %arg1[%999, %c3_610] : memref<16x8xi32, #tpu.memory_space<smem>>
    %1001 = arith.index_cast %997 : i32 to index
    %c0_611 = arith.constant 0 : index
    %1002 = vector.load %arg2[%1001, %c0_611] : memref<64x256xf32, #tpu.memory_space<vmem>>, vector<1x256xf32>
    %1003 = arith.index_cast %1000 : i32 to index
    %c0_612 = arith.constant 0 : index
    %1004 = vector.load %arg3[%1003, %c0_612] : memref<64x256xf32, #tpu.memory_space<vmem>>, vector<1x256xf32>
    %1005 = arith.addf %1002, %1004 : vector<1x256xf32>
    %c4_613 = arith.constant 4 : index
    %c7_614 = arith.constant 7 : index
    %c0_615 = arith.constant 0 : index
    %1006 = vector.load %arg13[%c4_613, %c7_614, %c0_615] : memref<8x16x256xf32, #tpu.memory_space<vmem>>, vector<1x1x256xf32>
    %1007 = vector.shape_cast %1006 : vector<1x1x256xf32> to vector<1x256xf32>
    %1008 = vector.shape_cast %1005 : vector<1x256xf32> to vector<1x1x256xf32>
    tpu.vector_store %arg13[%c4_613, %c7_614, %c0_615], %1008 {strides = array<i32>} : memref<8x16x256xf32, #tpu.memory_space<vmem>>, vector<1x1x256xf32>,
    %c8_i32_616 = arith.constant 8 : i32
    %1009 = arith.addi %0, %c8_i32_616 : i32
    %1010 = arith.index_cast %1009 : i32 to index
    %c4_617 = arith.constant 4 : index
    %1011 = memref.load %arg1[%1010, %c4_617] : memref<16x8xi32, #tpu.memory_space<smem>>
    %c8_i32_618 = arith.constant 8 : i32
    %1012 = arith.addi %0, %c8_i32_618 : i32
    %1013 = arith.index_cast %1012 : i32 to index
    %c3_619 = arith.constant 3 : index
    %1014 = memref.load %arg1[%1013, %c3_619] : memref<16x8xi32, #tpu.memory_space<smem>>
    %1015 = arith.index_cast %1011 : i32 to index
    %c0_620 = arith.constant 0 : index
    %1016 = vector.load %arg2[%1015, %c0_620] : memref<64x256xf32, #tpu.memory_space<vmem>>, vector<1x256xf32>
    %1017 = arith.index_cast %1014 : i32 to index
    %c0_621 = arith.constant 0 : index
    %1018 = vector.load %arg3[%1017, %c0_621] : memref<64x256xf32, #tpu.memory_space<vmem>>, vector<1x256xf32>
    %1019 = arith.addf %1016, %1018 : vector<1x256xf32>
    %c4_622 = arith.constant 4 : index
    %c8_623 = arith.constant 8 : index
    %c0_624 = arith.constant 0 : index
    %1020 = vector.load %arg13[%c4_622, %c8_623, %c0_624] : memref<8x16x256xf32, #tpu.memory_space<vmem>>, vector<1x1x256xf32>
    %1021 = vector.shape_cast %1020 : vector<1x1x256xf32> to vector<1x256xf32>
    %1022 = vector.shape_cast %1019 : vector<1x256xf32> to vector<1x1x256xf32>
    tpu.vector_store %arg13[%c4_622, %c8_623, %c0_624], %1022 {strides = array<i32>} : memref<8x16x256xf32, #tpu.memory_space<vmem>>, vector<1x1x256xf32>,
    %c9_i32_625 = arith.constant 9 : i32
    %1023 = arith.addi %0, %c9_i32_625 : i32
    %1024 = arith.index_cast %1023 : i32 to index
    %c4_626 = arith.constant 4 : index
    %1025 = memref.load %arg1[%1024, %c4_626] : memref<16x8xi32, #tpu.memory_space<smem>>
    %c9_i32_627 = arith.constant 9 : i32
    %1026 = arith.addi %0, %c9_i32_627 : i32
    %1027 = arith.index_cast %1026 : i32 to index
    %c3_628 = arith.constant 3 : index
    %1028 = memref.load %arg1[%1027, %c3_628] : memref<16x8xi32, #tpu.memory_space<smem>>
    %1029 = arith.index_cast %1025 : i32 to index
    %c0_629 = arith.constant 0 : index
    %1030 = vector.load %arg2[%1029, %c0_629] : memref<64x256xf32, #tpu.memory_space<vmem>>, vector<1x256xf32>
    %1031 = arith.index_cast %1028 : i32 to index
    %c0_630 = arith.constant 0 : index
    %1032 = vector.load %arg3[%1031, %c0_630] : memref<64x256xf32, #tpu.memory_space<vmem>>, vector<1x256xf32>
    %1033 = arith.addf %1030, %1032 : vector<1x256xf32>
    %c4_631 = arith.constant 4 : index
    %c9_632 = arith.constant 9 : index
    %c0_633 = arith.constant 0 : index
    %1034 = vector.load %arg13[%c4_631, %c9_632, %c0_633] : memref<8x16x256xf32, #tpu.memory_space<vmem>>, vector<1x1x256xf32>
    %1035 = vector.shape_cast %1034 : vector<1x1x256xf32> to vector<1x256xf32>
    %1036 = vector.shape_cast %1033 : vector<1x256xf32> to vector<1x1x256xf32>
    tpu.vector_store %arg13[%c4_631, %c9_632, %c0_633], %1036 {strides = array<i32>} : memref<8x16x256xf32, #tpu.memory_space<vmem>>, vector<1x1x256xf32>,
    %c10_i32_634 = arith.constant 10 : i32
    %1037 = arith.addi %0, %c10_i32_634 : i32
    %1038 = arith.index_cast %1037 : i32 to index
    %c4_635 = arith.constant 4 : index
    %1039 = memref.load %arg1[%1038, %c4_635] : memref<16x8xi32, #tpu.memory_space<smem>>
    %c10_i32_636 = arith.constant 10 : i32
    %1040 = arith.addi %0, %c10_i32_636 : i32
    %1041 = arith.index_cast %1040 : i32 to index
    %c3_637 = arith.constant 3 : index
    %1042 = memref.load %arg1[%1041, %c3_637] : memref<16x8xi32, #tpu.memory_space<smem>>
    %1043 = arith.index_cast %1039 : i32 to index
    %c0_638 = arith.constant 0 : index
    %1044 = vector.load %arg2[%1043, %c0_638] : memref<64x256xf32, #tpu.memory_space<vmem>>, vector<1x256xf32>
    %1045 = arith.index_cast %1042 : i32 to index
    %c0_639 = arith.constant 0 : index
    %1046 = vector.load %arg3[%1045, %c0_639] : memref<64x256xf32, #tpu.memory_space<vmem>>, vector<1x256xf32>
    %1047 = arith.addf %1044, %1046 : vector<1x256xf32>
    %c4_640 = arith.constant 4 : index
    %c10_641 = arith.constant 10 : index
    %c0_642 = arith.constant 0 : index
    %1048 = vector.load %arg13[%c4_640, %c10_641, %c0_642] : memref<8x16x256xf32, #tpu.memory_space<vmem>>, vector<1x1x256xf32>
    %1049 = vector.shape_cast %1048 : vector<1x1x256xf32> to vector<1x256xf32>
    %1050 = vector.shape_cast %1047 : vector<1x256xf32> to vector<1x1x256xf32>
    tpu.vector_store %arg13[%c4_640, %c10_641, %c0_642], %1050 {strides = array<i32>} : memref<8x16x256xf32, #tpu.memory_space<vmem>>, vector<1x1x256xf32>,
    %c11_i32_643 = arith.constant 11 : i32
    %1051 = arith.addi %0, %c11_i32_643 : i32
    %1052 = arith.index_cast %1051 : i32 to index
    %c4_644 = arith.constant 4 : index
    %1053 = memref.load %arg1[%1052, %c4_644] : memref<16x8xi32, #tpu.memory_space<smem>>
    %c11_i32_645 = arith.constant 11 : i32
    %1054 = arith.addi %0, %c11_i32_645 : i32
    %1055 = arith.index_cast %1054 : i32 to index
    %c3_646 = arith.constant 3 : index
    %1056 = memref.load %arg1[%1055, %c3_646] : memref<16x8xi32, #tpu.memory_space<smem>>
    %1057 = arith.index_cast %1053 : i32 to index
    %c0_647 = arith.constant 0 : index
    %1058 = vector.load %arg2[%1057, %c0_647] : memref<64x256xf32, #tpu.memory_space<vmem>>, vector<1x256xf32>
    %1059 = arith.index_cast %1056 : i32 to index
    %c0_648 = arith.constant 0 : index
    %1060 = vector.load %arg3[%1059, %c0_648] : memref<64x256xf32, #tpu.memory_space<vmem>>, vector<1x256xf32>
    %1061 = arith.addf %1058, %1060 : vector<1x256xf32>
    %c4_649 = arith.constant 4 : index
    %c11_650 = arith.constant 11 : index
    %c0_651 = arith.constant 0 : index
    %1062 = vector.load %arg13[%c4_649, %c11_650, %c0_651] : memref<8x16x256xf32, #tpu.memory_space<vmem>>, vector<1x1x256xf32>
    %1063 = vector.shape_cast %1062 : vector<1x1x256xf32> to vector<1x256xf32>
    %1064 = vector.shape_cast %1061 : vector<1x256xf32> to vector<1x1x256xf32>
    tpu.vector_store %arg13[%c4_649, %c11_650, %c0_651], %1064 {strides = array<i32>} : memref<8x16x256xf32, #tpu.memory_space<vmem>>, vector<1x1x256xf32>,
    %c12_i32_652 = arith.constant 12 : i32
    %1065 = arith.addi %0, %c12_i32_652 : i32
    %1066 = arith.index_cast %1065 : i32 to index
    %c4_653 = arith.constant 4 : index
    %1067 = memref.load %arg1[%1066, %c4_653] : memref<16x8xi32, #tpu.memory_space<smem>>
    %c12_i32_654 = arith.constant 12 : i32
    %1068 = arith.addi %0, %c12_i32_654 : i32
    %1069 = arith.index_cast %1068 : i32 to index
    %c3_655 = arith.constant 3 : index
    %1070 = memref.load %arg1[%1069, %c3_655] : memref<16x8xi32, #tpu.memory_space<smem>>
    %1071 = arith.index_cast %1067 : i32 to index
    %c0_656 = arith.constant 0 : index
    %1072 = vector.load %arg2[%1071, %c0_656] : memref<64x256xf32, #tpu.memory_space<vmem>>, vector<1x256xf32>
    %1073 = arith.index_cast %1070 : i32 to index
    %c0_657 = arith.constant 0 : index
    %1074 = vector.load %arg3[%1073, %c0_657] : memref<64x256xf32, #tpu.memory_space<vmem>>, vector<1x256xf32>
    %1075 = arith.addf %1072, %1074 : vector<1x256xf32>
    %c4_658 = arith.constant 4 : index
    %c12_659 = arith.constant 12 : index
    %c0_660 = arith.constant 0 : index
    %1076 = vector.load %arg13[%c4_658, %c12_659, %c0_660] : memref<8x16x256xf32, #tpu.memory_space<vmem>>, vector<1x1x256xf32>
    %1077 = vector.shape_cast %1076 : vector<1x1x256xf32> to vector<1x256xf32>
    %1078 = vector.shape_cast %1075 : vector<1x256xf32> to vector<1x1x256xf32>
    tpu.vector_store %arg13[%c4_658, %c12_659, %c0_660], %1078 {strides = array<i32>} : memref<8x16x256xf32, #tpu.memory_space<vmem>>, vector<1x1x256xf32>,
    %c13_i32_661 = arith.constant 13 : i32
    %1079 = arith.addi %0, %c13_i32_661 : i32
    %1080 = arith.index_cast %1079 : i32 to index
    %c4_662 = arith.constant 4 : index
    %1081 = memref.load %arg1[%1080, %c4_662] : memref<16x8xi32, #tpu.memory_space<smem>>
    %c13_i32_663 = arith.constant 13 : i32
    %1082 = arith.addi %0, %c13_i32_663 : i32
    %1083 = arith.index_cast %1082 : i32 to index
    %c3_664 = arith.constant 3 : index
    %1084 = memref.load %arg1[%1083, %c3_664] : memref<16x8xi32, #tpu.memory_space<smem>>
    %1085 = arith.index_cast %1081 : i32 to index
    %c0_665 = arith.constant 0 : index
    %1086 = vector.load %arg2[%1085, %c0_665] : memref<64x256xf32, #tpu.memory_space<vmem>>, vector<1x256xf32>
    %1087 = arith.index_cast %1084 : i32 to index
    %c0_666 = arith.constant 0 : index
    %1088 = vector.load %arg3[%1087, %c0_666] : memref<64x256xf32, #tpu.memory_space<vmem>>, vector<1x256xf32>
    %1089 = arith.addf %1086, %1088 : vector<1x256xf32>
    %c4_667 = arith.constant 4 : index
    %c13_668 = arith.constant 13 : index
    %c0_669 = arith.constant 0 : index
    %1090 = vector.load %arg13[%c4_667, %c13_668, %c0_669] : memref<8x16x256xf32, #tpu.memory_space<vmem>>, vector<1x1x256xf32>
    %1091 = vector.shape_cast %1090 : vector<1x1x256xf32> to vector<1x256xf32>
    %1092 = vector.shape_cast %1089 : vector<1x256xf32> to vector<1x1x256xf32>
    tpu.vector_store %arg13[%c4_667, %c13_668, %c0_669], %1092 {strides = array<i32>} : memref<8x16x256xf32, #tpu.memory_space<vmem>>, vector<1x1x256xf32>,
    %c14_i32_670 = arith.constant 14 : i32
    %1093 = arith.addi %0, %c14_i32_670 : i32
    %1094 = arith.index_cast %1093 : i32 to index
    %c4_671 = arith.constant 4 : index
    %1095 = memref.load %arg1[%1094, %c4_671] : memref<16x8xi32, #tpu.memory_space<smem>>
    %c14_i32_672 = arith.constant 14 : i32
    %1096 = arith.addi %0, %c14_i32_672 : i32
    %1097 = arith.index_cast %1096 : i32 to index
    %c3_673 = arith.constant 3 : index
    %1098 = memref.load %arg1[%1097, %c3_673] : memref<16x8xi32, #tpu.memory_space<smem>>
    %1099 = arith.index_cast %1095 : i32 to index
    %c0_674 = arith.constant 0 : index
    %1100 = vector.load %arg2[%1099, %c0_674] : memref<64x256xf32, #tpu.memory_space<vmem>>, vector<1x256xf32>
    %1101 = arith.index_cast %1098 : i32 to index
    %c0_675 = arith.constant 0 : index
    %1102 = vector.load %arg3[%1101, %c0_675] : memref<64x256xf32, #tpu.memory_space<vmem>>, vector<1x256xf32>
    %1103 = arith.addf %1100, %1102 : vector<1x256xf32>
    %c4_676 = arith.constant 4 : index
    %c14_677 = arith.constant 14 : index
    %c0_678 = arith.constant 0 : index
    %1104 = vector.load %arg13[%c4_676, %c14_677, %c0_678] : memref<8x16x256xf32, #tpu.memory_space<vmem>>, vector<1x1x256xf32>
    %1105 = vector.shape_cast %1104 : vector<1x1x256xf32> to vector<1x256xf32>
    %1106 = vector.shape_cast %1103 : vector<1x256xf32> to vector<1x1x256xf32>
    tpu.vector_store %arg13[%c4_676, %c14_677, %c0_678], %1106 {strides = array<i32>} : memref<8x16x256xf32, #tpu.memory_space<vmem>>, vector<1x1x256xf32>,
    %c15_i32_679 = arith.constant 15 : i32
    %1107 = arith.addi %0, %c15_i32_679 : i32
    %1108 = arith.index_cast %1107 : i32 to index
    %c4_680 = arith.constant 4 : index
    %1109 = memref.load %arg1[%1108, %c4_680] : memref<16x8xi32, #tpu.memory_space<smem>>
    %c15_i32_681 = arith.constant 15 : i32
    %1110 = arith.addi %0, %c15_i32_681 : i32
    %1111 = arith.index_cast %1110 : i32 to index
    %c3_682 = arith.constant 3 : index
    %1112 = memref.load %arg1[%1111, %c3_682] : memref<16x8xi32, #tpu.memory_space<smem>>
    %1113 = arith.index_cast %1109 : i32 to index
    %c0_683 = arith.constant 0 : index
    %1114 = vector.load %arg2[%1113, %c0_683] : memref<64x256xf32, #tpu.memory_space<vmem>>, vector<1x256xf32>
    %1115 = arith.index_cast %1112 : i32 to index
    %c0_684 = arith.constant 0 : index
    %1116 = vector.load %arg3[%1115, %c0_684] : memref<64x256xf32, #tpu.memory_space<vmem>>, vector<1x256xf32>
    %1117 = arith.addf %1114, %1116 : vector<1x256xf32>
    %c4_685 = arith.constant 4 : index
    %c15_686 = arith.constant 15 : index
    %c0_687 = arith.constant 0 : index
    %1118 = vector.load %arg13[%c4_685, %c15_686, %c0_687] : memref<8x16x256xf32, #tpu.memory_space<vmem>>, vector<1x1x256xf32>
    %1119 = vector.shape_cast %1118 : vector<1x1x256xf32> to vector<1x256xf32>
    %1120 = vector.shape_cast %1117 : vector<1x256xf32> to vector<1x1x256xf32>
    tpu.vector_store %arg13[%c4_685, %c15_686, %c0_687], %1120 {strides = array<i32>} : memref<8x16x256xf32, #tpu.memory_space<vmem>>, vector<1x1x256xf32>,
    %c0_i32_688 = arith.constant 0 : i32
    %1121 = arith.addi %0, %c0_i32_688 : i32
    %1122 = arith.index_cast %1121 : i32 to index
    %c5_689 = arith.constant 5 : index
    %1123 = memref.load %arg1[%1122, %c5_689] : memref<16x8xi32, #tpu.memory_space<smem>>
    %c0_i32_690 = arith.constant 0 : i32
    %1124 = arith.addi %0, %c0_i32_690 : i32
    %1125 = arith.index_cast %1124 : i32 to index
    %c2_691 = arith.constant 2 : index
    %1126 = memref.load %arg1[%1125, %c2_691] : memref<16x8xi32, #tpu.memory_space<smem>>
    %1127 = arith.index_cast %1123 : i32 to index
    %c0_692 = arith.constant 0 : index
    %1128 = vector.load %arg2[%1127, %c0_692] : memref<64x256xf32, #tpu.memory_space<vmem>>, vector<1x256xf32>
    %1129 = arith.index_cast %1126 : i32 to index
    %c0_693 = arith.constant 0 : index
    %1130 = vector.load %arg3[%1129, %c0_693] : memref<64x256xf32, #tpu.memory_space<vmem>>, vector<1x256xf32>
    %1131 = arith.addf %1128, %1130 : vector<1x256xf32>
    %c5_694 = arith.constant 5 : index
    %c0_695 = arith.constant 0 : index
    %c0_696 = arith.constant 0 : index
    %1132 = vector.load %arg13[%c5_694, %c0_695, %c0_696] : memref<8x16x256xf32, #tpu.memory_space<vmem>>, vector<1x1x256xf32>
    %1133 = vector.shape_cast %1132 : vector<1x1x256xf32> to vector<1x256xf32>
    %1134 = vector.shape_cast %1131 : vector<1x256xf32> to vector<1x1x256xf32>
    tpu.vector_store %arg13[%c5_694, %c0_695, %c0_696], %1134 {strides = array<i32>} : memref<8x16x256xf32, #tpu.memory_space<vmem>>, vector<1x1x256xf32>,
    %c1_i32_697 = arith.constant 1 : i32
    %1135 = arith.addi %0, %c1_i32_697 : i32
    %1136 = arith.index_cast %1135 : i32 to index
    %c5_698 = arith.constant 5 : index
    %1137 = memref.load %arg1[%1136, %c5_698] : memref<16x8xi32, #tpu.memory_space<smem>>
    %c1_i32_699 = arith.constant 1 : i32
    %1138 = arith.addi %0, %c1_i32_699 : i32
    %1139 = arith.index_cast %1138 : i32 to index
    %c2_700 = arith.constant 2 : index
    %1140 = memref.load %arg1[%1139, %c2_700] : memref<16x8xi32, #tpu.memory_space<smem>>
    %1141 = arith.index_cast %1137 : i32 to index
    %c0_701 = arith.constant 0 : index
    %1142 = vector.load %arg2[%1141, %c0_701] : memref<64x256xf32, #tpu.memory_space<vmem>>, vector<1x256xf32>
    %1143 = arith.index_cast %1140 : i32 to index
    %c0_702 = arith.constant 0 : index
    %1144 = vector.load %arg3[%1143, %c0_702] : memref<64x256xf32, #tpu.memory_space<vmem>>, vector<1x256xf32>
    %1145 = arith.addf %1142, %1144 : vector<1x256xf32>
    %c5_703 = arith.constant 5 : index
    %c1_704 = arith.constant 1 : index
    %c0_705 = arith.constant 0 : index
    %1146 = vector.load %arg13[%c5_703, %c1_704, %c0_705] : memref<8x16x256xf32, #tpu.memory_space<vmem>>, vector<1x1x256xf32>
    %1147 = vector.shape_cast %1146 : vector<1x1x256xf32> to vector<1x256xf32>
    %1148 = vector.shape_cast %1145 : vector<1x256xf32> to vector<1x1x256xf32>
    tpu.vector_store %arg13[%c5_703, %c1_704, %c0_705], %1148 {strides = array<i32>} : memref<8x16x256xf32, #tpu.memory_space<vmem>>, vector<1x1x256xf32>,
    %c2_i32_706 = arith.constant 2 : i32
    %1149 = arith.addi %0, %c2_i32_706 : i32
    %1150 = arith.index_cast %1149 : i32 to index
    %c5_707 = arith.constant 5 : index
    %1151 = memref.load %arg1[%1150, %c5_707] : memref<16x8xi32, #tpu.memory_space<smem>>
    %c2_i32_708 = arith.constant 2 : i32
    %1152 = arith.addi %0, %c2_i32_708 : i32
    %1153 = arith.index_cast %1152 : i32 to index
    %c2_709 = arith.constant 2 : index
    %1154 = memref.load %arg1[%1153, %c2_709] : memref<16x8xi32, #tpu.memory_space<smem>>
    %1155 = arith.index_cast %1151 : i32 to index
    %c0_710 = arith.constant 0 : index
    %1156 = vector.load %arg2[%1155, %c0_710] : memref<64x256xf32, #tpu.memory_space<vmem>>, vector<1x256xf32>
    %1157 = arith.index_cast %1154 : i32 to index
    %c0_711 = arith.constant 0 : index
    %1158 = vector.load %arg3[%1157, %c0_711] : memref<64x256xf32, #tpu.memory_space<vmem>>, vector<1x256xf32>
    %1159 = arith.addf %1156, %1158 : vector<1x256xf32>
    %c5_712 = arith.constant 5 : index
    %c2_713 = arith.constant 2 : index
    %c0_714 = arith.constant 0 : index
    %1160 = vector.load %arg13[%c5_712, %c2_713, %c0_714] : memref<8x16x256xf32, #tpu.memory_space<vmem>>, vector<1x1x256xf32>
    %1161 = vector.shape_cast %1160 : vector<1x1x256xf32> to vector<1x256xf32>
    %1162 = vector.shape_cast %1159 : vector<1x256xf32> to vector<1x1x256xf32>
    tpu.vector_store %arg13[%c5_712, %c2_713, %c0_714], %1162 {strides = array<i32>} : memref<8x16x256xf32, #tpu.memory_space<vmem>>, vector<1x1x256xf32>,
    %c3_i32_715 = arith.constant 3 : i32
    %1163 = arith.addi %0, %c3_i32_715 : i32
    %1164 = arith.index_cast %1163 : i32 to index
    %c5_716 = arith.constant 5 : index
    %1165 = memref.load %arg1[%1164, %c5_716] : memref<16x8xi32, #tpu.memory_space<smem>>
    %c3_i32_717 = arith.constant 3 : i32
    %1166 = arith.addi %0, %c3_i32_717 : i32
    %1167 = arith.index_cast %1166 : i32 to index
    %c2_718 = arith.constant 2 : index
    %1168 = memref.load %arg1[%1167, %c2_718] : memref<16x8xi32, #tpu.memory_space<smem>>
    %1169 = arith.index_cast %1165 : i32 to index
    %c0_719 = arith.constant 0 : index
    %1170 = vector.load %arg2[%1169, %c0_719] : memref<64x256xf32, #tpu.memory_space<vmem>>, vector<1x256xf32>
    %1171 = arith.index_cast %1168 : i32 to index
    %c0_720 = arith.constant 0 : index
    %1172 = vector.load %arg3[%1171, %c0_720] : memref<64x256xf32, #tpu.memory_space<vmem>>, vector<1x256xf32>
    %1173 = arith.addf %1170, %1172 : vector<1x256xf32>
    %c5_721 = arith.constant 5 : index
    %c3_722 = arith.constant 3 : index
    %c0_723 = arith.constant 0 : index
    %1174 = vector.load %arg13[%c5_721, %c3_722, %c0_723] : memref<8x16x256xf32, #tpu.memory_space<vmem>>, vector<1x1x256xf32>
    %1175 = vector.shape_cast %1174 : vector<1x1x256xf32> to vector<1x256xf32>
    %1176 = vector.shape_cast %1173 : vector<1x256xf32> to vector<1x1x256xf32>
    tpu.vector_store %arg13[%c5_721, %c3_722, %c0_723], %1176 {strides = array<i32>} : memref<8x16x256xf32, #tpu.memory_space<vmem>>, vector<1x1x256xf32>,
    %c4_i32_724 = arith.constant 4 : i32
    %1177 = arith.addi %0, %c4_i32_724 : i32
    %1178 = arith.index_cast %1177 : i32 to index
    %c5_725 = arith.constant 5 : index
    %1179 = memref.load %arg1[%1178, %c5_725] : memref<16x8xi32, #tpu.memory_space<smem>>
    %c4_i32_726 = arith.constant 4 : i32
    %1180 = arith.addi %0, %c4_i32_726 : i32
    %1181 = arith.index_cast %1180 : i32 to index
    %c2_727 = arith.constant 2 : index
    %1182 = memref.load %arg1[%1181, %c2_727] : memref<16x8xi32, #tpu.memory_space<smem>>
    %1183 = arith.index_cast %1179 : i32 to index
    %c0_728 = arith.constant 0 : index
    %1184 = vector.load %arg2[%1183, %c0_728] : memref<64x256xf32, #tpu.memory_space<vmem>>, vector<1x256xf32>
    %1185 = arith.index_cast %1182 : i32 to index
    %c0_729 = arith.constant 0 : index
    %1186 = vector.load %arg3[%1185, %c0_729] : memref<64x256xf32, #tpu.memory_space<vmem>>, vector<1x256xf32>
    %1187 = arith.addf %1184, %1186 : vector<1x256xf32>
    %c5_730 = arith.constant 5 : index
    %c4_731 = arith.constant 4 : index
    %c0_732 = arith.constant 0 : index
    %1188 = vector.load %arg13[%c5_730, %c4_731, %c0_732] : memref<8x16x256xf32, #tpu.memory_space<vmem>>, vector<1x1x256xf32>
    %1189 = vector.shape_cast %1188 : vector<1x1x256xf32> to vector<1x256xf32>
    %1190 = vector.shape_cast %1187 : vector<1x256xf32> to vector<1x1x256xf32>
    tpu.vector_store %arg13[%c5_730, %c4_731, %c0_732], %1190 {strides = array<i32>} : memref<8x16x256xf32, #tpu.memory_space<vmem>>, vector<1x1x256xf32>,
    %c5_i32_733 = arith.constant 5 : i32
    %1191 = arith.addi %0, %c5_i32_733 : i32
    %1192 = arith.index_cast %1191 : i32 to index
    %c5_734 = arith.constant 5 : index
    %1193 = memref.load %arg1[%1192, %c5_734] : memref<16x8xi32, #tpu.memory_space<smem>>
    %c5_i32_735 = arith.constant 5 : i32
    %1194 = arith.addi %0, %c5_i32_735 : i32
    %1195 = arith.index_cast %1194 : i32 to index
    %c2_736 = arith.constant 2 : index
    %1196 = memref.load %arg1[%1195, %c2_736] : memref<16x8xi32, #tpu.memory_space<smem>>
    %1197 = arith.index_cast %1193 : i32 to index
    %c0_737 = arith.constant 0 : index
    %1198 = vector.load %arg2[%1197, %c0_737] : memref<64x256xf32, #tpu.memory_space<vmem>>, vector<1x256xf32>
    %1199 = arith.index_cast %1196 : i32 to index
    %c0_738 = arith.constant 0 : index
    %1200 = vector.load %arg3[%1199, %c0_738] : memref<64x256xf32, #tpu.memory_space<vmem>>, vector<1x256xf32>
    %1201 = arith.addf %1198, %1200 : vector<1x256xf32>
    %c5_739 = arith.constant 5 : index
    %c5_740 = arith.constant 5 : index
    %c0_741 = arith.constant 0 : index
    %1202 = vector.load %arg13[%c5_739, %c5_740, %c0_741] : memref<8x16x256xf32, #tpu.memory_space<vmem>>, vector<1x1x256xf32>
    %1203 = vector.shape_cast %1202 : vector<1x1x256xf32> to vector<1x256xf32>
    %1204 = vector.shape_cast %1201 : vector<1x256xf32> to vector<1x1x256xf32>
    tpu.vector_store %arg13[%c5_739, %c5_740, %c0_741], %1204 {strides = array<i32>} : memref<8x16x256xf32, #tpu.memory_space<vmem>>, vector<1x1x256xf32>,
    %c6_i32_742 = arith.constant 6 : i32
    %1205 = arith.addi %0, %c6_i32_742 : i32
    %1206 = arith.index_cast %1205 : i32 to index
    %c5_743 = arith.constant 5 : index
    %1207 = memref.load %arg1[%1206, %c5_743] : memref<16x8xi32, #tpu.memory_space<smem>>
    %c6_i32_744 = arith.constant 6 : i32
    %1208 = arith.addi %0, %c6_i32_744 : i32
    %1209 = arith.index_cast %1208 : i32 to index
    %c2_745 = arith.constant 2 : index
    %1210 = memref.load %arg1[%1209, %c2_745] : memref<16x8xi32, #tpu.memory_space<smem>>
    %1211 = arith.index_cast %1207 : i32 to index
    %c0_746 = arith.constant 0 : index
    %1212 = vector.load %arg2[%1211, %c0_746] : memref<64x256xf32, #tpu.memory_space<vmem>>, vector<1x256xf32>
    %1213 = arith.index_cast %1210 : i32 to index
    %c0_747 = arith.constant 0 : index
    %1214 = vector.load %arg3[%1213, %c0_747] : memref<64x256xf32, #tpu.memory_space<vmem>>, vector<1x256xf32>
    %1215 = arith.addf %1212, %1214 : vector<1x256xf32>
    %c5_748 = arith.constant 5 : index
    %c6_749 = arith.constant 6 : index
    %c0_750 = arith.constant 0 : index
    %1216 = vector.load %arg13[%c5_748, %c6_749, %c0_750] : memref<8x16x256xf32, #tpu.memory_space<vmem>>, vector<1x1x256xf32>
    %1217 = vector.shape_cast %1216 : vector<1x1x256xf32> to vector<1x256xf32>
    %1218 = vector.shape_cast %1215 : vector<1x256xf32> to vector<1x1x256xf32>
    tpu.vector_store %arg13[%c5_748, %c6_749, %c0_750], %1218 {strides = array<i32>} : memref<8x16x256xf32, #tpu.memory_space<vmem>>, vector<1x1x256xf32>,
    %c7_i32_751 = arith.constant 7 : i32
    %1219 = arith.addi %0, %c7_i32_751 : i32
    %1220 = arith.index_cast %1219 : i32 to index
    %c5_752 = arith.constant 5 : index
    %1221 = memref.load %arg1[%1220, %c5_752] : memref<16x8xi32, #tpu.memory_space<smem>>
    %c7_i32_753 = arith.constant 7 : i32
    %1222 = arith.addi %0, %c7_i32_753 : i32
    %1223 = arith.index_cast %1222 : i32 to index
    %c2_754 = arith.constant 2 : index
    %1224 = memref.load %arg1[%1223, %c2_754] : memref<16x8xi32, #tpu.memory_space<smem>>
    %1225 = arith.index_cast %1221 : i32 to index
    %c0_755 = arith.constant 0 : index
    %1226 = vector.load %arg2[%1225, %c0_755] : memref<64x256xf32, #tpu.memory_space<vmem>>, vector<1x256xf32>
    %1227 = arith.index_cast %1224 : i32 to index
    %c0_756 = arith.constant 0 : index
    %1228 = vector.load %arg3[%1227, %c0_756] : memref<64x256xf32, #tpu.memory_space<vmem>>, vector<1x256xf32>
    %1229 = arith.addf %1226, %1228 : vector<1x256xf32>
    %c5_757 = arith.constant 5 : index
    %c7_758 = arith.constant 7 : index
    %c0_759 = arith.constant 0 : index
    %1230 = vector.load %arg13[%c5_757, %c7_758, %c0_759] : memref<8x16x256xf32, #tpu.memory_space<vmem>>, vector<1x1x256xf32>
    %1231 = vector.shape_cast %1230 : vector<1x1x256xf32> to vector<1x256xf32>
    %1232 = vector.shape_cast %1229 : vector<1x256xf32> to vector<1x1x256xf32>
    tpu.vector_store %arg13[%c5_757, %c7_758, %c0_759], %1232 {strides = array<i32>} : memref<8x16x256xf32, #tpu.memory_space<vmem>>, vector<1x1x256xf32>,
    %c8_i32_760 = arith.constant 8 : i32
    %1233 = arith.addi %0, %c8_i32_760 : i32
    %1234 = arith.index_cast %1233 : i32 to index
    %c5_761 = arith.constant 5 : index
    %1235 = memref.load %arg1[%1234, %c5_761] : memref<16x8xi32, #tpu.memory_space<smem>>
    %c8_i32_762 = arith.constant 8 : i32
    %1236 = arith.addi %0, %c8_i32_762 : i32
    %1237 = arith.index_cast %1236 : i32 to index
    %c2_763 = arith.constant 2 : index
    %1238 = memref.load %arg1[%1237, %c2_763] : memref<16x8xi32, #tpu.memory_space<smem>>
    %1239 = arith.index_cast %1235 : i32 to index
    %c0_764 = arith.constant 0 : index
    %1240 = vector.load %arg2[%1239, %c0_764] : memref<64x256xf32, #tpu.memory_space<vmem>>, vector<1x256xf32>
    %1241 = arith.index_cast %1238 : i32 to index
    %c0_765 = arith.constant 0 : index
    %1242 = vector.load %arg3[%1241, %c0_765] : memref<64x256xf32, #tpu.memory_space<vmem>>, vector<1x256xf32>
    %1243 = arith.addf %1240, %1242 : vector<1x256xf32>
    %c5_766 = arith.constant 5 : index
    %c8_767 = arith.constant 8 : index
    %c0_768 = arith.constant 0 : index
    %1244 = vector.load %arg13[%c5_766, %c8_767, %c0_768] : memref<8x16x256xf32, #tpu.memory_space<vmem>>, vector<1x1x256xf32>
    %1245 = vector.shape_cast %1244 : vector<1x1x256xf32> to vector<1x256xf32>
    %1246 = vector.shape_cast %1243 : vector<1x256xf32> to vector<1x1x256xf32>
    tpu.vector_store %arg13[%c5_766, %c8_767, %c0_768], %1246 {strides = array<i32>} : memref<8x16x256xf32, #tpu.memory_space<vmem>>, vector<1x1x256xf32>,
    %c9_i32_769 = arith.constant 9 : i32
    %1247 = arith.addi %0, %c9_i32_769 : i32
    %1248 = arith.index_cast %1247 : i32 to index
    %c5_770 = arith.constant 5 : index
    %1249 = memref.load %arg1[%1248, %c5_770] : memref<16x8xi32, #tpu.memory_space<smem>>
    %c9_i32_771 = arith.constant 9 : i32
    %1250 = arith.addi %0, %c9_i32_771 : i32
    %1251 = arith.index_cast %1250 : i32 to index
    %c2_772 = arith.constant 2 : index
    %1252 = memref.load %arg1[%1251, %c2_772] : memref<16x8xi32, #tpu.memory_space<smem>>
    %1253 = arith.index_cast %1249 : i32 to index
    %c0_773 = arith.constant 0 : index
    %1254 = vector.load %arg2[%1253, %c0_773] : memref<64x256xf32, #tpu.memory_space<vmem>>, vector<1x256xf32>
    %1255 = arith.index_cast %1252 : i32 to index
    %c0_774 = arith.constant 0 : index
    %1256 = vector.load %arg3[%1255, %c0_774] : memref<64x256xf32, #tpu.memory_space<vmem>>, vector<1x256xf32>
    %1257 = arith.addf %1254, %1256 : vector<1x256xf32>
    %c5_775 = arith.constant 5 : index
    %c9_776 = arith.constant 9 : index
    %c0_777 = arith.constant 0 : index
    %1258 = vector.load %arg13[%c5_775, %c9_776, %c0_777] : memref<8x16x256xf32, #tpu.memory_space<vmem>>, vector<1x1x256xf32>
    %1259 = vector.shape_cast %1258 : vector<1x1x256xf32> to vector<1x256xf32>
    %1260 = vector.shape_cast %1257 : vector<1x256xf32> to vector<1x1x256xf32>
    tpu.vector_store %arg13[%c5_775, %c9_776, %c0_777], %1260 {strides = array<i32>} : memref<8x16x256xf32, #tpu.memory_space<vmem>>, vector<1x1x256xf32>,
    %c10_i32_778 = arith.constant 10 : i32
    %1261 = arith.addi %0, %c10_i32_778 : i32
    %1262 = arith.index_cast %1261 : i32 to index
    %c5_779 = arith.constant 5 : index
    %1263 = memref.load %arg1[%1262, %c5_779] : memref<16x8xi32, #tpu.memory_space<smem>>
    %c10_i32_780 = arith.constant 10 : i32
    %1264 = arith.addi %0, %c10_i32_780 : i32
    %1265 = arith.index_cast %1264 : i32 to index
    %c2_781 = arith.constant 2 : index
    %1266 = memref.load %arg1[%1265, %c2_781] : memref<16x8xi32, #tpu.memory_space<smem>>
    %1267 = arith.index_cast %1263 : i32 to index
    %c0_782 = arith.constant 0 : index
    %1268 = vector.load %arg2[%1267, %c0_782] : memref<64x256xf32, #tpu.memory_space<vmem>>, vector<1x256xf32>
    %1269 = arith.index_cast %1266 : i32 to index
    %c0_783 = arith.constant 0 : index
    %1270 = vector.load %arg3[%1269, %c0_783] : memref<64x256xf32, #tpu.memory_space<vmem>>, vector<1x256xf32>
    %1271 = arith.addf %1268, %1270 : vector<1x256xf32>
    %c5_784 = arith.constant 5 : index
    %c10_785 = arith.constant 10 : index
    %c0_786 = arith.constant 0 : index
    %1272 = vector.load %arg13[%c5_784, %c10_785, %c0_786] : memref<8x16x256xf32, #tpu.memory_space<vmem>>, vector<1x1x256xf32>
    %1273 = vector.shape_cast %1272 : vector<1x1x256xf32> to vector<1x256xf32>
    %1274 = vector.shape_cast %1271 : vector<1x256xf32> to vector<1x1x256xf32>
    tpu.vector_store %arg13[%c5_784, %c10_785, %c0_786], %1274 {strides = array<i32>} : memref<8x16x256xf32, #tpu.memory_space<vmem>>, vector<1x1x256xf32>,
    %c11_i32_787 = arith.constant 11 : i32
    %1275 = arith.addi %0, %c11_i32_787 : i32
    %1276 = arith.index_cast %1275 : i32 to index
    %c5_788 = arith.constant 5 : index
    %1277 = memref.load %arg1[%1276, %c5_788] : memref<16x8xi32, #tpu.memory_space<smem>>
    %c11_i32_789 = arith.constant 11 : i32
    %1278 = arith.addi %0, %c11_i32_789 : i32
    %1279 = arith.index_cast %1278 : i32 to index
    %c2_790 = arith.constant 2 : index
    %1280 = memref.load %arg1[%1279, %c2_790] : memref<16x8xi32, #tpu.memory_space<smem>>
    %1281 = arith.index_cast %1277 : i32 to index
    %c0_791 = arith.constant 0 : index
    %1282 = vector.load %arg2[%1281, %c0_791] : memref<64x256xf32, #tpu.memory_space<vmem>>, vector<1x256xf32>
    %1283 = arith.index_cast %1280 : i32 to index
    %c0_792 = arith.constant 0 : index
    %1284 = vector.load %arg3[%1283, %c0_792] : memref<64x256xf32, #tpu.memory_space<vmem>>, vector<1x256xf32>
    %1285 = arith.addf %1282, %1284 : vector<1x256xf32>
    %c5_793 = arith.constant 5 : index
    %c11_794 = arith.constant 11 : index
    %c0_795 = arith.constant 0 : index
    %1286 = vector.load %arg13[%c5_793, %c11_794, %c0_795] : memref<8x16x256xf32, #tpu.memory_space<vmem>>, vector<1x1x256xf32>
    %1287 = vector.shape_cast %1286 : vector<1x1x256xf32> to vector<1x256xf32>
    %1288 = vector.shape_cast %1285 : vector<1x256xf32> to vector<1x1x256xf32>
    tpu.vector_store %arg13[%c5_793, %c11_794, %c0_795], %1288 {strides = array<i32>} : memref<8x16x256xf32, #tpu.memory_space<vmem>>, vector<1x1x256xf32>,
    %c12_i32_796 = arith.constant 12 : i32
    %1289 = arith.addi %0, %c12_i32_796 : i32
    %1290 = arith.index_cast %1289 : i32 to index
    %c5_797 = arith.constant 5 : index
    %1291 = memref.load %arg1[%1290, %c5_797] : memref<16x8xi32, #tpu.memory_space<smem>>
    %c12_i32_798 = arith.constant 12 : i32
    %1292 = arith.addi %0, %c12_i32_798 : i32
    %1293 = arith.index_cast %1292 : i32 to index
    %c2_799 = arith.constant 2 : index
    %1294 = memref.load %arg1[%1293, %c2_799] : memref<16x8xi32, #tpu.memory_space<smem>>
    %1295 = arith.index_cast %1291 : i32 to index
    %c0_800 = arith.constant 0 : index
    %1296 = vector.load %arg2[%1295, %c0_800] : memref<64x256xf32, #tpu.memory_space<vmem>>, vector<1x256xf32>
    %1297 = arith.index_cast %1294 : i32 to index
    %c0_801 = arith.constant 0 : index
    %1298 = vector.load %arg3[%1297, %c0_801] : memref<64x256xf32, #tpu.memory_space<vmem>>, vector<1x256xf32>
    %1299 = arith.addf %1296, %1298 : vector<1x256xf32>
    %c5_802 = arith.constant 5 : index
    %c12_803 = arith.constant 12 : index
    %c0_804 = arith.constant 0 : index
    %1300 = vector.load %arg13[%c5_802, %c12_803, %c0_804] : memref<8x16x256xf32, #tpu.memory_space<vmem>>, vector<1x1x256xf32>
    %1301 = vector.shape_cast %1300 : vector<1x1x256xf32> to vector<1x256xf32>
    %1302 = vector.shape_cast %1299 : vector<1x256xf32> to vector<1x1x256xf32>
    tpu.vector_store %arg13[%c5_802, %c12_803, %c0_804], %1302 {strides = array<i32>} : memref<8x16x256xf32, #tpu.memory_space<vmem>>, vector<1x1x256xf32>,
    %c13_i32_805 = arith.constant 13 : i32
    %1303 = arith.addi %0, %c13_i32_805 : i32
    %1304 = arith.index_cast %1303 : i32 to index
    %c5_806 = arith.constant 5 : index
    %1305 = memref.load %arg1[%1304, %c5_806] : memref<16x8xi32, #tpu.memory_space<smem>>
    %c13_i32_807 = arith.constant 13 : i32
    %1306 = arith.addi %0, %c13_i32_807 : i32
    %1307 = arith.index_cast %1306 : i32 to index
    %c2_808 = arith.constant 2 : index
    %1308 = memref.load %arg1[%1307, %c2_808] : memref<16x8xi32, #tpu.memory_space<smem>>
    %1309 = arith.index_cast %1305 : i32 to index
    %c0_809 = arith.constant 0 : index
    %1310 = vector.load %arg2[%1309, %c0_809] : memref<64x256xf32, #tpu.memory_space<vmem>>, vector<1x256xf32>
    %1311 = arith.index_cast %1308 : i32 to index
    %c0_810 = arith.constant 0 : index
    %1312 = vector.load %arg3[%1311, %c0_810] : memref<64x256xf32, #tpu.memory_space<vmem>>, vector<1x256xf32>
    %1313 = arith.addf %1310, %1312 : vector<1x256xf32>
    %c5_811 = arith.constant 5 : index
    %c13_812 = arith.constant 13 : index
    %c0_813 = arith.constant 0 : index
    %1314 = vector.load %arg13[%c5_811, %c13_812, %c0_813] : memref<8x16x256xf32, #tpu.memory_space<vmem>>, vector<1x1x256xf32>
    %1315 = vector.shape_cast %1314 : vector<1x1x256xf32> to vector<1x256xf32>
    %1316 = vector.shape_cast %1313 : vector<1x256xf32> to vector<1x1x256xf32>
    tpu.vector_store %arg13[%c5_811, %c13_812, %c0_813], %1316 {strides = array<i32>} : memref<8x16x256xf32, #tpu.memory_space<vmem>>, vector<1x1x256xf32>,
    %c14_i32_814 = arith.constant 14 : i32
    %1317 = arith.addi %0, %c14_i32_814 : i32
    %1318 = arith.index_cast %1317 : i32 to index
    %c5_815 = arith.constant 5 : index
    %1319 = memref.load %arg1[%1318, %c5_815] : memref<16x8xi32, #tpu.memory_space<smem>>
    %c14_i32_816 = arith.constant 14 : i32
    %1320 = arith.addi %0, %c14_i32_816 : i32
    %1321 = arith.index_cast %1320 : i32 to index
    %c2_817 = arith.constant 2 : index
    %1322 = memref.load %arg1[%1321, %c2_817] : memref<16x8xi32, #tpu.memory_space<smem>>
    %1323 = arith.index_cast %1319 : i32 to index
    %c0_818 = arith.constant 0 : index
    %1324 = vector.load %arg2[%1323, %c0_818] : memref<64x256xf32, #tpu.memory_space<vmem>>, vector<1x256xf32>
    %1325 = arith.index_cast %1322 : i32 to index
    %c0_819 = arith.constant 0 : index
    %1326 = vector.load %arg3[%1325, %c0_819] : memref<64x256xf32, #tpu.memory_space<vmem>>, vector<1x256xf32>
    %1327 = arith.addf %1324, %1326 : vector<1x256xf32>
    %c5_820 = arith.constant 5 : index
    %c14_821 = arith.constant 14 : index
    %c0_822 = arith.constant 0 : index
    %1328 = vector.load %arg13[%c5_820, %c14_821, %c0_822] : memref<8x16x256xf32, #tpu.memory_space<vmem>>, vector<1x1x256xf32>
    %1329 = vector.shape_cast %1328 : vector<1x1x256xf32> to vector<1x256xf32>
    %1330 = vector.shape_cast %1327 : vector<1x256xf32> to vector<1x1x256xf32>
    tpu.vector_store %arg13[%c5_820, %c14_821, %c0_822], %1330 {strides = array<i32>} : memref<8x16x256xf32, #tpu.memory_space<vmem>>, vector<1x1x256xf32>,
    %c15_i32_823 = arith.constant 15 : i32
    %1331 = arith.addi %0, %c15_i32_823 : i32
    %1332 = arith.index_cast %1331 : i32 to index
    %c5_824 = arith.constant 5 : index
    %1333 = memref.load %arg1[%1332, %c5_824] : memref<16x8xi32, #tpu.memory_space<smem>>
    %c15_i32_825 = arith.constant 15 : i32
    %1334 = arith.addi %0, %c15_i32_825 : i32
    %1335 = arith.index_cast %1334 : i32 to index
    %c2_826 = arith.constant 2 : index
    %1336 = memref.load %arg1[%1335, %c2_826] : memref<16x8xi32, #tpu.memory_space<smem>>
    %1337 = arith.index_cast %1333 : i32 to index
    %c0_827 = arith.constant 0 : index
    %1338 = vector.load %arg2[%1337, %c0_827] : memref<64x256xf32, #tpu.memory_space<vmem>>, vector<1x256xf32>
    %1339 = arith.index_cast %1336 : i32 to index
    %c0_828 = arith.constant 0 : index
    %1340 = vector.load %arg3[%1339, %c0_828] : memref<64x256xf32, #tpu.memory_space<vmem>>, vector<1x256xf32>
    %1341 = arith.addf %1338, %1340 : vector<1x256xf32>
    %c5_829 = arith.constant 5 : index
    %c15_830 = arith.constant 15 : index
    %c0_831 = arith.constant 0 : index
    %1342 = vector.load %arg13[%c5_829, %c15_830, %c0_831] : memref<8x16x256xf32, #tpu.memory_space<vmem>>, vector<1x1x256xf32>
    %1343 = vector.shape_cast %1342 : vector<1x1x256xf32> to vector<1x256xf32>
    %1344 = vector.shape_cast %1341 : vector<1x256xf32> to vector<1x1x256xf32>
    tpu.vector_store %arg13[%c5_829, %c15_830, %c0_831], %1344 {strides = array<i32>} : memref<8x16x256xf32, #tpu.memory_space<vmem>>, vector<1x1x256xf32>,
    %c0_i32_832 = arith.constant 0 : i32
    %1345 = arith.addi %0, %c0_i32_832 : i32
    %1346 = arith.index_cast %1345 : i32 to index
    %c6_833 = arith.constant 6 : index
    %1347 = memref.load %arg1[%1346, %c6_833] : memref<16x8xi32, #tpu.memory_space<smem>>
    %c0_i32_834 = arith.constant 0 : i32
    %1348 = arith.addi %0, %c0_i32_834 : i32
    %1349 = arith.index_cast %1348 : i32 to index
    %c1_835 = arith.constant 1 : index
    %1350 = memref.load %arg1[%1349, %c1_835] : memref<16x8xi32, #tpu.memory_space<smem>>
    %1351 = arith.index_cast %1347 : i32 to index
    %c0_836 = arith.constant 0 : index
    %1352 = vector.load %arg2[%1351, %c0_836] : memref<64x256xf32, #tpu.memory_space<vmem>>, vector<1x256xf32>
    %1353 = arith.index_cast %1350 : i32 to index
    %c0_837 = arith.constant 0 : index
    %1354 = vector.load %arg3[%1353, %c0_837] : memref<64x256xf32, #tpu.memory_space<vmem>>, vector<1x256xf32>
    %1355 = arith.addf %1352, %1354 : vector<1x256xf32>
    %c6_838 = arith.constant 6 : index
    %c0_839 = arith.constant 0 : index
    %c0_840 = arith.constant 0 : index
    %1356 = vector.load %arg13[%c6_838, %c0_839, %c0_840] : memref<8x16x256xf32, #tpu.memory_space<vmem>>, vector<1x1x256xf32>
    %1357 = vector.shape_cast %1356 : vector<1x1x256xf32> to vector<1x256xf32>
    %1358 = vector.shape_cast %1355 : vector<1x256xf32> to vector<1x1x256xf32>
    tpu.vector_store %arg13[%c6_838, %c0_839, %c0_840], %1358 {strides = array<i32>} : memref<8x16x256xf32, #tpu.memory_space<vmem>>, vector<1x1x256xf32>,
    %c1_i32_841 = arith.constant 1 : i32
    %1359 = arith.addi %0, %c1_i32_841 : i32
    %1360 = arith.index_cast %1359 : i32 to index
    %c6_842 = arith.constant 6 : index
    %1361 = memref.load %arg1[%1360, %c6_842] : memref<16x8xi32, #tpu.memory_space<smem>>
    %c1_i32_843 = arith.constant 1 : i32
    %1362 = arith.addi %0, %c1_i32_843 : i32
    %1363 = arith.index_cast %1362 : i32 to index
    %c1_844 = arith.constant 1 : index
    %1364 = memref.load %arg1[%1363, %c1_844] : memref<16x8xi32, #tpu.memory_space<smem>>
    %1365 = arith.index_cast %1361 : i32 to index
    %c0_845 = arith.constant 0 : index
    %1366 = vector.load %arg2[%1365, %c0_845] : memref<64x256xf32, #tpu.memory_space<vmem>>, vector<1x256xf32>
    %1367 = arith.index_cast %1364 : i32 to index
    %c0_846 = arith.constant 0 : index
    %1368 = vector.load %arg3[%1367, %c0_846] : memref<64x256xf32, #tpu.memory_space<vmem>>, vector<1x256xf32>
    %1369 = arith.addf %1366, %1368 : vector<1x256xf32>
    %c6_847 = arith.constant 6 : index
    %c1_848 = arith.constant 1 : index
    %c0_849 = arith.constant 0 : index
    %1370 = vector.load %arg13[%c6_847, %c1_848, %c0_849] : memref<8x16x256xf32, #tpu.memory_space<vmem>>, vector<1x1x256xf32>
    %1371 = vector.shape_cast %1370 : vector<1x1x256xf32> to vector<1x256xf32>
    %1372 = vector.shape_cast %1369 : vector<1x256xf32> to vector<1x1x256xf32>
    tpu.vector_store %arg13[%c6_847, %c1_848, %c0_849], %1372 {strides = array<i32>} : memref<8x16x256xf32, #tpu.memory_space<vmem>>, vector<1x1x256xf32>,
    %c2_i32_850 = arith.constant 2 : i32
    %1373 = arith.addi %0, %c2_i32_850 : i32
    %1374 = arith.index_cast %1373 : i32 to index
    %c6_851 = arith.constant 6 : index
    %1375 = memref.load %arg1[%1374, %c6_851] : memref<16x8xi32, #tpu.memory_space<smem>>
    %c2_i32_852 = arith.constant 2 : i32
    %1376 = arith.addi %0, %c2_i32_852 : i32
    %1377 = arith.index_cast %1376 : i32 to index
    %c1_853 = arith.constant 1 : index
    %1378 = memref.load %arg1[%1377, %c1_853] : memref<16x8xi32, #tpu.memory_space<smem>>
    %1379 = arith.index_cast %1375 : i32 to index
    %c0_854 = arith.constant 0 : index
    %1380 = vector.load %arg2[%1379, %c0_854] : memref<64x256xf32, #tpu.memory_space<vmem>>, vector<1x256xf32>
    %1381 = arith.index_cast %1378 : i32 to index
    %c0_855 = arith.constant 0 : index
    %1382 = vector.load %arg3[%1381, %c0_855] : memref<64x256xf32, #tpu.memory_space<vmem>>, vector<1x256xf32>
    %1383 = arith.addf %1380, %1382 : vector<1x256xf32>
    %c6_856 = arith.constant 6 : index
    %c2_857 = arith.constant 2 : index
    %c0_858 = arith.constant 0 : index
    %1384 = vector.load %arg13[%c6_856, %c2_857, %c0_858] : memref<8x16x256xf32, #tpu.memory_space<vmem>>, vector<1x1x256xf32>
    %1385 = vector.shape_cast %1384 : vector<1x1x256xf32> to vector<1x256xf32>
    %1386 = vector.shape_cast %1383 : vector<1x256xf32> to vector<1x1x256xf32>
    tpu.vector_store %arg13[%c6_856, %c2_857, %c0_858], %1386 {strides = array<i32>} : memref<8x16x256xf32, #tpu.memory_space<vmem>>, vector<1x1x256xf32>,
    %c3_i32_859 = arith.constant 3 : i32
    %1387 = arith.addi %0, %c3_i32_859 : i32
    %1388 = arith.index_cast %1387 : i32 to index
    %c6_860 = arith.constant 6 : index
    %1389 = memref.load %arg1[%1388, %c6_860] : memref<16x8xi32, #tpu.memory_space<smem>>
    %c3_i32_861 = arith.constant 3 : i32
    %1390 = arith.addi %0, %c3_i32_861 : i32
    %1391 = arith.index_cast %1390 : i32 to index
    %c1_862 = arith.constant 1 : index
    %1392 = memref.load %arg1[%1391, %c1_862] : memref<16x8xi32, #tpu.memory_space<smem>>
    %1393 = arith.index_cast %1389 : i32 to index
    %c0_863 = arith.constant 0 : index
    %1394 = vector.load %arg2[%1393, %c0_863] : memref<64x256xf32, #tpu.memory_space<vmem>>, vector<1x256xf32>
    %1395 = arith.index_cast %1392 : i32 to index
    %c0_864 = arith.constant 0 : index
    %1396 = vector.load %arg3[%1395, %c0_864] : memref<64x256xf32, #tpu.memory_space<vmem>>, vector<1x256xf32>
    %1397 = arith.addf %1394, %1396 : vector<1x256xf32>
    %c6_865 = arith.constant 6 : index
    %c3_866 = arith.constant 3 : index
    %c0_867 = arith.constant 0 : index
    %1398 = vector.load %arg13[%c6_865, %c3_866, %c0_867] : memref<8x16x256xf32, #tpu.memory_space<vmem>>, vector<1x1x256xf32>
    %1399 = vector.shape_cast %1398 : vector<1x1x256xf32> to vector<1x256xf32>
    %1400 = vector.shape_cast %1397 : vector<1x256xf32> to vector<1x1x256xf32>
    tpu.vector_store %arg13[%c6_865, %c3_866, %c0_867], %1400 {strides = array<i32>} : memref<8x16x256xf32, #tpu.memory_space<vmem>>, vector<1x1x256xf32>,
    %c4_i32_868 = arith.constant 4 : i32
    %1401 = arith.addi %0, %c4_i32_868 : i32
    %1402 = arith.index_cast %1401 : i32 to index
    %c6_869 = arith.constant 6 : index
    %1403 = memref.load %arg1[%1402, %c6_869] : memref<16x8xi32, #tpu.memory_space<smem>>
    %c4_i32_870 = arith.constant 4 : i32
    %1404 = arith.addi %0, %c4_i32_870 : i32
    %1405 = arith.index_cast %1404 : i32 to index
    %c1_871 = arith.constant 1 : index
    %1406 = memref.load %arg1[%1405, %c1_871] : memref<16x8xi32, #tpu.memory_space<smem>>
    %1407 = arith.index_cast %1403 : i32 to index
    %c0_872 = arith.constant 0 : index
    %1408 = vector.load %arg2[%1407, %c0_872] : memref<64x256xf32, #tpu.memory_space<vmem>>, vector<1x256xf32>
    %1409 = arith.index_cast %1406 : i32 to index
    %c0_873 = arith.constant 0 : index
    %1410 = vector.load %arg3[%1409, %c0_873] : memref<64x256xf32, #tpu.memory_space<vmem>>, vector<1x256xf32>
    %1411 = arith.addf %1408, %1410 : vector<1x256xf32>
    %c6_874 = arith.constant 6 : index
    %c4_875 = arith.constant 4 : index
    %c0_876 = arith.constant 0 : index
    %1412 = vector.load %arg13[%c6_874, %c4_875, %c0_876] : memref<8x16x256xf32, #tpu.memory_space<vmem>>, vector<1x1x256xf32>
    %1413 = vector.shape_cast %1412 : vector<1x1x256xf32> to vector<1x256xf32>
    %1414 = vector.shape_cast %1411 : vector<1x256xf32> to vector<1x1x256xf32>
    tpu.vector_store %arg13[%c6_874, %c4_875, %c0_876], %1414 {strides = array<i32>} : memref<8x16x256xf32, #tpu.memory_space<vmem>>, vector<1x1x256xf32>,
    %c5_i32_877 = arith.constant 5 : i32
    %1415 = arith.addi %0, %c5_i32_877 : i32
    %1416 = arith.index_cast %1415 : i32 to index
    %c6_878 = arith.constant 6 : index
    %1417 = memref.load %arg1[%1416, %c6_878] : memref<16x8xi32, #tpu.memory_space<smem>>
    %c5_i32_879 = arith.constant 5 : i32
    %1418 = arith.addi %0, %c5_i32_879 : i32
    %1419 = arith.index_cast %1418 : i32 to index
    %c1_880 = arith.constant 1 : index
    %1420 = memref.load %arg1[%1419, %c1_880] : memref<16x8xi32, #tpu.memory_space<smem>>
    %1421 = arith.index_cast %1417 : i32 to index
    %c0_881 = arith.constant 0 : index
    %1422 = vector.load %arg2[%1421, %c0_881] : memref<64x256xf32, #tpu.memory_space<vmem>>, vector<1x256xf32>
    %1423 = arith.index_cast %1420 : i32 to index
    %c0_882 = arith.constant 0 : index
    %1424 = vector.load %arg3[%1423, %c0_882] : memref<64x256xf32, #tpu.memory_space<vmem>>, vector<1x256xf32>
    %1425 = arith.addf %1422, %1424 : vector<1x256xf32>
    %c6_883 = arith.constant 6 : index
    %c5_884 = arith.constant 5 : index
    %c0_885 = arith.constant 0 : index
    %1426 = vector.load %arg13[%c6_883, %c5_884, %c0_885] : memref<8x16x256xf32, #tpu.memory_space<vmem>>, vector<1x1x256xf32>
    %1427 = vector.shape_cast %1426 : vector<1x1x256xf32> to vector<1x256xf32>
    %1428 = vector.shape_cast %1425 : vector<1x256xf32> to vector<1x1x256xf32>
    tpu.vector_store %arg13[%c6_883, %c5_884, %c0_885], %1428 {strides = array<i32>} : memref<8x16x256xf32, #tpu.memory_space<vmem>>, vector<1x1x256xf32>,
    %c6_i32_886 = arith.constant 6 : i32
    %1429 = arith.addi %0, %c6_i32_886 : i32
    %1430 = arith.index_cast %1429 : i32 to index
    %c6_887 = arith.constant 6 : index
    %1431 = memref.load %arg1[%1430, %c6_887] : memref<16x8xi32, #tpu.memory_space<smem>>
    %c6_i32_888 = arith.constant 6 : i32
    %1432 = arith.addi %0, %c6_i32_888 : i32
    %1433 = arith.index_cast %1432 : i32 to index
    %c1_889 = arith.constant 1 : index
    %1434 = memref.load %arg1[%1433, %c1_889] : memref<16x8xi32, #tpu.memory_space<smem>>
    %1435 = arith.index_cast %1431 : i32 to index
    %c0_890 = arith.constant 0 : index
    %1436 = vector.load %arg2[%1435, %c0_890] : memref<64x256xf32, #tpu.memory_space<vmem>>, vector<1x256xf32>
    %1437 = arith.index_cast %1434 : i32 to index
    %c0_891 = arith.constant 0 : index
    %1438 = vector.load %arg3[%1437, %c0_891] : memref<64x256xf32, #tpu.memory_space<vmem>>, vector<1x256xf32>
    %1439 = arith.addf %1436, %1438 : vector<1x256xf32>
    %c6_892 = arith.constant 6 : index
    %c6_893 = arith.constant 6 : index
    %c0_894 = arith.constant 0 : index
    %1440 = vector.load %arg13[%c6_892, %c6_893, %c0_894] : memref<8x16x256xf32, #tpu.memory_space<vmem>>, vector<1x1x256xf32>
    %1441 = vector.shape_cast %1440 : vector<1x1x256xf32> to vector<1x256xf32>
    %1442 = vector.shape_cast %1439 : vector<1x256xf32> to vector<1x1x256xf32>
    tpu.vector_store %arg13[%c6_892, %c6_893, %c0_894], %1442 {strides = array<i32>} : memref<8x16x256xf32, #tpu.memory_space<vmem>>, vector<1x1x256xf32>,
    %c7_i32_895 = arith.constant 7 : i32
    %1443 = arith.addi %0, %c7_i32_895 : i32
    %1444 = arith.index_cast %1443 : i32 to index
    %c6_896 = arith.constant 6 : index
    %1445 = memref.load %arg1[%1444, %c6_896] : memref<16x8xi32, #tpu.memory_space<smem>>
    %c7_i32_897 = arith.constant 7 : i32
    %1446 = arith.addi %0, %c7_i32_897 : i32
    %1447 = arith.index_cast %1446 : i32 to index
    %c1_898 = arith.constant 1 : index
    %1448 = memref.load %arg1[%1447, %c1_898] : memref<16x8xi32, #tpu.memory_space<smem>>
    %1449 = arith.index_cast %1445 : i32 to index
    %c0_899 = arith.constant 0 : index
    %1450 = vector.load %arg2[%1449, %c0_899] : memref<64x256xf32, #tpu.memory_space<vmem>>, vector<1x256xf32>
    %1451 = arith.index_cast %1448 : i32 to index
    %c0_900 = arith.constant 0 : index
    %1452 = vector.load %arg3[%1451, %c0_900] : memref<64x256xf32, #tpu.memory_space<vmem>>, vector<1x256xf32>
    %1453 = arith.addf %1450, %1452 : vector<1x256xf32>
    %c6_901 = arith.constant 6 : index
    %c7_902 = arith.constant 7 : index
    %c0_903 = arith.constant 0 : index
    %1454 = vector.load %arg13[%c6_901, %c7_902, %c0_903] : memref<8x16x256xf32, #tpu.memory_space<vmem>>, vector<1x1x256xf32>
    %1455 = vector.shape_cast %1454 : vector<1x1x256xf32> to vector<1x256xf32>
    %1456 = vector.shape_cast %1453 : vector<1x256xf32> to vector<1x1x256xf32>
    tpu.vector_store %arg13[%c6_901, %c7_902, %c0_903], %1456 {strides = array<i32>} : memref<8x16x256xf32, #tpu.memory_space<vmem>>, vector<1x1x256xf32>,
    %c8_i32_904 = arith.constant 8 : i32
    %1457 = arith.addi %0, %c8_i32_904 : i32
    %1458 = arith.index_cast %1457 : i32 to index
    %c6_905 = arith.constant 6 : index
    %1459 = memref.load %arg1[%1458, %c6_905] : memref<16x8xi32, #tpu.memory_space<smem>>
    %c8_i32_906 = arith.constant 8 : i32
    %1460 = arith.addi %0, %c8_i32_906 : i32
    %1461 = arith.index_cast %1460 : i32 to index
    %c1_907 = arith.constant 1 : index
    %1462 = memref.load %arg1[%1461, %c1_907] : memref<16x8xi32, #tpu.memory_space<smem>>
    %1463 = arith.index_cast %1459 : i32 to index
    %c0_908 = arith.constant 0 : index
    %1464 = vector.load %arg2[%1463, %c0_908] : memref<64x256xf32, #tpu.memory_space<vmem>>, vector<1x256xf32>
    %1465 = arith.index_cast %1462 : i32 to index
    %c0_909 = arith.constant 0 : index
    %1466 = vector.load %arg3[%1465, %c0_909] : memref<64x256xf32, #tpu.memory_space<vmem>>, vector<1x256xf32>
    %1467 = arith.addf %1464, %1466 : vector<1x256xf32>
    %c6_910 = arith.constant 6 : index
    %c8_911 = arith.constant 8 : index
    %c0_912 = arith.constant 0 : index
    %1468 = vector.load %arg13[%c6_910, %c8_911, %c0_912] : memref<8x16x256xf32, #tpu.memory_space<vmem>>, vector<1x1x256xf32>
    %1469 = vector.shape_cast %1468 : vector<1x1x256xf32> to vector<1x256xf32>
    %1470 = vector.shape_cast %1467 : vector<1x256xf32> to vector<1x1x256xf32>
    tpu.vector_store %arg13[%c6_910, %c8_911, %c0_912], %1470 {strides = array<i32>} : memref<8x16x256xf32, #tpu.memory_space<vmem>>, vector<1x1x256xf32>,
    %c9_i32_913 = arith.constant 9 : i32
    %1471 = arith.addi %0, %c9_i32_913 : i32
    %1472 = arith.index_cast %1471 : i32 to index
    %c6_914 = arith.constant 6 : index
    %1473 = memref.load %arg1[%1472, %c6_914] : memref<16x8xi32, #tpu.memory_space<smem>>
    %c9_i32_915 = arith.constant 9 : i32
    %1474 = arith.addi %0, %c9_i32_915 : i32
    %1475 = arith.index_cast %1474 : i32 to index
    %c1_916 = arith.constant 1 : index
    %1476 = memref.load %arg1[%1475, %c1_916] : memref<16x8xi32, #tpu.memory_space<smem>>
    %1477 = arith.index_cast %1473 : i32 to index
    %c0_917 = arith.constant 0 : index
    %1478 = vector.load %arg2[%1477, %c0_917] : memref<64x256xf32, #tpu.memory_space<vmem>>, vector<1x256xf32>
    %1479 = arith.index_cast %1476 : i32 to index
    %c0_918 = arith.constant 0 : index
    %1480 = vector.load %arg3[%1479, %c0_918] : memref<64x256xf32, #tpu.memory_space<vmem>>, vector<1x256xf32>
    %1481 = arith.addf %1478, %1480 : vector<1x256xf32>
    %c6_919 = arith.constant 6 : index
    %c9_920 = arith.constant 9 : index
    %c0_921 = arith.constant 0 : index
    %1482 = vector.load %arg13[%c6_919, %c9_920, %c0_921] : memref<8x16x256xf32, #tpu.memory_space<vmem>>, vector<1x1x256xf32>
    %1483 = vector.shape_cast %1482 : vector<1x1x256xf32> to vector<1x256xf32>
    %1484 = vector.shape_cast %1481 : vector<1x256xf32> to vector<1x1x256xf32>
    tpu.vector_store %arg13[%c6_919, %c9_920, %c0_921], %1484 {strides = array<i32>} : memref<8x16x256xf32, #tpu.memory_space<vmem>>, vector<1x1x256xf32>,
    %c10_i32_922 = arith.constant 10 : i32
    %1485 = arith.addi %0, %c10_i32_922 : i32
    %1486 = arith.index_cast %1485 : i32 to index
    %c6_923 = arith.constant 6 : index
    %1487 = memref.load %arg1[%1486, %c6_923] : memref<16x8xi32, #tpu.memory_space<smem>>
    %c10_i32_924 = arith.constant 10 : i32
    %1488 = arith.addi %0, %c10_i32_924 : i32
    %1489 = arith.index_cast %1488 : i32 to index
    %c1_925 = arith.constant 1 : index
    %1490 = memref.load %arg1[%1489, %c1_925] : memref<16x8xi32, #tpu.memory_space<smem>>
    %1491 = arith.index_cast %1487 : i32 to index
    %c0_926 = arith.constant 0 : index
    %1492 = vector.load %arg2[%1491, %c0_926] : memref<64x256xf32, #tpu.memory_space<vmem>>, vector<1x256xf32>
    %1493 = arith.index_cast %1490 : i32 to index
    %c0_927 = arith.constant 0 : index
    %1494 = vector.load %arg3[%1493, %c0_927] : memref<64x256xf32, #tpu.memory_space<vmem>>, vector<1x256xf32>
    %1495 = arith.addf %1492, %1494 : vector<1x256xf32>
    %c6_928 = arith.constant 6 : index
    %c10_929 = arith.constant 10 : index
    %c0_930 = arith.constant 0 : index
    %1496 = vector.load %arg13[%c6_928, %c10_929, %c0_930] : memref<8x16x256xf32, #tpu.memory_space<vmem>>, vector<1x1x256xf32>
    %1497 = vector.shape_cast %1496 : vector<1x1x256xf32> to vector<1x256xf32>
    %1498 = vector.shape_cast %1495 : vector<1x256xf32> to vector<1x1x256xf32>
    tpu.vector_store %arg13[%c6_928, %c10_929, %c0_930], %1498 {strides = array<i32>} : memref<8x16x256xf32, #tpu.memory_space<vmem>>, vector<1x1x256xf32>,
    %c11_i32_931 = arith.constant 11 : i32
    %1499 = arith.addi %0, %c11_i32_931 : i32
    %1500 = arith.index_cast %1499 : i32 to index
    %c6_932 = arith.constant 6 : index
    %1501 = memref.load %arg1[%1500, %c6_932] : memref<16x8xi32, #tpu.memory_space<smem>>
    %c11_i32_933 = arith.constant 11 : i32
    %1502 = arith.addi %0, %c11_i32_933 : i32
    %1503 = arith.index_cast %1502 : i32 to index
    %c1_934 = arith.constant 1 : index
    %1504 = memref.load %arg1[%1503, %c1_934] : memref<16x8xi32, #tpu.memory_space<smem>>
    %1505 = arith.index_cast %1501 : i32 to index
    %c0_935 = arith.constant 0 : index
    %1506 = vector.load %arg2[%1505, %c0_935] : memref<64x256xf32, #tpu.memory_space<vmem>>, vector<1x256xf32>
    %1507 = arith.index_cast %1504 : i32 to index
    %c0_936 = arith.constant 0 : index
    %1508 = vector.load %arg3[%1507, %c0_936] : memref<64x256xf32, #tpu.memory_space<vmem>>, vector<1x256xf32>
    %1509 = arith.addf %1506, %1508 : vector<1x256xf32>
    %c6_937 = arith.constant 6 : index
    %c11_938 = arith.constant 11 : index
    %c0_939 = arith.constant 0 : index
    %1510 = vector.load %arg13[%c6_937, %c11_938, %c0_939] : memref<8x16x256xf32, #tpu.memory_space<vmem>>, vector<1x1x256xf32>
    %1511 = vector.shape_cast %1510 : vector<1x1x256xf32> to vector<1x256xf32>
    %1512 = vector.shape_cast %1509 : vector<1x256xf32> to vector<1x1x256xf32>
    tpu.vector_store %arg13[%c6_937, %c11_938, %c0_939], %1512 {strides = array<i32>} : memref<8x16x256xf32, #tpu.memory_space<vmem>>, vector<1x1x256xf32>,
    %c12_i32_940 = arith.constant 12 : i32
    %1513 = arith.addi %0, %c12_i32_940 : i32
    %1514 = arith.index_cast %1513 : i32 to index
    %c6_941 = arith.constant 6 : index
    %1515 = memref.load %arg1[%1514, %c6_941] : memref<16x8xi32, #tpu.memory_space<smem>>
    %c12_i32_942 = arith.constant 12 : i32
    %1516 = arith.addi %0, %c12_i32_942 : i32
    %1517 = arith.index_cast %1516 : i32 to index
    %c1_943 = arith.constant 1 : index
    %1518 = memref.load %arg1[%1517, %c1_943] : memref<16x8xi32, #tpu.memory_space<smem>>
    %1519 = arith.index_cast %1515 : i32 to index
    %c0_944 = arith.constant 0 : index
    %1520 = vector.load %arg2[%1519, %c0_944] : memref<64x256xf32, #tpu.memory_space<vmem>>, vector<1x256xf32>
    %1521 = arith.index_cast %1518 : i32 to index
    %c0_945 = arith.constant 0 : index
    %1522 = vector.load %arg3[%1521, %c0_945] : memref<64x256xf32, #tpu.memory_space<vmem>>, vector<1x256xf32>
    %1523 = arith.addf %1520, %1522 : vector<1x256xf32>
    %c6_946 = arith.constant 6 : index
    %c12_947 = arith.constant 12 : index
    %c0_948 = arith.constant 0 : index
    %1524 = vector.load %arg13[%c6_946, %c12_947, %c0_948] : memref<8x16x256xf32, #tpu.memory_space<vmem>>, vector<1x1x256xf32>
    %1525 = vector.shape_cast %1524 : vector<1x1x256xf32> to vector<1x256xf32>
    %1526 = vector.shape_cast %1523 : vector<1x256xf32> to vector<1x1x256xf32>
    tpu.vector_store %arg13[%c6_946, %c12_947, %c0_948], %1526 {strides = array<i32>} : memref<8x16x256xf32, #tpu.memory_space<vmem>>, vector<1x1x256xf32>,
    %c13_i32_949 = arith.constant 13 : i32
    %1527 = arith.addi %0, %c13_i32_949 : i32
    %1528 = arith.index_cast %1527 : i32 to index
    %c6_950 = arith.constant 6 : index
    %1529 = memref.load %arg1[%1528, %c6_950] : memref<16x8xi32, #tpu.memory_space<smem>>
    %c13_i32_951 = arith.constant 13 : i32
    %1530 = arith.addi %0, %c13_i32_951 : i32
    %1531 = arith.index_cast %1530 : i32 to index
    %c1_952 = arith.constant 1 : index
    %1532 = memref.load %arg1[%1531, %c1_952] : memref<16x8xi32, #tpu.memory_space<smem>>
    %1533 = arith.index_cast %1529 : i32 to index
    %c0_953 = arith.constant 0 : index
    %1534 = vector.load %arg2[%1533, %c0_953] : memref<64x256xf32, #tpu.memory_space<vmem>>, vector<1x256xf32>
    %1535 = arith.index_cast %1532 : i32 to index
    %c0_954 = arith.constant 0 : index
    %1536 = vector.load %arg3[%1535, %c0_954] : memref<64x256xf32, #tpu.memory_space<vmem>>, vector<1x256xf32>
    %1537 = arith.addf %1534, %1536 : vector<1x256xf32>
    %c6_955 = arith.constant 6 : index
    %c13_956 = arith.constant 13 : index
    %c0_957 = arith.constant 0 : index
    %1538 = vector.load %arg13[%c6_955, %c13_956, %c0_957] : memref<8x16x256xf32, #tpu.memory_space<vmem>>, vector<1x1x256xf32>
    %1539 = vector.shape_cast %1538 : vector<1x1x256xf32> to vector<1x256xf32>
    %1540 = vector.shape_cast %1537 : vector<1x256xf32> to vector<1x1x256xf32>
    tpu.vector_store %arg13[%c6_955, %c13_956, %c0_957], %1540 {strides = array<i32>} : memref<8x16x256xf32, #tpu.memory_space<vmem>>, vector<1x1x256xf32>,
    %c14_i32_958 = arith.constant 14 : i32
    %1541 = arith.addi %0, %c14_i32_958 : i32
    %1542 = arith.index_cast %1541 : i32 to index
    %c6_959 = arith.constant 6 : index
    %1543 = memref.load %arg1[%1542, %c6_959] : memref<16x8xi32, #tpu.memory_space<smem>>
    %c14_i32_960 = arith.constant 14 : i32
    %1544 = arith.addi %0, %c14_i32_960 : i32
    %1545 = arith.index_cast %1544 : i32 to index
    %c1_961 = arith.constant 1 : index
    %1546 = memref.load %arg1[%1545, %c1_961] : memref<16x8xi32, #tpu.memory_space<smem>>
    %1547 = arith.index_cast %1543 : i32 to index
    %c0_962 = arith.constant 0 : index
    %1548 = vector.load %arg2[%1547, %c0_962] : memref<64x256xf32, #tpu.memory_space<vmem>>, vector<1x256xf32>
    %1549 = arith.index_cast %1546 : i32 to index
    %c0_963 = arith.constant 0 : index
    %1550 = vector.load %arg3[%1549, %c0_963] : memref<64x256xf32, #tpu.memory_space<vmem>>, vector<1x256xf32>
    %1551 = arith.addf %1548, %1550 : vector<1x256xf32>
    %c6_964 = arith.constant 6 : index
    %c14_965 = arith.constant 14 : index
    %c0_966 = arith.constant 0 : index
    %1552 = vector.load %arg13[%c6_964, %c14_965, %c0_966] : memref<8x16x256xf32, #tpu.memory_space<vmem>>, vector<1x1x256xf32>
    %1553 = vector.shape_cast %1552 : vector<1x1x256xf32> to vector<1x256xf32>
    %1554 = vector.shape_cast %1551 : vector<1x256xf32> to vector<1x1x256xf32>
    tpu.vector_store %arg13[%c6_964, %c14_965, %c0_966], %1554 {strides = array<i32>} : memref<8x16x256xf32, #tpu.memory_space<vmem>>, vector<1x1x256xf32>,
    %c15_i32_967 = arith.constant 15 : i32
    %1555 = arith.addi %0, %c15_i32_967 : i32
    %1556 = arith.index_cast %1555 : i32 to index
    %c6_968 = arith.constant 6 : index
    %1557 = memref.load %arg1[%1556, %c6_968] : memref<16x8xi32, #tpu.memory_space<smem>>
    %c15_i32_969 = arith.constant 15 : i32
    %1558 = arith.addi %0, %c15_i32_969 : i32
    %1559 = arith.index_cast %1558 : i32 to index
    %c1_970 = arith.constant 1 : index
    %1560 = memref.load %arg1[%1559, %c1_970] : memref<16x8xi32, #tpu.memory_space<smem>>
    %1561 = arith.index_cast %1557 : i32 to index
    %c0_971 = arith.constant 0 : index
    %1562 = vector.load %arg2[%1561, %c0_971] : memref<64x256xf32, #tpu.memory_space<vmem>>, vector<1x256xf32>
    %1563 = arith.index_cast %1560 : i32 to index
    %c0_972 = arith.constant 0 : index
    %1564 = vector.load %arg3[%1563, %c0_972] : memref<64x256xf32, #tpu.memory_space<vmem>>, vector<1x256xf32>
    %1565 = arith.addf %1562, %1564 : vector<1x256xf32>
    %c6_973 = arith.constant 6 : index
    %c15_974 = arith.constant 15 : index
    %c0_975 = arith.constant 0 : index
    %1566 = vector.load %arg13[%c6_973, %c15_974, %c0_975] : memref<8x16x256xf32, #tpu.memory_space<vmem>>, vector<1x1x256xf32>
    %1567 = vector.shape_cast %1566 : vector<1x1x256xf32> to vector<1x256xf32>
    %1568 = vector.shape_cast %1565 : vector<1x256xf32> to vector<1x1x256xf32>
    tpu.vector_store %arg13[%c6_973, %c15_974, %c0_975], %1568 {strides = array<i32>} : memref<8x16x256xf32, #tpu.memory_space<vmem>>, vector<1x1x256xf32>,
    %c0_i32_976 = arith.constant 0 : i32
    %1569 = arith.addi %0, %c0_i32_976 : i32
    %1570 = arith.index_cast %1569 : i32 to index
    %c7_977 = arith.constant 7 : index
    %1571 = memref.load %arg1[%1570, %c7_977] : memref<16x8xi32, #tpu.memory_space<smem>>
    %c0_i32_978 = arith.constant 0 : i32
    %1572 = arith.addi %0, %c0_i32_978 : i32
    %1573 = arith.index_cast %1572 : i32 to index
    %c0_979 = arith.constant 0 : index
    %1574 = memref.load %arg1[%1573, %c0_979] : memref<16x8xi32, #tpu.memory_space<smem>>
    %1575 = arith.index_cast %1571 : i32 to index
    %c0_980 = arith.constant 0 : index
    %1576 = vector.load %arg2[%1575, %c0_980] : memref<64x256xf32, #tpu.memory_space<vmem>>, vector<1x256xf32>
    %1577 = arith.index_cast %1574 : i32 to index
    %c0_981 = arith.constant 0 : index
    %1578 = vector.load %arg3[%1577, %c0_981] : memref<64x256xf32, #tpu.memory_space<vmem>>, vector<1x256xf32>
    %1579 = arith.addf %1576, %1578 : vector<1x256xf32>
    %c7_982 = arith.constant 7 : index
    %c0_983 = arith.constant 0 : index
    %c0_984 = arith.constant 0 : index
    %1580 = vector.load %arg13[%c7_982, %c0_983, %c0_984] : memref<8x16x256xf32, #tpu.memory_space<vmem>>, vector<1x1x256xf32>
    %1581 = vector.shape_cast %1580 : vector<1x1x256xf32> to vector<1x256xf32>
    %1582 = vector.shape_cast %1579 : vector<1x256xf32> to vector<1x1x256xf32>
    tpu.vector_store %arg13[%c7_982, %c0_983, %c0_984], %1582 {strides = array<i32>} : memref<8x16x256xf32, #tpu.memory_space<vmem>>, vector<1x1x256xf32>,
    %c1_i32_985 = arith.constant 1 : i32
    %1583 = arith.addi %0, %c1_i32_985 : i32
    %1584 = arith.index_cast %1583 : i32 to index
    %c7_986 = arith.constant 7 : index
    %1585 = memref.load %arg1[%1584, %c7_986] : memref<16x8xi32, #tpu.memory_space<smem>>
    %c1_i32_987 = arith.constant 1 : i32
    %1586 = arith.addi %0, %c1_i32_987 : i32
    %1587 = arith.index_cast %1586 : i32 to index
    %c0_988 = arith.constant 0 : index
    %1588 = memref.load %arg1[%1587, %c0_988] : memref<16x8xi32, #tpu.memory_space<smem>>
    %1589 = arith.index_cast %1585 : i32 to index
    %c0_989 = arith.constant 0 : index
    %1590 = vector.load %arg2[%1589, %c0_989] : memref<64x256xf32, #tpu.memory_space<vmem>>, vector<1x256xf32>
    %1591 = arith.index_cast %1588 : i32 to index
    %c0_990 = arith.constant 0 : index
    %1592 = vector.load %arg3[%1591, %c0_990] : memref<64x256xf32, #tpu.memory_space<vmem>>, vector<1x256xf32>
    %1593 = arith.addf %1590, %1592 : vector<1x256xf32>
    %c7_991 = arith.constant 7 : index
    %c1_992 = arith.constant 1 : index
    %c0_993 = arith.constant 0 : index
    %1594 = vector.load %arg13[%c7_991, %c1_992, %c0_993] : memref<8x16x256xf32, #tpu.memory_space<vmem>>, vector<1x1x256xf32>
    %1595 = vector.shape_cast %1594 : vector<1x1x256xf32> to vector<1x256xf32>
    %1596 = vector.shape_cast %1593 : vector<1x256xf32> to vector<1x1x256xf32>
    tpu.vector_store %arg13[%c7_991, %c1_992, %c0_993], %1596 {strides = array<i32>} : memref<8x16x256xf32, #tpu.memory_space<vmem>>, vector<1x1x256xf32>,
    %c2_i32_994 = arith.constant 2 : i32
    %1597 = arith.addi %0, %c2_i32_994 : i32
    %1598 = arith.index_cast %1597 : i32 to index
    %c7_995 = arith.constant 7 : index
    %1599 = memref.load %arg1[%1598, %c7_995] : memref<16x8xi32, #tpu.memory_space<smem>>
    %c2_i32_996 = arith.constant 2 : i32
    %1600 = arith.addi %0, %c2_i32_996 : i32
    %1601 = arith.index_cast %1600 : i32 to index
    %c0_997 = arith.constant 0 : index
    %1602 = memref.load %arg1[%1601, %c0_997] : memref<16x8xi32, #tpu.memory_space<smem>>
    %1603 = arith.index_cast %1599 : i32 to index
    %c0_998 = arith.constant 0 : index
    %1604 = vector.load %arg2[%1603, %c0_998] : memref<64x256xf32, #tpu.memory_space<vmem>>, vector<1x256xf32>
    %1605 = arith.index_cast %1602 : i32 to index
    %c0_999 = arith.constant 0 : index
    %1606 = vector.load %arg3[%1605, %c0_999] : memref<64x256xf32, #tpu.memory_space<vmem>>, vector<1x256xf32>
    %1607 = arith.addf %1604, %1606 : vector<1x256xf32>
    %c7_1000 = arith.constant 7 : index
    %c2_1001 = arith.constant 2 : index
    %c0_1002 = arith.constant 0 : index
    %1608 = vector.load %arg13[%c7_1000, %c2_1001, %c0_1002] : memref<8x16x256xf32, #tpu.memory_space<vmem>>, vector<1x1x256xf32>
    %1609 = vector.shape_cast %1608 : vector<1x1x256xf32> to vector<1x256xf32>
    %1610 = vector.shape_cast %1607 : vector<1x256xf32> to vector<1x1x256xf32>
    tpu.vector_store %arg13[%c7_1000, %c2_1001, %c0_1002], %1610 {strides = array<i32>} : memref<8x16x256xf32, #tpu.memory_space<vmem>>, vector<1x1x256xf32>,
    %c3_i32_1003 = arith.constant 3 : i32
    %1611 = arith.addi %0, %c3_i32_1003 : i32
    %1612 = arith.index_cast %1611 : i32 to index
    %c7_1004 = arith.constant 7 : index
    %1613 = memref.load %arg1[%1612, %c7_1004] : memref<16x8xi32, #tpu.memory_space<smem>>
    %c3_i32_1005 = arith.constant 3 : i32
    %1614 = arith.addi %0, %c3_i32_1005 : i32
    %1615 = arith.index_cast %1614 : i32 to index
    %c0_1006 = arith.constant 0 : index
    %1616 = memref.load %arg1[%1615, %c0_1006] : memref<16x8xi32, #tpu.memory_space<smem>>
    %1617 = arith.index_cast %1613 : i32 to index
    %c0_1007 = arith.constant 0 : index
    %1618 = vector.load %arg2[%1617, %c0_1007] : memref<64x256xf32, #tpu.memory_space<vmem>>, vector<1x256xf32>
    %1619 = arith.index_cast %1616 : i32 to index
    %c0_1008 = arith.constant 0 : index
    %1620 = vector.load %arg3[%1619, %c0_1008] : memref<64x256xf32, #tpu.memory_space<vmem>>, vector<1x256xf32>
    %1621 = arith.addf %1618, %1620 : vector<1x256xf32>
    %c7_1009 = arith.constant 7 : index
    %c3_1010 = arith.constant 3 : index
    %c0_1011 = arith.constant 0 : index
    %1622 = vector.load %arg13[%c7_1009, %c3_1010, %c0_1011] : memref<8x16x256xf32, #tpu.memory_space<vmem>>, vector<1x1x256xf32>
    %1623 = vector.shape_cast %1622 : vector<1x1x256xf32> to vector<1x256xf32>
    %1624 = vector.shape_cast %1621 : vector<1x256xf32> to vector<1x1x256xf32>
    tpu.vector_store %arg13[%c7_1009, %c3_1010, %c0_1011], %1624 {strides = array<i32>} : memref<8x16x256xf32, #tpu.memory_space<vmem>>, vector<1x1x256xf32>,
    %c4_i32_1012 = arith.constant 4 : i32
    %1625 = arith.addi %0, %c4_i32_1012 : i32
    %1626 = arith.index_cast %1625 : i32 to index
    %c7_1013 = arith.constant 7 : index
    %1627 = memref.load %arg1[%1626, %c7_1013] : memref<16x8xi32, #tpu.memory_space<smem>>
    %c4_i32_1014 = arith.constant 4 : i32
    %1628 = arith.addi %0, %c4_i32_1014 : i32
    %1629 = arith.index_cast %1628 : i32 to index
    %c0_1015 = arith.constant 0 : index
    %1630 = memref.load %arg1[%1629, %c0_1015] : memref<16x8xi32, #tpu.memory_space<smem>>
    %1631 = arith.index_cast %1627 : i32 to index
    %c0_1016 = arith.constant 0 : index
    %1632 = vector.load %arg2[%1631, %c0_1016] : memref<64x256xf32, #tpu.memory_space<vmem>>, vector<1x256xf32>
    %1633 = arith.index_cast %1630 : i32 to index
    %c0_1017 = arith.constant 0 : index
    %1634 = vector.load %arg3[%1633, %c0_1017] : memref<64x256xf32, #tpu.memory_space<vmem>>, vector<1x256xf32>
    %1635 = arith.addf %1632, %1634 : vector<1x256xf32>
    %c7_1018 = arith.constant 7 : index
    %c4_1019 = arith.constant 4 : index
    %c0_1020 = arith.constant 0 : index
    %1636 = vector.load %arg13[%c7_1018, %c4_1019, %c0_1020] : memref<8x16x256xf32, #tpu.memory_space<vmem>>, vector<1x1x256xf32>
    %1637 = vector.shape_cast %1636 : vector<1x1x256xf32> to vector<1x256xf32>
    %1638 = vector.shape_cast %1635 : vector<1x256xf32> to vector<1x1x256xf32>
    tpu.vector_store %arg13[%c7_1018, %c4_1019, %c0_1020], %1638 {strides = array<i32>} : memref<8x16x256xf32, #tpu.memory_space<vmem>>, vector<1x1x256xf32>,
    %c5_i32_1021 = arith.constant 5 : i32
    %1639 = arith.addi %0, %c5_i32_1021 : i32
    %1640 = arith.index_cast %1639 : i32 to index
    %c7_1022 = arith.constant 7 : index
    %1641 = memref.load %arg1[%1640, %c7_1022] : memref<16x8xi32, #tpu.memory_space<smem>>
    %c5_i32_1023 = arith.constant 5 : i32
    %1642 = arith.addi %0, %c5_i32_1023 : i32
    %1643 = arith.index_cast %1642 : i32 to index
    %c0_1024 = arith.constant 0 : index
    %1644 = memref.load %arg1[%1643, %c0_1024] : memref<16x8xi32, #tpu.memory_space<smem>>
    %1645 = arith.index_cast %1641 : i32 to index
    %c0_1025 = arith.constant 0 : index
    %1646 = vector.load %arg2[%1645, %c0_1025] : memref<64x256xf32, #tpu.memory_space<vmem>>, vector<1x256xf32>
    %1647 = arith.index_cast %1644 : i32 to index
    %c0_1026 = arith.constant 0 : index
    %1648 = vector.load %arg3[%1647, %c0_1026] : memref<64x256xf32, #tpu.memory_space<vmem>>, vector<1x256xf32>
    %1649 = arith.addf %1646, %1648 : vector<1x256xf32>
    %c7_1027 = arith.constant 7 : index
    %c5_1028 = arith.constant 5 : index
    %c0_1029 = arith.constant 0 : index
    %1650 = vector.load %arg13[%c7_1027, %c5_1028, %c0_1029] : memref<8x16x256xf32, #tpu.memory_space<vmem>>, vector<1x1x256xf32>
    %1651 = vector.shape_cast %1650 : vector<1x1x256xf32> to vector<1x256xf32>
    %1652 = vector.shape_cast %1649 : vector<1x256xf32> to vector<1x1x256xf32>
    tpu.vector_store %arg13[%c7_1027, %c5_1028, %c0_1029], %1652 {strides = array<i32>} : memref<8x16x256xf32, #tpu.memory_space<vmem>>, vector<1x1x256xf32>,
    %c6_i32_1030 = arith.constant 6 : i32
    %1653 = arith.addi %0, %c6_i32_1030 : i32
    %1654 = arith.index_cast %1653 : i32 to index
    %c7_1031 = arith.constant 7 : index
    %1655 = memref.load %arg1[%1654, %c7_1031] : memref<16x8xi32, #tpu.memory_space<smem>>
    %c6_i32_1032 = arith.constant 6 : i32
    %1656 = arith.addi %0, %c6_i32_1032 : i32
    %1657 = arith.index_cast %1656 : i32 to index
    %c0_1033 = arith.constant 0 : index
    %1658 = memref.load %arg1[%1657, %c0_1033] : memref<16x8xi32, #tpu.memory_space<smem>>
    %1659 = arith.index_cast %1655 : i32 to index
    %c0_1034 = arith.constant 0 : index
    %1660 = vector.load %arg2[%1659, %c0_1034] : memref<64x256xf32, #tpu.memory_space<vmem>>, vector<1x256xf32>
    %1661 = arith.index_cast %1658 : i32 to index
    %c0_1035 = arith.constant 0 : index
    %1662 = vector.load %arg3[%1661, %c0_1035] : memref<64x256xf32, #tpu.memory_space<vmem>>, vector<1x256xf32>
    %1663 = arith.addf %1660, %1662 : vector<1x256xf32>
    %c7_1036 = arith.constant 7 : index
    %c6_1037 = arith.constant 6 : index
    %c0_1038 = arith.constant 0 : index
    %1664 = vector.load %arg13[%c7_1036, %c6_1037, %c0_1038] : memref<8x16x256xf32, #tpu.memory_space<vmem>>, vector<1x1x256xf32>
    %1665 = vector.shape_cast %1664 : vector<1x1x256xf32> to vector<1x256xf32>
    %1666 = vector.shape_cast %1663 : vector<1x256xf32> to vector<1x1x256xf32>
    tpu.vector_store %arg13[%c7_1036, %c6_1037, %c0_1038], %1666 {strides = array<i32>} : memref<8x16x256xf32, #tpu.memory_space<vmem>>, vector<1x1x256xf32>,
    %c7_i32_1039 = arith.constant 7 : i32
    %1667 = arith.addi %0, %c7_i32_1039 : i32
    %1668 = arith.index_cast %1667 : i32 to index
    %c7_1040 = arith.constant 7 : index
    %1669 = memref.load %arg1[%1668, %c7_1040] : memref<16x8xi32, #tpu.memory_space<smem>>
    %c7_i32_1041 = arith.constant 7 : i32
    %1670 = arith.addi %0, %c7_i32_1041 : i32
    %1671 = arith.index_cast %1670 : i32 to index
    %c0_1042 = arith.constant 0 : index
    %1672 = memref.load %arg1[%1671, %c0_1042] : memref<16x8xi32, #tpu.memory_space<smem>>
    %1673 = arith.index_cast %1669 : i32 to index
    %c0_1043 = arith.constant 0 : index
    %1674 = vector.load %arg2[%1673, %c0_1043] : memref<64x256xf32, #tpu.memory_space<vmem>>, vector<1x256xf32>
    %1675 = arith.index_cast %1672 : i32 to index
    %c0_1044 = arith.constant 0 : index
    %1676 = vector.load %arg3[%1675, %c0_1044] : memref<64x256xf32, #tpu.memory_space<vmem>>, vector<1x256xf32>
    %1677 = arith.addf %1674, %1676 : vector<1x256xf32>
    %c7_1045 = arith.constant 7 : index
    %c7_1046 = arith.constant 7 : index
    %c0_1047 = arith.constant 0 : index
    %1678 = vector.load %arg13[%c7_1045, %c7_1046, %c0_1047] : memref<8x16x256xf32, #tpu.memory_space<vmem>>, vector<1x1x256xf32>
    %1679 = vector.shape_cast %1678 : vector<1x1x256xf32> to vector<1x256xf32>
    %1680 = vector.shape_cast %1677 : vector<1x256xf32> to vector<1x1x256xf32>
    tpu.vector_store %arg13[%c7_1045, %c7_1046, %c0_1047], %1680 {strides = array<i32>} : memref<8x16x256xf32, #tpu.memory_space<vmem>>, vector<1x1x256xf32>,
    %c8_i32_1048 = arith.constant 8 : i32
    %1681 = arith.addi %0, %c8_i32_1048 : i32
    %1682 = arith.index_cast %1681 : i32 to index
    %c7_1049 = arith.constant 7 : index
    %1683 = memref.load %arg1[%1682, %c7_1049] : memref<16x8xi32, #tpu.memory_space<smem>>
    %c8_i32_1050 = arith.constant 8 : i32
    %1684 = arith.addi %0, %c8_i32_1050 : i32
    %1685 = arith.index_cast %1684 : i32 to index
    %c0_1051 = arith.constant 0 : index
    %1686 = memref.load %arg1[%1685, %c0_1051] : memref<16x8xi32, #tpu.memory_space<smem>>
    %1687 = arith.index_cast %1683 : i32 to index
    %c0_1052 = arith.constant 0 : index
    %1688 = vector.load %arg2[%1687, %c0_1052] : memref<64x256xf32, #tpu.memory_space<vmem>>, vector<1x256xf32>
    %1689 = arith.index_cast %1686 : i32 to index
    %c0_1053 = arith.constant 0 : index
    %1690 = vector.load %arg3[%1689, %c0_1053] : memref<64x256xf32, #tpu.memory_space<vmem>>, vector<1x256xf32>
    %1691 = arith.addf %1688, %1690 : vector<1x256xf32>
    %c7_1054 = arith.constant 7 : index
    %c8_1055 = arith.constant 8 : index
    %c0_1056 = arith.constant 0 : index
    %1692 = vector.load %arg13[%c7_1054, %c8_1055, %c0_1056] : memref<8x16x256xf32, #tpu.memory_space<vmem>>, vector<1x1x256xf32>
    %1693 = vector.shape_cast %1692 : vector<1x1x256xf32> to vector<1x256xf32>
    %1694 = vector.shape_cast %1691 : vector<1x256xf32> to vector<1x1x256xf32>
    tpu.vector_store %arg13[%c7_1054, %c8_1055, %c0_1056], %1694 {strides = array<i32>} : memref<8x16x256xf32, #tpu.memory_space<vmem>>, vector<1x1x256xf32>,
    %c9_i32_1057 = arith.constant 9 : i32
    %1695 = arith.addi %0, %c9_i32_1057 : i32
    %1696 = arith.index_cast %1695 : i32 to index
    %c7_1058 = arith.constant 7 : index
    %1697 = memref.load %arg1[%1696, %c7_1058] : memref<16x8xi32, #tpu.memory_space<smem>>
    %c9_i32_1059 = arith.constant 9 : i32
    %1698 = arith.addi %0, %c9_i32_1059 : i32
    %1699 = arith.index_cast %1698 : i32 to index
    %c0_1060 = arith.constant 0 : index
    %1700 = memref.load %arg1[%1699, %c0_1060] : memref<16x8xi32, #tpu.memory_space<smem>>
    %1701 = arith.index_cast %1697 : i32 to index
    %c0_1061 = arith.constant 0 : index
    %1702 = vector.load %arg2[%1701, %c0_1061] : memref<64x256xf32, #tpu.memory_space<vmem>>, vector<1x256xf32>
    %1703 = arith.index_cast %1700 : i32 to index
    %c0_1062 = arith.constant 0 : index
    %1704 = vector.load %arg3[%1703, %c0_1062] : memref<64x256xf32, #tpu.memory_space<vmem>>, vector<1x256xf32>
    %1705 = arith.addf %1702, %1704 : vector<1x256xf32>
    %c7_1063 = arith.constant 7 : index
    %c9_1064 = arith.constant 9 : index
    %c0_1065 = arith.constant 0 : index
    %1706 = vector.load %arg13[%c7_1063, %c9_1064, %c0_1065] : memref<8x16x256xf32, #tpu.memory_space<vmem>>, vector<1x1x256xf32>
    %1707 = vector.shape_cast %1706 : vector<1x1x256xf32> to vector<1x256xf32>
    %1708 = vector.shape_cast %1705 : vector<1x256xf32> to vector<1x1x256xf32>
    tpu.vector_store %arg13[%c7_1063, %c9_1064, %c0_1065], %1708 {strides = array<i32>} : memref<8x16x256xf32, #tpu.memory_space<vmem>>, vector<1x1x256xf32>,
    %c10_i32_1066 = arith.constant 10 : i32
    %1709 = arith.addi %0, %c10_i32_1066 : i32
    %1710 = arith.index_cast %1709 : i32 to index
    %c7_1067 = arith.constant 7 : index
    %1711 = memref.load %arg1[%1710, %c7_1067] : memref<16x8xi32, #tpu.memory_space<smem>>
    %c10_i32_1068 = arith.constant 10 : i32
    %1712 = arith.addi %0, %c10_i32_1068 : i32
    %1713 = arith.index_cast %1712 : i32 to index
    %c0_1069 = arith.constant 0 : index
    %1714 = memref.load %arg1[%1713, %c0_1069] : memref<16x8xi32, #tpu.memory_space<smem>>
    %1715 = arith.index_cast %1711 : i32 to index
    %c0_1070 = arith.constant 0 : index
    %1716 = vector.load %arg2[%1715, %c0_1070] : memref<64x256xf32, #tpu.memory_space<vmem>>, vector<1x256xf32>
    %1717 = arith.index_cast %1714 : i32 to index
    %c0_1071 = arith.constant 0 : index
    %1718 = vector.load %arg3[%1717, %c0_1071] : memref<64x256xf32, #tpu.memory_space<vmem>>, vector<1x256xf32>
    %1719 = arith.addf %1716, %1718 : vector<1x256xf32>
    %c7_1072 = arith.constant 7 : index
    %c10_1073 = arith.constant 10 : index
    %c0_1074 = arith.constant 0 : index
    %1720 = vector.load %arg13[%c7_1072, %c10_1073, %c0_1074] : memref<8x16x256xf32, #tpu.memory_space<vmem>>, vector<1x1x256xf32>
    %1721 = vector.shape_cast %1720 : vector<1x1x256xf32> to vector<1x256xf32>
    %1722 = vector.shape_cast %1719 : vector<1x256xf32> to vector<1x1x256xf32>
    tpu.vector_store %arg13[%c7_1072, %c10_1073, %c0_1074], %1722 {strides = array<i32>} : memref<8x16x256xf32, #tpu.memory_space<vmem>>, vector<1x1x256xf32>,
    %c11_i32_1075 = arith.constant 11 : i32
    %1723 = arith.addi %0, %c11_i32_1075 : i32
    %1724 = arith.index_cast %1723 : i32 to index
    %c7_1076 = arith.constant 7 : index
    %1725 = memref.load %arg1[%1724, %c7_1076] : memref<16x8xi32, #tpu.memory_space<smem>>
    %c11_i32_1077 = arith.constant 11 : i32
    %1726 = arith.addi %0, %c11_i32_1077 : i32
    %1727 = arith.index_cast %1726 : i32 to index
    %c0_1078 = arith.constant 0 : index
    %1728 = memref.load %arg1[%1727, %c0_1078] : memref<16x8xi32, #tpu.memory_space<smem>>
    %1729 = arith.index_cast %1725 : i32 to index
    %c0_1079 = arith.constant 0 : index
    %1730 = vector.load %arg2[%1729, %c0_1079] : memref<64x256xf32, #tpu.memory_space<vmem>>, vector<1x256xf32>
    %1731 = arith.index_cast %1728 : i32 to index
    %c0_1080 = arith.constant 0 : index
    %1732 = vector.load %arg3[%1731, %c0_1080] : memref<64x256xf32, #tpu.memory_space<vmem>>, vector<1x256xf32>
    %1733 = arith.addf %1730, %1732 : vector<1x256xf32>
    %c7_1081 = arith.constant 7 : index
    %c11_1082 = arith.constant 11 : index
    %c0_1083 = arith.constant 0 : index
    %1734 = vector.load %arg13[%c7_1081, %c11_1082, %c0_1083] : memref<8x16x256xf32, #tpu.memory_space<vmem>>, vector<1x1x256xf32>
    %1735 = vector.shape_cast %1734 : vector<1x1x256xf32> to vector<1x256xf32>
    %1736 = vector.shape_cast %1733 : vector<1x256xf32> to vector<1x1x256xf32>
    tpu.vector_store %arg13[%c7_1081, %c11_1082, %c0_1083], %1736 {strides = array<i32>} : memref<8x16x256xf32, #tpu.memory_space<vmem>>, vector<1x1x256xf32>,
    %c12_i32_1084 = arith.constant 12 : i32
    %1737 = arith.addi %0, %c12_i32_1084 : i32
    %1738 = arith.index_cast %1737 : i32 to index
    %c7_1085 = arith.constant 7 : index
    %1739 = memref.load %arg1[%1738, %c7_1085] : memref<16x8xi32, #tpu.memory_space<smem>>
    %c12_i32_1086 = arith.constant 12 : i32
    %1740 = arith.addi %0, %c12_i32_1086 : i32
    %1741 = arith.index_cast %1740 : i32 to index
    %c0_1087 = arith.constant 0 : index
    %1742 = memref.load %arg1[%1741, %c0_1087] : memref<16x8xi32, #tpu.memory_space<smem>>
    %1743 = arith.index_cast %1739 : i32 to index
    %c0_1088 = arith.constant 0 : index
    %1744 = vector.load %arg2[%1743, %c0_1088] : memref<64x256xf32, #tpu.memory_space<vmem>>, vector<1x256xf32>
    %1745 = arith.index_cast %1742 : i32 to index
    %c0_1089 = arith.constant 0 : index
    %1746 = vector.load %arg3[%1745, %c0_1089] : memref<64x256xf32, #tpu.memory_space<vmem>>, vector<1x256xf32>
    %1747 = arith.addf %1744, %1746 : vector<1x256xf32>
    %c7_1090 = arith.constant 7 : index
    %c12_1091 = arith.constant 12 : index
    %c0_1092 = arith.constant 0 : index
    %1748 = vector.load %arg13[%c7_1090, %c12_1091, %c0_1092] : memref<8x16x256xf32, #tpu.memory_space<vmem>>, vector<1x1x256xf32>
    %1749 = vector.shape_cast %1748 : vector<1x1x256xf32> to vector<1x256xf32>
    %1750 = vector.shape_cast %1747 : vector<1x256xf32> to vector<1x1x256xf32>
    tpu.vector_store %arg13[%c7_1090, %c12_1091, %c0_1092], %1750 {strides = array<i32>} : memref<8x16x256xf32, #tpu.memory_space<vmem>>, vector<1x1x256xf32>,
    %c13_i32_1093 = arith.constant 13 : i32
    %1751 = arith.addi %0, %c13_i32_1093 : i32
    %1752 = arith.index_cast %1751 : i32 to index
    %c7_1094 = arith.constant 7 : index
    %1753 = memref.load %arg1[%1752, %c7_1094] : memref<16x8xi32, #tpu.memory_space<smem>>
    %c13_i32_1095 = arith.constant 13 : i32
    %1754 = arith.addi %0, %c13_i32_1095 : i32
    %1755 = arith.index_cast %1754 : i32 to index
    %c0_1096 = arith.constant 0 : index
    %1756 = memref.load %arg1[%1755, %c0_1096] : memref<16x8xi32, #tpu.memory_space<smem>>
    %1757 = arith.index_cast %1753 : i32 to index
    %c0_1097 = arith.constant 0 : index
    %1758 = vector.load %arg2[%1757, %c0_1097] : memref<64x256xf32, #tpu.memory_space<vmem>>, vector<1x256xf32>
    %1759 = arith.index_cast %1756 : i32 to index
    %c0_1098 = arith.constant 0 : index
    %1760 = vector.load %arg3[%1759, %c0_1098] : memref<64x256xf32, #tpu.memory_space<vmem>>, vector<1x256xf32>
    %1761 = arith.addf %1758, %1760 : vector<1x256xf32>
    %c7_1099 = arith.constant 7 : index
    %c13_1100 = arith.constant 13 : index
    %c0_1101 = arith.constant 0 : index
    %1762 = vector.load %arg13[%c7_1099, %c13_1100, %c0_1101] : memref<8x16x256xf32, #tpu.memory_space<vmem>>, vector<1x1x256xf32>
    %1763 = vector.shape_cast %1762 : vector<1x1x256xf32> to vector<1x256xf32>
    %1764 = vector.shape_cast %1761 : vector<1x256xf32> to vector<1x1x256xf32>
    tpu.vector_store %arg13[%c7_1099, %c13_1100, %c0_1101], %1764 {strides = array<i32>} : memref<8x16x256xf32, #tpu.memory_space<vmem>>, vector<1x1x256xf32>,
    %c14_i32_1102 = arith.constant 14 : i32
    %1765 = arith.addi %0, %c14_i32_1102 : i32
    %1766 = arith.index_cast %1765 : i32 to index
    %c7_1103 = arith.constant 7 : index
    %1767 = memref.load %arg1[%1766, %c7_1103] : memref<16x8xi32, #tpu.memory_space<smem>>
    %c14_i32_1104 = arith.constant 14 : i32
    %1768 = arith.addi %0, %c14_i32_1104 : i32
    %1769 = arith.index_cast %1768 : i32 to index
    %c0_1105 = arith.constant 0 : index
    %1770 = memref.load %arg1[%1769, %c0_1105] : memref<16x8xi32, #tpu.memory_space<smem>>
    %1771 = arith.index_cast %1767 : i32 to index
    %c0_1106 = arith.constant 0 : index
    %1772 = vector.load %arg2[%1771, %c0_1106] : memref<64x256xf32, #tpu.memory_space<vmem>>, vector<1x256xf32>
    %1773 = arith.index_cast %1770 : i32 to index
    %c0_1107 = arith.constant 0 : index
    %1774 = vector.load %arg3[%1773, %c0_1107] : memref<64x256xf32, #tpu.memory_space<vmem>>, vector<1x256xf32>
    %1775 = arith.addf %1772, %1774 : vector<1x256xf32>
    %c7_1108 = arith.constant 7 : index
    %c14_1109 = arith.constant 14 : index
    %c0_1110 = arith.constant 0 : index
    %1776 = vector.load %arg13[%c7_1108, %c14_1109, %c0_1110] : memref<8x16x256xf32, #tpu.memory_space<vmem>>, vector<1x1x256xf32>
    %1777 = vector.shape_cast %1776 : vector<1x1x256xf32> to vector<1x256xf32>
    %1778 = vector.shape_cast %1775 : vector<1x256xf32> to vector<1x1x256xf32>
    tpu.vector_store %arg13[%c7_1108, %c14_1109, %c0_1110], %1778 {strides = array<i32>} : memref<8x16x256xf32, #tpu.memory_space<vmem>>, vector<1x1x256xf32>,
    %c15_i32_1111 = arith.constant 15 : i32
    %1779 = arith.addi %0, %c15_i32_1111 : i32
    %1780 = arith.index_cast %1779 : i32 to index
    %c7_1112 = arith.constant 7 : index
    %1781 = memref.load %arg1[%1780, %c7_1112] : memref<16x8xi32, #tpu.memory_space<smem>>
    %c15_i32_1113 = arith.constant 15 : i32
    %1782 = arith.addi %0, %c15_i32_1113 : i32
    %1783 = arith.index_cast %1782 : i32 to index
    %c0_1114 = arith.constant 0 : index
    %1784 = memref.load %arg1[%1783, %c0_1114] : memref<16x8xi32, #tpu.memory_space<smem>>
    %1785 = arith.index_cast %1781 : i32 to index
    %c0_1115 = arith.constant 0 : index
    %1786 = vector.load %arg2[%1785, %c0_1115] : memref<64x256xf32, #tpu.memory_space<vmem>>, vector<1x256xf32>
    %1787 = arith.index_cast %1784 : i32 to index
    %c0_1116 = arith.constant 0 : index
    %1788 = vector.load %arg3[%1787, %c0_1116] : memref<64x256xf32, #tpu.memory_space<vmem>>, vector<1x256xf32>
    %1789 = arith.addf %1786, %1788 : vector<1x256xf32>
    %c7_1117 = arith.constant 7 : index
    %c15_1118 = arith.constant 15 : index
    %c0_1119 = arith.constant 0 : index
    %1790 = vector.load %arg13[%c7_1117, %c15_1118, %c0_1119] : memref<8x16x256xf32, #tpu.memory_space<vmem>>, vector<1x1x256xf32>
    %1791 = vector.shape_cast %1790 : vector<1x1x256xf32> to vector<1x256xf32>
    %1792 = vector.shape_cast %1789 : vector<1x256xf32> to vector<1x1x256xf32>
    tpu.vector_store %arg13[%c7_1117, %c15_1118, %c0_1119], %1792 {strides = array<i32>} : memref<8x16x256xf32, #tpu.memory_space<vmem>>, vector<1x1x256xf32>,
    %c0_1120 = arith.constant 0 : index
    %c0_1121 = arith.constant 0 : index
    %1793 = vector.load %arg5[%c0_1120, %c0_1121] : memref<64x256xf32, #tpu.memory_space<vmem>>, vector<64x256xf32>
    %cst = arith.constant 0.000000e+00 : f32
    %1794 = vector.broadcast %cst : f32 to vector<16x64xf32>
    %cst_1122 = arith.constant 0.000000e+00 : f32
    %1795 = vector.broadcast %cst_1122 : f32 to vector<16x64xf32>
    %c0_i32_1123 = arith.constant 0 : i32
    %1796 = arith.index_cast %c0_i32_1123 : i32 to index
    %c0_1124 = arith.constant 0 : index
    %c0_1125 = arith.constant 0 : index
    %1797 = vector.load %arg13[%1796, %c0_1124, %c0_1125] : memref<8x16x256xf32, #tpu.memory_space<vmem>>, vector<1x16x256xf32>
    %1798 = vector.shape_cast %1797 : vector<1x16x256xf32> to vector<16x256xf32>
    %cst_1126 = arith.constant dense<0.000000e+00> : vector<16x256xf32>
    %1799 = tpu.matmul %1794, %1793, %cst_1126 {dimension_numbers = #tpu.dot_dimension_numbers<[1], [0], [0], [1], [0, 0, 1, 1], [], []>} : vector<16x64xf32>, vector<64x256xf32>, vector<16x256xf32> -> vector<16x256xf32>
    %1800 = arith.addf %1798, %1799 : vector<16x256xf32>
    %1801 = vector.extract_strided_slice %1800 {offsets = [0, 0], sizes = [16, 192], strides = [1, 1]} : vector<16x256xf32> to vector<16x192xf32>
    %1802 = arith.negf %1801 : vector<16x192xf32>
    %1803 = math.exp %1802 : vector<16x192xf32>
    %cst_1127 = arith.constant 1.000000e+00 : f32
    %1804 = vector.broadcast %cst_1127 : f32 to vector<16x192xf32>
    %1805 = arith.addf %1804, %1803 : vector<16x192xf32>
    %1806 = arith.divf %1804, %1805 : vector<16x192xf32>
    %1807 = vector.extract_strided_slice %1806 {offsets = [0, 0], sizes = [16, 64], strides = [1, 1]} : vector<16x192xf32> to vector<16x64xf32>
    %1808 = vector.extract_strided_slice %1806 {offsets = [0, 64], sizes = [16, 64], strides = [1, 1]} : vector<16x192xf32> to vector<16x64xf32>
    %1809 = vector.extract_strided_slice %1806 {offsets = [0, 128], sizes = [16, 64], strides = [1, 1]} : vector<16x192xf32> to vector<16x64xf32>
    %1810 = vector.extract_strided_slice %1800 {offsets = [0, 192], sizes = [16, 64], strides = [1, 1]} : vector<16x256xf32> to vector<16x64xf32>
    %1811 = math.tanh %1810 : vector<16x64xf32>
    %1812 = arith.mulf %1808, %1795 : vector<16x64xf32>
    %1813 = arith.mulf %1807, %1811 : vector<16x64xf32>
    %1814 = arith.addf %1812, %1813 : vector<16x64xf32>
    %1815 = math.tanh %1814 : vector<16x64xf32>
    %1816 = arith.mulf %1809, %1815 : vector<16x64xf32>
    %c1_i32_1128 = arith.constant 1 : i32
    %1817 = arith.index_cast %c1_i32_1128 : i32 to index
    %c0_1129 = arith.constant 0 : index
    %c0_1130 = arith.constant 0 : index
    %1818 = vector.load %arg13[%1817, %c0_1129, %c0_1130] : memref<8x16x256xf32, #tpu.memory_space<vmem>>, vector<1x16x256xf32>
    %1819 = vector.shape_cast %1818 : vector<1x16x256xf32> to vector<16x256xf32>
    %cst_1131 = arith.constant dense<0.000000e+00> : vector<16x256xf32>
    %1820 = tpu.matmul %1816, %1793, %cst_1131 {dimension_numbers = #tpu.dot_dimension_numbers<[1], [0], [0], [1], [0, 0, 1, 1], [], []>} : vector<16x64xf32>, vector<64x256xf32>, vector<16x256xf32> -> vector<16x256xf32>
    %1821 = arith.addf %1819, %1820 : vector<16x256xf32>
    %1822 = vector.extract_strided_slice %1821 {offsets = [0, 0], sizes = [16, 192], strides = [1, 1]} : vector<16x256xf32> to vector<16x192xf32>
    %1823 = arith.negf %1822 : vector<16x192xf32>
    %1824 = math.exp %1823 : vector<16x192xf32>
    %cst_1132 = arith.constant 1.000000e+00 : f32
    %1825 = vector.broadcast %cst_1132 : f32 to vector<16x192xf32>
    %1826 = arith.addf %1825, %1824 : vector<16x192xf32>
    %1827 = arith.divf %1825, %1826 : vector<16x192xf32>
    %1828 = vector.extract_strided_slice %1827 {offsets = [0, 0], sizes = [16, 64], strides = [1, 1]} : vector<16x192xf32> to vector<16x64xf32>
    %1829 = vector.extract_strided_slice %1827 {offsets = [0, 64], sizes = [16, 64], strides = [1, 1]} : vector<16x192xf32> to vector<16x64xf32>
    %1830 = vector.extract_strided_slice %1827 {offsets = [0, 128], sizes = [16, 64], strides = [1, 1]} : vector<16x192xf32> to vector<16x64xf32>
    %1831 = vector.extract_strided_slice %1821 {offsets = [0, 192], sizes = [16, 64], strides = [1, 1]} : vector<16x256xf32> to vector<16x64xf32>
    %1832 = math.tanh %1831 : vector<16x64xf32>
    %1833 = arith.mulf %1829, %1814 : vector<16x64xf32>
    %1834 = arith.mulf %1828, %1832 : vector<16x64xf32>
    %1835 = arith.addf %1833, %1834 : vector<16x64xf32>
    %1836 = math.tanh %1835 : vector<16x64xf32>
    %1837 = arith.mulf %1830, %1836 : vector<16x64xf32>
    %c2_i32_1133 = arith.constant 2 : i32
    %1838 = arith.index_cast %c2_i32_1133 : i32 to index
    %c0_1134 = arith.constant 0 : index
    %c0_1135 = arith.constant 0 : index
    %1839 = vector.load %arg13[%1838, %c0_1134, %c0_1135] : memref<8x16x256xf32, #tpu.memory_space<vmem>>, vector<1x16x256xf32>
    %1840 = vector.shape_cast %1839 : vector<1x16x256xf32> to vector<16x256xf32>
    %cst_1136 = arith.constant dense<0.000000e+00> : vector<16x256xf32>
    %1841 = tpu.matmul %1837, %1793, %cst_1136 {dimension_numbers = #tpu.dot_dimension_numbers<[1], [0], [0], [1], [0, 0, 1, 1], [], []>} : vector<16x64xf32>, vector<64x256xf32>, vector<16x256xf32> -> vector<16x256xf32>
    %1842 = arith.addf %1840, %1841 : vector<16x256xf32>
    %1843 = vector.extract_strided_slice %1842 {offsets = [0, 0], sizes = [16, 192], strides = [1, 1]} : vector<16x256xf32> to vector<16x192xf32>
    %1844 = arith.negf %1843 : vector<16x192xf32>
    %1845 = math.exp %1844 : vector<16x192xf32>
    %cst_1137 = arith.constant 1.000000e+00 : f32
    %1846 = vector.broadcast %cst_1137 : f32 to vector<16x192xf32>
    %1847 = arith.addf %1846, %1845 : vector<16x192xf32>
    %1848 = arith.divf %1846, %1847 : vector<16x192xf32>
    %1849 = vector.extract_strided_slice %1848 {offsets = [0, 0], sizes = [16, 64], strides = [1, 1]} : vector<16x192xf32> to vector<16x64xf32>
    %1850 = vector.extract_strided_slice %1848 {offsets = [0, 64], sizes = [16, 64], strides = [1, 1]} : vector<16x192xf32> to vector<16x64xf32>
    %1851 = vector.extract_strided_slice %1848 {offsets = [0, 128], sizes = [16, 64], strides = [1, 1]} : vector<16x192xf32> to vector<16x64xf32>
    %1852 = vector.extract_strided_slice %1842 {offsets = [0, 192], sizes = [16, 64], strides = [1, 1]} : vector<16x256xf32> to vector<16x64xf32>
    %1853 = math.tanh %1852 : vector<16x64xf32>
    %1854 = arith.mulf %1850, %1835 : vector<16x64xf32>
    %1855 = arith.mulf %1849, %1853 : vector<16x64xf32>
    %1856 = arith.addf %1854, %1855 : vector<16x64xf32>
    %1857 = math.tanh %1856 : vector<16x64xf32>
    %1858 = arith.mulf %1851, %1857 : vector<16x64xf32>
    %c3_i32_1138 = arith.constant 3 : i32
    %1859 = arith.index_cast %c3_i32_1138 : i32 to index
    %c0_1139 = arith.constant 0 : index
    %c0_1140 = arith.constant 0 : index
    %1860 = vector.load %arg13[%1859, %c0_1139, %c0_1140] : memref<8x16x256xf32, #tpu.memory_space<vmem>>, vector<1x16x256xf32>
    %1861 = vector.shape_cast %1860 : vector<1x16x256xf32> to vector<16x256xf32>
    %cst_1141 = arith.constant dense<0.000000e+00> : vector<16x256xf32>
    %1862 = tpu.matmul %1858, %1793, %cst_1141 {dimension_numbers = #tpu.dot_dimension_numbers<[1], [0], [0], [1], [0, 0, 1, 1], [], []>} : vector<16x64xf32>, vector<64x256xf32>, vector<16x256xf32> -> vector<16x256xf32>
    %1863 = arith.addf %1861, %1862 : vector<16x256xf32>
    %1864 = vector.extract_strided_slice %1863 {offsets = [0, 0], sizes = [16, 192], strides = [1, 1]} : vector<16x256xf32> to vector<16x192xf32>
    %1865 = arith.negf %1864 : vector<16x192xf32>
    %1866 = math.exp %1865 : vector<16x192xf32>
    %cst_1142 = arith.constant 1.000000e+00 : f32
    %1867 = vector.broadcast %cst_1142 : f32 to vector<16x192xf32>
    %1868 = arith.addf %1867, %1866 : vector<16x192xf32>
    %1869 = arith.divf %1867, %1868 : vector<16x192xf32>
    %1870 = vector.extract_strided_slice %1869 {offsets = [0, 0], sizes = [16, 64], strides = [1, 1]} : vector<16x192xf32> to vector<16x64xf32>
    %1871 = vector.extract_strided_slice %1869 {offsets = [0, 64], sizes = [16, 64], strides = [1, 1]} : vector<16x192xf32> to vector<16x64xf32>
    %1872 = vector.extract_strided_slice %1869 {offsets = [0, 128], sizes = [16, 64], strides = [1, 1]} : vector<16x192xf32> to vector<16x64xf32>
    %1873 = vector.extract_strided_slice %1863 {offsets = [0, 192], sizes = [16, 64], strides = [1, 1]} : vector<16x256xf32> to vector<16x64xf32>
    %1874 = math.tanh %1873 : vector<16x64xf32>
    %1875 = arith.mulf %1871, %1856 : vector<16x64xf32>
    %1876 = arith.mulf %1870, %1874 : vector<16x64xf32>
    %1877 = arith.addf %1875, %1876 : vector<16x64xf32>
    %1878 = math.tanh %1877 : vector<16x64xf32>
    %1879 = arith.mulf %1872, %1878 : vector<16x64xf32>
    %c4_i32_1143 = arith.constant 4 : i32
    %1880 = arith.index_cast %c4_i32_1143 : i32 to index
    %c0_1144 = arith.constant 0 : index
    %c0_1145 = arith.constant 0 : index
    %1881 = vector.load %arg13[%1880, %c0_1144, %c0_1145] : memref<8x16x256xf32, #tpu.memory_space<vmem>>, vector<1x16x256xf32>
    %1882 = vector.shape_cast %1881 : vector<1x16x256xf32> to vector<16x256xf32>
    %cst_1146 = arith.constant dense<0.000000e+00> : vector<16x256xf32>
    %1883 = tpu.matmul %1879, %1793, %cst_1146 {dimension_numbers = #tpu.dot_dimension_numbers<[1], [0], [0], [1], [0, 0, 1, 1], [], []>} : vector<16x64xf32>, vector<64x256xf32>, vector<16x256xf32> -> vector<16x256xf32>
    %1884 = arith.addf %1882, %1883 : vector<16x256xf32>
    %1885 = vector.extract_strided_slice %1884 {offsets = [0, 0], sizes = [16, 192], strides = [1, 1]} : vector<16x256xf32> to vector<16x192xf32>
    %1886 = arith.negf %1885 : vector<16x192xf32>
    %1887 = math.exp %1886 : vector<16x192xf32>
    %cst_1147 = arith.constant 1.000000e+00 : f32
    %1888 = vector.broadcast %cst_1147 : f32 to vector<16x192xf32>
    %1889 = arith.addf %1888, %1887 : vector<16x192xf32>
    %1890 = arith.divf %1888, %1889 : vector<16x192xf32>
    %1891 = vector.extract_strided_slice %1890 {offsets = [0, 0], sizes = [16, 64], strides = [1, 1]} : vector<16x192xf32> to vector<16x64xf32>
    %1892 = vector.extract_strided_slice %1890 {offsets = [0, 64], sizes = [16, 64], strides = [1, 1]} : vector<16x192xf32> to vector<16x64xf32>
    %1893 = vector.extract_strided_slice %1890 {offsets = [0, 128], sizes = [16, 64], strides = [1, 1]} : vector<16x192xf32> to vector<16x64xf32>
    %1894 = vector.extract_strided_slice %1884 {offsets = [0, 192], sizes = [16, 64], strides = [1, 1]} : vector<16x256xf32> to vector<16x64xf32>
    %1895 = math.tanh %1894 : vector<16x64xf32>
    %1896 = arith.mulf %1892, %1877 : vector<16x64xf32>
    %1897 = arith.mulf %1891, %1895 : vector<16x64xf32>
    %1898 = arith.addf %1896, %1897 : vector<16x64xf32>
    %1899 = math.tanh %1898 : vector<16x64xf32>
    %1900 = arith.mulf %1893, %1899 : vector<16x64xf32>
    %c5_i32_1148 = arith.constant 5 : i32
    %1901 = arith.index_cast %c5_i32_1148 : i32 to index
    %c0_1149 = arith.constant 0 : index
    %c0_1150 = arith.constant 0 : index
    %1902 = vector.load %arg13[%1901, %c0_1149, %c0_1150] : memref<8x16x256xf32, #tpu.memory_space<vmem>>, vector<1x16x256xf32>
    %1903 = vector.shape_cast %1902 : vector<1x16x256xf32> to vector<16x256xf32>
    %cst_1151 = arith.constant dense<0.000000e+00> : vector<16x256xf32>
    %1904 = tpu.matmul %1900, %1793, %cst_1151 {dimension_numbers = #tpu.dot_dimension_numbers<[1], [0], [0], [1], [0, 0, 1, 1], [], []>} : vector<16x64xf32>, vector<64x256xf32>, vector<16x256xf32> -> vector<16x256xf32>
    %1905 = arith.addf %1903, %1904 : vector<16x256xf32>
    %1906 = vector.extract_strided_slice %1905 {offsets = [0, 0], sizes = [16, 192], strides = [1, 1]} : vector<16x256xf32> to vector<16x192xf32>
    %1907 = arith.negf %1906 : vector<16x192xf32>
    %1908 = math.exp %1907 : vector<16x192xf32>
    %cst_1152 = arith.constant 1.000000e+00 : f32
    %1909 = vector.broadcast %cst_1152 : f32 to vector<16x192xf32>
    %1910 = arith.addf %1909, %1908 : vector<16x192xf32>
    %1911 = arith.divf %1909, %1910 : vector<16x192xf32>
    %1912 = vector.extract_strided_slice %1911 {offsets = [0, 0], sizes = [16, 64], strides = [1, 1]} : vector<16x192xf32> to vector<16x64xf32>
    %1913 = vector.extract_strided_slice %1911 {offsets = [0, 64], sizes = [16, 64], strides = [1, 1]} : vector<16x192xf32> to vector<16x64xf32>
    %1914 = vector.extract_strided_slice %1911 {offsets = [0, 128], sizes = [16, 64], strides = [1, 1]} : vector<16x192xf32> to vector<16x64xf32>
    %1915 = vector.extract_strided_slice %1905 {offsets = [0, 192], sizes = [16, 64], strides = [1, 1]} : vector<16x256xf32> to vector<16x64xf32>
    %1916 = math.tanh %1915 : vector<16x64xf32>
    %1917 = arith.mulf %1913, %1898 : vector<16x64xf32>
    %1918 = arith.mulf %1912, %1916 : vector<16x64xf32>
    %1919 = arith.addf %1917, %1918 : vector<16x64xf32>
    %1920 = math.tanh %1919 : vector<16x64xf32>
    %1921 = arith.mulf %1914, %1920 : vector<16x64xf32>
    %c6_i32_1153 = arith.constant 6 : i32
    %1922 = arith.index_cast %c6_i32_1153 : i32 to index
    %c0_1154 = arith.constant 0 : index
    %c0_1155 = arith.constant 0 : index
    %1923 = vector.load %arg13[%1922, %c0_1154, %c0_1155] : memref<8x16x256xf32, #tpu.memory_space<vmem>>, vector<1x16x256xf32>
    %1924 = vector.shape_cast %1923 : vector<1x16x256xf32> to vector<16x256xf32>
    %cst_1156 = arith.constant dense<0.000000e+00> : vector<16x256xf32>
    %1925 = tpu.matmul %1921, %1793, %cst_1156 {dimension_numbers = #tpu.dot_dimension_numbers<[1], [0], [0], [1], [0, 0, 1, 1], [], []>} : vector<16x64xf32>, vector<64x256xf32>, vector<16x256xf32> -> vector<16x256xf32>
    %1926 = arith.addf %1924, %1925 : vector<16x256xf32>
    %1927 = vector.extract_strided_slice %1926 {offsets = [0, 0], sizes = [16, 192], strides = [1, 1]} : vector<16x256xf32> to vector<16x192xf32>
    %1928 = arith.negf %1927 : vector<16x192xf32>
    %1929 = math.exp %1928 : vector<16x192xf32>
    %cst_1157 = arith.constant 1.000000e+00 : f32
    %1930 = vector.broadcast %cst_1157 : f32 to vector<16x192xf32>
    %1931 = arith.addf %1930, %1929 : vector<16x192xf32>
    %1932 = arith.divf %1930, %1931 : vector<16x192xf32>
    %1933 = vector.extract_strided_slice %1932 {offsets = [0, 0], sizes = [16, 64], strides = [1, 1]} : vector<16x192xf32> to vector<16x64xf32>
    %1934 = vector.extract_strided_slice %1932 {offsets = [0, 64], sizes = [16, 64], strides = [1, 1]} : vector<16x192xf32> to vector<16x64xf32>
    %1935 = vector.extract_strided_slice %1932 {offsets = [0, 128], sizes = [16, 64], strides = [1, 1]} : vector<16x192xf32> to vector<16x64xf32>
    %1936 = vector.extract_strided_slice %1926 {offsets = [0, 192], sizes = [16, 64], strides = [1, 1]} : vector<16x256xf32> to vector<16x64xf32>
    %1937 = math.tanh %1936 : vector<16x64xf32>
    %1938 = arith.mulf %1934, %1919 : vector<16x64xf32>
    %1939 = arith.mulf %1933, %1937 : vector<16x64xf32>
    %1940 = arith.addf %1938, %1939 : vector<16x64xf32>
    %1941 = math.tanh %1940 : vector<16x64xf32>
    %1942 = arith.mulf %1935, %1941 : vector<16x64xf32>
    %c7_i32_1158 = arith.constant 7 : i32
    %1943 = arith.index_cast %c7_i32_1158 : i32 to index
    %c0_1159 = arith.constant 0 : index
    %c0_1160 = arith.constant 0 : index
    %1944 = vector.load %arg13[%1943, %c0_1159, %c0_1160] : memref<8x16x256xf32, #tpu.memory_space<vmem>>, vector<1x16x256xf32>
    %1945 = vector.shape_cast %1944 : vector<1x16x256xf32> to vector<16x256xf32>
    %cst_1161 = arith.constant dense<0.000000e+00> : vector<16x256xf32>
    %1946 = tpu.matmul %1942, %1793, %cst_1161 {dimension_numbers = #tpu.dot_dimension_numbers<[1], [0], [0], [1], [0, 0, 1, 1], [], []>} : vector<16x64xf32>, vector<64x256xf32>, vector<16x256xf32> -> vector<16x256xf32>
    %1947 = arith.addf %1945, %1946 : vector<16x256xf32>
    %1948 = vector.extract_strided_slice %1947 {offsets = [0, 0], sizes = [16, 192], strides = [1, 1]} : vector<16x256xf32> to vector<16x192xf32>
    %1949 = arith.negf %1948 : vector<16x192xf32>
    %1950 = math.exp %1949 : vector<16x192xf32>
    %cst_1162 = arith.constant 1.000000e+00 : f32
    %1951 = vector.broadcast %cst_1162 : f32 to vector<16x192xf32>
    %1952 = arith.addf %1951, %1950 : vector<16x192xf32>
    %1953 = arith.divf %1951, %1952 : vector<16x192xf32>
    %1954 = vector.extract_strided_slice %1953 {offsets = [0, 0], sizes = [16, 64], strides = [1, 1]} : vector<16x192xf32> to vector<16x64xf32>
    %1955 = vector.extract_strided_slice %1953 {offsets = [0, 64], sizes = [16, 64], strides = [1, 1]} : vector<16x192xf32> to vector<16x64xf32>
    %1956 = vector.extract_strided_slice %1953 {offsets = [0, 128], sizes = [16, 64], strides = [1, 1]} : vector<16x192xf32> to vector<16x64xf32>
    %1957 = vector.extract_strided_slice %1947 {offsets = [0, 192], sizes = [16, 64], strides = [1, 1]} : vector<16x256xf32> to vector<16x64xf32>
    %1958 = math.tanh %1957 : vector<16x64xf32>
    %1959 = arith.mulf %1955, %1940 : vector<16x64xf32>
    %1960 = arith.mulf %1954, %1958 : vector<16x64xf32>
    %1961 = arith.addf %1959, %1960 : vector<16x64xf32>
    %1962 = math.tanh %1961 : vector<16x64xf32>
    %1963 = arith.mulf %1956, %1962 : vector<16x64xf32>
    %c8_i32_1163 = arith.constant 8 : i32
    %c0_1164 = arith.constant 0 : index
    %c0_1165 = arith.constant 0 : index
    %c0_1166 = arith.constant 0 : index
    %1964 = vector.load %arg4[%c0_1164, %c0_1165, %c0_1166] : memref<16x8x64xf32, #tpu.memory_space<vmem>>, vector<16x8x64xf32>
    %c0_1167 = arith.constant 0 : index
    %c0_1168 = arith.constant 0 : index
    %1965 = vector.load %arg6[%c0_1167, %c0_1168] : memref<64x64xf32, #tpu.memory_space<vmem>>, vector<64x64xf32>
    %cst_1169 = arith.constant dense<0.000000e+00> : vector<16x64xf32>
    %1966 = tpu.matmul %1963, %1965, %cst_1169 {dimension_numbers = #tpu.dot_dimension_numbers<[1], [0], [0], [1], [0, 0, 1, 1], [], []>} : vector<16x64xf32>, vector<64x64xf32>, vector<16x64xf32> -> vector<16x64xf32>
    %c0_1170 = arith.constant 0 : index
    %c0_1171 = arith.constant 0 : index
    %1967 = vector.load %arg7[%c0_1170, %c0_1171] : memref<1x64xf32, #tpu.memory_space<vmem>>, vector<1x64xf32>
    %1968 = vector.broadcast %1967 : vector<1x64xf32> to vector<16x64xf32>
    %1969 = arith.addf %1966, %1968 : vector<16x64xf32>
    %cst_1172 = arith.constant 0.000000e+00 : f32
    %1970 = vector.broadcast %cst_1172 : f32 to vector<16x64xf32>
    %1971 = arith.maximumf %1969, %1970 : vector<16x64xf32>
    %1972 = vector.shape_cast %1971 : vector<16x64xf32> to vector<16x1x64xf32>
    %1973 = vector.broadcast %1972 : vector<16x1x64xf32> to vector<16x8x64xf32>
    %1974 = arith.mulf %1964, %1973 : vector<16x8x64xf32>
    %cst_1173 = arith.constant dense<0.000000e+00> : vector<16x8xf32>
    %1975 = vector.multi_reduction <add>, %1974, %cst_1173 [2] : vector<16x8x64xf32> to vector<16x8xf32>
    %cst_1174 = arith.constant dense<0xFF800000> : vector<16xf32>
    %1976 = vector.multi_reduction <maximumf>, %1975, %cst_1174 [1] : vector<16x8xf32> to vector<16xf32>
    %1977 = vector.shape_cast %1976 : vector<16xf32> to vector<16x1xf32>
    %1978 = vector.broadcast %1977 : vector<16x1xf32> to vector<16x8xf32>
    %1979 = arith.subf %1975, %1978 : vector<16x8xf32>
    %1980 = math.exp %1979 : vector<16x8xf32>
    %cst_1175 = arith.constant dense<0.000000e+00> : vector<16xf32>
    %1981 = vector.multi_reduction <add>, %1980, %cst_1175 [1] : vector<16x8xf32> to vector<16xf32>
    %1982 = vector.shape_cast %1981 : vector<16xf32> to vector<16x1xf32>
    %1983 = vector.broadcast %1982 : vector<16x1xf32> to vector<16x8xf32>
    %1984 = arith.divf %1980, %1983 : vector<16x8xf32>
    %1985 = vector.shape_cast %1984 : vector<16x8xf32> to vector<16x8x1xf32>
    %1986 = vector.broadcast %1985 : vector<16x8x1xf32> to vector<16x8x64xf32>
    %1987 = arith.mulf %1964, %1986 : vector<16x8x64xf32>
    %cst_1176 = arith.constant dense<0.000000e+00> : vector<16x64xf32>
    %1988 = vector.multi_reduction <add>, %1987, %cst_1176 [1] : vector<16x8x64xf32> to vector<16x64xf32>
    %c0_1177 = arith.constant 0 : index
    %c0_1178 = arith.constant 0 : index
    %1989 = vector.load %arg8[%c0_1177, %c0_1178] : memref<64x64xf32, #tpu.memory_space<vmem>>, vector<64x64xf32>
    %cst_1179 = arith.constant dense<0.000000e+00> : vector<16x64xf32>
    %1990 = tpu.matmul %1988, %1989, %cst_1179 {dimension_numbers = #tpu.dot_dimension_numbers<[1], [0], [0], [1], [0, 0, 1, 1], [], []>} : vector<16x64xf32>, vector<64x64xf32>, vector<16x64xf32> -> vector<16x64xf32>
    %c0_1180 = arith.constant 0 : index
    %c0_1181 = arith.constant 0 : index
    %1991 = vector.load %arg9[%c0_1180, %c0_1181] : memref<1x64xf32, #tpu.memory_space<vmem>>, vector<1x64xf32>
    %1992 = vector.broadcast %1991 : vector<1x64xf32> to vector<16x64xf32>
    %1993 = arith.addf %1990, %1992 : vector<16x64xf32>
    %cst_1182 = arith.constant 0.000000e+00 : f32
    %1994 = vector.broadcast %cst_1182 : f32 to vector<16x64xf32>
    %1995 = arith.maximumf %1993, %1994 : vector<16x64xf32>
    %1996 = arith.mulf %1995, %1963 : vector<16x64xf32>
    %c0_1183 = arith.constant 0 : index
    %c0_1184 = arith.constant 0 : index
    %1997 = vector.load %arg10[%c0_1183, %c0_1184] : memref<1x64xf32, #tpu.memory_space<vmem>>, vector<1x64xf32>
    %1998 = vector.broadcast %1997 : vector<1x64xf32> to vector<16x64xf32>
    %1999 = arith.mulf %1996, %1998 : vector<16x64xf32>
    %cst_1185 = arith.constant dense<0.000000e+00> : vector<16xf32>
    %2000 = vector.multi_reduction <add>, %1999, %cst_1185 [1] : vector<16x64xf32> to vector<16xf32>
    %2001 = vector.shape_cast %2000 : vector<16xf32> to vector<16x1xf32>
    %c0_1186 = arith.constant 0 : index
    %c0_1187 = arith.constant 0 : index
    %2002 = vector.load %arg11[%c0_1186, %c0_1187] : memref<1x1xf32, #tpu.memory_space<vmem>>, vector<1x1xf32>
    %2003 = vector.broadcast %2002 : vector<1x1xf32> to vector<16x1xf32>
    %2004 = arith.addf %2001, %2003 : vector<16x1xf32>
    %cst_1188 = arith.constant 0.000000e+00 : f32
    %2005 = vector.broadcast %cst_1188 : f32 to vector<16x1xf32>
    %2006 = arith.maximumf %2004, %2005 : vector<16x1xf32>
    %c0_1189 = arith.constant 0 : index
    %c0_1190 = arith.constant 0 : index
    %2007 = vector.load %arg12[%c0_1189, %c0_1190] : memref<16x1xf32, #tpu.memory_space<vmem>>, vector<16x1xf32>
    tpu.vector_store %arg12[%c0_1189, %c0_1190], %2006 {strides = array<i32>} : memref<16x1xf32, #tpu.memory_space<vmem>>, vector<16x1xf32>,
    return
  }
  func.func @transform_0(%arg0: i32, %arg1: memref<16x8xi32, #tpu.memory_space<smem>>) -> (i32, i32) {
    %c0_i32 = arith.constant 0 : i32
    %c0_i32_0 = arith.constant 0 : i32
    %c0_i32_1 = arith.constant 0 : i32
    return %c0_i32, %c0_i32_0 : i32, i32
  }
  func.func @transform_1(%arg0: i32, %arg1: memref<16x8xi32, #tpu.memory_space<smem>>) -> (i32, i32) {
    %c0_i32 = arith.constant 0 : i32
    %c0_i32_0 = arith.constant 0 : i32
    %c0_i32_1 = arith.constant 0 : i32
    return %c0_i32, %c0_i32_0 : i32, i32
  }
  func.func @transform_2(%arg0: i32, %arg1: memref<16x8xi32, #tpu.memory_space<smem>>) -> (i32, i32, i32) {
    %c0_i32 = arith.constant 0 : i32
    %c0_i32_0 = arith.constant 0 : i32
    %c0_i32_1 = arith.constant 0 : i32
    return %arg0, %c0_i32, %c0_i32_0 : i32, i32, i32
  }
  func.func @transform_3(%arg0: i32, %arg1: memref<16x8xi32, #tpu.memory_space<smem>>) -> (i32, i32) {
    %c0_i32 = arith.constant 0 : i32
    %c0_i32_0 = arith.constant 0 : i32
    %c0_i32_1 = arith.constant 0 : i32
    return %c0_i32, %c0_i32_0 : i32, i32
  }
  func.func @transform_4(%arg0: i32, %arg1: memref<16x8xi32, #tpu.memory_space<smem>>) -> (i32, i32) {
    %c0_i32 = arith.constant 0 : i32
    %c0_i32_0 = arith.constant 0 : i32
    %c0_i32_1 = arith.constant 0 : i32
    return %c0_i32, %c0_i32_0 : i32, i32
  }
  func.func @transform_5(%arg0: i32, %arg1: memref<16x8xi32, #tpu.memory_space<smem>>) -> (i32, i32) {
    %c0_i32 = arith.constant 0 : i32
    %c0_i32_0 = arith.constant 0 : i32
    %c0_i32_1 = arith.constant 0 : i32
    return %c0_i32, %c0_i32_0 : i32, i32
  }
  func.func @transform_6(%arg0: i32, %arg1: memref<16x8xi32, #tpu.memory_space<smem>>) -> (i32, i32) {
    %c0_i32 = arith.constant 0 : i32
    %c0_i32_0 = arith.constant 0 : i32
    %c0_i32_1 = arith.constant 0 : i32
    return %c0_i32, %c0_i32_0 : i32, i32
  }
  func.func @transform_7(%arg0: i32, %arg1: memref<16x8xi32, #tpu.memory_space<smem>>) -> (i32, i32) {
    %c0_i32 = arith.constant 0 : i32
    %c0_i32_0 = arith.constant 0 : i32
    %c0_i32_1 = arith.constant 0 : i32
    return %c0_i32, %c0_i32_0 : i32, i32
  }
  func.func @transform_8(%arg0: i32, %arg1: memref<16x8xi32, #tpu.memory_space<smem>>) -> (i32, i32) {
    %c0_i32 = arith.constant 0 : i32
    %c0_i32_0 = arith.constant 0 : i32
    %c0_i32_1 = arith.constant 0 : i32
    return %c0_i32, %c0_i32_0 : i32, i32
  }
  func.func @transform_9(%arg0: i32, %arg1: memref<16x8xi32, #tpu.memory_space<smem>>) -> (i32, i32) {
    %c0_i32 = arith.constant 0 : i32
    %c0_i32_0 = arith.constant 0 : i32
    %c0_i32_1 = arith.constant 0 : i32
    return %c0_i32, %c0_i32_0 : i32, i32
  }
  func.func @transform_10(%arg0: i32, %arg1: memref<16x8xi32, #tpu.memory_space<smem>>) -> (i32, i32) {
    %c0_i32 = arith.constant 0 : i32
    %c0_i32_0 = arith.constant 0 : i32
    return %arg0, %c0_i32 : i32, i32
  }
}

</mosaic_0001>

<bundles_post_ra>
// kernel: _lambda_.1
= control target key start
LH: loop header
LB: loop body
LE: loop exit
PB: predicated region body
PF: predicated region fallthrough
CT: control target
= control target key end

     0   :  { %s10800_s0 = inlined_call_operand.vmem [shape: s32[16,8], index: 0, kind: input, shape index: {}]   ;;  %s10801_s1 = inlined_call_operand.vmem [shape: f32[64,256], index: 1, kind: input, shape index: {}]   ;;  %s10802_s2 = inlined_call_operand.vmem [shape: f32[64,256], index: 2, kind: input, shape index: {}]   ;;  %s10803_s3 = inlined_call_operand.vmem [shape: f32[16,8,64], index: 3, kind: input, shape index: {}]   ;;  %s10804_s4 = inlined_call_operand.vmem [shape: f32[64,256], index: 4, kind: input, shape index: {}]   ;;  %s10805_s5 = inlined_call_operand.vmem [shape: f32[64,64], index: 5, kind: input, shape index: {}]   ;;  %s10806_s6 = inlined_call_operand.vmem [shape: f32[1,64], index: 6, kind: input, shape index: {}]   ;;  %s10807_s7 = inlined_call_operand.vmem [shape: f32[64,64], index: 7, kind: input, shape index: {}]   ;;  %s10808_s8 = inlined_call_operand.vmem [shape: f32[1,64], index: 8, kind: input, shape index: {}]   ;;  %s10809_s9 = inlined_call_operand.vmem [shape: f32[1,64], index: 9, kind: input, shape index: {}]   ;;  %s10810_s11 = inlined_call_operand.vmem [shape: f32[16,1], index: 11, kind: output, shape index: {}]   ;;  %s10811_s10 = inlined_call_operand.<no memory space> [shape: f32[1,1], index: 10, kind: input, shape index: {}]  }
   0x1   :  { %10843 = sst [smem:[#allocation32_spill]] %s10803_s3  ;;  %s16_s19 = sshll.u32 %s10800_s0, 4  ;;  %v20_v0 = vstv %s10811_s10  ;;  %s17_s19 = int_to_ptr.vmem [resolvable:$true] %s16_s19 }
   0x2   :  { %10844 = sst [smem:[#allocation33_spill]] %s10805_s5  ;;  %21 = vst [vmem:[#allocation5] sm:$0x1] %v20_v0  ;;  %s8148_s22 = scalar_lea.vmem %s17_s19, 256 }
   0x3   :  { %10845 = sst [smem:[#allocation34_spill]] %s10806_s6  ;;  %p8149_p0 = scmp.ne.s32.totalorder %s17_s19, %s8148_s22 }
   0x4   :  { %10846 = sst [smem:[#allocation35_spill]] %s10807_s7  ;;  %p8153_p1 = scmp.lt.s32.totalorder %s17_s19, %s17_s19 }
   0x5   :  { %10847 = sst [smem:[#allocation36_spill]] %s10808_s8  ;;  %p8154_p2 = scmp.lt.s32.totalorder %s8148_s22, %s8148_s22 }
   0x6   :  { %10848 = sst [smem:[#allocation37_spill]] %s10809_s9 }
   0x7   :  { %10849 = sst [smem:[#allocation38_spill]] %s10810_s11  ;;  %p8155_p3 = por %p8154_p2, %p8153_p1 }
   0x9   :  { %p8156_p4 = pnand %p8155_p3, %p8149_p0 }
   0xb   :  { %8159 = shalt.err (!%p8156_p4)  }
   0xc   :  { %s8162_s23 = smov [#allocation4]  }
   0xd   :  { %19 = dma.vmem_to_smem %s17_s19, 256, %s8162_s23, [#allocation3] }
   0xe   :  { %8160 = dma.done.wait [#allocation3], 256 }
   0xf   :  { %8161 = vsyncadd [#allocation3], 4294967040 }
  0x10   :  { %23 = sfence }
  0x11   :  { %v3264_v1 = vld [vmem:[%s10804_s4 + $0x8] sm:$0xff]  ;;  %v3266_v2 = vld [vmem:[%s10804_s4 + $0x18] sm:$0xff]  ;;  %v3263_v3 = vld [vmem:[%s10804_s4] sm:$0xff]  ;;  %s8242_s28 = sld [smem:[#allocation4]]  ;;  %v8163_v8 = vmov 0.0   ;;  %s8256_s16 = sld [smem:[#allocation4 + $0x7]]  ;;  %v68_v22 = vlaneseq }
  0x12   :  { %v8244_v4 = vpack.c.bf16 %v3266_v2, %v3264_v1  ;;  %v3265_v5 = vld [vmem:[%s10804_s4 + $0x10] sm:$0xff]  ;;  %v3268_v6 = vld [vmem:[%s10804_s4 + $0x28] sm:$0xff]  ;;  %v3270_v7 = vld [vmem:[%s10804_s4 + $0x38] sm:$0xff]  ;;  %3351 = vmatprep.mubr.f32.mxu0 %v8163_v8  ;;  %3502 = vmatprep.mubr.f32.mxu1 %v8163_v8  ;;  %s8272_s23 = sld [smem:[#allocation4 + $0x80]]  ;;  %s8282_s25 = sld [smem:[#allocation4 + $0x87]]  ;;  %vm3283_vm1 = vcmask 523264  }
  0x13   :  { %v8259_v9 = vpack.c.bf16 %v3265_v5, %v3263_v3  ;;  %v8261_v10 = vpack.c.bf16 %v3270_v7, %v3268_v6  ;;  %v3267_v11 = vld [vmem:[%s10804_s4 + $0x20] sm:$0xff]  ;;  %v3269_v12 = vld [vmem:[%s10804_s4 + $0x30] sm:$0xff]  ;;  %v3272_v13 = vld [vmem:[%s10804_s4 + $0x48] sm:$0xff]  ;;  %s8284_s10 = sld [smem:[#allocation4 + $0x100]]  ;;  %s8296_s12 = sld [smem:[#allocation4 + $0x107]]  ;;  %vm8337_vm0 = vcmp.lt.s32.totalorder %v68_v22, 256 }
  0x14   :  { %7726 = vmatprep.subr.bf16.mxu0 %v8244_v4  ;;  %v3274_v14 = vld [vmem:[%s10804_s4 + $0x58] sm:$0xff]  ;;  %7742 = vmatprep.subr.bf16.mxu1 %v8244_v4  ;;  %v8280_v15 = vpack.c.bf16 %v3269_v12, %v3267_v11  ;;  %v3271_v17 = vld [vmem:[%s10804_s4 + $0x40] sm:$0xff]  ;;  %v3273_v18 = vld [vmem:[%s10804_s4 + $0x50] sm:$0xff]  ;;  %s8298_s13 = sld [smem:[#allocation4 + $0x180]]  ;;  %vm4925_vm2 = vcmask 1041409   ;;  %vm4927_vm3 = vcmask 1042434  }
  0x15   :  { %7728 = vmatpush1.bf16.msra.mxu0 %v8259_v9  ;;  %7744 = vmatpush1.bf16.msra.mxu1 %v8259_v9  ;;  %v8288_v16 = vpack.c.bf16 %v3274_v14, %v3272_v13  ;;  %v3276_v19 = vld [vmem:[%s10804_s4 + $0x68] sm:$0xff]  ;;  %v3278_v20 = vld [vmem:[%s10804_s4 + $0x78] sm:$0xff]  ;;  %v8311_v21 = vpack.c.bf16 %v3273_v18, %v3271_v17  ;;  %v3275_v24 = vld [vmem:[%s10804_s4 + $0x60] sm:$0xff]  ;;  %vm4929_vm4 = vcmask 1043459   ;;  %vm4931_vm5 = vcmask 1044484  }
  0x16   :  { %7730 = vmatprep.subr.bf16.mxu0 %v8261_v10  ;;  %7746 = vmatprep.subr.bf16.mxu1 %v8261_v10  ;;  %v8316_v23 = vpack.c.bf16 %v3278_v20, %v3276_v19  ;;  %v3277_v25 = vld [vmem:[%s10804_s4 + $0x70] sm:$0xff]  ;;  %vm4933_vm6 = vcmask 1045509   ;;  %vm4935_vm7 = vcmask 1046534   ;;  %vm4937_vm8 = vcmask 1047559  }
  0x17   :  { %s49_s19 = sshra.s32 %s8242_s28, 3  ;;  %s52_s20 = sand.u32 7, %s8242_s28  ;;  %v8334_v27 = vpack.c.bf16 %v3277_v25, %v3275_v24  ;;  %vm4948_vm9 = vcmask 64512   ;;  %vm5711_vm10 = vcmask 7168  }
  0x18   :  { %s7411_s21 = sshll.u32 %s49_s19, 4  ;;  %s58_s22 = sshra.s32 %s8256_s16, 3 }
  0x19   :  { %7732 = vmatpush1.bf16.msra.mxu0 %v8280_v15  ;;  %s55_s24 = sadd.s32 %s7411_s21, %s52_s20  ;;  %s61_s0 = sand.u32 7, %s8256_s16  ;;  %7748 = vmatpush1.bf16.msra.mxu1 %v8280_v15 }
  0x1a   :  { %7734 = vmatprep.subr.bf16.mxu0 %v8288_v16  ;;  %s56_s16 = scalar_lea.vmem %s10801_s1, %s55_s24  ;;  %s7412_s15 = sshll.u32 %s58_s22, 4  ;;  %7750 = vmatprep.subr.bf16.mxu1 %v8288_v16 }
  0x1b   :  { %v57_v26 = vld [vmem:[%s56_s16] ss:$8 sm:$0x3]  ;;  %s64_s17 = sadd.s32 %s7412_s15, %s61_s0  ;;  %s79_s18 = sshra.s32 %s8272_s23, 3 }
  0x1c   :  { %s65_s21 = scalar_lea.vmem %s10802_s2, %s64_s17  ;;  %s82_s26 = sand.u32 7, %s8272_s23 }
  0x1d   :  { %7736 = vmatpush1.bf16.msra.mxu0 %v8311_v21  ;;  %v66_v28 = vld [vmem:[%s65_s21] ss:$8 sm:$0x3]  ;;  %s7413_s4 = sshll.u32 %s79_s18, 4  ;;  %s88_s22 = sshra.s32 %s8282_s25, 3  ;;  %7752 = vmatpush1.bf16.msra.mxu1 %v8311_v21 }
  0x1e   :  { %7738 = vmatprep.subr.bf16.mxu0 %v8316_v23  ;;  %v67_v30 = vadd.f32 %v66_v28, %v57_v26  ;;  %s85_s23 = sadd.s32 %s7413_s4, %s82_s26  ;;  %s91_s24 = sand.u32 7, %s8282_s25  ;;  %7754 = vmatprep.subr.bf16.mxu1 %v8316_v23 }
  0x1f   :  { %s86_s28 = scalar_lea.vmem %s10801_s1, %s85_s23  ;;  %s7414_s29 = sshll.u32 %s88_s22, 4 }
  0x20   :  { %72 = vst.msk [vmem:[#allocation2] ss:$8 sm:$0x3] %vm8337_vm0, %v67_v30  ;;  %v87_v31 = vld [vmem:[%s86_s28] ss:$8 sm:$0x3]  ;;  %s94_s30 = sadd.s32 %s7414_s29, %s91_s24 }
  0x21   :  { %s106_s14 = sshra.s32 %s8284_s10, 3  ;;  %7740 = vmatpush1.bf16.msra.mxu0 %v8334_v27  ;;  %s95_s25 = scalar_lea.vmem %s10802_s2, %s94_s30  ;;  %7756 = vmatpush1.bf16.msra.mxu1 %v8334_v27 }
  0x22   :  { %s109_s17 = sand.u32 7, %s8284_s10  ;;  %v96_v32 = vld [vmem:[%s95_s25] ss:$8 sm:$0x3]  ;;  %s7415_s18 = sshll.u32 %s106_s14, 4  ;;  %7758 = vmatprep.subr.bf16.mxu0 %v8244_v4  ;;  %7774 = vmatprep.subr.bf16.mxu1 %v8244_v4 }
  0x23   :  { %s115_s19 = sshra.s32 %s8296_s12, 3  ;;  %v97_v33 = vadd.f32 %v96_v32, %v87_v31  ;;  %s112_s20 = sadd.s32 %s7415_s18, %s109_s17 }
  0x24   :  { %s118_s21 = sand.u32 7, %s8296_s12  ;;  %3352 = vmatmul.mubr.f32.vlgmr.msra.gmra.mrb[0].mxu0 %v8163_v8  ;;  %s113_s10 = scalar_lea.vmem %s10801_s1, %s112_s20 }
  0x25   :  { %s7416_s22 = sshll.u32 %s115_s19, 4  ;;  %3357 = vmatprep.mubr.f32.mxu0 %v8163_v8  ;;  %99 = vst.msk [vmem:[#allocation2 + $0x1] ss:$8 sm:$0x3] %vm8337_vm0, %v97_v33  ;;  %s6609_s24 = sld [smem:[#allocation4 + $0x187]]  ;;  %7760 = vmatpush1.bf16.msra.mxu0 %v8259_v9 }
  0x26   :  { %v114_v34 = vld [vmem:[%s113_s10] ss:$8 sm:$0x3]  ;;  %s121_s23 = sadd.s32 %s7416_s22, %s118_s21  ;;  %s133_s28 = sshra.s32 %s8298_s13, 3  ;;  %7762 = vmatprep.subr.bf16.mxu0 %v8261_v10 }
  0x27   :  { %s122_s12 = scalar_lea.vmem %s10802_s2, %s121_s23  ;;  %s136_s29 = sand.u32 7, %s8298_s13 }
  0x28   :  { %v123_v35 = vld [vmem:[%s122_s12] ss:$8 sm:$0x3]  ;;  %s7417_s30 = sshll.u32 %s133_s28, 4  ;;  %3358 = vmatmul.mubr.f32.gmra.mrb[2].mxu0 %v8163_v8  ;;  %s6614_s16 = sld [smem:[#allocation4 + $0x200]] }
  0x29   :  { %v124_v36 = vadd.f32 %v123_v35, %v114_v34  ;;  %s139_s14 = sadd.s32 %s7417_s30, %s136_s29  ;;  %s8377_s15 = sld [smem:[#allocation4 + $0x207]]  ;;  %7764 = vmatpush1.bf16.msra.mxu0 %v8280_v15  ;;  %3653 = vmatprep.mubr.f32.mxu0 %v8163_v8 }
  0x2a   :  { %s140_s18 = scalar_lea.vmem %s10801_s1, %s139_s14  ;;  %s8386_s13 = sld [smem:[#allocation4 + $0x280]]  ;;  %7766 = vmatprep.subr.bf16.mxu0 %v8288_v16 }
  0x2b   :  { %126 = vst.msk [vmem:[#allocation2 + $0x2] ss:$8 sm:$0x3] %vm8337_vm0, %v124_v36  ;;  %s142_s19 = sshra.s32 %s6609_s24, 3  ;;  %s145_s20 = sand.u32 7, %s6609_s24 }
  0x2c   :  { %s7418_s21 = sshll.u32 %s142_s19, 4  ;;  %s8389_s26 = sld [smem:[#allocation4 + $0x287]]  ;;  %v141_v37 = vld [vmem:[%s140_s18] ss:$8 sm:$0x3] }
  0x2d   :  { %s148_s4 = sadd.s32 %s7418_s21, %s145_s20  ;;  %s8391_s10 = sld [smem:[#allocation4 + $0x300]]  ;;  %7768 = vmatpush1.bf16.msra.mxu0 %v8311_v21 }
  0x2e   :  { %s149_s0 = scalar_lea.vmem %s10802_s2, %s148_s4  ;;  %s160_s27 = sshra.s32 %s6614_s16, 3  ;;  %7770 = vmatprep.subr.bf16.mxu0 %v8316_v23 }
  0x2f   :  { %v150_v38 = vld [vmem:[%s149_s0] ss:$8 sm:$0x3]  ;;  %s163_s24 = sand.u32 7, %s6614_s16  ;;  %s7419_s12 = sshll.u32 %s160_s27, 4 }
  0x30   :  { %v151_v39 = vadd.f32 %v150_v38, %v141_v37  ;;  %s166_s28 = sadd.s32 %s7419_s12, %s163_s24  ;;  %s169_s29 = sshra.s32 %s8377_s15, 3 }
  0x31   :  { %s167_s25 = scalar_lea.vmem %s10801_s1, %s166_s28  ;;  %s172_s17 = sand.u32 7, %s8377_s15  ;;  %7772 = vmatpush1.bf16.msra.mxu0 %v8334_v27 }
  0x32   :  { %153 = vst.msk [vmem:[#allocation2 + $0x3] ss:$8 sm:$0x3] %vm8337_vm0, %v151_v39  ;;  %s7420_s18 = sshll.u32 %s169_s29, 4  ;;  %s187_s19 = sshra.s32 %s8386_s13, 3  ;;  %7790 = vmatprep.subr.bf16.mxu0 %v8244_v4 }
  0x33   :  { %v168_v40 = vld [vmem:[%s167_s25] ss:$8 sm:$0x3]  ;;  %s175_s16 = sadd.s32 %s7420_s18, %s172_s17  ;;  %s190_s20 = sand.u32 7, %s8386_s13 }
  0x34   :  { %s176_s22 = scalar_lea.vmem %s10802_s2, %s175_s16  ;;  %s7421_s15 = sshll.u32 %s187_s19, 4 }
  0x35   :  { %v177_v41 = vld [vmem:[%s176_s22] ss:$8 sm:$0x3]  ;;  %s193_s23 = sadd.s32 %s7421_s15, %s190_s20  ;;  %s196_s0 = sshra.s32 %s8389_s26, 3 }
  0x36   :  { %v178_v42 = vadd.f32 %v177_v41, %v168_v40  ;;  %s194_s12 = scalar_lea.vmem %s10801_s1, %s193_s23  ;;  %s199_s28 = sand.u32 7, %s8389_s26 }
  0x37   :  { %s7422_s29 = sshll.u32 %s196_s0, 4  ;;  %s6627_s30 = sld [smem:[#allocation4 + $0x307]]  ;;  %v195_v43 = vld [vmem:[%s194_s12] ss:$8 sm:$0x3] }
  0x38   :  { %180 = vst.msk [vmem:[#allocation2 + $0x4] ss:$8 sm:$0x3] %vm8337_vm0, %v178_v42  ;;  %s202_s13 = sadd.s32 %s7422_s29, %s199_s28  ;;  %s214_s14 = sshra.s32 %s8391_s10, 3 }
  0x39   :  { %s203_s18 = scalar_lea.vmem %s10802_s2, %s202_s13  ;;  %s217_s19 = sand.u32 7, %s8391_s10 }
  0x3a   :  { %v204_v44 = vld [vmem:[%s203_s18] ss:$8 sm:$0x3]  ;;  %s7423_s16 = sshll.u32 %s214_s14, 4  ;;  %s6632_s20 = sld [smem:[#allocation4 + $0x380]] }
  0x3b   :  { %v205_v45 = vadd.f32 %v204_v44, %v195_v43  ;;  %s220_s21 = sadd.s32 %s7423_s16, %s217_s19  ;;  %s6633_s4 = sld [smem:[#allocation4 + $0x387]] }
  0x3c   :  { %s221_s15 = scalar_lea.vmem %s10801_s1, %s220_s21  ;;  %s8446_s12 = sld [smem:[#allocation4 + $0x507]] }
  0x3d   :  { %207 = vst.msk [vmem:[#allocation2 + $0x5] ss:$8 sm:$0x3] %vm8337_vm0, %v205_v45  ;;  %s223_s23 = sshra.s32 %s6627_s30, 3  ;;  %s226_s0 = sand.u32 7, %s6627_s30 }
  0x3e   :  { %s7424_s27 = sshll.u32 %s223_s23, 4  ;;  %v222_v46 = vld [vmem:[%s221_s15] ss:$8 sm:$0x3]  ;;  %s8448_s10 = sld [smem:[#allocation4 + $0x580]] }
  0x3f   :  { %s229_s24 = sadd.s32 %s7424_s27, %s226_s0  ;;  %s6639_s0 = sld [smem:[#allocation4 + $0x407]] }
  0x40   :  { %s230_s28 = scalar_lea.vmem %s10802_s2, %s229_s24  ;;  %s241_s29 = sshra.s32 %s6632_s20, 3 }
  0x41   :  { %v231_v47 = vld [vmem:[%s230_s28] ss:$8 sm:$0x3]  ;;  %s244_s13 = sand.u32 7, %s6632_s20  ;;  %s7425_s14 = sshll.u32 %s241_s29, 4 }
  0x42   :  { %v232_v48 = vadd.f32 %v231_v47, %v222_v46  ;;  %s247_s25 = sadd.s32 %s7425_s14, %s244_s13  ;;  %s250_s17 = sshra.s32 %s6633_s4, 3 }
  0x43   :  { %s248_s16 = scalar_lea.vmem %s10801_s1, %s247_s25  ;;  %s253_s21 = sand.u32 7, %s6633_s4 }
  0x44   :  { %234 = vst.msk [vmem:[#allocation2 + $0x6] ss:$8 sm:$0x3] %vm8337_vm0, %v232_v48  ;;  %s7426_s30 = sshll.u32 %s250_s17, 4  ;;  %s6638_s20 = sld [smem:[#allocation4 + $0x400]] }
  0x45   :  { %v249_v49 = vld [vmem:[%s248_s16] ss:$8 sm:$0x3]  ;;  %s256_s26 = sadd.s32 %s7426_s30, %s253_s21  ;;  %s6644_s27 = sld [smem:[#allocation4 + $0x480]] }
  0x46   :  { %s257_s23 = scalar_lea.vmem %s10802_s2, %s256_s26  ;;  %s8442_s24 = sld [smem:[#allocation4 + $0x487]] }
  0x47   :  { %v258_v50 = vld [vmem:[%s257_s23] ss:$8 sm:$0x3]  ;;  %s8444_s4 = sld [smem:[#allocation4 + $0x500]]  ;;  %s8450_s28 = sld [smem:[#allocation4 + $0x587]] }
  0x48   :  { %v259_v51 = vadd.f32 %v258_v50, %v249_v49  ;;  %s8452_s29 = sld [smem:[#allocation4 + $0x600]]  ;;  %s8454_s13 = sld [smem:[#allocation4 + $0x607]] }
  0x49   :  { %s8456_s14 = sld [smem:[#allocation4 + $0x680]]  ;;  %s8458_s25 = sld [smem:[#allocation4 + $0x687]] }
  0x4a   :  { %261 = vst.msk [vmem:[#allocation2 + $0x7] ss:$8 sm:$0x3] %vm8337_vm0, %v259_v51  ;;  %s268_s17 = sshra.s32 %s6638_s20, 3  ;;  %s277_s18 = sshra.s32 %s6639_s0, 3 }
  0x4b   :  { %s271_s19 = sand.u32 7, %s6638_s20  ;;  %s7427_s16 = sshll.u32 %s268_s17, 4 }
  0x4c   :  { %s274_s21 = sadd.s32 %s7427_s16, %s271_s19  ;;  %s280_s30 = sand.u32 7, %s6639_s0 }
  0x4d   :  { %s275_s15 = scalar_lea.vmem %s10801_s1, %s274_s21  ;;  %s7428_s23 = sshll.u32 %s277_s18, 4 }
  0x4e   :  { %v276_v52 = vld [vmem:[%s275_s15] ss:$8 sm:$0x3]  ;;  %s283_s11 = sadd.s32 %s7428_s23, %s280_s30  ;;  %s295_s9 = sshra.s32 %s6644_s27, 3 }
  0x4f   :  { %s284_s3 = scalar_lea.vmem %s10802_s2, %s283_s11  ;;  %s298_s6 = sand.u32 7, %s6644_s27 }
  0x50   :  { %v285_v53 = vld [vmem:[%s284_s3] ss:$8 sm:$0x3]  ;;  %s7429_s20 = sshll.u32 %s295_s9, 4  ;;  %s304_s17 = sshra.s32 %s8442_s24, 3 }
  0x51   :  { %v286_v54 = vadd.f32 %v285_v53, %v276_v52  ;;  %s301_s0 = sadd.s32 %s7429_s20, %s298_s6  ;;  %s307_s19 = sand.u32 7, %s8442_s24  ;;  %v3280_v18 = vld [vmem:[#allocation2 + $0x8] sm:$0xff]  ;;  %v3279_v33 = vld [vmem:[#allocation2] sm:$0xff] }
  0x52   :  { %s302_s21 = scalar_lea.vmem %s10801_s1, %s301_s0  ;;  %s7430_s30 = sshll.u32 %s304_s17, 4 }
  0x53   :  { %288 = vst.msk [vmem:[#allocation2 + $0x10] ss:$8 sm:$0x3] %vm8337_vm0, %v286_v54  ;;  %v303_v55 = vld [vmem:[%s302_s21] ss:$8 sm:$0x3]  ;;  %s310_s7 = sadd.s32 %s7430_s30, %s307_s19 }
  0x54   :  { %s322_s8 = sshra.s32 %s8444_s4, 3  ;;  %s311_s9 = scalar_lea.vmem %s10802_s2, %s310_s7 }
  0x55   :  { %s325_s27 = sand.u32 7, %s8444_s4  ;;  %v312_v56 = vld [vmem:[%s311_s9] ss:$8 sm:$0x3]  ;;  %s7431_s6 = sshll.u32 %s322_s8, 4 }
  0x56   :  { %s331_s24 = sshra.s32 %s8446_s12, 3  ;;  %v313_v57 = vadd.f32 %v312_v56, %v303_v55  ;;  %s328_s26 = sadd.s32 %s7431_s6, %s325_s27 }
  0x57   :  { %s334_s22 = sand.u32 7, %s8446_s12  ;;  %s329_s20 = scalar_lea.vmem %s10801_s1, %s328_s26 }
  0x58   :  { %s7432_s17 = sshll.u32 %s331_s24, 4  ;;  %315 = vst.msk [vmem:[#allocation2 + $0x11] ss:$8 sm:$0x3] %vm8337_vm0, %v313_v57  ;;  %s349_s4 = sshra.s32 %s8448_s10, 3 }
  0x59   :  { %v330_v58 = vld [vmem:[%s329_s20] ss:$8 sm:$0x3]  ;;  %s337_s0 = sadd.s32 %s7432_s17, %s334_s22  ;;  %s352_s21 = sand.u32 7, %s8448_s10 }
  0x5a   :  { %s338_s18 = scalar_lea.vmem %s10802_s2, %s337_s0  ;;  %s7433_s12 = sshll.u32 %s349_s4, 4 }
  0x5b   :  { %v339_v59 = vld [vmem:[%s338_s18] ss:$8 sm:$0x3]  ;;  %s358_s30 = sshra.s32 %s8450_s28, 3  ;;  %s355_s7 = sadd.s32 %s7433_s12, %s352_s21 }
  0x5c   :  { %v340_v60 = vadd.f32 %v339_v59, %v330_v58  ;;  %s361_s8 = sand.u32 7, %s8450_s28  ;;  %s356_s9 = scalar_lea.vmem %s10801_s1, %s355_s7 }
  0x5d   :  { %s7434_s27 = sshll.u32 %s358_s30, 4  ;;  %v357_v61 = vld [vmem:[%s356_s9] ss:$8 sm:$0x3]  ;;  %s376_s10 = sshra.s32 %s8452_s29, 3 }
  0x5e   :  { %342 = vst.msk [vmem:[#allocation2 + $0x12] ss:$8 sm:$0x3] %vm8337_vm0, %v340_v60  ;;  %s364_s6 = sadd.s32 %s7434_s27, %s361_s8  ;;  %s379_s15 = sand.u32 7, %s8452_s29 }
  0x5f   :  { %s365_s22 = scalar_lea.vmem %s10802_s2, %s364_s6  ;;  %s7435_s28 = sshll.u32 %s376_s10, 4 }
  0x60   :  { %v366_v62 = vld [vmem:[%s365_s22] ss:$8 sm:$0x3]  ;;  %s385_s23 = sshra.s32 %s8454_s13, 3  ;;  %s382_s20 = sadd.s32 %s7435_s28, %s379_s15 }
  0x61   :  { %v367_v63 = vadd.f32 %v366_v62, %v357_v61  ;;  %s388_s17 = sand.u32 7, %s8454_s13  ;;  %s383_s19 = scalar_lea.vmem %s10801_s1, %s382_s20 }
  0x62   :  { %s7436_s16 = sshll.u32 %s385_s23, 4  ;;  %v384_v0 = vld [vmem:[%s383_s19] ss:$8 sm:$0x3]  ;;  %s403_s21 = sshra.s32 %s8456_s14, 3 }
  0x63   :  { %369 = vst.msk [vmem:[#allocation2 + $0x13] ss:$8 sm:$0x3] %vm8337_vm0, %v367_v63  ;;  %s391_s18 = sadd.s32 %s7436_s16, %s388_s17  ;;  %s406_s7 = sand.u32 7, %s8456_s14 }
  0x64   :  { %s392_s30 = scalar_lea.vmem %s10802_s2, %s391_s18  ;;  %s7437_s8 = sshll.u32 %s403_s21, 4 }
  0x65   :  { %v393_v1 = vld [vmem:[%s392_s30] ss:$8 sm:$0x3]  ;;  %s412_s3 = sshra.s32 %s8458_s25, 3  ;;  %s409_s13 = sadd.s32 %s7437_s8, %s406_s7 }
  0x66   :  { %v394_v2 = vadd.f32 %v393_v1, %v384_v0  ;;  %s415_s11 = sand.u32 7, %s8458_s25  ;;  %s410_s6 = scalar_lea.vmem %s10801_s1, %s409_s13 }
  0x67   :  { %s7438_s10 = sshll.u32 %s412_s3, 4  ;;  %v411_v3 = vld [vmem:[%s410_s6] ss:$8 sm:$0x3]  ;;  %s6674_s26 = sld [smem:[#allocation4 + $0x700]] }
  0x68   :  { %396 = vst.msk [vmem:[#allocation2 + $0x14] ss:$8 sm:$0x3] %vm8337_vm0, %v394_v2  ;;  %s418_s24 = sadd.s32 %s7438_s10, %s415_s11  ;;  %s6675_s28 = sld [smem:[#allocation4 + $0x707]] }
  0x69   :  { %s419_s14 = scalar_lea.vmem %s10802_s2, %s418_s24  ;;  %s6680_s23 = sld [smem:[#allocation4 + $0x780]] }
  0x6a   :  { %v420_v5 = vld [vmem:[%s419_s14] ss:$8 sm:$0x3]  ;;  %s6681_s25 = sld [smem:[#allocation4 + $0x787]]  ;;  %s8564_s18 = sld [smem:[#allocation4 + $0x106]] }
  0x6b   :  { %v421_v6 = vadd.f32 %v420_v5, %v411_v3  ;;  %s8566_s21 = sld [smem:[#allocation4 + $0x181]]  ;;  %s8576_s8 = sld [smem:[#allocation4 + $0x286]] }
  0x6d   :  { %423 = vst.msk [vmem:[#allocation2 + $0x15] ss:$8 sm:$0x3] %vm8337_vm0, %v421_v6  ;;  %s430_s20 = sshra.s32 %s6674_s26, 3  ;;  %s433_s17 = sand.u32 7, %s6674_s26 }
  0x6e   :  { %s7439_s0 = sshll.u32 %s430_s20, 4  ;;  %s439_s4 = sshra.s32 %s6675_s28, 3 }
  0x6f   :  { %s436_s19 = sadd.s32 %s7439_s0, %s433_s17  ;;  %s442_s16 = sand.u32 7, %s6675_s28 }
  0x70   :  { %s437_s29 = scalar_lea.vmem %s10801_s1, %s436_s19  ;;  %s7440_s12 = sshll.u32 %s439_s4, 4 }
  0x71   :  { %v438_v7 = vld [vmem:[%s437_s29] ss:$8 sm:$0x3]  ;;  %s445_s30 = sadd.s32 %s7440_s12, %s442_s16  ;;  %s457_s7 = sshra.s32 %s6680_s23, 3 }
  0x72   :  { %s446_s13 = scalar_lea.vmem %s10802_s2, %s445_s30  ;;  %s460_s11 = sand.u32 7, %s6680_s23 }
  0x73   :  { %v447_v11 = vld [vmem:[%s446_s13] ss:$8 sm:$0x3]  ;;  %s7441_s9 = sshll.u32 %s457_s7, 4  ;;  %s466_s27 = sshra.s32 %s6681_s25, 3 }
  0x74   :  { %v448_v12 = vadd.f32 %v447_v11, %v438_v7  ;;  %s463_s6 = sadd.s32 %s7441_s9, %s460_s11  ;;  %s469_s10 = sand.u32 7, %s6681_s25 }
  0x75   :  { %s464_s22 = scalar_lea.vmem %s10801_s1, %s463_s6  ;;  %s7442_s15 = sshll.u32 %s466_s27, 4 }
  0x76   :  { %450 = vst.msk [vmem:[#allocation2 + $0x16] ss:$8 sm:$0x3] %vm8337_vm0, %v448_v12  ;;  %v465_v13 = vld [vmem:[%s464_s22] ss:$8 sm:$0x3]  ;;  %s472_s14 = sadd.s32 %s7442_s15, %s469_s10 }
  0x77   :  { %s473_s23 = scalar_lea.vmem %s10802_s2, %s472_s14  ;;  %s10815_s25 = smov 64  }
  0x78   :  { %v474_v14 = vld [vmem:[%s473_s23] ss:$8 sm:$0x3]  ;;  %s6686_s17 = sld [smem:[#allocation4 + $0x1]]  ;;  %s6687_s0 = sld [smem:[#allocation4 + $0x6]] }
  0x79   :  { %v475_v17 = vadd.f32 %v474_v14, %v465_v13  ;;  %s8558_s4 = sld [smem:[#allocation4 + $0x81]]  ;;  %s8560_s19 = sld [smem:[#allocation4 + $0x86]] }
  0x7a   :  { %s8562_s16 = sld [smem:[#allocation4 + $0x101]]  ;;  %s8568_s29 = sld [smem:[#allocation4 + $0x186]] }
  0x7b   :  { %477 = vst.msk [vmem:[#allocation2 + $0x17] ss:$8 sm:$0x3] %vm8337_vm0, %v475_v17  ;;  %s8570_s12 = sld [smem:[#allocation4 + $0x201]]  ;;  %s8572_s30 = sld [smem:[#allocation4 + $0x206]] }
  0x7c   :  { %s8574_s7 = sld [smem:[#allocation4 + $0x281]]  ;;  %s544_s28 = sshra.s32 %s8564_s18, 3 }
  0x7e   :  { %s483_s3 = sshra.s32 %s6686_s17, 3  ;;  %s486_s13 = sand.u32 7, %s6686_s17 }
  0x7f   :  { %s7443_s11 = sshll.u32 %s483_s3, 4  ;;  %s492_s9 = sshra.s32 %s6687_s0, 3 }
  0x80   :  { %s489_s27 = sadd.s32 %s7443_s11, %s486_s13  ;;  %s495_s6 = sand.u32 7, %s6687_s0 }
  0x81   :  { %s490_s26 = scalar_lea.vmem %s10801_s1, %s489_s27  ;;  %s7444_s22 = sshll.u32 %s492_s9, 4 }
  0x82   :  { %v3282_v25 = vld [vmem:[#allocation2 + $0x18] sm:$0xff]  ;;  %v3281_v35 = vld [vmem:[#allocation2 + $0x10] sm:$0xff]  ;;  %v491_v57 = vld [vmem:[%s490_s26] ss:$8 sm:$0x3]  ;;  %s498_s15 = sadd.s32 %s7444_s22, %s495_s6  ;;  %s509_s14 = sshra.s32 %s8558_s4, 3 }
  0x83   :  { %s499_s23 = scalar_lea.vmem %s10802_s2, %s498_s15  ;;  %s512_s17 = sand.u32 7, %s8558_s4 }
  0x84   :  { %v500_v58 = vld [vmem:[%s499_s23] ss:$8 sm:$0x3]  ;;  %s7445_s0 = sshll.u32 %s509_s14, 4  ;;  %s518_s3 = sshra.s32 %s8560_s19, 3 }
  0x85   :  { %v501_v59 = vadd.f32 %v500_v58, %v491_v57  ;;  %s515_s13 = sadd.s32 %s7445_s0, %s512_s17  ;;  %s521_s11 = sand.u32 7, %s8560_s19 }
  0x86   :  { %s516_s6 = scalar_lea.vmem %s10801_s1, %s515_s13  ;;  %s7446_s10 = sshll.u32 %s518_s3, 4 }
  0x87   :  { %503 = vst.msk [vmem:[#allocation2 + $0x20] ss:$8 sm:$0x3] %vm8337_vm0, %v501_v59  ;;  %v517_v60 = vld [vmem:[%s516_s6] ss:$8 sm:$0x3]  ;;  %s524_s24 = sadd.s32 %s7446_s10, %s521_s11 }
  0x88   :  { %s535_s4 = sshra.s32 %s8562_s16, 3  ;;  %s525_s15 = scalar_lea.vmem %s10802_s2, %s524_s24 }
  0x89   :  { %s538_s14 = sand.u32 7, %s8562_s16  ;;  %v526_v61 = vld [vmem:[%s525_s15] ss:$8 sm:$0x3]  ;;  %s7447_s19 = sshll.u32 %s535_s4, 4 }
  0x8a   :  { %v527_v62 = vadd.f32 %v526_v61, %v517_v60  ;;  %s541_s20 = sadd.s32 %s7447_s19, %s538_s14  ;;  %s547_s23 = sand.u32 7, %s8564_s18 }
  0x8b   :  { %s542_s3 = scalar_lea.vmem %s10801_s1, %s541_s20  ;;  %s7448_s13 = sshll.u32 %s544_s28, 4 }
  0x8c   :  { %529 = vst.msk [vmem:[#allocation2 + $0x21] ss:$8 sm:$0x3] %vm8337_vm0, %v527_v62  ;;  %v543_v63 = vld [vmem:[%s542_s3] ss:$8 sm:$0x3]  ;;  %s550_s11 = sadd.s32 %s7448_s13, %s547_s23 }
  0x8d   :  { %s561_s16 = sshra.s32 %s8566_s21, 3  ;;  %s551_s6 = scalar_lea.vmem %s10802_s2, %s550_s11 }
  0x8e   :  { %s564_s10 = sand.u32 7, %s8566_s21  ;;  %v552_v0 = vld [vmem:[%s551_s6] ss:$8 sm:$0x3]  ;;  %s7449_s18 = sshll.u32 %s561_s16, 4 }
  0x8f   :  { %s570_s24 = sshra.s32 %s8568_s29, 3  ;;  %v553_v1 = vadd.f32 %v552_v0, %v543_v63  ;;  %s567_s4 = sadd.s32 %s7449_s18, %s564_s10 }
  0x90   :  { %s573_s26 = sand.u32 7, %s8568_s29  ;;  %s568_s14 = scalar_lea.vmem %s10801_s1, %s567_s4 }
  0x91   :  { %s7450_s19 = sshll.u32 %s570_s24, 4  ;;  %555 = vst.msk [vmem:[#allocation2 + $0x22] ss:$8 sm:$0x3] %vm8337_vm0, %v553_v1  ;;  %s587_s21 = sshra.s32 %s8570_s12, 3 }
  0x92   :  { %v569_v2 = vld [vmem:[%s568_s14] ss:$8 sm:$0x3]  ;;  %s576_s28 = sadd.s32 %s7450_s19, %s573_s26  ;;  %s590_s0 = sand.u32 7, %s8570_s12 }
  0x93   :  { %s577_s17 = scalar_lea.vmem %s10802_s2, %s576_s28  ;;  %s7451_s29 = sshll.u32 %s587_s21, 4 }
  0x94   :  { %v578_v3 = vld [vmem:[%s577_s17] ss:$8 sm:$0x3]  ;;  %s596_s3 = sshra.s32 %s8572_s30, 3  ;;  %s593_s13 = sadd.s32 %s7451_s29, %s590_s0 }
  0x95   :  { %v579_v5 = vadd.f32 %v578_v3, %v569_v2  ;;  %s599_s11 = sand.u32 7, %s8572_s30  ;;  %s594_s27 = scalar_lea.vmem %s10801_s1, %s593_s13 }
  0x96   :  { %s7452_s6 = sshll.u32 %s596_s3, 4  ;;  %v595_v6 = vld [vmem:[%s594_s27] ss:$8 sm:$0x3]  ;;  %s613_s18 = sshra.s32 %s8574_s7, 3 }
  0x97   :  { %581 = vst.msk [vmem:[#allocation2 + $0x23] ss:$8 sm:$0x3] %vm8337_vm0, %v579_v5  ;;  %s602_s10 = sadd.s32 %s7452_s6, %s599_s11  ;;  %s616_s26 = sand.u32 7, %s8574_s7 }
  0x98   :  { %s603_s4 = scalar_lea.vmem %s10802_s2, %s602_s10  ;;  %s7453_s22 = sshll.u32 %s613_s18, 4 }
  0x99   :  { %v604_v7 = vld [vmem:[%s603_s4] ss:$8 sm:$0x3]  ;;  %s622_s15 = sshra.s32 %s8576_s8, 3  ;;  %s619_s30 = sadd.s32 %s7453_s22, %s616_s26 }
  0x9a   :  { %v605_v11 = vadd.f32 %v604_v7, %v595_v6  ;;  %s625_s14 = sand.u32 7, %s8576_s8  ;;  %s620_s21 = scalar_lea.vmem %s10801_s1, %s619_s30 }
  0x9b   :  { %s7454_s20 = sshll.u32 %s622_s15, 4  ;;  %v621_v12 = vld [vmem:[%s620_s21] ss:$8 sm:$0x3]  ;;  %s6722_s17 = sld [smem:[#allocation4 + $0x301]] }
  0x9c   :  { %607 = vst.msk [vmem:[#allocation2 + $0x24] ss:$8 sm:$0x3] %vm8337_vm0, %v605_v11  ;;  %s628_s23 = sadd.s32 %s7454_s20, %s625_s14  ;;  %s6723_s3 = sld [smem:[#allocation4 + $0x306]] }
  0x9d   :  { %s629_s7 = scalar_lea.vmem %s10802_s2, %s628_s23  ;;  %s6728_s13 = sld [smem:[#allocation4 + $0x381]] }
  0x9e   :  { %v630_v13 = vld [vmem:[%s629_s7] ss:$8 sm:$0x3]  ;;  %s6729_s8 = sld [smem:[#allocation4 + $0x386]]  ;;  %s8684_s12 = sld [smem:[#allocation4 + $0x581]] }
  0x9f   :  { %v631_v14 = vadd.f32 %v630_v13, %v621_v12  ;;  %s8682_s18 = sld [smem:[#allocation4 + $0x506]] }
  0xa0   :  { %s8694_s15 = sld [smem:[#allocation4 + $0x686]] }
  0xa1   :  { %633 = vst.msk [vmem:[#allocation2 + $0x25] ss:$8 sm:$0x3] %vm8337_vm0, %v631_v14  ;;  %s639_s11 = sshra.s32 %s6722_s17, 3  ;;  %s642_s16 = sand.u32 7, %s6722_s17 }
  0xa2   :  { %s7455_s9 = sshll.u32 %s639_s11, 4  ;;  %s648_s27 = sshra.s32 %s6723_s3, 3 }
  0xa3   :  { %s645_s6 = sadd.s32 %s7455_s9, %s642_s16  ;;  %s651_s10 = sand.u32 7, %s6723_s3 }
  0xa4   :  { %s646_s24 = scalar_lea.vmem %s10801_s1, %s645_s6  ;;  %s7456_s4 = sshll.u32 %s648_s27, 4 }
  0xa5   :  { %v647_v17 = vld [vmem:[%s646_s24] ss:$8 sm:$0x3]  ;;  %s654_s26 = sadd.s32 %s7456_s4, %s651_s10  ;;  %s665_s22 = sshra.s32 %s6728_s13, 3 }
  0xa6   :  { %s655_s14 = scalar_lea.vmem %s10802_s2, %s654_s26  ;;  %s668_s19 = sand.u32 7, %s6728_s13 }
  0xa7   :  { %s7457_s28 = sshll.u32 %s665_s22, 4  ;;  %s674_s21 = sshra.s32 %s6729_s8, 3 }
  0xa8   :  { %s671_s20 = sadd.s32 %s7457_s28, %s668_s19  ;;  %s677_s23 = sand.u32 7, %s6729_s8 }
  0xa9   :  { %s672_s29 = scalar_lea.vmem %s10801_s1, %s671_s20  ;;  %s7458_s7 = sshll.u32 %s674_s21, 4 }
  0xaa   :  { %s680_s3 = sadd.s32 %s7458_s7, %s677_s23  ;;  %s6734_s8 = sld [smem:[#allocation4 + $0x401]] }
  0xab   :  { %s681_s13 = scalar_lea.vmem %s10802_s2, %s680_s3  ;;  %s6735_s9 = sld [smem:[#allocation4 + $0x406]] }
  0xac   :  { %s6740_s27 = sld [smem:[#allocation4 + $0x481]]  ;;  %s8678_s6 = sld [smem:[#allocation4 + $0x486]] }
  0xad   :  { %s8680_s10 = sld [smem:[#allocation4 + $0x501]]  ;;  %s8686_s24 = sld [smem:[#allocation4 + $0x586]] }
  0xae   :  { %s8688_s4 = sld [smem:[#allocation4 + $0x601]]  ;;  %s8690_s26 = sld [smem:[#allocation4 + $0x606]] }
  0xaf   :  { %s8692_s22 = sld [smem:[#allocation4 + $0x681]]  ;;  %s755_s11 = sand.u32 7, %s8682_s18 }
  0xb0   :  { %s691_s30 = sshra.s32 %s6734_s8, 3  ;;  %s694_s19 = sand.u32 7, %s6734_s8 }
  0xb1   :  { %s7459_s28 = sshll.u32 %s691_s30, 4  ;;  %s703_s20 = sand.u32 7, %s6735_s9 }
  0xb2   :  { %s697_s21 = sadd.s32 %s7459_s28, %s694_s19  ;;  %s717_s3 = sshra.s32 %s6740_s27, 3 }
  0xb3   :  { %s698_s0 = scalar_lea.vmem %s10801_s1, %s697_s21  ;;  %s7461_s8 = sshll.u32 %s717_s3, 4 }
  0xb4   :  { %s726_s30 = sshra.s32 %s8678_s6, 3  ;;  %s729_s19 = sand.u32 7, %s8678_s6 }
  0xb5   :  { %s752_s6 = sshra.s32 %s8682_s18, 3  ;;  %s798_s16 = sand.u32 7, %s8688_s4 }
  0xb6   :  { %s830_s17 = sshra.s32 %s8694_s15, 3 }
  0xf7   :  { %v3353_v19 = vpop.f32.mrb[0].mxu0 }
  0xf8   :  { %v3355_v20 = vpop.f32.mrb[1].mxu0  ;;  %v3364_v34 = vadd.f32 %v3353_v19, %v3279_v33 }
  0xf9   :  { %v8542_v24 = vadd.f32 %v3355_v20, %v3280_v18  ;;  %v656_v18 = vld [vmem:[%s655_s14] ss:$8 sm:$0x3]  ;;  %s700_s14 = sshra.s32 %s6735_s9, 3 }
  0xfa   :  { %v7357_v36 = vmul.f32 -1.442695, %v3364_v34  ;;  %v657_v19 = vadd.f32 %v656_v18, %v647_v17  ;;  %v673_v20 = vld [vmem:[%s672_s29] ss:$8 sm:$0x3]  ;;  %s7460_s29 = sshll.u32 %s700_s14, 4 }
  0xfb   :  { %7892 = vtanh.f32 %v8542_v24  ;;  %v3359_v26 = vpop.f32.mrb[2].mxu0  ;;  %s706_s7 = sadd.s32 %s7460_s29, %s703_s20  ;;  %s7462_s20 = sshll.u32 %s726_s30, 4 }
  0xfc   :  { %v3361_v28 = vpop.f32.mrb[3].mxu0  ;;  %v3366_v37 = vadd.f32 %v3359_v26, %v3281_v35  ;;  %659 = vst.msk [vmem:[#allocation2 + $0x26] ss:$8 sm:$0x3] %vm8337_vm0, %v657_v19  ;;  %s732_s23 = sadd.s32 %s7462_s20, %s729_s19  ;;  %s7464_s30 = sshll.u32 %s752_s6, 4 }
  0xfd   :  { %v8545_v30 = vadd.f32 %v3361_v28, %v3282_v25  ;;  %v682_v25 = vld [vmem:[%s681_s13] ss:$8 sm:$0x3]  ;;  %v7358_v28 = vmul.f32 -1.442695, %v8542_v24  ;;  %s707_s13 = scalar_lea.vmem %s10802_s2, %s706_s7  ;;  %s733_s29 = scalar_lea.vmem %s10802_s2, %s732_s23 }
  0xfe   :  { %v7359_v38 = vmul.f32 -1.442695, %v3366_v37  ;;  %v683_v26 = vadd.f32 %v682_v25, %v673_v20  ;;  %s746_s7 = sand.u32 7, %s8680_s10  ;;  %s778_s20 = sshra.s32 %s8686_s24, 3 }
  0xff   :  { %7894 = vtanh.f32 %v8545_v30 }
 0x100   :  { %7896 = vpow2.f32 %v7357_v36  ;;  %685 = vst.msk [vmem:[#allocation2 + $0x27] ss:$8 sm:$0x3] %vm8337_vm0, %v683_v26 }
 0x101   :  { %7898 = vpow2.f32 %v7359_v38 }
 0x105   :  { %v7893_v31 = vpop.eup %7892 }
 0x106   :  { %3398 = vrot.lane.b32.xlu0 %v7893_v31, %s10815_s25  ;;  %v7360_v31 = vmul.f32 -1.442695, %v8545_v30  ;;  %v699_v30 = vld [vmem:[%s698_s0] ss:$8 sm:$0x3]  ;;  %s833_s0 = sand.u32 7, %s8694_s15 }
 0x107   :  { %s6777_s15 = sld [smem:[#allocation4 + $0x786]]  ;;  %v3429_v2 = vld [vmem:[#allocation2 + $0x28] sm:$0xff]  ;;  %v3428_v18 = vld [vmem:[#allocation2 + $0x20] sm:$0xff] }
 0x109   :  { %v7895_v32 = vpop.eup %7894 }
 0x10a   :  { %3400 = vrot.lane.b32.xlu0 %v7895_v32, %s10815_s25  ;;  %v7897_v39 = vpop.eup %7896 }
 0x10b   :  { %v3380_v40 = vadd.f32 1.0, %v7897_v39  ;;  %v7899_v41 = vpop.eup %7898 }
 0x10c   :  { %v3382_v42 = vadd.f32 1.0, %v7899_v41  ;;  %v708_v41 = vld [vmem:[%s707_s13] ss:$8 sm:$0x3]  ;;  %s804_s13 = sshra.s32 %s8690_s26, 3 }
 0x10d   :  { %7900 = vrcp.f32 %v3380_v40  ;;  %s7468_s28 = sshll.u32 %s804_s13, 4  ;;  %s6776_s13 = sld [smem:[#allocation4 + $0x781]] }
 0x10e   :  { %7902 = vrcp.f32 %v3382_v42  ;;  %v709_v42 = vadd.f32 %v708_v41, %v699_v30 }
 0x110   :  { %711 = vst.msk [vmem:[#allocation2 + $0x30] ss:$8 sm:$0x3] %vm8337_vm0, %v709_v42 }
 0x117   :  { %v7901_v43 = vpop.eup %7900 }
 0x118   :  { %v7903_v46 = vpop.eup %7902  ;;  %v3394_v49 = vmul.f32 0.0, %v7901_v43 }
 0x119   :  { %v3395_v52 = vmul.f32 0.0, %v7903_v46 }
 0x178   :  { %v3399_v44 = vpop.permute.xlu0 %3398 }
 0x179   :  { %v3404_v45 = vmul.f32 %v7901_v43, %v3399_v44  ;;  %v734_v44 = vld [vmem:[%s733_s29] ss:$8 sm:$0x3] }
 0x17b   :  { %3408 = vrot.lane.b32.xlu1 %v3404_v45, %s10815_s25 }
 0x17c   :  { %v3401_v47 = vpop.permute.xlu0 %3400 }
 0x17d   :  { %v3405_v48 = vmul.f32 %v7903_v46, %v3401_v47 }
 0x17f   :  { %3410 = vrot.lane.b32.xlu1 %v3405_v48, %s10815_s25 }
 0x1ed   :  { %v3409_v50 = vpop.permute.xlu1 %3408 }
 0x1ee   :  { %v8552_v51 = vadd.f32 %v3409_v50, %v3394_v49 }
 0x1f0   :  { %7904 = vtanh.f32 %v8552_v51 }
 0x1f1   :  { %v3411_v53 = vpop.permute.xlu1 %3410 }
 0x1f2   :  { %v8555_v54 = vadd.f32 %v3411_v53, %v3395_v52 }
 0x1f4   :  { %7906 = vtanh.f32 %v8555_v54 }
 0x1f5   :  { %7908 = vpow2.f32 %v7358_v28 }
 0x1f6   :  { %7910 = vpow2.f32 %v7360_v31 }
 0x1fa   :  { %v7905_v55 = vpop.eup %7904 }
 0x1fb   :  { %3420 = vrot.lane.b32.xlu0 %v7905_v55, %s10815_s25 }
 0x1fe   :  { %v7907_v56 = vpop.eup %7906 }
 0x1ff   :  { %3422 = vrot.lane.b32.xlu1 %v7907_v56, %s10815_s25  ;;  %v7909_v32 = vpop.eup %7908  ;;  %s720_s25 = sand.u32 7, %s6740_s27  ;;  %s743_s27 = sshra.s32 %s8680_s10, 3 }
 0x200   :  { %v3381_v33 = vadd.f32 1.0, %v7909_v32  ;;  %v7911_v34 = vpop.eup %7910  ;;  %s723_s9 = sadd.s32 %s7461_s8, %s720_s25  ;;  %s7463_s25 = sshll.u32 %s743_s27, 4 }
 0x201   :  { %v3383_v35 = vadd.f32 1.0, %v7911_v34  ;;  %s724_s21 = scalar_lea.vmem %s10801_s1, %s723_s9  ;;  %s749_s3 = sadd.s32 %s7463_s25, %s746_s7 }
 0x202   :  { %7912 = vrcp.f32 %v3381_v33  ;;  %v725_v43 = vld [vmem:[%s724_s21] ss:$8 sm:$0x3]  ;;  %s750_s8 = scalar_lea.vmem %s10801_s1, %s749_s3  ;;  %s758_s9 = sadd.s32 %s7464_s30, %s755_s11 }
 0x203   :  { %7914 = vrcp.f32 %v3383_v35  ;;  %v735_v45 = vadd.f32 %v734_v44, %v725_v43  ;;  %v751_v46 = vld [vmem:[%s750_s8] ss:$8 sm:$0x3]  ;;  %s769_s10 = sshra.s32 %s8684_s12, 3  ;;  %s759_s14 = scalar_lea.vmem %s10802_s2, %s758_s9 }
 0x204   :  { %s772_s21 = sand.u32 7, %s8684_s12  ;;  %v760_v47 = vld [vmem:[%s759_s14] ss:$8 sm:$0x3]  ;;  %s7465_s18 = sshll.u32 %s769_s10, 4 }
 0x205   :  { %737 = vst.msk [vmem:[#allocation2 + $0x31] ss:$8 sm:$0x3] %vm8337_vm0, %v735_v45  ;;  %v761_v48 = vadd.f32 %v760_v47, %v751_v46  ;;  %s775_s23 = sadd.s32 %s7465_s18, %s772_s21  ;;  %s781_s27 = sand.u32 7, %s8686_s24 }
 0x206   :  { %s776_s29 = scalar_lea.vmem %s10801_s1, %s775_s23  ;;  %s7466_s7 = sshll.u32 %s778_s20, 4 }
 0x207   :  { %763 = vst.msk [vmem:[#allocation2 + $0x32] ss:$8 sm:$0x3] %vm8337_vm0, %v761_v48  ;;  %v777_v49 = vld [vmem:[%s776_s29] ss:$8 sm:$0x3]  ;;  %s784_s25 = sadd.s32 %s7466_s7, %s781_s27 }
 0x208   :  { %s795_s12 = sshra.s32 %s8688_s4, 3  ;;  %s785_s11 = scalar_lea.vmem %s10802_s2, %s784_s25 }
 0x209   :  { %v786_v50 = vld [vmem:[%s785_s11] ss:$8 sm:$0x3]  ;;  %s7467_s24 = sshll.u32 %s795_s12, 4  ;;  %s807_s30 = sand.u32 7, %s8690_s26 }
 0x20a   :  { %v787_v52 = vadd.f32 %v786_v50, %v777_v49  ;;  %s801_s8 = sadd.s32 %s7467_s24, %s798_s16  ;;  %s810_s14 = sadd.s32 %s7468_s28, %s807_s30 }
 0x20b   :  { %s802_s19 = scalar_lea.vmem %s10801_s1, %s801_s8  ;;  %s821_s21 = sshra.s32 %s8692_s22, 3 }
 0x20c   :  { %v7913_v36 = vpop.eup %7912  ;;  %789 = vst.msk [vmem:[#allocation2 + $0x33] ss:$8 sm:$0x3] %vm8337_vm0, %v787_v52  ;;  %v803_v53 = vld [vmem:[%s802_s19] ss:$8 sm:$0x3]  ;;  %s811_s20 = scalar_lea.vmem %s10802_s2, %s810_s14 }
 0x20d   :  { %v7915_v39 = vpop.eup %7914  ;;  %s824_s23 = sand.u32 7, %s8692_s22  ;;  %v812_v55 = vld [vmem:[%s811_s20] ss:$8 sm:$0x3]  ;;  %s7469_s27 = sshll.u32 %s821_s21, 4 }
 0x20e   :  { %v813_v56 = vadd.f32 %v812_v55, %v803_v53  ;;  %s827_s26 = sadd.s32 %s7469_s27, %s824_s23  ;;  %s7470_s12 = sshll.u32 %s830_s17, 4 }
 0x20f   :  { %s828_s25 = scalar_lea.vmem %s10801_s1, %s827_s26  ;;  %s836_s6 = sadd.s32 %s7470_s12, %s833_s0 }
 0x210   :  { %815 = vst.msk [vmem:[#allocation2 + $0x34] ss:$8 sm:$0x3] %vm8337_vm0, %v813_v56  ;;  %v829_v57 = vld [vmem:[%s828_s25] ss:$8 sm:$0x3]  ;;  %s837_s22 = scalar_lea.vmem %s10802_s2, %s836_s6 }
 0x211   :  { %s6770_s3 = sld [smem:[#allocation4 + $0x701]]  ;;  %s6771_s24 = sld [smem:[#allocation4 + $0x706]]  ;;  %v838_v58 = vld [vmem:[%s837_s22] ss:$8 sm:$0x3] }
 0x212   :  { %v839_v59 = vadd.f32 %v838_v58, %v829_v57  ;;  %s873_s23 = sshra.s32 %s6776_s13, 3  ;;  %s876_s0 = sand.u32 7, %s6776_s13 }
 0x213   :  { %s7473_s29 = sshll.u32 %s873_s23, 4  ;;  %s882_s7 = sshra.s32 %s6777_s15, 3 }
 0x214   :  { %841 = vst.msk [vmem:[#allocation2 + $0x35] ss:$8 sm:$0x3] %vm8337_vm0, %v839_v59  ;;  %s879_s25 = sadd.s32 %s7473_s29, %s876_s0  ;;  %s885_s12 = sand.u32 7, %s6777_s15 }
 0x215   :  { %s880_s11 = scalar_lea.vmem %s10801_s1, %s879_s25  ;;  %s7474_s16 = sshll.u32 %s882_s7, 4 }
 0x216   :  { %v881_v63 = vld [vmem:[%s880_s11] ss:$8 sm:$0x3]  ;;  %s888_s22 = sadd.s32 %s7474_s16, %s885_s12  ;;  %s10852_s15 = smov 64  }
 0x217   :  { %s847_s8 = sshra.s32 %s6770_s3, 3  ;;  %s850_s30 = sand.u32 7, %s6770_s3 }
 0x218   :  { %s7471_s9 = sshll.u32 %s847_s8, 4  ;;  %s856_s10 = sshra.s32 %s6771_s24, 3 }
 0x219   :  { %s853_s19 = sadd.s32 %s7471_s9, %s850_s30  ;;  %s859_s28 = sand.u32 7, %s6771_s24 }
 0x21a   :  { %s854_s4 = scalar_lea.vmem %s10801_s1, %s853_s19  ;;  %s7472_s18 = sshll.u32 %s856_s10, 4 }
 0x21b   :  { %v855_v60 = vld [vmem:[%s854_s4] ss:$8 sm:$0x3]  ;;  %s862_s20 = sadd.s32 %s7472_s18, %s859_s28  ;;  %s889_s13 = scalar_lea.vmem %s10802_s2, %s888_s22 }
 0x21c   :  { %s863_s26 = scalar_lea.vmem %s10802_s2, %s862_s20  ;;  %v890_v0 = vld [vmem:[%s889_s13] ss:$8 sm:$0x3]  ;;  %s6782_s30 = sld [smem:[#allocation4 + $0x2]] }
 0x21d   :  { %v864_v61 = vld [vmem:[%s863_s26] ss:$8 sm:$0x3]  ;;  %v891_v1 = vadd.f32 %v890_v0, %v881_v63  ;;  %s6783_s9 = sld [smem:[#allocation4 + $0x5]]  ;;  %s8796_s10 = sld [smem:[#allocation4 + $0x82]] }
 0x21e   :  { %v865_v62 = vadd.f32 %v864_v61, %v855_v60  ;;  %s8798_s19 = sld [smem:[#allocation4 + $0x85]]  ;;  %s8800_s28 = sld [smem:[#allocation4 + $0x102]] }
 0x21f   :  { %893 = vst.msk [vmem:[#allocation2 + $0x37] ss:$8 sm:$0x3] %vm8337_vm0, %v891_v1  ;;  %s8802_s14 = sld [smem:[#allocation4 + $0x105]]  ;;  %s8804_s21 = sld [smem:[#allocation4 + $0x182]] }
 0x220   :  { %867 = vst.msk [vmem:[#allocation2 + $0x36] ss:$8 sm:$0x3] %vm8337_vm0, %v865_v62  ;;  %s8806_s4 = sld [smem:[#allocation4 + $0x185]]  ;;  %s8808_s18 = sld [smem:[#allocation4 + $0x202]] }
 0x221   :  { %s8810_s20 = sld [smem:[#allocation4 + $0x205]]  ;;  %s8812_s23 = sld [smem:[#allocation4 + $0x282]] }
 0x222   :  { %s8814_s27 = sld [smem:[#allocation4 + $0x285]]  ;;  %s899_s17 = sshra.s32 %s6782_s30, 3 }
 0x223   :  { %s902_s26 = sand.u32 7, %s6782_s30  ;;  %s7475_s0 = sshll.u32 %s899_s17, 4 }
 0x224   :  { %s908_s29 = sshra.s32 %s6783_s9, 3  ;;  %s905_s7 = sadd.s32 %s7475_s0, %s902_s26 }
 0x225   :  { %s911_s25 = sand.u32 7, %s6783_s9  ;;  %s906_s3 = scalar_lea.vmem %s10801_s1, %s905_s7 }
 0x226   :  { %s7476_s11 = sshll.u32 %s908_s29, 4  ;;  %v907_v45 = vld [vmem:[%s906_s3] ss:$8 sm:$0x3]  ;;  %s925_s22 = sshra.s32 %s8796_s10, 3 }
 0x227   :  { %v3431_v7 = vld [vmem:[#allocation2 + $0x38] sm:$0xff]  ;;  %v3430_v20 = vld [vmem:[#allocation2 + $0x30] sm:$0xff]  ;;  %s914_s16 = sadd.s32 %s7476_s11, %s911_s25  ;;  %s928_s30 = sand.u32 7, %s8796_s10 }
 0x228   :  { %s915_s13 = scalar_lea.vmem %s10802_s2, %s914_s16  ;;  %s7477_s9 = sshll.u32 %s925_s22, 4 }
 0x229   :  { %v916_v46 = vld [vmem:[%s915_s13] ss:$8 sm:$0x3]  ;;  %s934_s17 = sshra.s32 %s8798_s19, 3  ;;  %s931_s26 = sadd.s32 %s7477_s9, %s928_s30 }
 0x22a   :  { %v917_v47 = vadd.f32 %v916_v46, %v907_v45  ;;  %s937_s0 = sand.u32 7, %s8798_s19  ;;  %s932_s25 = scalar_lea.vmem %s10801_s1, %s931_s26 }
 0x22b   :  { %s7478_s12 = sshll.u32 %s934_s17, 4  ;;  %v933_v48 = vld [vmem:[%s932_s25] ss:$8 sm:$0x3]  ;;  %s951_s10 = sshra.s32 %s8800_s28, 3 }
 0x22c   :  { %919 = vst.msk [vmem:[#allocation2 + $0x40] ss:$8 sm:$0x3] %vm8337_vm0, %v917_v47  ;;  %s940_s6 = sadd.s32 %s7478_s12, %s937_s0  ;;  %s954_s22 = sand.u32 7, %s8800_s28 }
 0x22d   :  { %s941_s16 = scalar_lea.vmem %s10802_s2, %s940_s6  ;;  %s7479_s19 = sshll.u32 %s951_s10, 4 }
 0x22e   :  { %v942_v49 = vld [vmem:[%s941_s16] ss:$8 sm:$0x3]  ;;  %s960_s24 = sshra.s32 %s8802_s14, 3  ;;  %s957_s8 = sadd.s32 %s7479_s19, %s954_s22 }
 0x22f   :  { %v943_v50 = vadd.f32 %v942_v49, %v933_v48  ;;  %s963_s13 = sand.u32 7, %s8802_s14  ;;  %s958_s17 = scalar_lea.vmem %s10801_s1, %s957_s8 }
 0x230   :  { %s7480_s26 = sshll.u32 %s960_s24, 4  ;;  %v959_v52 = vld [vmem:[%s958_s17] ss:$8 sm:$0x3]  ;;  %s977_s28 = sshra.s32 %s8804_s21, 3 }
 0x231   :  { %945 = vst.msk [vmem:[#allocation2 + $0x41] ss:$8 sm:$0x3] %vm8337_vm0, %v943_v50  ;;  %s966_s0 = sadd.s32 %s7480_s26, %s963_s13  ;;  %s980_s12 = sand.u32 7, %s8804_s21 }
 0x232   :  { %s967_s25 = scalar_lea.vmem %s10802_s2, %s966_s0  ;;  %s7481_s14 = sshll.u32 %s977_s28, 4 }
 0x233   :  { %v968_v53 = vld [vmem:[%s967_s25] ss:$8 sm:$0x3]  ;;  %s986_s6 = sshra.s32 %s8806_s4, 3  ;;  %s983_s10 = sadd.s32 %s7481_s14, %s980_s12 }
 0x234   :  { %v969_v55 = vadd.f32 %v968_v53, %v959_v52  ;;  %s989_s3 = sand.u32 7, %s8806_s4  ;;  %s984_s22 = scalar_lea.vmem %s10801_s1, %s983_s10 }
 0x235   :  { %s7482_s19 = sshll.u32 %s986_s6, 4  ;;  %v985_v56 = vld [vmem:[%s984_s22] ss:$8 sm:$0x3]  ;;  %s1003_s21 = sshra.s32 %s8808_s18, 3 }
 0x236   :  { %971 = vst.msk [vmem:[#allocation2 + $0x42] ss:$8 sm:$0x3] %vm8337_vm0, %v969_v55  ;;  %s992_s24 = sadd.s32 %s7482_s19, %s989_s3  ;;  %s1006_s9 = sand.u32 7, %s8808_s18 }
 0x237   :  { %s993_s30 = scalar_lea.vmem %s10802_s2, %s992_s24  ;;  %s7483_s4 = sshll.u32 %s1003_s21, 4 }
 0x238   :  { %v994_v57 = vld [vmem:[%s993_s30] ss:$8 sm:$0x3]  ;;  %s1012_s17 = sshra.s32 %s8810_s20, 3  ;;  %s1009_s26 = sadd.s32 %s7483_s4, %s1006_s9 }
 0x239   :  { %v995_v58 = vadd.f32 %v994_v57, %v985_v56  ;;  %s1015_s0 = sand.u32 7, %s8810_s20  ;;  %s1010_s7 = scalar_lea.vmem %s10801_s1, %s1009_s26 }
 0x23a   :  { %s7484_s25 = sshll.u32 %s1012_s17, 4  ;;  %v1011_v59 = vld [vmem:[%s1010_s7] ss:$8 sm:$0x3]  ;;  %s1029_s14 = sshra.s32 %s8812_s23, 3 }
 0x23b   :  { %997 = vst.msk [vmem:[#allocation2 + $0x43] ss:$8 sm:$0x3] %vm8337_vm0, %v995_v58  ;;  %s1018_s12 = sadd.s32 %s7484_s25, %s1015_s0  ;;  %s1032_s3 = sand.u32 7, %s8812_s23 }
 0x23c   :  { %s1019_s10 = scalar_lea.vmem %s10802_s2, %s1018_s12  ;;  %s7485_s11 = sshll.u32 %s1029_s14, 4 }
 0x23d   :  { %v1020_v60 = vld [vmem:[%s1019_s10] ss:$8 sm:$0x3]  ;;  %s1038_s16 = sshra.s32 %s8814_s27, 3  ;;  %s1035_s20 = sadd.s32 %s7485_s11, %s1032_s3 }
 0x23e   :  { %v1021_v61 = vadd.f32 %v1020_v60, %v1011_v59  ;;  %s1041_s22 = sand.u32 7, %s8814_s27  ;;  %s1036_s21 = scalar_lea.vmem %s10801_s1, %s1035_s20 }
 0x23f   :  { %s7486_s8 = sshll.u32 %s1038_s16, 4  ;;  %v1037_v62 = vld [vmem:[%s1036_s21] ss:$8 sm:$0x3]  ;;  %s6818_s30 = sld [smem:[#allocation4 + $0x302]] }
 0x240   :  { %1023 = vst.msk [vmem:[#allocation2 + $0x44] ss:$8 sm:$0x3] %vm8337_vm0, %v1021_v61  ;;  %s1044_s13 = sadd.s32 %s7486_s8, %s1041_s22  ;;  %s6819_s17 = sld [smem:[#allocation4 + $0x305]] }
 0x241   :  { %s1045_s23 = scalar_lea.vmem %s10802_s2, %s1044_s13  ;;  %s6824_s26 = sld [smem:[#allocation4 + $0x382]] }
 0x242   :  { %v1046_v63 = vld [vmem:[%s1045_s23] ss:$8 sm:$0x3]  ;;  %s6825_s27 = sld [smem:[#allocation4 + $0x385]]  ;;  %s8922_s18 = sld [smem:[#allocation4 + $0x582]] }
 0x243   :  { %v1047_v0 = vadd.f32 %v1046_v63, %v1037_v62  ;;  %s8920_s14 = sld [smem:[#allocation4 + $0x505]] }
 0x244   :  { %s8932_s16 = sld [smem:[#allocation4 + $0x685]] }
 0x245   :  { %1049 = vst.msk [vmem:[#allocation2 + $0x45] ss:$8 sm:$0x3] %vm8337_vm0, %v1047_v0  ;;  %s1055_s0 = sshra.s32 %s6818_s30, 3  ;;  %s1058_s28 = sand.u32 7, %s6818_s30 }
 0x246   :  { %s7487_s29 = sshll.u32 %s1055_s0, 4  ;;  %s1064_s7 = sshra.s32 %s6819_s17, 3 }
 0x247   :  { %s1061_s25 = sadd.s32 %s7487_s29, %s1058_s28  ;;  %s1067_s12 = sand.u32 7, %s6819_s17 }
 0x248   :  { %s1062_s6 = scalar_lea.vmem %s10801_s1, %s1061_s25  ;;  %s7488_s10 = sshll.u32 %s1064_s7, 4 }
 0x249   :  { %v1063_v1 = vld [vmem:[%s1062_s6] ss:$8 sm:$0x3]  ;;  %s1070_s3 = sadd.s32 %s7488_s10, %s1067_s12  ;;  %s1081_s11 = sshra.s32 %s6824_s26, 3 }
 0x24a   :  { %s1071_s22 = scalar_lea.vmem %s10802_s2, %s1070_s3  ;;  %s1084_s19 = sand.u32 7, %s6824_s26 }
 0x24b   :  { %s7489_s24 = sshll.u32 %s1081_s11, 4  ;;  %s1090_s21 = sshra.s32 %s6825_s27, 3 }
 0x24c   :  { %s1087_s8 = sadd.s32 %s7489_s24, %s1084_s19  ;;  %s1093_s13 = sand.u32 7, %s6825_s27 }
 0x24d   :  { %s1088_s4 = scalar_lea.vmem %s10801_s1, %s1087_s8  ;;  %s7490_s23 = sshll.u32 %s1090_s21, 4 }
 0x24e   :  { %s1096_s17 = sadd.s32 %s7490_s23, %s1093_s13  ;;  %s6830_s27 = sld [smem:[#allocation4 + $0x402]] }
 0x24f   :  { %s1097_s26 = scalar_lea.vmem %s10802_s2, %s1096_s17  ;;  %s6831_s29 = sld [smem:[#allocation4 + $0x405]] }
 0x250   :  { %s6836_s7 = sld [smem:[#allocation4 + $0x482]]  ;;  %s8916_s25 = sld [smem:[#allocation4 + $0x485]] }
 0x251   :  { %s8918_s12 = sld [smem:[#allocation4 + $0x502]]  ;;  %s8924_s6 = sld [smem:[#allocation4 + $0x585]] }
 0x252   :  { %s8926_s10 = sld [smem:[#allocation4 + $0x602]]  ;;  %s8928_s3 = sld [smem:[#allocation4 + $0x605]] }
 0x253   :  { %s8930_s11 = sld [smem:[#allocation4 + $0x682]]  ;;  %s1171_s0 = sand.u32 7, %s8920_s14 }
 0x254   :  { %s1107_s20 = sshra.s32 %s6830_s27, 3  ;;  %s1110_s19 = sand.u32 7, %s6830_s27 }
 0x255   :  { %s7491_s24 = sshll.u32 %s1107_s20, 4  ;;  %s1119_s8 = sand.u32 7, %s6831_s29 }
 0x256   :  { %s1113_s21 = sadd.s32 %s7491_s24, %s1110_s19  ;;  %s1133_s17 = sshra.s32 %s6836_s7, 3 }
 0x257   :  { %s1114_s9 = scalar_lea.vmem %s10801_s1, %s1113_s21  ;;  %s1136_s5 = sand.u32 7, %s6836_s7 }
 0x258   :  { %s7493_s27 = sshll.u32 %s1133_s17, 4  ;;  %s1142_s20 = sshra.s32 %s8916_s25, 3 }
 0x259   :  { %s1145_s19 = sand.u32 7, %s8916_s25  ;;  %s1159_s7 = sshra.s32 %s8918_s12, 3 }
 0x25a   :  { %s1168_s25 = sshra.s32 %s8920_s14, 3  ;;  %s1214_s28 = sand.u32 7, %s8926_s10 }
 0x25b   :  { %s1246_s30 = sshra.s32 %s8932_s16, 3 }
 0x26d   :  { %v3421_v37 = vpop.permute.xlu0 %3420 }
 0x26e   :  { %v3426_v38 = vmul.f32 %v7913_v36, %v3421_v37 }
 0x270   :  { %7361 = vmatmul.mubr.msk.f32.vlgmr.msra.gmra.mrb[0].mxu1 %vm3283_vm1, %v3426_v38 }
 0x271   :  { %v3423_v40 = vpop.permute.xlu1 %3422  ;;  %3508 = vmatprep.mubr.f32.mxu1 %v8163_v8  ;;  %7776 = vmatpush1.bf16.msra.mxu1 %v8259_v9 }
 0x272   :  { %v3427_v24 = vmul.f32 %v7915_v39, %v3423_v40  ;;  %7778 = vmatprep.subr.bf16.mxu1 %v8261_v10 }
 0x274   :  { %7362 = vmatmul.mubr.msk.f32.gmra.mrb[2].mxu1 %vm3283_vm1, %v3427_v24 }
 0x275   :  { %7780 = vmatpush1.bf16.msra.mxu1 %v8280_v15  ;;  %3804 = vmatprep.mubr.f32.mxu1 %v8163_v8 }
 0x276   :  { %7782 = vmatprep.subr.bf16.mxu1 %v8288_v16 }
 0x279   :  { %7784 = vmatpush1.bf16.msra.mxu1 %v8311_v21 }
 0x27a   :  { %7786 = vmatprep.subr.bf16.mxu1 %v8316_v23 }
 0x27d   :  { %7788 = vmatpush1.bf16.msra.mxu1 %v8334_v27 }
 0x27e   :  { %7806 = vmatprep.subr.bf16.mxu1 %v8244_v4 }
 0x343   :  { %v3504_v3 = vpop.f32.mrb[0].mxu1 }
 0x344   :  { %v3506_v5 = vpop.f32.mrb[1].mxu1  ;;  %v3515_v19 = vadd.f32 %v3504_v3, %v3428_v18 }
 0x345   :  { %v8778_v6 = vadd.f32 %v3506_v5, %v3429_v2  ;;  %v1072_v2 = vld [vmem:[%s1071_s22] ss:$8 sm:$0x3]  ;;  %s1116_s22 = sshra.s32 %s6831_s29, 3  ;;  %s1139_s29 = sadd.s32 %s7493_s27, %s1136_s5 }
 0x346   :  { %v7363_v25 = vmul.f32 -1.442695, %v3515_v19  ;;  %v1073_v3 = vadd.f32 %v1072_v2, %v1063_v1  ;;  %v1089_v5 = vld [vmem:[%s1088_s4] ss:$8 sm:$0x3]  ;;  %s7492_s4 = sshll.u32 %s1116_s22, 4  ;;  %s1140_s21 = scalar_lea.vmem %s10801_s1, %s1139_s29 }
 0x347   :  { %7916 = vtanh.f32 %v8778_v6  ;;  %v3510_v11 = vpop.f32.mrb[2].mxu1  ;;  %s1122_s23 = sadd.s32 %s7492_s4, %s1119_s8  ;;  %s7494_s8 = sshll.u32 %s1142_s20, 4 }
 0x348   :  { %v3512_v12 = vpop.f32.mrb[3].mxu1  ;;  %v3517_v26 = vadd.f32 %v3510_v11, %v3430_v20  ;;  %1075 = vst.msk [vmem:[#allocation2 + $0x46] ss:$8 sm:$0x3] %vm8337_vm0, %v1073_v3  ;;  %s1148_s13 = sadd.s32 %s7494_s8, %s1145_s19  ;;  %s7495_s5 = sshll.u32 %s1159_s7, 4 }
 0x349   :  { %v8781_v13 = vadd.f32 %v3512_v12, %v3431_v7  ;;  %v1098_v7 = vld [vmem:[%s1097_s26] ss:$8 sm:$0x3]  ;;  %v7364_v12 = vmul.f32 -1.442695, %v8778_v6  ;;  %s1123_s26 = scalar_lea.vmem %s10802_s2, %s1122_s23  ;;  %s1149_s4 = scalar_lea.vmem %s10802_s2, %s1148_s13 }
 0x34a   :  { %v7365_v28 = vmul.f32 -1.442695, %v3517_v26  ;;  %v1099_v11 = vadd.f32 %v1098_v7, %v1089_v5  ;;  %s1162_s23 = sand.u32 7, %s8918_s12  ;;  %s7496_s20 = sshll.u32 %s1168_s25, 4 }
 0x34b   :  { %7918 = vtanh.f32 %v8781_v13  ;;  %s1165_s17 = sadd.s32 %s7495_s5, %s1162_s23  ;;  %s1174_s29 = sadd.s32 %s7496_s20, %s1171_s0 }
 0x34c   :  { %7920 = vpow2.f32 %v7363_v25  ;;  %1101 = vst.msk [vmem:[#allocation2 + $0x47] ss:$8 sm:$0x3] %vm8337_vm0, %v1099_v11  ;;  %s1166_s27 = scalar_lea.vmem %s10801_s1, %s1165_s17  ;;  %s1185_s12 = sshra.s32 %s8922_s18, 3 }
 0x34d   :  { %7922 = vpow2.f32 %v7365_v28  ;;  %s1175_s22 = scalar_lea.vmem %s10802_s2, %s1174_s29  ;;  %s7497_s14 = sshll.u32 %s1185_s12, 4 }
 0x34e   :  { %s1194_s8 = sshra.s32 %s8924_s6, 3  ;;  %s1197_s7 = sand.u32 7, %s8924_s6 }
 0x34f   :  { %s7498_s23 = sshll.u32 %s1194_s8, 4  ;;  %s1223_s20 = sand.u32 7, %s8928_s3 }
 0x350   :  { %s1200_s5 = sadd.s32 %s7498_s23, %s1197_s7  ;;  %s6866_s17 = sld [smem:[#allocation4 + $0x702]] }
 0x351   :  { %v7917_v14 = vpop.eup %7916  ;;  %s1201_s0 = scalar_lea.vmem %s10802_s2, %s1200_s5 }
 0x352   :  { %3549 = vrot.lane.b32.xlu0 %v7917_v14, %s10852_s15  ;;  %v7366_v14 = vmul.f32 -1.442695, %v8781_v13  ;;  %v1115_v13 = vld [vmem:[%s1114_s9] ss:$8 sm:$0x3]  ;;  %s1249_s9 = sand.u32 7, %s8932_s16 }
 0x353   :  { %s6873_s16 = sld [smem:[#allocation4 + $0x785]]  ;;  %v3580_v56 = vld [vmem:[#allocation2 + $0x48] sm:$0xff]  ;;  %v3579_v2 = vld [vmem:[#allocation2 + $0x40] sm:$0xff] }
 0x355   :  { %v7919_v17 = vpop.eup %7918 }
 0x356   :  { %3551 = vrot.lane.b32.xlu1 %v7919_v17, %s10852_s15  ;;  %v7921_v31 = vpop.eup %7920 }
 0x357   :  { %v3531_v32 = vadd.f32 1.0, %v7921_v31  ;;  %v7923_v33 = vpop.eup %7922 }
 0x358   :  { %v3533_v34 = vadd.f32 1.0, %v7923_v33  ;;  %v1124_v33 = vld [vmem:[%s1123_s26] ss:$8 sm:$0x3]  ;;  %s1220_s26 = sshra.s32 %s8928_s3, 3 }
 0x359   :  { %7924 = vrcp.f32 %v3531_v32  ;;  %s7500_s24 = sshll.u32 %s1220_s26, 4  ;;  %s6872_s26 = sld [smem:[#allocation4 + $0x782]] }
 0x35a   :  { %7926 = vrcp.f32 %v3533_v34  ;;  %v1125_v34 = vadd.f32 %v1124_v33, %v1115_v13  ;;  %s1298_s23 = sshra.s32 %s6873_s16, 3 }
 0x35c   :  { %1127 = vst.msk [vmem:[#allocation2 + $0x50] ss:$8 sm:$0x3] %vm8337_vm0, %v1125_v34 }
 0x363   :  { %v7925_v35 = vpop.eup %7924 }
 0x364   :  { %v7927_v38 = vpop.eup %7926  ;;  %v3545_v24 = vmul.f32 %v7925_v35, %v8552_v51 }
 0x365   :  { %v3546_v42 = vmul.f32 %v7927_v38, %v8555_v54 }
 0x3c4   :  { %v3550_v36 = vpop.permute.xlu0 %3549 }
 0x3c5   :  { %v3555_v37 = vmul.f32 %v7925_v35, %v3550_v36  ;;  %v1141_v35 = vld [vmem:[%s1140_s21] ss:$8 sm:$0x3]  ;;  %s1188_s21 = sand.u32 7, %s8922_s18  ;;  %s1211_s18 = sshra.s32 %s8926_s10, 3 }
 0x3c6   :  { %v1150_v36 = vld [vmem:[%s1149_s4] ss:$8 sm:$0x3]  ;;  %s1191_s13 = sadd.s32 %s7497_s14, %s1188_s21  ;;  %s7499_s6 = sshll.u32 %s1211_s18, 4 }
 0x3c7   :  { %3559 = vrot.lane.b32.xlu0 %v3555_v37, %s10852_s15  ;;  %v1151_v37 = vadd.f32 %v1150_v36, %v1141_v35  ;;  %s1192_s4 = scalar_lea.vmem %s10801_s1, %s1191_s13  ;;  %s1237_s21 = sshra.s32 %s8930_s11, 3 }
 0x3c8   :  { %v3552_v39 = vpop.permute.xlu1 %3551  ;;  %s1240_s13 = sand.u32 7, %s8930_s11  ;;  %s7501_s7 = sshll.u32 %s1237_s21, 4 }
 0x3c9   :  { %v3556_v40 = vmul.f32 %v7927_v38, %v3552_v39  ;;  %1153 = vst.msk [vmem:[#allocation2 + $0x51] ss:$8 sm:$0x3] %vm8337_vm0, %v1151_v37  ;;  %v1167_v38 = vld [vmem:[%s1166_s27] ss:$8 sm:$0x3]  ;;  %s1217_s27 = sadd.s32 %s7499_s6, %s1214_s28  ;;  %s1243_s3 = sadd.s32 %s7501_s7, %s1240_s13 }
 0x3ca   :  { %v1176_v39 = vld [vmem:[%s1175_s22] ss:$8 sm:$0x3]  ;;  %s1218_s19 = scalar_lea.vmem %s10801_s1, %s1217_s27  ;;  %s1226_s22 = sadd.s32 %s7500_s24, %s1223_s20 }
 0x3cb   :  { %3561 = vrot.lane.b32.xlu1 %v3556_v40, %s10852_s15  ;;  %v1177_v40 = vadd.f32 %v1176_v39, %v1167_v38  ;;  %s1227_s8 = scalar_lea.vmem %s10802_s2, %s1226_s22  ;;  %s1244_s5 = scalar_lea.vmem %s10801_s1, %s1243_s3 }
 0x3cc   :  { %s7502_s18 = sshll.u32 %s1246_s30, 4  ;;  %v1245_v45 = vld [vmem:[%s1244_s5] ss:$8 sm:$0x3]  ;;  %s6867_s6 = sld [smem:[#allocation4 + $0x705]] }
 0x3cd   :  { %1179 = vst.msk [vmem:[#allocation2 + $0x52] ss:$8 sm:$0x3] %vm8337_vm0, %v1177_v40  ;;  %s1252_s25 = sadd.s32 %s7502_s18, %s1249_s9  ;;  %s1263_s27 = sshra.s32 %s6866_s17, 3 }
 0x3ce   :  { %s1253_s11 = scalar_lea.vmem %s10802_s2, %s1252_s25  ;;  %s1266_s20 = sand.u32 7, %s6866_s17 }
 0x3cf   :  { %v1254_v46 = vld [vmem:[%s1253_s11] ss:$8 sm:$0x3]  ;;  %s7503_s29 = sshll.u32 %s1263_s27, 4  ;;  %s1289_s13 = sshra.s32 %s6872_s26, 3 }
 0x3d0   :  { %v1255_v47 = vadd.f32 %v1254_v46, %v1245_v45  ;;  %s1292_s9 = sand.u32 7, %s6872_s26  ;;  %s1301_s18 = sand.u32 7, %s6873_s16 }
 0x3d1   :  { %s7506_s28 = sshll.u32 %s1298_s23, 4  ;;  %s6878_s16 = sld [smem:[#allocation4 + $0x3]] }
 0x3d2   :  { %1257 = vst.msk [vmem:[#allocation2 + $0x55] ss:$8 sm:$0x3] %vm8337_vm0, %v1255_v47  ;;  %s1272_s12 = sshra.s32 %s6867_s6, 3  ;;  %s1275_s24 = sand.u32 7, %s6867_s6 }
 0x3d3   :  { %s7504_s14 = sshll.u32 %s1272_s12, 4  ;;  %s1304_s11 = sadd.s32 %s7506_s28, %s1301_s18 }
 0x3d4   :  { %s1305_s26 = scalar_lea.vmem %s10802_s2, %s1304_s11  ;;  %s9036_s12 = sld [smem:[#allocation4 + $0x84]] }
 0x3d5   :  { %v1306_v53 = vld [vmem:[%s1305_s26] ss:$8 sm:$0x3]  ;;  %s9042_s22 = sld [smem:[#allocation4 + $0x183]]  ;;  %s9044_s21 = sld [smem:[#allocation4 + $0x184]] }
 0x3d7   :  { %s1315_s7 = sshra.s32 %s6878_s16, 3  ;;  %s1318_s30 = sand.u32 7, %s6878_s16 }
 0x439   :  { %v3560_v30 = vpop.permute.xlu0 %3559 }
 0x43a   :  { %v8789_v41 = vadd.f32 %v3560_v30, %v3545_v24  ;;  %v1193_v24 = vld [vmem:[%s1192_s4] ss:$8 sm:$0x3]  ;;  %s7505_s4 = sshll.u32 %s1289_s13, 4  ;;  %s9052_s13 = sld [smem:[#allocation4 + $0x284]] }
 0x43b   :  { %v1202_v30 = vld [vmem:[%s1201_s0] ss:$8 sm:$0x3]  ;;  %s1295_s5 = sadd.s32 %s7505_s4, %s1292_s9 }
 0x43c   :  { %7928 = vtanh.f32 %v8789_v41  ;;  %s1296_s0 = scalar_lea.vmem %s10801_s1, %s1295_s5 }
 0x43d   :  { %v3562_v43 = vpop.permute.xlu1 %3561  ;;  %v1297_v52 = vld [vmem:[%s1296_s0] ss:$8 sm:$0x3] }
 0x43e   :  { %v8793_v44 = vadd.f32 %v3562_v43, %v3546_v42  ;;  %v1203_v42 = vadd.f32 %v1202_v30, %v1193_v24  ;;  %v1219_v43 = vld [vmem:[%s1218_s19] ss:$8 sm:$0x3]  ;;  %s1269_s19 = sadd.s32 %s7503_s29, %s1266_s20  ;;  %v1307_v55 = vadd.f32 %v1306_v53, %v1297_v52  ;;  %s6879_s20 = sld [smem:[#allocation4 + $0x4]] }
 0x43f   :  { %s1270_s10 = scalar_lea.vmem %s10801_s1, %s1269_s19  ;;  %s9034_s29 = sld [smem:[#allocation4 + $0x83]] }
 0x440   :  { %7930 = vtanh.f32 %v8793_v44  ;;  %1205 = vst.msk [vmem:[#allocation2 + $0x53] ss:$8 sm:$0x3] %vm8337_vm0, %v1203_v42  ;;  %v1271_v48 = vld [vmem:[%s1270_s10] ss:$8 sm:$0x3] }
 0x441   :  { %7932 = vpow2.f32 %v7364_v12  ;;  %1309 = vst.msk [vmem:[#allocation2 + $0x57] ss:$8 sm:$0x3] %vm8337_vm0, %v1307_v55  ;;  %s9038_s19 = sld [smem:[#allocation4 + $0x103]] }
 0x442   :  { %7934 = vpow2.f32 %v7366_v14  ;;  %s9046_s10 = sld [smem:[#allocation4 + $0x203]] }
 0x444   :  { %s1324_s9 = sshra.s32 %s6879_s20, 3  ;;  %s1327_s23 = sand.u32 7, %s6879_s20 }
 0x445   :  { %s7508_s17 = sshll.u32 %s1324_s9, 4  ;;  %s1341_s28 = sshra.s32 %s9034_s29, 3 }
 0x446   :  { %v7929_v51 = vpop.eup %7928  ;;  %s9061_s0 = sadd.s32 %s7508_s17, %s1327_s23  ;;  %s1344_s26 = sand.u32 7, %s9034_s29 }
 0x447   :  { %3571 = vrot.lane.b32.xlu0 %v7929_v51, %s10852_s15  ;;  %v1228_v51 = vld [vmem:[%s1227_s8] ss:$8 sm:$0x3]  ;;  %s1278_s8 = sadd.s32 %s7504_s14, %s1275_s24  ;;  %s9040_s24 = sld [smem:[#allocation4 + $0x104]] }
 0x448   :  { %s1279_s3 = scalar_lea.vmem %s10802_s2, %s1278_s8  ;;  %s9048_s14 = sld [smem:[#allocation4 + $0x204]] }
 0x449   :  { %v1280_v49 = vld [vmem:[%s1279_s3] ss:$8 sm:$0x3]  ;;  %s9050_s8 = sld [smem:[#allocation4 + $0x283]]  ;;  %s7507_s3 = sshll.u32 %s1315_s7, 4 }
 0x44a   :  { %v7931_v54 = vpop.eup %7930  ;;  %v1281_v50 = vadd.f32 %v1280_v49, %v1271_v48  ;;  %s9055_s4 = sadd.s32 %s7507_s3, %s1318_s30  ;;  %s1331_s27 = scalar_lea.vmem %s10802_s2, %s9061_s0 }
 0x44b   :  { %3573 = vrot.lane.b32.xlu1 %v7931_v54, %s10852_s15  ;;  %v7933_v17 = vpop.eup %7932  ;;  %v1229_v54 = vadd.f32 %v1228_v51, %v1219_v43  ;;  %s1322_s25 = scalar_lea.vmem %s10801_s1, %s9055_s4  ;;  %v1332_v38 = vld [vmem:[%s1331_s27] ss:$8 sm:$0x3]  ;;  %s7509_s16 = sshll.u32 %s1341_s28, 4 }
 0x44c   :  { %v3532_v18 = vadd.f32 1.0, %v7933_v17  ;;  %v7935_v19 = vpop.eup %7934  ;;  %1283 = vst.msk [vmem:[#allocation2 + $0x56] ss:$8 sm:$0x3] %vm8337_vm0, %v1281_v50  ;;  %s1350_s20 = sshra.s32 %s9036_s12, 3  ;;  %s9071_s7 = sadd.s32 %s7509_s16, %s1344_s26 }
 0x44d   :  { %v3534_v20 = vadd.f32 1.0, %v7935_v19  ;;  %1231 = vst.msk [vmem:[#allocation2 + $0x54] ss:$8 sm:$0x3] %vm8337_vm0, %v1229_v54  ;;  %10853 = sst [smem:[#allocation7_spill]] %s9071_s7  ;;  %s1353_s30 = sand.u32 7, %s9036_s12 }
 0x44e   :  { %7936 = vrcp.f32 %v3532_v18  ;;  %v1323_v37 = vld [vmem:[%s1322_s25] ss:$8 sm:$0x3]  ;;  %s1348_s23 = scalar_lea.vmem %s10801_s1, %s9071_s7  ;;  %s7510_s5 = sshll.u32 %s1350_s20, 4 }
 0x44f   :  { %7938 = vrcp.f32 %v3534_v20  ;;  %v1333_v39 = vadd.f32 %v1332_v38, %v1323_v37  ;;  %v1349_v40 = vld [vmem:[%s1348_s23] ss:$8 sm:$0x3]  ;;  %s9080_s29 = sadd.s32 %s7510_s5, %s1353_s30  ;;  %s1367_s18 = sshra.s32 %s9038_s19, 3 }
 0x450   :  { %10854 = sst [smem:[#allocation8_spill]] %s9080_s29  ;;  %s1357_s28 = scalar_lea.vmem %s10802_s2, %s9080_s29 }
 0x451   :  { %1335 = vst.msk [vmem:[#allocation2 + $0x60] ss:$8 sm:$0x3] %vm8337_vm0, %v1333_v39  ;;  %s1370_s12 = sand.u32 7, %s9038_s19  ;;  %s7511_s11 = sshll.u32 %s1367_s18, 4 }
 0x452   :  { %v1358_v24 = vld [vmem:[%s1357_s28] ss:$8 sm:$0x3]  ;;  %s1376_s6 = sshra.s32 %s9040_s24, 3  ;;  %s9089_s27 = sadd.s32 %s7511_s11, %s1370_s12 }
 0x453   :  { %v1359_v30 = vadd.f32 %v1358_v24, %v1349_v40  ;;  %10855 = sst [smem:[#allocation9_spill]] %s9089_s27  ;;  %s1379_s26 = sand.u32 7, %s9040_s24 }
 0x454   :  { %v3582_v60 = vld [vmem:[#allocation2 + $0x58] sm:$0xff]  ;;  %v3581_v5 = vld [vmem:[#allocation2 + $0x50] sm:$0xff]  ;;  %s1374_s30 = scalar_lea.vmem %s10801_s1, %s9089_s27  ;;  %s7512_s3 = sshll.u32 %s1376_s6, 4 }
 0x455   :  { %1361 = vst.msk [vmem:[#allocation2 + $0x61] ss:$8 sm:$0x3] %vm8337_vm0, %v1359_v30  ;;  %v1375_v42 = vld [vmem:[%s1374_s30] ss:$8 sm:$0x3]  ;;  %s9098_s19 = sadd.s32 %s7512_s3, %s1379_s26 }
 0x456   :  { %10856 = sst [smem:[#allocation10_spill]] %s9098_s19  ;;  %s1393_s9 = sshra.s32 %s9042_s22, 3 }
 0x457   :  { %s1383_s18 = scalar_lea.vmem %s10802_s2, %s9098_s19  ;;  %s1396_s24 = sand.u32 7, %s9042_s22 }
 0x458   :  { %v7937_v25 = vpop.eup %7936  ;;  %v1384_v43 = vld [vmem:[%s1383_s18] ss:$8 sm:$0x3]  ;;  %s7513_s25 = sshll.u32 %s1393_s9, 4  ;;  %s1402_s17 = sshra.s32 %s9044_s21, 3 }
 0x459   :  { %v7939_v31 = vpop.eup %7938  ;;  %v1385_v51 = vadd.f32 %v1384_v43, %v1375_v42  ;;  %s9107_s28 = sadd.s32 %s7513_s25, %s1396_s24  ;;  %s1405_s12 = sand.u32 7, %s9044_s21 }
 0x45a   :  { %10857 = sst [smem:[#allocation11_spill]] %s9107_s28  ;;  %s1400_s26 = scalar_lea.vmem %s10801_s1, %s9107_s28 }
 0x45b   :  { %s7514_s16 = sshll.u32 %s1402_s17, 4  ;;  %1387 = vst.msk [vmem:[#allocation2 + $0x62] ss:$8 sm:$0x3] %vm8337_vm0, %v1385_v51  ;;  %s1419_s20 = sshra.s32 %s9046_s10, 3 }
 0x45c   :  { %v1401_v54 = vld [vmem:[%s1400_s26] ss:$8 sm:$0x3]  ;;  %s9116_s22 = sadd.s32 %s7514_s16, %s1405_s12  ;;  %s1422_s21 = sand.u32 7, %s9046_s10 }
 0x45d   :  { %10858 = sst [smem:[#allocation12_spill]] %s9116_s22  ;;  %s1409_s9 = scalar_lea.vmem %s10802_s2, %s9116_s22 }
 0x45e   :  { %v1410_v45 = vld [vmem:[%s1409_s9] ss:$8 sm:$0x3]  ;;  %s7515_s23 = sshll.u32 %s1419_s20, 4  ;;  %s1428_s5 = sshra.s32 %s9048_s14, 3 }
 0x45f   :  { %v1411_v46 = vadd.f32 %v1410_v45, %v1401_v54  ;;  %s9125_s18 = sadd.s32 %s7515_s23, %s1422_s21  ;;  %s1431_s24 = sand.u32 7, %s9048_s14 }
 0x460   :  { %10859 = sst [smem:[#allocation13_spill]] %s9125_s18  ;;  %s1426_s12 = scalar_lea.vmem %s10801_s1, %s9125_s18 }
 0x461   :  { %s7516_s11 = sshll.u32 %s1428_s5, 4  ;;  %1413 = vst.msk [vmem:[#allocation2 + $0x63] ss:$8 sm:$0x3] %vm8337_vm0, %v1411_v46  ;;  %s1445_s6 = sshra.s32 %s9050_s8, 3 }
 0x462   :  { %v1427_v47 = vld [vmem:[%s1426_s12] ss:$8 sm:$0x3]  ;;  %s9134_s10 = sadd.s32 %s7516_s11, %s1431_s24  ;;  %s1448_s30 = sand.u32 7, %s9050_s8 }
 0x463   :  { %10860 = sst [smem:[#allocation14_spill]] %s9134_s10  ;;  %s1435_s20 = scalar_lea.vmem %s10802_s2, %s9134_s10 }
 0x464   :  { %v1436_v48 = vld [vmem:[%s1435_s20] ss:$8 sm:$0x3]  ;;  %s7517_s14 = sshll.u32 %s1445_s6, 4  ;;  %s1454_s3 = sshra.s32 %s9052_s13, 3 }
 0x465   :  { %v1437_v49 = vadd.f32 %v1436_v48, %v1427_v47  ;;  %s9143_s9 = sadd.s32 %s7517_s14, %s1448_s30  ;;  %s1457_s21 = sand.u32 7, %s9052_s13 }
 0x466   :  { %10861 = sst [smem:[#allocation15_spill]] %s9143_s9  ;;  %s1452_s24 = scalar_lea.vmem %s10801_s1, %s9143_s9 }
 0x467   :  { %s7518_s25 = sshll.u32 %s1454_s3, 4  ;;  %1439 = vst.msk [vmem:[#allocation2 + $0x64] ss:$8 sm:$0x3] %vm8337_vm0, %v1437_v49  ;;  %s6914_s8 = sld [smem:[#allocation4 + $0x303]] }
 0x468   :  { %v1453_v50 = vld [vmem:[%s1452_s24] ss:$8 sm:$0x3]  ;;  %s9152_s17 = sadd.s32 %s7518_s25, %s1457_s21  ;;  %s6915_s26 = sld [smem:[#allocation4 + $0x304]] }
 0x469   :  { %10862 = sst [smem:[#allocation16_spill]] %s9152_s17  ;;  %s1461_s6 = scalar_lea.vmem %s10802_s2, %s9152_s17 }
 0x46a   :  { %v1462_v52 = vld [vmem:[%s1461_s6] ss:$8 sm:$0x3]  ;;  %s6920_s13 = sld [smem:[#allocation4 + $0x383]]  ;;  %s6921_s16 = sld [smem:[#allocation4 + $0x384]] }
 0x46b   :  { %v1463_v53 = vadd.f32 %v1462_v52, %v1453_v50  ;;  %s9210_s24 = sld [smem:[#allocation4 + $0x584]] }
 0x46c   :  { %s9218_s17 = sld [smem:[#allocation4 + $0x684]] }
 0x46d   :  { %1465 = vst.msk [vmem:[#allocation2 + $0x65] ss:$8 sm:$0x3] %vm8337_vm0, %v1463_v53  ;;  %s1471_s20 = sshra.s32 %s6914_s8, 3  ;;  %s1474_s30 = sand.u32 7, %s6914_s8 }
 0x46e   :  { %s7519_s14 = sshll.u32 %s1471_s20, 4  ;;  %s1480_s3 = sshra.s32 %s6915_s26, 3 }
 0x46f   :  { %s9160_s21 = sadd.s32 %s7519_s14, %s1474_s30  ;;  %s1483_s23 = sand.u32 7, %s6915_s26 }
 0x470   :  { %10863 = sst [smem:[#allocation17_spill]] %s9160_s21  ;;  %s1478_s25 = scalar_lea.vmem %s10801_s1, %s9160_s21 }
 0x471   :  { %s7520_s12 = sshll.u32 %s1480_s3, 4  ;;  %v1479_v55 = vld [vmem:[%s1478_s25] ss:$8 sm:$0x3]  ;;  %s1497_s6 = sshra.s32 %s6920_s13, 3 }
 0x472   :  { %s9166_s11 = sadd.s32 %s7520_s12, %s1483_s23  ;;  %s1500_s20 = sand.u32 7, %s6920_s13 }
 0x473   :  { %10864 = sst [smem:[#allocation18_spill]] %s9166_s11  ;;  %s1487_s8 = scalar_lea.vmem %s10802_s2, %s9166_s11 }
 0x474   :  { %s7521_s30 = sshll.u32 %s1497_s6, 4  ;;  %s1506_s14 = sshra.s32 %s6921_s16, 3 }
 0x475   :  { %s9172_s26 = sadd.s32 %s7521_s30, %s1500_s20  ;;  %s1509_s5 = sand.u32 7, %s6921_s16 }
 0x476   :  { %10865 = sst [smem:[#allocation19_spill]] %s9172_s26  ;;  %s1504_s23 = scalar_lea.vmem %s10801_s1, %s9172_s26 }
 0x477   :  { %s7522_s25 = sshll.u32 %s1506_s14, 4  ;;  %s6926_s16 = sld [smem:[#allocation4 + $0x403]] }
 0x478   :  { %s9180_s9 = sadd.s32 %s7522_s25, %s1509_s5  ;;  %s6927_s6 = sld [smem:[#allocation4 + $0x404]] }
 0x479   :  { %10866 = sst [smem:[#allocation20_spill]] %s9180_s9  ;;  %s1513_s12 = scalar_lea.vmem %s10802_s2, %s9180_s9 }
 0x47a   :  { %s9202_s20 = sld [smem:[#allocation4 + $0x484]]  ;;  %s9204_s30 = sld [smem:[#allocation4 + $0x503]] }
 0x47b   :  { %s9206_s14 = sld [smem:[#allocation4 + $0x504]]  ;;  %s9208_s5 = sld [smem:[#allocation4 + $0x583]] }
 0x47c   :  { %s9212_s3 = sld [smem:[#allocation4 + $0x603]] }
 0x47d   :  { %s9216_s25 = sld [smem:[#allocation4 + $0x683]]  ;;  %s1523_s13 = sshra.s32 %s6926_s16, 3 }
 0x47e   :  { %s1526_s26 = sand.u32 7, %s6926_s16  ;;  %s7523_s9 = sshll.u32 %s1523_s13, 4 }
 0x47f   :  { %s9220_s21 = sadd.s32 %s7523_s9, %s1526_s26  ;;  %s1535_s11 = sand.u32 7, %s6927_s6 }
 0x480   :  { %s1530_s28 = scalar_lea.vmem %s10801_s1, %s9220_s21  ;;  %s1575_s29 = sshra.s32 %s9204_s30, 3 }
 0x4b9   :  { %v3572_v26 = vpop.permute.xlu0 %3571 }
 0x4ba   :  { %v3577_v28 = vmul.f32 %v7937_v25, %v3572_v26 }
 0x4bc   :  { %7367 = vmatmul.mubr.msk.f32.vlgmr.msra.gmra.mrb[4].mxu0 %vm3283_vm1, %v3577_v28 }
 0x4bd   :  { %v3574_v32 = vpop.permute.xlu1 %3573  ;;  %3659 = vmatprep.mubr.f32.mxu0 %v8163_v8  ;;  %7792 = vmatpush1.bf16.msra.mxu0 %v8259_v9 }
 0x4be   :  { %v3578_v6 = vmul.f32 %v7939_v31, %v3574_v32  ;;  %7794 = vmatprep.subr.bf16.mxu0 %v8261_v10 }
 0x4c0   :  { %7368 = vmatmul.mubr.msk.f32.gmra.mrb[6].mxu0 %vm3283_vm1, %v3578_v6 }
 0x4c1   :  { %7796 = vmatpush1.bf16.msra.mxu0 %v8280_v15  ;;  %3955 = vmatprep.mubr.f32.mxu0 %v8163_v8 }
 0x4c2   :  { %7798 = vmatprep.subr.bf16.mxu0 %v8288_v16 }
 0x4c5   :  { %7800 = vmatpush1.bf16.msra.mxu0 %v8311_v21 }
 0x4c6   :  { %7802 = vmatprep.subr.bf16.mxu0 %v8316_v23 }
 0x4c9   :  { %7804 = vmatpush1.bf16.msra.mxu0 %v8334_v27 }
 0x4ca   :  { %7822 = vmatprep.subr.bf16.mxu0 %v8244_v4 }
 0x58f   :  { %v3655_v57 = vpop.f32.mrb[4].mxu0 }
 0x590   :  { %v3657_v58 = vpop.f32.mrb[5].mxu0  ;;  %v3666_v3 = vadd.f32 %v3655_v57, %v3579_v2 }
 0x591   :  { %v9016_v59 = vadd.f32 %v3657_v58, %v3580_v56  ;;  %v1488_v56 = vld [vmem:[%s1487_s8] ss:$8 sm:$0x3]  ;;  %s6932_s8 = sld [smem:[#allocation4 + $0x483]] }
 0x592   :  { %v7369_v7 = vmul.f32 -1.442695, %v3666_v3  ;;  %v1489_v57 = vadd.f32 %v1488_v56, %v1479_v55  ;;  %v1505_v58 = vld [vmem:[%s1504_s23] ss:$8 sm:$0x3]  ;;  %s9214_s23 = sld [smem:[#allocation4 + $0x604]] }
 0x593   :  { %7940 = vtanh.f32 %v9016_v59  ;;  %v3661_v61 = vpop.f32.mrb[6].mxu0 }
 0x594   :  { %v3663_v62 = vpop.f32.mrb[7].mxu0  ;;  %v3668_v11 = vadd.f32 %v3661_v61, %v3581_v5  ;;  %1491 = vst.msk [vmem:[#allocation2 + $0x66] ss:$8 sm:$0x3] %vm8337_vm0, %v1489_v57 }
 0x595   :  { %v9019_v63 = vadd.f32 %v3663_v62, %v3582_v60  ;;  %v1514_v60 = vld [vmem:[%s1513_s12] ss:$8 sm:$0x3]  ;;  %v7370_v62 = vmul.f32 -1.442695, %v9016_v59  ;;  %s1532_s12 = sshra.s32 %s6927_s6, 3 }
 0x596   :  { %v7371_v12 = vmul.f32 -1.442695, %v3668_v11  ;;  %v1515_v61 = vadd.f32 %v1514_v60, %v1505_v58  ;;  %s7524_s22 = sshll.u32 %s1532_s12, 4  ;;  %s1558_s6 = sshra.s32 %s9202_s20, 3 }
 0x597   :  { %7942 = vtanh.f32 %v9019_v63  ;;  %s9226_s27 = sadd.s32 %s7524_s22, %s1535_s11  ;;  %s1549_s19 = sshra.s32 %s6932_s8, 3 }
 0x598   :  { %7944 = vpow2.f32 %v7369_v7  ;;  %1517 = vst.msk [vmem:[#allocation2 + $0x67] ss:$8 sm:$0x3] %vm8337_vm0, %v1515_v61  ;;  %s1539_s16 = scalar_lea.vmem %s10802_s2, %s9226_s27  ;;  %s1552_s26 = sand.u32 7, %s6932_s8 }
 0x599   :  { %7946 = vpow2.f32 %v7371_v12  ;;  %s7525_s9 = sshll.u32 %s1549_s19, 4  ;;  %s7526_s13 = sshll.u32 %s1558_s6, 4 }
 0x59a   :  { %s9233_s18 = sadd.s32 %s7525_s9, %s1552_s26  ;;  %s1584_s26 = sshra.s32 %s9206_s14, 3 }
 0x59b   :  { %s1556_s11 = scalar_lea.vmem %s10801_s1, %s9233_s18  ;;  %s1587_s6 = sand.u32 7, %s9206_s14 }
 0x59c   :  { %s1604_s14 = sand.u32 7, %s9208_s5 }
 0x59d   :  { %v7941_v0 = vpop.eup %7940 }
 0x59e   :  { %3700 = vrot.lane.b32.xlu0 %v7941_v0, %s10852_s15  ;;  %v7372_v0 = vmul.f32 -1.442695, %v9019_v63  ;;  %v1540_v63 = vld [vmem:[%s1539_s16] ss:$8 sm:$0x3]  ;;  %s7527_s16 = sshll.u32 %s1575_s29, 4 }
 0x59f   :  { %v3731_v51 = vld [vmem:[#allocation2 + $0x68] sm:$0xff]  ;;  %v3730_v55 = vld [vmem:[#allocation2 + $0x60] sm:$0xff] }
 0x5a1   :  { %v7943_v1 = vpop.eup %7942 }
 0x5a2   :  { %3702 = vrot.lane.b32.xlu1 %v7943_v1, %s10852_s15  ;;  %v7945_v14 = vpop.eup %7944 }
 0x5a3   :  { %v3682_v17 = vadd.f32 1.0, %v7945_v14  ;;  %v7947_v18 = vpop.eup %7946 }
 0x5a4   :  { %v3684_v19 = vadd.f32 1.0, %v7947_v18 }
 0x5a5   :  { %7948 = vrcp.f32 %v3682_v17 }
 0x5a6   :  { %7950 = vrcp.f32 %v3684_v19  ;;  %v1557_v19 = vld [vmem:[%s1556_s11] ss:$8 sm:$0x3]  ;;  %s7528_s11 = sshll.u32 %s1584_s26, 4  ;;  %s1613_s26 = sand.u32 7, %s9210_s24 }
 0x5af   :  { %v7949_v20 = vpop.eup %7948 }
 0x5b0   :  { %v7951_v28 = vpop.eup %7950  ;;  %v3696_v6 = vmul.f32 %v7949_v20, %v8789_v41 }
 0x5b1   :  { %v3697_v34 = vmul.f32 %v7951_v28, %v8793_v44 }
 0x610   :  { %v3701_v25 = vpop.permute.xlu0 %3700 }
 0x611   :  { %v3706_v26 = vmul.f32 %v7949_v20, %v3701_v25 }
 0x613   :  { %3710 = vrot.lane.b32.xlu0 %v3706_v26, %s10852_s15 }
 0x614   :  { %v3703_v31 = vpop.permute.xlu1 %3702 }
 0x615   :  { %v3707_v32 = vmul.f32 %v7951_v28, %v3703_v31 }
 0x617   :  { %3712 = vrot.lane.b32.xlu1 %v3707_v32, %s10852_s15 }
 0x685   :  { %v3711_v13 = vpop.permute.xlu0 %3710 }
 0x686   :  { %v9027_v33 = vadd.f32 %v3711_v13, %v3696_v6 }
 0x688   :  { %7952 = vtanh.f32 %v9027_v33 }
 0x689   :  { %v3713_v35 = vpop.permute.xlu1 %3712 }
 0x68a   :  { %v9031_v36 = vadd.f32 %v3713_v35, %v3697_v34 }
 0x68c   :  { %7954 = vtanh.f32 %v9031_v36 }
 0x68d   :  { %7956 = vpow2.f32 %v7370_v62 }
 0x68e   :  { %7958 = vpow2.f32 %v7372_v0 }
 0x692   :  { %v7953_v41 = vpop.eup %7952 }
 0x693   :  { %3722 = vrot.lane.b32.xlu0 %v7953_v41, %s10852_s15 }
 0x696   :  { %v7955_v44 = vpop.eup %7954 }
 0x697   :  { %3724 = vrot.lane.b32.xlu1 %v7955_v44, %s10852_s15  ;;  %v7957_v1 = vpop.eup %7956 }
 0x698   :  { %v3683_v2 = vadd.f32 1.0, %v7957_v1  ;;  %v7959_v3 = vpop.eup %7958 }
 0x699   :  { %v3685_v5 = vadd.f32 1.0, %v7959_v3 }
 0x69a   :  { %7960 = vrcp.f32 %v3683_v2 }
 0x69b   :  { %7962 = vrcp.f32 %v3685_v5 }
 0x6a4   :  { %v7961_v7 = vpop.eup %7960 }
 0x6a5   :  { %v7963_v14 = vpop.eup %7962 }
 0x705   :  { %v3723_v11 = vpop.permute.xlu0 %3722 }
 0x706   :  { %v3728_v12 = vmul.f32 %v7961_v7, %v3723_v11 }
 0x708   :  { %7373 = vmatmul.mubr.msk.f32.vlgmr.msra.gmra.mrb[4].mxu1 %vm3283_vm1, %v3728_v12 }
 0x709   :  { %v3725_v17 = vpop.permute.xlu1 %3724  ;;  %3810 = vmatprep.mubr.f32.mxu1 %v8163_v8  ;;  %7808 = vmatpush1.bf16.msra.mxu1 %v8259_v9 }
 0x70a   :  { %v3729_v59 = vmul.f32 %v7963_v14, %v3725_v17  ;;  %7810 = vmatprep.subr.bf16.mxu1 %v8261_v10 }
 0x70c   :  { %7374 = vmatmul.mubr.msk.f32.gmra.mrb[6].mxu1 %vm3283_vm1, %v3729_v59 }
 0x70d   :  { %7812 = vmatpush1.bf16.msra.mxu1 %v8280_v15  ;;  %4106 = vmatprep.mubr.f32.mxu1 %v8163_v8 }
 0x70e   :  { %7814 = vmatprep.subr.bf16.mxu1 %v8288_v16 }
 0x711   :  { %7816 = vmatpush1.bf16.msra.mxu1 %v8311_v21 }
 0x712   :  { %7818 = vmatprep.subr.bf16.mxu1 %v8316_v23 }
 0x715   :  { %7820 = vmatpush1.bf16.msra.mxu1 %v8334_v27 }
 0x716   :  { %7838 = vmatprep.subr.bf16.mxu1 %v8244_v4  ;;  %v1531_v4 = vld [vmem:[%s1530_s28] ss:$8 sm:$0x3]  ;;  %s1561_s28 = sand.u32 7, %s9202_s20  ;;  %s1578_s20 = sand.u32 7, %s9204_s30 }
 0x717   :  { %v1541_v18 = vadd.f32 %v1540_v63, %v1531_v4  ;;  %s9242_s7 = sadd.s32 %s7526_s13, %s1561_s28  ;;  %s9251_s9 = sadd.s32 %s7527_s16, %s1578_s20 }
 0x718   :  { %s1565_s12 = scalar_lea.vmem %s10802_s2, %s9242_s7  ;;  %s1582_s10 = scalar_lea.vmem %s10801_s1, %s9251_s9 }
 0x719   :  { %1543 = vst.msk [vmem:[#allocation2 + $0x70] ss:$8 sm:$0x3] %vm8337_vm0, %v1541_v18  ;;  %v1566_v20 = vld [vmem:[%s1565_s12] ss:$8 sm:$0x3]  ;;  %s9260_s30 = sadd.s32 %s7528_s11, %s1587_s6 }
 0x71a   :  { %v1567_v25 = vadd.f32 %v1566_v20, %v1557_v19  ;;  %v1583_v26 = vld [vmem:[%s1582_s10] ss:$8 sm:$0x3]  ;;  %s1601_s13 = sshra.s32 %s9208_s5, 3  ;;  %s1591_s8 = scalar_lea.vmem %s10802_s2, %s9260_s30 }
 0x71b   :  { %v1592_v28 = vld [vmem:[%s1591_s8] ss:$8 sm:$0x3]  ;;  %s7529_s12 = sshll.u32 %s1601_s13, 4  ;;  %s1610_s20 = sshra.s32 %s9210_s24, 3 }
 0x71c   :  { %1569 = vst.msk [vmem:[#allocation2 + $0x71] ss:$8 sm:$0x3] %vm8337_vm0, %v1567_v25  ;;  %v1593_v31 = vadd.f32 %v1592_v28, %v1583_v26  ;;  %s9269_s16 = sadd.s32 %s7529_s12, %s1604_s14  ;;  %s7530_s10 = sshll.u32 %s1610_s20, 4 }
 0x71d   :  { %10867 = sst [smem:[#allocation21_spill]] %s9269_s16  ;;  %s1608_s22 = scalar_lea.vmem %s10801_s1, %s9269_s16 }
 0x71e   :  { %1595 = vst.msk [vmem:[#allocation2 + $0x72] ss:$8 sm:$0x3] %vm8337_vm0, %v1593_v31  ;;  %v1609_v32 = vld [vmem:[%s1608_s22] ss:$8 sm:$0x3]  ;;  %s9278_s5 = sadd.s32 %s7530_s10, %s1613_s26 }
 0x71f   :  { %10868 = sst [smem:[#allocation22_spill]] %s9278_s5  ;;  %s1627_s11 = sshra.s32 %s9212_s3, 3 }
 0x720   :  { %s1617_s19 = scalar_lea.vmem %s10802_s2, %s9278_s5  ;;  %s1630_s24 = sand.u32 7, %s9212_s3 }
 0x721   :  { %v1618_v6 = vld [vmem:[%s1617_s19] ss:$8 sm:$0x3]  ;;  %s7531_s8 = sshll.u32 %s1627_s11, 4  ;;  %s1636_s14 = sshra.s32 %s9214_s23, 3 }
 0x722   :  { %v1619_v13 = vadd.f32 %v1618_v6, %v1609_v32  ;;  %s9287_s12 = sadd.s32 %s7531_s8, %s1630_s24  ;;  %s1639_s20 = sand.u32 7, %s9214_s23 }
 0x723   :  { %10869 = sst [smem:[#allocation23_spill]] %s9287_s12  ;;  %s1634_s28 = scalar_lea.vmem %s10801_s1, %s9287_s12 }
 0x724   :  { %s7532_s22 = sshll.u32 %s1636_s14, 4  ;;  %1621 = vst.msk [vmem:[#allocation2 + $0x73] ss:$8 sm:$0x3] %vm8337_vm0, %v1619_v13  ;;  %s1653_s10 = sshra.s32 %s9216_s25, 3 }
 0x725   :  { %v1635_v34 = vld [vmem:[%s1634_s28] ss:$8 sm:$0x3]  ;;  %s9296_s3 = sadd.s32 %s7532_s22, %s1639_s20  ;;  %s1656_s19 = sand.u32 7, %s9216_s25 }
 0x726   :  { %10870 = sst [smem:[#allocation24_spill]] %s9296_s3  ;;  %s1643_s29 = scalar_lea.vmem %s10802_s2, %s9296_s3 }
 0x727   :  { %v1644_v35 = vld [vmem:[%s1643_s29] ss:$8 sm:$0x3]  ;;  %s7533_s23 = sshll.u32 %s1653_s10, 4  ;;  %s1662_s24 = sshra.s32 %s9218_s17, 3 }
 0x728   :  { %v1645_v41 = vadd.f32 %v1644_v35, %v1635_v34  ;;  %s9305_s8 = sadd.s32 %s7533_s23, %s1656_s19  ;;  %s1665_s14 = sand.u32 7, %s9218_s17 }
 0x729   :  { %10871 = sst [smem:[#allocation25_spill]] %s9305_s8  ;;  %s1660_s20 = scalar_lea.vmem %s10801_s1, %s9305_s8 }
 0x72a   :  { %s7534_s28 = sshll.u32 %s1662_s24, 4  ;;  %1647 = vst.msk [vmem:[#allocation2 + $0x74] ss:$8 sm:$0x3] %vm8337_vm0, %v1645_v41  ;;  %s6962_s25 = sld [smem:[#allocation4 + $0x703]] }
 0x72b   :  { %v1661_v44 = vld [vmem:[%s1660_s20] ss:$8 sm:$0x3]  ;;  %s9314_s22 = sadd.s32 %s7534_s28, %s1665_s14  ;;  %s6963_s29 = sld [smem:[#allocation4 + $0x704]] }
 0x72c   :  { %10872 = sst [smem:[#allocation26_spill]] %s9314_s22  ;;  %s1669_s13 = scalar_lea.vmem %s10802_s2, %s9314_s22 }
 0x72d   :  { %v1670_v37 = vld [vmem:[%s1669_s13] ss:$8 sm:$0x3]  ;;  %s6968_s17 = sld [smem:[#allocation4 + $0x783]]  ;;  %s6969_s19 = sld [smem:[#allocation4 + $0x784]] }
 0x72e   :  { %v1671_v38 = vadd.f32 %v1670_v37, %v1661_v44  ;;  %s10882_s28 = sld [smem:[#allocation11_spill]]  ;;  %s1745_s3 = scalar_lea.vmem %s10802_s2, %s9055_s4 }
 0x72f   :  { %v1746_v20 = vld [vmem:[%s1745_s3] ss:$8 sm:$0x3]  ;;  %s10884_s5 = sld [smem:[#allocation13_spill]] }
 0x730   :  { %1673 = vst.msk [vmem:[#allocation2 + $0x75] ss:$8 sm:$0x3] %vm8337_vm0, %v1671_v38  ;;  %s1679_s23 = sshra.s32 %s6962_s25, 3  ;;  %s1682_s24 = sand.u32 7, %s6962_s25 }
 0x731   :  { %s7535_s26 = sshll.u32 %s1679_s23, 4  ;;  %s1688_s6 = sshra.s32 %s6963_s29, 3 }
 0x732   :  { %s9322_s14 = sadd.s32 %s7535_s26, %s1682_s24  ;;  %s1691_s20 = sand.u32 7, %s6963_s29 }
 0x733   :  { %10873 = sst [smem:[#allocation27_spill]] %s9322_s14  ;;  %s1686_s10 = scalar_lea.vmem %s10801_s1, %s9322_s14 }
 0x734   :  { %s7536_s11 = sshll.u32 %s1688_s6, 4  ;;  %v1687_v39 = vld [vmem:[%s1686_s10] ss:$8 sm:$0x3]  ;;  %s1705_s22 = sshra.s32 %s6968_s17, 3 }
 0x735   :  { %s9328_s13 = sadd.s32 %s7536_s11, %s1691_s20  ;;  %s1708_s23 = sand.u32 7, %s6968_s17 }
 0x736   :  { %10874 = sst [smem:[#allocation28_spill]] %s9328_s13  ;;  %s1695_s25 = scalar_lea.vmem %s10802_s2, %s9328_s13 }
 0x737   :  { %v1696_v40 = vld [vmem:[%s1695_s25] ss:$8 sm:$0x3]  ;;  %s7537_s24 = sshll.u32 %s1705_s22, 4  ;;  %s1714_s26 = sshra.s32 %s6969_s19, 3 }
 0x738   :  { %v1697_v24 = vadd.f32 %v1696_v40, %v1687_v39  ;;  %s9334_s29 = sadd.s32 %s7537_s24, %s1708_s23  ;;  %s1717_s8 = sand.u32 7, %s6969_s19 }
 0x739   :  { %10875 = sst [smem:[#allocation29_spill]] %s9334_s29  ;;  %s1712_s20 = scalar_lea.vmem %s10801_s1, %s9334_s29 }
 0x73a   :  { %s7538_s10 = sshll.u32 %s1714_s26, 4  ;;  %1699 = vst.msk [vmem:[#allocation2 + $0x76] ss:$8 sm:$0x3] %vm8337_vm0, %v1697_v24  ;;  %s10877_s19 = sld [smem:[#allocation8_spill]] }
 0x73b   :  { %v1713_v30 = vld [vmem:[%s1712_s20] ss:$8 sm:$0x3]  ;;  %s9342_s12 = sadd.s32 %s7538_s10, %s1717_s8  ;;  %s10878_s11 = sld [smem:[#allocation7_spill]] }
 0x73c   :  { %10876 = sst [smem:[#allocation30_spill]] %s9342_s12  ;;  %s1721_s17 = scalar_lea.vmem %s10802_s2, %s9342_s12 }
 0x73d   :  { %v1722_v42 = vld [vmem:[%s1721_s17] ss:$8 sm:$0x3]  ;;  %s10879_s25 = sld [smem:[#allocation10_spill]]  ;;  %s10880_s23 = sld [smem:[#allocation9_spill]] }
 0x73e   :  { %v1723_v43 = vadd.f32 %v1722_v42, %v1713_v30  ;;  %s10881_s24 = sld [smem:[#allocation12_spill]]  ;;  %s1736_s6 = scalar_lea.vmem %s10801_s1, %s9061_s0 }
 0x73f   :  { %s10883_s13 = sld [smem:[#allocation14_spill]]  ;;  %s10885_s10 = sld [smem:[#allocation16_spill]] }
 0x740   :  { %1725 = vst.msk [vmem:[#allocation2 + $0x77] ss:$8 sm:$0x3] %vm8337_vm0, %v1723_v43  ;;  %s1760_s29 = scalar_lea.vmem %s10801_s1, %s10877_s19  ;;  %s10886_s19 = sld [smem:[#allocation15_spill]] }
 0x741   :  { %s1769_s16 = scalar_lea.vmem %s10802_s2, %s10878_s11  ;;  %v1761_v25 = vld [vmem:[%s1760_s29] ss:$8 sm:$0x3]  ;;  %s10892_s4 = sld [smem:[#allocation21_spill]] }
 0x742   :  { %v1770_v26 = vld [vmem:[%s1769_s16] ss:$8 sm:$0x3]  ;;  %s1817_s16 = scalar_lea.vmem %s10802_s2, %s10882_s28  ;;  %s10889_s28 = sld [smem:[#allocation20_spill]] }
 0x743   :  { %s1784_s8 = scalar_lea.vmem %s10801_s1, %s10879_s25  ;;  %s1793_s20 = scalar_lea.vmem %s10802_s2, %s10880_s23  ;;  %v1771_v28 = vadd.f32 %v1770_v26, %v1761_v25  ;;  %v1818_v34 = vld [vmem:[%s1817_s16] ss:$8 sm:$0x3] }
 0x744   :  { %v1785_v31 = vld [vmem:[%s1784_s8] ss:$8 sm:$0x3]  ;;  %s1808_s11 = scalar_lea.vmem %s10801_s1, %s10881_s24  ;;  %s10887_s25 = sld [smem:[#allocation18_spill]] }
 0x745   :  { %v1794_v32 = vld [vmem:[%s1793_s20] ss:$8 sm:$0x3]  ;;  %s10888_s23 = sld [smem:[#allocation17_spill]]  ;;  %s1832_s0 = scalar_lea.vmem %s10801_s1, %s10883_s13 }
 0x746   :  { %v1795_v6 = vadd.f32 %v1794_v32, %v1785_v31  ;;  %v1809_v13 = vld [vmem:[%s1808_s11] ss:$8 sm:$0x3]  ;;  %s1841_s24 = scalar_lea.vmem %s10802_s2, %s10884_s5  ;;  %1773 = vst.msk [vmem:[#allocation2 + $0x81] ss:$8 sm:$0x3] %vm8337_vm0, %v1771_v28  ;;  %s1856_s14 = scalar_lea.vmem %s10801_s1, %s10885_s10 }
 0x747   :  { %v3733_v47 = vld [vmem:[#allocation2 + $0x78] sm:$0xff]  ;;  %v3732_v57 = vld [vmem:[#allocation2 + $0x70] sm:$0xff]  ;;  %v1819_v35 = vadd.f32 %v1818_v34, %v1809_v13  ;;  %v1833_v41 = vld [vmem:[%s1832_s0] ss:$8 sm:$0x3]  ;;  %s10890_s20 = sld [smem:[#allocation19_spill]]  ;;  %s1865_s13 = scalar_lea.vmem %s10802_s2, %s10886_s19 }
 0x748   :  { %v1842_v44 = vld [vmem:[%s1841_s24] ss:$8 sm:$0x3]  ;;  %1797 = vst.msk [vmem:[#allocation2 + $0x82] ss:$8 sm:$0x3] %vm8337_vm0, %v1795_v6  ;;  %s1904_s0 = scalar_lea.vmem %s10801_s1, %s10889_s28  ;;  %s1937_s12 = scalar_lea.vmem %s10802_s2, %s9220_s21 }
 0x749   :  { %v1843_v38 = vadd.f32 %v1842_v44, %v1833_v41  ;;  %v1857_v39 = vld [vmem:[%s1856_s14] ss:$8 sm:$0x3]  ;;  %1821 = vst.msk [vmem:[#allocation2 + $0x83] ss:$8 sm:$0x3] %vm8337_vm0, %v1819_v35  ;;  %s1952_s5 = scalar_lea.vmem %s10801_s1, %s9242_s7  ;;  %s1961_s22 = scalar_lea.vmem %s10802_s2, %s9233_s18 }
 0x74a   :  { %v1866_v40 = vld [vmem:[%s1865_s13] ss:$8 sm:$0x3]  ;;  %s1880_s29 = scalar_lea.vmem %s10801_s1, %s10887_s25  ;;  %s10893_s16 = sld [smem:[#allocation24_spill]] }
 0x74b   :  { %s1889_s17 = scalar_lea.vmem %s10802_s2, %s10888_s23  ;;  %v1867_v24 = vadd.f32 %v1866_v40, %v1857_v39  ;;  %v1881_v30 = vld [vmem:[%s1880_s29] ss:$8 sm:$0x3]  ;;  %1845 = vst.msk [vmem:[#allocation2 + $0x84] ss:$8 sm:$0x3] %vm8337_vm0, %v1843_v38  ;;  %s1976_s19 = scalar_lea.vmem %s10801_s1, %s9260_s30 }
 0x74c   :  { %v1890_v42 = vld [vmem:[%s1889_s17] ss:$8 sm:$0x3]  ;;  %s10891_s23 = sld [smem:[#allocation22_spill]]  ;;  %s10894_s17 = sld [smem:[#allocation23_spill]] }
 0x74d   :  { %s1913_s25 = scalar_lea.vmem %s10802_s2, %s10890_s20  ;;  %v1891_v43 = vadd.f32 %v1890_v42, %v1881_v30  ;;  %1869 = vst.msk [vmem:[#allocation2 + $0x85] ss:$8 sm:$0x3] %vm8337_vm0, %v1867_v24  ;;  %s1985_s26 = scalar_lea.vmem %s10802_s2, %s9251_s9 }
 0x74e   :  { %s10895_s8 = sld [smem:[#allocation26_spill]]  ;;  %s10896_s7 = sld [smem:[#allocation25_spill]] }
 0x74f   :  { %1893 = vst.msk [vmem:[#allocation2 + $0x86] ss:$8 sm:$0x3] %vm8337_vm0, %v1891_v43  ;;  %s2009_s20 = scalar_lea.vmem %s10802_s2, %s10892_s4  ;;  %s10897_s30 = sld [smem:[#allocation28_spill]] }
 0x750   :  { %s10898_s14 = sld [smem:[#allocation27_spill]]  ;;  %s2024_s11 = scalar_lea.vmem %s10801_s1, %s10893_s16 }
 0x751   :  { %s10899_s4 = sld [smem:[#allocation30_spill]]  ;;  %s10900_s3 = sld [smem:[#allocation29_spill]] }
 0x752   :  { %s2000_s18 = scalar_lea.vmem %s10801_s1, %s10891_s23  ;;  %s2033_s23 = scalar_lea.vmem %s10802_s2, %s10894_s17 }
 0x753   :  { %s9561_s9 = sld [smem:[#allocation4 + $0x85]]  ;;  %s9567_s13 = sld [smem:[#allocation4 + $0x102]] }
 0x754   :  { %s2057_s16 = scalar_lea.vmem %s10802_s2, %s10896_s7  ;;  %s9577_s29 = sld [smem:[#allocation4 + $0x285]] }
 0x756   :  { %s2081_s24 = scalar_lea.vmem %s10802_s2, %s10898_s14  ;;  %s7071_s14 = sld [smem:[#allocation4 + $0x2]] }
 0x757   :  { %v2082_v28 = vld [vmem:[%s2081_s24] ss:$8 sm:$0x3] }
 0x759   :  { %s2137_s7 = sshra.s32 %s9561_s9, 3  ;;  %s2173_s28 = sand.u32 7, %s9567_s13 }
 0x75c   :  { %s2125_s21 = sand.u32 7, %s7071_s14 }
 0x7db   :  { %v3806_v54 = vpop.f32.mrb[4].mxu1 }
 0x7dc   :  { %v3808_v45 = vpop.f32.mrb[5].mxu1  ;;  %v3817_v56 = vadd.f32 %v3806_v54, %v3730_v55  ;;  %v1914_v54 = vld [vmem:[%s1913_s25] ss:$8 sm:$0x3] }
 0x7dd   :  { %v9350_v46 = vadd.f32 %v3808_v45, %v3731_v51  ;;  %v1905_v51 = vld [vmem:[%s1904_s0] ss:$8 sm:$0x3]  ;;  %s2072_s0 = scalar_lea.vmem %s10801_s1, %s10897_s30  ;;  %s7070_s30 = sld [smem:[#allocation4 + $0x5]] }
 0x7de   :  { %v7375_v58 = vmul.f32 -1.442695, %v3817_v56  ;;  %v1915_v45 = vadd.f32 %v1914_v54, %v1905_v51  ;;  %v2073_v26 = vld [vmem:[%s2072_s0] ss:$8 sm:$0x3] }
 0x7df   :  { %7964 = vtanh.f32 %v9350_v46  ;;  %v3812_v48 = vpop.f32.mrb[6].mxu1  ;;  %v2083_v31 = vadd.f32 %v2082_v28, %v2073_v26 }
 0x7e0   :  { %v3814_v49 = vpop.f32.mrb[7].mxu1  ;;  %v3819_v60 = vadd.f32 %v3812_v48, %v3732_v57  ;;  %1917 = vst.msk [vmem:[#allocation2 + $0x87] ss:$8 sm:$0x3] %vm8337_vm0, %v1915_v45  ;;  %v7376_v48 = vmul.f32 -1.442695, %v9350_v46 }
 0x7e1   :  { %v9353_v50 = vadd.f32 %v3814_v49, %v3733_v47  ;;  %2085 = vst.msk [vmem:[#allocation2 + $0x96] ss:$8 sm:$0x3] %vm8337_vm0, %v2083_v31 }
 0x7e2   :  { %v7377_v61 = vmul.f32 -1.442695, %v3819_v60 }
 0x7e3   :  { %7966 = vtanh.f32 %v9353_v50  ;;  %v7378_v49 = vmul.f32 -1.442695, %v9353_v50  ;;  %s2116_s10 = sand.u32 7, %s7070_s30 }
 0x7e4   :  { %7968 = vpow2.f32 %v7375_v58 }
 0x7e5   :  { %7970 = vpow2.f32 %v7377_v61 }
 0x7e9   :  { %v7965_v52 = vpop.eup %7964 }
 0x7ea   :  { %3851 = vrot.lane.b32.xlu0 %v7965_v52, %s10852_s15 }
 0x7ed   :  { %v7967_v53 = vpop.eup %7966 }
 0x7ee   :  { %3853 = vrot.lane.b32.xlu1 %v7967_v53, %s10852_s15  ;;  %v7969_v62 = vpop.eup %7968 }
 0x7ef   :  { %v3833_v0 = vadd.f32 1.0, %v7969_v62  ;;  %v7971_v1 = vpop.eup %7970 }
 0x7f0   :  { %v3835_v2 = vadd.f32 1.0, %v7971_v1 }
 0x7f1   :  { %7972 = vrcp.f32 %v3833_v0  ;;  %v1938_v0 = vld [vmem:[%s1937_s12] ss:$8 sm:$0x3]  ;;  %s9563_s12 = sld [smem:[#allocation4 + $0x82]] }
 0x7f2   :  { %7974 = vrcp.f32 %v3835_v2  ;;  %v1953_v2 = vld [vmem:[%s1952_s5] ss:$8 sm:$0x3]  ;;  %s9569_s5 = sld [smem:[#allocation4 + $0x185]] }
 0x7fb   :  { %v7973_v3 = vpop.eup %7972 }
 0x7fc   :  { %v7975_v11 = vpop.eup %7974  ;;  %v3847_v17 = vmul.f32 %v7973_v3, %v9027_v33  ;;  %v1737_v33 = vld [vmem:[%s1736_s6] ss:$8 sm:$0x3]  ;;  %s1928_s6 = scalar_lea.vmem %s10801_s1, %s9226_s27  ;;  %s2048_s27 = scalar_lea.vmem %s10801_s1, %s10895_s8 }
 0x7fd   :  { %v3848_v63 = vmul.f32 %v7975_v11, %v9031_v36  ;;  %v1747_v36 = vadd.f32 %v1746_v20, %v1737_v33  ;;  %v1929_v50 = vld [vmem:[%s1928_s6] ss:$8 sm:$0x3] }
 0x7fe   :  { %v1939_v1 = vadd.f32 %v1938_v0, %v1929_v50  ;;  %v2049_v20 = vld [vmem:[%s2048_s27] ss:$8 sm:$0x3]  ;;  %s2113_s27 = sshra.s32 %s7070_s30, 3  ;;  %s7573_s30 = sshll.u32 %s2137_s7, 4 }
 0x7ff   :  { %1749 = vst.msk [vmem:[#allocation2 + $0x80] ss:$8 sm:$0x3] %vm8337_vm0, %v1747_v36  ;;  %v2058_v36 = vld [vmem:[%s2057_s16] ss:$8 sm:$0x3] }
 0x800   :  { %1941 = vst.msk [vmem:[#allocation2 + $0x90] ss:$8 sm:$0x3] %vm8337_vm0, %v1939_v1  ;;  %v2059_v25 = vadd.f32 %v2058_v36, %v2049_v20  ;;  %s2122_s16 = sshra.s32 %s7071_s14, 3  ;;  %s2146_s14 = sshra.s32 %s9563_s12, 3 }
 0x801   :  { %s7572_s24 = sshll.u32 %s2122_s16, 4  ;;  %s2170_s7 = sshra.s32 %s9567_s13, 3 }
 0x802   :  { %2061 = vst.msk [vmem:[#allocation2 + $0x95] ss:$8 sm:$0x3] %vm8337_vm0, %v2059_v25  ;;  %s2128_s8 = sadd.s32 %s7572_s24, %s2125_s21  ;;  %s7574_s21 = sshll.u32 %s2146_s14, 4 }
 0x803   :  { %s2129_s6 = scalar_lea.vmem %s10802_s2, %s2128_s8  ;;  %s7576_s14 = sshll.u32 %s2170_s7, 4 }
 0x806   :  { %v3882_v34 = vld [vmem:[#allocation2 + $0x88] sm:$0xff]  ;;  %v3881_v42 = vld [vmem:[#allocation2 + $0x80] sm:$0xff] }
 0x85c   :  { %v3852_v5 = vpop.permute.xlu0 %3851 }
 0x85d   :  { %v3857_v7 = vmul.f32 %v7973_v3, %v3852_v5  ;;  %v1962_v3 = vld [vmem:[%s1961_s22] ss:$8 sm:$0x3]  ;;  %s9579_s22 = sld [smem:[#allocation4 + $0x282]] }
 0x85e   :  { %v1963_v5 = vadd.f32 %v1962_v3, %v1953_v2 }
 0x85f   :  { %3861 = vrot.lane.b32.xlu0 %v3857_v7, %s10852_s15  ;;  %v1977_v7 = vld [vmem:[%s1976_s19] ss:$8 sm:$0x3]  ;;  %s7571_s19 = sshll.u32 %s2113_s27, 4 }
 0x860   :  { %v3854_v12 = vpop.permute.xlu1 %3853  ;;  %1965 = vst.msk [vmem:[#allocation2 + $0x91] ss:$8 sm:$0x3] %vm8337_vm0, %v1963_v5  ;;  %s2119_s17 = sadd.s32 %s7571_s19, %s2116_s10  ;;  %v2130_v5 = vld [vmem:[%s2129_s6] ss:$8 sm:$0x3] }
 0x861   :  { %v3858_v14 = vmul.f32 %v7975_v11, %v3854_v12  ;;  %v1986_v11 = vld [vmem:[%s1985_s26] ss:$8 sm:$0x3]  ;;  %s2120_s25 = scalar_lea.vmem %s10801_s1, %s2119_s17  ;;  %s2149_s10 = sand.u32 7, %s9563_s12 }
 0x862   :  { %v1987_v12 = vadd.f32 %v1986_v11, %v1977_v7  ;;  %v2121_v3 = vld [vmem:[%s2120_s25] ss:$8 sm:$0x3]  ;;  %s2152_s0 = sadd.s32 %s7574_s21, %s2149_s10 }
 0x863   :  { %3863 = vrot.lane.b32.xlu1 %v3858_v14, %s10852_s15  ;;  %v2001_v14 = vld [vmem:[%s2000_s18] ss:$8 sm:$0x3]  ;;  %s2096_s18 = scalar_lea.vmem %s10801_s1, %s10899_s4  ;;  %s9573_s4 = sld [smem:[#allocation4 + $0x205]]  ;;  %v2131_v7 = vadd.f32 %v2130_v5, %v2121_v3 }
 0x864   :  { %1989 = vst.msk [vmem:[#allocation2 + $0x92] ss:$8 sm:$0x3] %vm8337_vm0, %v1987_v12  ;;  %v2097_v32 = vld [vmem:[%s2096_s18] ss:$8 sm:$0x3]  ;;  %s2153_s24 = scalar_lea.vmem %s10802_s2, %s2152_s0 }
 0x865   :  { %2133 = vst.msk [vmem:[#allocation2 + $0xa0] ss:$8 sm:$0x3] %vm8337_vm0, %v2131_v7  ;;  %v2154_v12 = vld [vmem:[%s2153_s24] ss:$8 sm:$0x3] }
 0x866   :  { %s2242_s26 = sshra.s32 %s9579_s22, 3  ;;  %s2245_s25 = sand.u32 7, %s9579_s22 }
 0x867   :  { %s7113_s22 = sld [smem:[#allocation4 + $0x382]] }
 0x869   :  { %s2212_s6 = sand.u32 7, %s9573_s4 }
 0x8d1   :  { %v3862_v59 = vpop.permute.xlu0 %3861 }
 0x8d2   :  { %v9361_v4 = vadd.f32 %v3862_v59, %v3847_v17  ;;  %v2010_v17 = vld [vmem:[%s2009_s20] ss:$8 sm:$0x3]  ;;  %s2105_s20 = scalar_lea.vmem %s10802_s2, %s10900_s3  ;;  %s9575_s3 = sld [smem:[#allocation4 + $0x202]] }
 0x8d3   :  { %v2011_v59 = vadd.f32 %v2010_v17, %v2001_v14  ;;  %v2106_v6 = vld [vmem:[%s2105_s20] ss:$8 sm:$0x3]  ;;  %s2140_s20 = sand.u32 7, %s9561_s9 }
 0x8d4   :  { %7976 = vtanh.f32 %v9361_v4  ;;  %v2107_v13 = vadd.f32 %v2106_v6, %v2097_v32  ;;  %s2143_s27 = sadd.s32 %s7573_s30, %s2140_s20 }
 0x8d5   :  { %v3864_v18 = vpop.permute.xlu1 %3863  ;;  %2013 = vst.msk [vmem:[#allocation2 + $0x93] ss:$8 sm:$0x3] %vm8337_vm0, %v2011_v59  ;;  %s2144_s17 = scalar_lea.vmem %s10801_s1, %s2143_s27  ;;  %s2176_s27 = sadd.s32 %s7576_s14, %s2173_s28 }
 0x8d6   :  { %v9365_v19 = vadd.f32 %v3864_v18, %v3848_v63  ;;  %v2025_v63 = vld [vmem:[%s2024_s11] ss:$8 sm:$0x3]  ;;  %2109 = vst.msk [vmem:[#allocation2 + $0x97] ss:$8 sm:$0x3] %vm8337_vm0, %v2107_v13  ;;  %s2177_s16 = scalar_lea.vmem %s10802_s2, %s2176_s27 }
 0x8d7   :  { %v2034_v18 = vld [vmem:[%s2033_s23] ss:$8 sm:$0x3]  ;;  %s9565_s11 = sld [smem:[#allocation4 + $0x105]]  ;;  %s9571_s23 = sld [smem:[#allocation4 + $0x182]] }
 0x8d8   :  { %7978 = vtanh.f32 %v9365_v19  ;;  %v2035_v33 = vadd.f32 %v2034_v18, %v2025_v63  ;;  %v2145_v11 = vld [vmem:[%s2144_s17] ss:$8 sm:$0x3]  ;;  %s2188_s17 = sand.u32 7, %s9569_s5  ;;  %s2218_s20 = sshra.s32 %s9575_s3, 3 }
 0x8d9   :  { %7980 = vpow2.f32 %v7376_v48  ;;  %v2155_v14 = vadd.f32 %v2154_v12, %v2145_v11  ;;  %v2178_v59 = vld [vmem:[%s2177_s16] ss:$8 sm:$0x3]  ;;  %s2221_s14 = sand.u32 7, %s9575_s3  ;;  %s7580_s19 = sshll.u32 %s2218_s20, 4 }
 0x8da   :  { %7982 = vpow2.f32 %v7378_v49  ;;  %2037 = vst.msk [vmem:[#allocation2 + $0x94] ss:$8 sm:$0x3] %vm8337_vm0, %v2035_v33  ;;  %s2224_s16 = sadd.s32 %s7580_s19, %s2221_s14  ;;  %s7112_s20 = sld [smem:[#allocation4 + $0x385]] }
 0x8db   :  { %2157 = vst.msk [vmem:[#allocation2 + $0xa1] ss:$8 sm:$0x3] %vm8337_vm0, %v2155_v14 }
 0x8dd   :  { %s2161_s9 = sshra.s32 %s9565_s11, 3  ;;  %s2164_s8 = sand.u32 7, %s9565_s11 }
 0x8de   :  { %v7977_v37 = vpop.eup %7976  ;;  %s7575_s12 = sshll.u32 %s2161_s9, 4  ;;  %s2185_s11 = sshra.s32 %s9569_s5, 3 }
 0x8df   :  { %3873 = vrot.lane.b32.xlu0 %v7977_v37, %s10852_s15  ;;  %s2167_s18 = sadd.s32 %s7575_s12, %s2164_s8  ;;  %s7577_s13 = sshll.u32 %s2185_s11, 4 }
 0x8e0   :  { %s2168_s30 = scalar_lea.vmem %s10801_s1, %s2167_s18  ;;  %s2194_s21 = sshra.s32 %s9571_s23, 3 }
 0x8e1   :  { %v3884_v37 = vld [vmem:[#allocation2 + $0x98] sm:$0xff]  ;;  %v3883_v51 = vld [vmem:[#allocation2 + $0x90] sm:$0xff]  ;;  %v2169_v17 = vld [vmem:[%s2168_s30] ss:$8 sm:$0x3]  ;;  %s2191_s0 = sadd.s32 %s7577_s13, %s2188_s17  ;;  %s2197_s9 = sand.u32 7, %s9571_s23 }
 0x8e2   :  { %v7979_v47 = vpop.eup %7978  ;;  %v2179_v63 = vadd.f32 %v2178_v59, %v2169_v17  ;;  %s2192_s24 = scalar_lea.vmem %s10801_s1, %s2191_s0  ;;  %s7578_s8 = sshll.u32 %s2194_s21, 4 }
 0x8e3   :  { %3875 = vrot.lane.b32.xlu1 %v7979_v47, %s10852_s15  ;;  %v7981_v52 = vpop.eup %7980  ;;  %v2193_v18 = vld [vmem:[%s2192_s24] ss:$8 sm:$0x3]  ;;  %s2200_s12 = sadd.s32 %s7578_s8, %s2197_s9  ;;  %s2209_s5 = sshra.s32 %s9573_s4, 3 }
 0x8e4   :  { %v3834_v53 = vadd.f32 1.0, %v7981_v52  ;;  %v7983_v55 = vpop.eup %7982  ;;  %2181 = vst.msk [vmem:[#allocation2 + $0xa2] ss:$8 sm:$0x3] %vm8337_vm0, %v2179_v63  ;;  %s2201_s28 = scalar_lea.vmem %s10802_s2, %s2200_s12  ;;  %s7579_s23 = sshll.u32 %s2209_s5, 4 }
 0x8e5   :  { %v3836_v56 = vadd.f32 1.0, %v7983_v55  ;;  %v2202_v33 = vld [vmem:[%s2201_s28] ss:$8 sm:$0x3]  ;;  %s2215_s30 = sadd.s32 %s7579_s23, %s2212_s6  ;;  %s2233_s17 = sshra.s32 %s9577_s29, 3 }
 0x8e6   :  { %7984 = vrcp.f32 %v3834_v53  ;;  %v2203_v20 = vadd.f32 %v2202_v33, %v2193_v18  ;;  %s2216_s10 = scalar_lea.vmem %s10801_s1, %s2215_s30  ;;  %s2225_s21 = scalar_lea.vmem %s10802_s2, %s2224_s16 }
 0x8e7   :  { %7986 = vrcp.f32 %v3836_v56  ;;  %v2217_v36 = vld [vmem:[%s2216_s10] ss:$8 sm:$0x3]  ;;  %s2236_s0 = sand.u32 7, %s9577_s29  ;;  %s7581_s9 = sshll.u32 %s2233_s17, 4 }
 0x8e8   :  { %2205 = vst.msk [vmem:[#allocation2 + $0xa3] ss:$8 sm:$0x3] %vm8337_vm0, %v2203_v20  ;;  %v2226_v25 = vld [vmem:[%s2225_s21] ss:$8 sm:$0x3]  ;;  %s2239_s3 = sadd.s32 %s7581_s9, %s2236_s0 }
 0x8e9   :  { %v2227_v26 = vadd.f32 %v2226_v25, %v2217_v36  ;;  %s2240_s12 = scalar_lea.vmem %s10801_s1, %s2239_s3  ;;  %s7582_s5 = sshll.u32 %s2242_s26, 4 }
 0x8ea   :  { %v2241_v28 = vld [vmem:[%s2240_s12] ss:$8 sm:$0x3]  ;;  %s2248_s7 = sadd.s32 %s7582_s5, %s2245_s25  ;;  %s7106_s18 = sld [smem:[#allocation4 + $0x305]] }
 0x8eb   :  { %2229 = vst.msk [vmem:[#allocation2 + $0xa4] ss:$8 sm:$0x3] %vm8337_vm0, %v2227_v26  ;;  %s2249_s29 = scalar_lea.vmem %s10802_s2, %s2248_s7  ;;  %s7107_s23 = sld [smem:[#allocation4 + $0x302]] }
 0x8ec   :  { %v2250_v31 = vld [vmem:[%s2249_s29] ss:$8 sm:$0x3]  ;;  %s2281_s0 = sshra.s32 %s7112_s20, 3  ;;  %s2284_s25 = sand.u32 7, %s7112_s20 }
 0x8ed   :  { %v2251_v32 = vadd.f32 %v2250_v31, %v2241_v28  ;;  %s7585_s24 = sshll.u32 %s2281_s0, 4  ;;  %s2290_s8 = sshra.s32 %s7113_s22, 3 }
 0x8ee   :  { %s2287_s12 = sadd.s32 %s7585_s24, %s2284_s25  ;;  %s2293_s5 = sand.u32 7, %s7113_s22 }
 0x8ef   :  { %2253 = vst.msk [vmem:[#allocation2 + $0xa5] ss:$8 sm:$0x3] %vm8337_vm0, %v2251_v32  ;;  %s2288_s28 = scalar_lea.vmem %s10801_s1, %s2287_s12  ;;  %s7586_s6 = sshll.u32 %s2290_s8, 4 }
 0x8f0   :  { %v7985_v57 = vpop.eup %7984  ;;  %s2257_s30 = sshra.s32 %s7106_s18, 3  ;;  %s2260_s14 = sand.u32 7, %s7106_s18 }
 0x8f1   :  { %v7987_v61 = vpop.eup %7986  ;;  %s7583_s27 = sshll.u32 %s2257_s30, 4  ;;  %s2266_s11 = sshra.s32 %s7107_s23, 3 }
 0x8f2   :  { %s2263_s10 = sadd.s32 %s7583_s27, %s2260_s14  ;;  %s2269_s19 = sand.u32 7, %s7107_s23 }
 0x8f3   :  { %s2264_s4 = scalar_lea.vmem %s10801_s1, %s2263_s10  ;;  %s7584_s13 = sshll.u32 %s2266_s11, 4 }
 0x8f4   :  { %v2265_v6 = vld [vmem:[%s2264_s4] ss:$8 sm:$0x3]  ;;  %s2272_s21 = sadd.s32 %s7584_s13, %s2269_s19  ;;  %s2296_s29 = sadd.s32 %s7586_s6, %s2293_s5 }
 0x8f5   :  { %s2273_s3 = scalar_lea.vmem %s10802_s2, %s2272_s21  ;;  %s2297_s20 = scalar_lea.vmem %s10802_s2, %s2296_s29 }
 0x8f6   :  { %v2274_v13 = vld [vmem:[%s2273_s3] ss:$8 sm:$0x3]  ;;  %s7118_s22 = sld [smem:[#allocation4 + $0x405]]  ;;  %s7119_s14 = sld [smem:[#allocation4 + $0x402]] }
 0x8f7   :  { %s7124_s27 = sld [smem:[#allocation4 + $0x485]]  ;;  %s9680_s11 = sld [smem:[#allocation4 + $0x482]] }
 0x8f8   :  { %s9682_s10 = sld [smem:[#allocation4 + $0x505]]  ;;  %s9684_s19 = sld [smem:[#allocation4 + $0x502]] }
 0x8f9   :  { %s9686_s16 = sld [smem:[#allocation4 + $0x585]]  ;;  %s9688_s17 = sld [smem:[#allocation4 + $0x582]] }
 0x8fa   :  { %s9690_s4 = sld [smem:[#allocation4 + $0x605]]  ;;  %s9692_s13 = sld [smem:[#allocation4 + $0x602]] }
 0x8fb   :  { %s9694_s21 = sld [smem:[#allocation4 + $0x685]]  ;;  %s9696_s0 = sld [smem:[#allocation4 + $0x682]] }
 0x8fc   :  { %s2305_s9 = sshra.s32 %s7118_s22, 3  ;;  %s2314_s26 = sshra.s32 %s7119_s14, 3 }
 0x8fd   :  { %s2308_s3 = sand.u32 7, %s7118_s22  ;;  %s7587_s25 = sshll.u32 %s2305_s9, 4 }
 0x8fe   :  { %s2311_s24 = sadd.s32 %s7587_s25, %s2308_s3  ;;  %s2317_s8 = sand.u32 7, %s7119_s14 }
 0x8ff   :  { %s2312_s7 = scalar_lea.vmem %s10801_s1, %s2311_s24  ;;  %s7588_s18 = sshll.u32 %s2314_s26, 4 }
 0x900   :  { %s2329_s6 = sshra.s32 %s7124_s27, 3  ;;  %s2338_s9 = sshra.s32 %s9680_s11, 3 }
 0x901   :  { %s7589_s22 = sshll.u32 %s2329_s6, 4  ;;  %s2341_s3 = sand.u32 7, %s9680_s11 }
 0x902   :  { %s2362_s6 = sshra.s32 %s9684_s19, 3  ;;  %s2365_s23 = sand.u32 7, %s9684_s19 }
 0x903   :  { %s2434_s5 = sshra.s32 %s9696_s0, 3 }
 0x951   :  { %v3874_v58 = vpop.permute.xlu0 %3873 }
 0x952   :  { %v3879_v60 = vmul.f32 %v7985_v57, %v3874_v58 }
 0x954   :  { %7379 = vmatmul.mubr.msk.f32.vlgmr.msra.gmra.mrb[8].mxu0 %vm3283_vm1, %v3879_v60 }
 0x955   :  { %v3876_v62 = vpop.permute.xlu1 %3875  ;;  %3961 = vmatprep.mubr.f32.mxu0 %v8163_v8  ;;  %7824 = vmatpush1.bf16.msra.mxu0 %v8259_v9 }
 0x956   :  { %v3880_v46 = vmul.f32 %v7987_v61, %v3876_v62  ;;  %7826 = vmatprep.subr.bf16.mxu0 %v8261_v10 }
 0x958   :  { %7380 = vmatmul.mubr.msk.f32.gmra.mrb[10].mxu0 %vm3283_vm1, %v3880_v46 }
 0x959   :  { %7828 = vmatpush1.bf16.msra.mxu0 %v8280_v15  ;;  %4257 = vmatprep.mubr.f32.mxu0 %v8163_v8 }
 0x95a   :  { %7830 = vmatprep.subr.bf16.mxu0 %v8288_v16 }
 0x95d   :  { %7832 = vmatpush1.bf16.msra.mxu0 %v8311_v21 }
 0x95e   :  { %7834 = vmatprep.subr.bf16.mxu0 %v8316_v23 }
 0x961   :  { %7836 = vmatpush1.bf16.msra.mxu0 %v8334_v27 }
 0xa27   :  { %v3957_v35 = vpop.f32.mrb[8].mxu0 }
 0xa28   :  { %v3959_v41 = vpop.f32.mrb[9].mxu0  ;;  %v3968_v43 = vadd.f32 %v3957_v35, %v3881_v42  ;;  %v2289_v35 = vld [vmem:[%s2288_s28] ss:$8 sm:$0x3]  ;;  %s2320_s28 = sadd.s32 %s7588_s18, %s2317_s8  ;;  %s7590_s8 = sshll.u32 %s2338_s9, 4 }
 0xa29   :  { %v9543_v44 = vadd.f32 %v3959_v41, %v3882_v34  ;;  %v2275_v34 = vadd.f32 %v2274_v13, %v2265_v6  ;;  %v2298_v41 = vld [vmem:[%s2297_s20] ss:$8 sm:$0x3]  ;;  %s2321_s30 = scalar_lea.vmem %s10802_s2, %s2320_s28  ;;  %s2332_s20 = sand.u32 7, %s7124_s27 }
 0xa2a   :  { %v7381_v54 = vmul.f32 -1.442695, %v3968_v43  ;;  %s2335_s14 = sadd.s32 %s7589_s22, %s2332_s20  ;;  %s2344_s12 = sadd.s32 %s7590_s8, %s2341_s3 }
 0xa2b   :  { %7988 = vtanh.f32 %v9543_v44  ;;  %v3963_v38 = vpop.f32.mrb[10].mxu0  ;;  %2277 = vst.msk [vmem:[#allocation2 + $0xa6] ss:$8 sm:$0x3] %vm8337_vm0, %v2275_v34  ;;  %s2336_s24 = scalar_lea.vmem %s10801_s1, %s2335_s14  ;;  %s2353_s27 = sshra.s32 %s9682_s10, 3 }
 0xa2c   :  { %v3965_v39 = vpop.f32.mrb[11].mxu0  ;;  %v3970_v45 = vadd.f32 %v3963_v38, %v3883_v51  ;;  %v7382_v38 = vmul.f32 -1.442695, %v9543_v44  ;;  %s2345_s18 = scalar_lea.vmem %s10802_s2, %s2344_s12  ;;  %s2356_s28 = sand.u32 7, %s9682_s10 }
 0xa2d   :  { %v9546_v40 = vadd.f32 %v3965_v39, %v3884_v37  ;;  %v2299_v37 = vadd.f32 %v2298_v41, %v2289_v35  ;;  %s7591_s11 = sshll.u32 %s2353_s27, 4  ;;  %s7592_s9 = sshll.u32 %s2362_s6, 4 }
 0xa2e   :  { %v7383_v47 = vmul.f32 -1.442695, %v3970_v45  ;;  %s2359_s29 = sadd.s32 %s7591_s11, %s2356_s28  ;;  %s2368_s14 = sadd.s32 %s7592_s9, %s2365_s23 }
 0xa2f   :  { %7990 = vtanh.f32 %v9546_v40  ;;  %2301 = vst.msk [vmem:[#allocation2 + $0xa7] ss:$8 sm:$0x3] %vm8337_vm0, %v2299_v37  ;;  %v7384_v39 = vmul.f32 -1.442695, %v9546_v40  ;;  %s2360_s22 = scalar_lea.vmem %s10801_s1, %s2359_s29  ;;  %s2377_s10 = sshra.s32 %s9686_s16, 3 }
 0xa30   :  { %7992 = vpow2.f32 %v7381_v54  ;;  %s2369_s26 = scalar_lea.vmem %s10802_s2, %s2368_s14  ;;  %s7593_s19 = sshll.u32 %s2377_s10, 4 }
 0xa31   :  { %7994 = vpow2.f32 %v7383_v47  ;;  %v2370_v40 = vld [vmem:[%s2369_s26] ss:$8 sm:$0x3]  ;;  %s2386_s8 = sshra.s32 %s9688_s17, 3  ;;  %s2389_s27 = sand.u32 7, %s9688_s17 }
 0xa32   :  { %s7594_s28 = sshll.u32 %s2386_s8, 4  ;;  %s2410_s20 = sshra.s32 %s9692_s13, 3 }
 0xa33   :  { %s2392_s11 = sadd.s32 %s7594_s28, %s2389_s27  ;;  %s2413_s9 = sand.u32 7, %s9692_s13 }
 0xa34   :  { %s2393_s23 = scalar_lea.vmem %s10802_s2, %s2392_s11  ;;  %s7596_s25 = sshll.u32 %s2410_s20, 4 }
 0xa35   :  { %v7989_v24 = vpop.eup %7988  ;;  %s2416_s26 = sadd.s32 %s7596_s25, %s2413_s9  ;;  %s7154_s29 = sld [smem:[#allocation4 + $0x705]] }
 0xa36   :  { %4002 = vrot.lane.b32.xlu0 %v7989_v24, %s10852_s15  ;;  %s2417_s8 = scalar_lea.vmem %s10802_s2, %s2416_s26  ;;  %s7160_s20 = sld [smem:[#allocation4 + $0x785]]  ;;  %v4033_v5 = vld [vmem:[#allocation2 + $0xa8] sm:$0xff]  ;;  %v4032_v20 = vld [vmem:[#allocation2 + $0xa0] sm:$0xff] }
 0xa37   :  { %s9806_s26 = sld [smem:[#allocation4 + $0x186]] }
 0xa39   :  { %v7991_v30 = vpop.eup %7990 }
 0xa3a   :  { %4004 = vrot.lane.b32.xlu1 %v7991_v30, %s10852_s15  ;;  %v7993_v48 = vpop.eup %7992 }
 0xa3b   :  { %v3984_v49 = vadd.f32 1.0, %v7993_v48  ;;  %v7995_v52 = vpop.eup %7994  ;;  %s2452_s9 = sand.u32 7, %s7154_s29 }
 0xa3c   :  { %v3986_v53 = vadd.f32 1.0, %v7995_v52 }
 0xa3d   :  { %7996 = vrcp.f32 %v3984_v49 }
 0xa3e   :  { %7998 = vrcp.f32 %v3986_v53  ;;  %v2394_v53 = vld [vmem:[%s2393_s23] ss:$8 sm:$0x3] }
 0xa47   :  { %v7997_v55 = vpop.eup %7996 }
 0xa48   :  { %v7999_v58 = vpop.eup %7998  ;;  %v3998_v62 = vmul.f32 %v7997_v55, %v9361_v4 }
 0xa49   :  { %v3999_v0 = vmul.f32 %v7999_v58, %v9365_v19 }
 0xaa8   :  { %v4003_v56 = vpop.permute.xlu0 %4002 }
 0xaa9   :  { %v4008_v57 = vmul.f32 %v7997_v55, %v4003_v56 }
 0xaab   :  { %4012 = vrot.lane.b32.xlu0 %v4008_v57, %s10852_s15  ;;  %v2418_v57 = vld [vmem:[%s2417_s8] ss:$8 sm:$0x3] }
 0xaac   :  { %v4005_v60 = vpop.permute.xlu1 %4004 }
 0xaad   :  { %v4009_v61 = vmul.f32 %v7999_v58, %v4005_v60 }
 0xaaf   :  { %4014 = vrot.lane.b32.xlu1 %v4009_v61, %s10852_s15 }
 0xb1d   :  { %v4013_v46 = vpop.permute.xlu0 %4012 }
 0xb1e   :  { %v9554_v50 = vadd.f32 %v4013_v46, %v3998_v62 }
 0xb20   :  { %8000 = vtanh.f32 %v9554_v50 }
 0xb21   :  { %v4015_v1 = vpop.permute.xlu1 %4014 }
 0xb22   :  { %v9558_v2 = vadd.f32 %v4015_v1, %v3999_v0 }
 0xb24   :  { %8002 = vtanh.f32 %v9558_v2 }
 0xb25   :  { %8004 = vpow2.f32 %v7382_v38 }
 0xb26   :  { %8006 = vpow2.f32 %v7384_v39 }
 0xb2a   :  { %v8001_v4 = vpop.eup %8000 }
 0xb2b   :  { %4024 = vrot.lane.b32.xlu0 %v8001_v4, %s10852_s15 }
 0xb2e   :  { %v8003_v19 = vpop.eup %8002 }
 0xb2f   :  { %4026 = vrot.lane.b32.xlu1 %v8003_v19, %s10852_s15  ;;  %v8005_v24 = vpop.eup %8004 }
 0xb30   :  { %v3985_v30 = vadd.f32 1.0, %v8005_v24  ;;  %v8007_v42 = vpop.eup %8006 }
 0xb31   :  { %v3987_v43 = vadd.f32 1.0, %v8007_v42 }
 0xb32   :  { %8008 = vrcp.f32 %v3985_v30 }
 0xb33   :  { %8010 = vrcp.f32 %v3987_v43 }
 0xb3c   :  { %v8009_v51 = vpop.eup %8008 }
 0xb3d   :  { %v8011_v47 = vpop.eup %8010 }
 0xb9d   :  { %v4025_v54 = vpop.permute.xlu0 %4024 }
 0xb9e   :  { %v4030_v45 = vmul.f32 %v8009_v51, %v4025_v54 }
 0xba0   :  { %7385 = vmatmul.mubr.msk.f32.vlgmr.msra.gmra.mrb[8].mxu1 %vm3283_vm1, %v4030_v45 }
 0xba1   :  { %v4027_v48 = vpop.permute.xlu1 %4026  ;;  %4112 = vmatprep.mubr.f32.mxu1 %v8163_v8  ;;  %7840 = vmatpush1.bf16.msra.mxu1 %v8259_v9  ;;  %v2313_v9 = vld [vmem:[%s2312_s7] ss:$8 sm:$0x3]  ;;  %s2437_s7 = sand.u32 7, %s9696_s0  ;;  %s7161_s0 = sld [smem:[#allocation4 + $0x782]] }
 0xba2   :  { %v4031_v44 = vmul.f32 %v8011_v47, %v4027_v48  ;;  %7842 = vmatprep.subr.bf16.mxu1 %v8261_v10  ;;  %v2322_v10 = vld [vmem:[%s2321_s30] ss:$8 sm:$0x3]  ;;  %s2404_s30 = sand.u32 7, %s9690_s4 }
 0xba4   :  { %7386 = vmatmul.mubr.msk.f32.gmra.mrb[10].mxu1 %vm3283_vm1, %v4031_v44 }
 0xba5   :  { %7844 = vmatpush1.bf16.msra.mxu1 %v8280_v15  ;;  %4408 = vmatprep.mubr.f32.mxu1 %v8163_v8  ;;  %v2323_v15 = vadd.f32 %v2322_v10, %v2313_v9 }
 0xba6   :  { %7846 = vmatprep.subr.bf16.mxu1 %v8288_v16  ;;  %v2337_v16 = vld [vmem:[%s2336_s24] ss:$8 sm:$0x3]  ;;  %s2380_s24 = sand.u32 7, %s9686_s16  ;;  %s2401_s16 = sshra.s32 %s9690_s4, 3 }
 0xba7   :  { %2325 = vst.msk [vmem:[#allocation2 + $0xb0] ss:$8 sm:$0x3] %vm8337_vm0, %v2323_v15  ;;  %s2383_s12 = sadd.s32 %s7593_s19, %s2380_s24  ;;  %s7595_s17 = sshll.u32 %s2401_s16, 4 }
 0xba8   :  { %s2425_s24 = sshra.s32 %s9694_s21, 3  ;;  %s7598_s16 = sshll.u32 %s2434_s5, 4 }
 0xba9   :  { %7848 = vmatpush1.bf16.msra.mxu1 %v8311_v21  ;;  %v2346_v21 = vld [vmem:[%s2345_s18] ss:$8 sm:$0x3]  ;;  %s2384_s18 = scalar_lea.vmem %s10801_s1, %s2383_s12  ;;  %s2428_s12 = sand.u32 7, %s9694_s21 }
 0xbaa   :  { %7850 = vmatprep.subr.bf16.mxu1 %v8316_v23  ;;  %v2347_v23 = vadd.f32 %v2346_v21, %v2337_v16  ;;  %v2385_v52 = vld [vmem:[%s2384_s18] ss:$8 sm:$0x3]  ;;  %s7597_s27 = sshll.u32 %s2425_s24, 4  ;;  %s2440_s6 = sadd.s32 %s7598_s16, %s2437_s7 }
 0xbab   :  { %v2395_v55 = vadd.f32 %v2394_v53, %v2385_v52  ;;  %s2431_s13 = sadd.s32 %s7597_s27, %s2428_s12  ;;  %s2441_s21 = scalar_lea.vmem %s10802_s2, %s2440_s6 }
 0xbac   :  { %2349 = vst.msk [vmem:[#allocation2 + $0xb1] ss:$8 sm:$0x3] %vm8337_vm0, %v2347_v23  ;;  %s2432_s11 = scalar_lea.vmem %s10801_s1, %s2431_s13  ;;  %v2442_v61 = vld [vmem:[%s2441_s21] ss:$8 sm:$0x3] }
 0xbad   :  { %7852 = vmatpush1.bf16.msra.mxu1 %v8334_v27  ;;  %v2361_v27 = vld [vmem:[%s2360_s22] ss:$8 sm:$0x3]  ;;  %s2407_s22 = sadd.s32 %s7595_s17, %s2404_s30  ;;  %2397 = vst.msk [vmem:[#allocation2 + $0xb3] ss:$8 sm:$0x3] %vm8337_vm0, %v2395_v55 }
 0xbae   :  { %v2371_v49 = vadd.f32 %v2370_v40, %v2361_v27  ;;  %s2408_s3 = scalar_lea.vmem %s10801_s1, %s2407_s22  ;;  %v2433_v60 = vld [vmem:[%s2432_s11] ss:$8 sm:$0x3]  ;;  %s7155_s17 = sld [smem:[#allocation4 + $0x702]] }
 0xbaf   :  { %v2409_v56 = vld [vmem:[%s2408_s3] ss:$8 sm:$0x3]  ;;  %v2443_v62 = vadd.f32 %v2442_v61, %v2433_v60  ;;  %s2449_s22 = sshra.s32 %s7154_s29, 3  ;;  %s2473_s12 = sshra.s32 %s7160_s20, 3 }
 0xbb0   :  { %2373 = vst.msk [vmem:[#allocation2 + $0xb2] ss:$8 sm:$0x3] %vm8337_vm0, %v2371_v49  ;;  %v2419_v58 = vadd.f32 %v2418_v57, %v2409_v56  ;;  %s7599_s14 = sshll.u32 %s2449_s22, 4  ;;  %s2476_s7 = sand.u32 7, %s7160_s20 }
 0xbb1   :  { %2445 = vst.msk [vmem:[#allocation2 + $0xb5] ss:$8 sm:$0x3] %vm8337_vm0, %v2443_v62  ;;  %s2455_s3 = sadd.s32 %s7599_s14, %s2452_s9  ;;  %s7601_s18 = sshll.u32 %s2473_s12, 4 }
 0xbb2   :  { %2421 = vst.msk [vmem:[#allocation2 + $0xb4] ss:$8 sm:$0x3] %vm8337_vm0, %v2419_v58  ;;  %s2456_s4 = scalar_lea.vmem %s10801_s1, %s2455_s3  ;;  %s2482_s28 = sshra.s32 %s7161_s0, 3 }
 0xbb3   :  { %v2457_v46 = vld [vmem:[%s2456_s4] ss:$8 sm:$0x3]  ;;  %s2479_s11 = sadd.s32 %s7601_s18, %s2476_s7  ;;  %s2485_s16 = sand.u32 7, %s7161_s0 }
 0xbb4   :  { %s2458_s10 = sshra.s32 %s7155_s17, 3  ;;  %s2461_s25 = sand.u32 7, %s7155_s17 }
 0xbb5   :  { %s7600_s19 = sshll.u32 %s2458_s10, 4  ;;  %s2480_s23 = scalar_lea.vmem %s10801_s1, %s2479_s11 }
 0xbb6   :  { %s2464_s8 = sadd.s32 %s7600_s19, %s2461_s25  ;;  %s7602_s30 = sshll.u32 %s2482_s28, 4  ;;  %v2481_v4 = vld [vmem:[%s2480_s23] ss:$8 sm:$0x3] }
 0xbb7   :  { %s2465_s13 = scalar_lea.vmem %s10802_s2, %s2464_s8  ;;  %s2488_s21 = sadd.s32 %s7602_s30, %s2485_s16 }
 0xbb8   :  { %v2466_v0 = vld [vmem:[%s2465_s13] ss:$8 sm:$0x3]  ;;  %s2489_s20 = scalar_lea.vmem %s10802_s2, %s2488_s21  ;;  %s7166_s0 = sld [smem:[#allocation4 + $0x6]] }
 0xbb9   :  { %v2467_v1 = vadd.f32 %v2466_v0, %v2457_v46  ;;  %v2490_v19 = vld [vmem:[%s2489_s20] ss:$8 sm:$0x3]  ;;  %s7167_s9 = sld [smem:[#allocation4 + $0x1]]  ;;  %s9798_s14 = sld [smem:[#allocation4 + $0x86]] }
 0xbba   :  { %v2491_v3 = vadd.f32 %v2490_v19, %v2481_v4  ;;  %s9800_s10 = sld [smem:[#allocation4 + $0x81]]  ;;  %s9802_s3 = sld [smem:[#allocation4 + $0x106]] }
 0xbbb   :  { %2469 = vst.msk [vmem:[#allocation2 + $0xb6] ss:$8 sm:$0x3] %vm8337_vm0, %v2467_v1  ;;  %s9804_s25 = sld [smem:[#allocation4 + $0x101]]  ;;  %s9810_s4 = sld [smem:[#allocation4 + $0x206]] }
 0xbbc   :  { %2493 = vst.msk [vmem:[#allocation2 + $0xb7] ss:$8 sm:$0x3] %vm8337_vm0, %v2491_v3  ;;  %s9808_s24 = sld [smem:[#allocation4 + $0x181]]  ;;  %s9814_s8 = sld [smem:[#allocation4 + $0x286]] }
 0xbbd   :  { %s9812_s19 = sld [smem:[#allocation4 + $0x201]] }
 0xbbe   :  { %s9816_s12 = sld [smem:[#allocation4 + $0x281]]  ;;  %s2497_s27 = sshra.s32 %s7166_s0, 3 }
 0xbbf   :  { %s2500_s5 = sand.u32 7, %s7166_s0  ;;  %s7603_s13 = sshll.u32 %s2497_s27, 4 }
 0xbc0   :  { %s2506_s7 = sshra.s32 %s7167_s9, 3  ;;  %s2503_s18 = sadd.s32 %s7603_s13, %s2500_s5 }
 0xbc1   :  { %s2509_s28 = sand.u32 7, %s7167_s9  ;;  %s2504_s6 = scalar_lea.vmem %s10801_s1, %s2503_s18 }
 0xbc2   :  { %s7604_s29 = sshll.u32 %s2506_s7, 4  ;;  %v2505_v47 = vld [vmem:[%s2504_s6] ss:$8 sm:$0x3]  ;;  %s2521_s30 = sshra.s32 %s9798_s14, 3 }
 0xbc3   :  { %v4035_v14 = vld [vmem:[#allocation2 + $0xb8] sm:$0xff]  ;;  %v4034_v25 = vld [vmem:[#allocation2 + $0xb0] sm:$0xff]  ;;  %s2512_s23 = sadd.s32 %s7604_s29, %s2509_s28  ;;  %s2524_s20 = sand.u32 7, %s9798_s14 }
 0xbc4   :  { %s2513_s22 = scalar_lea.vmem %s10802_s2, %s2512_s23  ;;  %s7605_s0 = sshll.u32 %s2521_s30, 4 }
 0xbc5   :  { %v2514_v48 = vld [vmem:[%s2513_s22] ss:$8 sm:$0x3]  ;;  %s2530_s9 = sshra.s32 %s9800_s10, 3  ;;  %s2527_s27 = sadd.s32 %s7605_s0, %s2524_s20 }
 0xbc6   :  { %v2515_v44 = vadd.f32 %v2514_v48, %v2505_v47  ;;  %s2533_s5 = sand.u32 7, %s9800_s10  ;;  %s2528_s18 = scalar_lea.vmem %s10801_s1, %s2527_s27 }
 0xbc7   :  { %s7606_s28 = sshll.u32 %s2530_s9, 4  ;;  %v2529_v9 = vld [vmem:[%s2528_s18] ss:$8 sm:$0x3]  ;;  %s2545_s14 = sshra.s32 %s9802_s3, 3 }
 0xbc8   :  { %2517 = vst.msk [vmem:[#allocation2 + $0xc0] ss:$8 sm:$0x3] %vm8337_vm0, %v2515_v44  ;;  %s2536_s11 = sadd.s32 %s7606_s28, %s2533_s5  ;;  %s2548_s23 = sand.u32 7, %s9802_s3 }
 0xbc9   :  { %s2537_s29 = scalar_lea.vmem %s10802_s2, %s2536_s11  ;;  %s7607_s10 = sshll.u32 %s2545_s14, 4 }
 0xbca   :  { %v2538_v10 = vld [vmem:[%s2537_s29] ss:$8 sm:$0x3]  ;;  %s2554_s30 = sshra.s32 %s9804_s25, 3  ;;  %s2551_s21 = sadd.s32 %s7607_s10, %s2548_s23 }
 0xbcb   :  { %v2539_v15 = vadd.f32 %v2538_v10, %v2529_v9  ;;  %s2557_s17 = sand.u32 7, %s9804_s25  ;;  %s2552_s0 = scalar_lea.vmem %s10801_s1, %s2551_s21 }
 0xbcc   :  { %s7608_s9 = sshll.u32 %s2554_s30, 4  ;;  %v2553_v16 = vld [vmem:[%s2552_s0] ss:$8 sm:$0x3]  ;;  %s2569_s3 = sshra.s32 %s9806_s26, 3 }
 0xbcd   :  { %2541 = vst.msk [vmem:[#allocation2 + $0xc1] ss:$8 sm:$0x3] %vm8337_vm0, %v2539_v15  ;;  %s2560_s27 = sadd.s32 %s7608_s9, %s2557_s17  ;;  %s2572_s18 = sand.u32 7, %s9806_s26 }
 0xbce   :  { %s2561_s7 = scalar_lea.vmem %s10802_s2, %s2560_s27  ;;  %s7609_s25 = sshll.u32 %s2569_s3, 4 }
 0xbcf   :  { %v2562_v21 = vld [vmem:[%s2561_s7] ss:$8 sm:$0x3]  ;;  %s2578_s28 = sshra.s32 %s9808_s24, 3  ;;  %s2575_s11 = sadd.s32 %s7609_s25, %s2572_s18 }
 0xbd0   :  { %v2563_v23 = vadd.f32 %v2562_v21, %v2553_v16  ;;  %s2581_s14 = sand.u32 7, %s9808_s24  ;;  %s2576_s29 = scalar_lea.vmem %s10801_s1, %s2575_s11 }
 0xbd1   :  { %s7610_s23 = sshll.u32 %s2578_s28, 4  ;;  %v2577_v27 = vld [vmem:[%s2576_s29] ss:$8 sm:$0x3]  ;;  %s2593_s26 = sshra.s32 %s9810_s4, 3 }
 0xbd2   :  { %2565 = vst.msk [vmem:[#allocation2 + $0xc2] ss:$8 sm:$0x3] %vm8337_vm0, %v2563_v23  ;;  %s2584_s10 = sadd.s32 %s7610_s23, %s2581_s14  ;;  %s2596_s22 = sand.u32 7, %s9810_s4 }
 0xbd3   :  { %s2585_s17 = scalar_lea.vmem %s10802_s2, %s2584_s10  ;;  %s7611_s24 = sshll.u32 %s2593_s26, 4 }
 0xbd4   :  { %v2586_v40 = vld [vmem:[%s2585_s17] ss:$8 sm:$0x3]  ;;  %s2602_s20 = sshra.s32 %s9812_s19, 3  ;;  %s2599_s0 = sadd.s32 %s7611_s24, %s2596_s22 }
 0xbd5   :  { %v2587_v49 = vadd.f32 %v2586_v40, %v2577_v27  ;;  %s2605_s9 = sand.u32 7, %s9812_s19  ;;  %s2600_s5 = scalar_lea.vmem %s10801_s1, %s2599_s0 }
 0xbd6   :  { %s7612_s13 = sshll.u32 %s2602_s20, 4  ;;  %v2601_v52 = vld [vmem:[%s2600_s5] ss:$8 sm:$0x3]  ;;  %s2617_s18 = sshra.s32 %s9814_s8, 3 }
 0xbd7   :  { %2589 = vst.msk [vmem:[#allocation2 + $0xc3] ss:$8 sm:$0x3] %vm8337_vm0, %v2587_v49  ;;  %s2608_s7 = sadd.s32 %s7612_s13, %s2605_s9  ;;  %s2620_s11 = sand.u32 7, %s9814_s8 }
 0xbd8   :  { %s2609_s28 = scalar_lea.vmem %s10802_s2, %s2608_s7  ;;  %s7613_s14 = sshll.u32 %s2617_s18, 4 }
 0xbd9   :  { %v2610_v53 = vld [vmem:[%s2609_s28] ss:$8 sm:$0x3]  ;;  %s2626_s16 = sshra.s32 %s9816_s12, 3  ;;  %s2623_s19 = sadd.s32 %s7613_s14, %s2620_s11 }
 0xbda   :  { %v2611_v55 = vadd.f32 %v2610_v53, %v2601_v52  ;;  %s2629_s6 = sand.u32 7, %s9816_s12  ;;  %s2624_s10 = scalar_lea.vmem %s10801_s1, %s2623_s19 }
 0xbdb   :  { %s7614_s26 = sshll.u32 %s2626_s16, 4  ;;  %v2625_v56 = vld [vmem:[%s2624_s10] ss:$8 sm:$0x3]  ;;  %s7202_s21 = sld [smem:[#allocation4 + $0x306]] }
 0xbdc   :  { %2613 = vst.msk [vmem:[#allocation2 + $0xc4] ss:$8 sm:$0x3] %vm8337_vm0, %v2611_v55  ;;  %s2632_s30 = sadd.s32 %s7614_s26, %s2629_s6  ;;  %s7203_s24 = sld [smem:[#allocation4 + $0x301]] }
 0xbdd   :  { %s2633_s8 = scalar_lea.vmem %s10802_s2, %s2632_s30  ;;  %s7208_s20 = sld [smem:[#allocation4 + $0x386]] }
 0xbde   :  { %v2634_v57 = vld [vmem:[%s2633_s8] ss:$8 sm:$0x3]  ;;  %s7209_s12 = sld [smem:[#allocation4 + $0x381]]  ;;  %s9915_s7 = sld [smem:[#allocation4 + $0x586]] }
 0xbdf   :  { %v2635_v58 = vadd.f32 %v2634_v57, %v2625_v56  ;;  %s9917_s18 = sld [smem:[#allocation4 + $0x581]] }
 0xbe1   :  { %2637 = vst.msk [vmem:[#allocation2 + $0xc5] ss:$8 sm:$0x3] %vm8337_vm0, %v2635_v58  ;;  %s2641_s0 = sshra.s32 %s7202_s21, 3  ;;  %s2644_s9 = sand.u32 7, %s7202_s21 }
 0xbe2   :  { %s7615_s27 = sshll.u32 %s2641_s0, 4  ;;  %s2650_s3 = sshra.s32 %s7203_s24, 3 }
 0xbe3   :  { %s2647_s5 = sadd.s32 %s7615_s27, %s2644_s9  ;;  %s2653_s13 = sand.u32 7, %s7203_s24 }
 0xbe4   :  { %s2648_s4 = scalar_lea.vmem %s10801_s1, %s2647_s5  ;;  %s7616_s25 = sshll.u32 %s2650_s3, 4 }
 0xbe5   :  { %v2649_v60 = vld [vmem:[%s2648_s4] ss:$8 sm:$0x3]  ;;  %s2656_s28 = sadd.s32 %s7616_s25, %s2653_s13  ;;  %s2665_s11 = sshra.s32 %s7208_s20, 3 }
 0xbe6   :  { %s2657_s19 = scalar_lea.vmem %s10802_s2, %s2656_s28  ;;  %s2668_s6 = sand.u32 7, %s7208_s20 }
 0xbe7   :  { %v2658_v61 = vld [vmem:[%s2657_s19] ss:$8 sm:$0x3]  ;;  %s7617_s29 = sshll.u32 %s2665_s11, 4  ;;  %s2674_s23 = sshra.s32 %s7209_s12, 3 }
 0xbe8   :  { %v2659_v62 = vadd.f32 %v2658_v61, %v2649_v60  ;;  %s2671_s10 = sadd.s32 %s7617_s29, %s2668_s6  ;;  %s2677_s26 = sand.u32 7, %s7209_s12 }
 0xbe9   :  { %s2672_s17 = scalar_lea.vmem %s10801_s1, %s2671_s10  ;;  %s7618_s22 = sshll.u32 %s2674_s23, 4 }
 0xbea   :  { %2661 = vst.msk [vmem:[#allocation2 + $0xc6] ss:$8 sm:$0x3] %vm8337_vm0, %v2659_v62  ;;  %v2673_v46 = vld [vmem:[%s2672_s17] ss:$8 sm:$0x3]  ;;  %s2680_s8 = sadd.s32 %s7618_s22, %s2677_s26 }
 0xbeb   :  { %s2681_s20 = scalar_lea.vmem %s10802_s2, %s2680_s8  ;;  %s7214_s12 = sld [smem:[#allocation4 + $0x406]] }
 0xbec   :  { %v2682_v0 = vld [vmem:[%s2681_s20] ss:$8 sm:$0x3]  ;;  %s7215_s9 = sld [smem:[#allocation4 + $0x401]]  ;;  %s7220_s27 = sld [smem:[#allocation4 + $0x486]] }
 0xbed   :  { %v2683_v1 = vadd.f32 %v2682_v0, %v2673_v46  ;;  %s9909_s3 = sld [smem:[#allocation4 + $0x481]]  ;;  %s9911_s5 = sld [smem:[#allocation4 + $0x506]] }
 0xbee   :  { %s9913_s13 = sld [smem:[#allocation4 + $0x501]]  ;;  %s9919_s4 = sld [smem:[#allocation4 + $0x606]] }
 0xbef   :  { %2685 = vst.msk [vmem:[#allocation2 + $0xc7] ss:$8 sm:$0x3] %vm8337_vm0, %v2683_v1  ;;  %s9921_s25 = sld [smem:[#allocation4 + $0x601]]  ;;  %s9923_s28 = sld [smem:[#allocation4 + $0x686]] }
 0xbf0   :  { %s9925_s11 = sld [smem:[#allocation4 + $0x681]] }
 0xbf1   :  { %s2689_s14 = sshra.s32 %s7214_s12, 3  ;;  %s2692_s19 = sand.u32 7, %s7214_s12 }
 0xbf2   :  { %s2698_s16 = sshra.s32 %s7215_s9, 3  ;;  %s7619_s6 = sshll.u32 %s2689_s14, 4 }
 0xbf3   :  { %s2695_s29 = sadd.s32 %s7619_s6, %s2692_s19  ;;  %s2701_s23 = sand.u32 7, %s7215_s9 }
 0xbf4   :  { %s2696_s30 = scalar_lea.vmem %s10801_s1, %s2695_s29  ;;  %s7620_s21 = sshll.u32 %s2698_s16, 4 }
 0xbf5   :  { %s2704_s17 = sadd.s32 %s7620_s21, %s2701_s23  ;;  %s2713_s22 = sshra.s32 %s7220_s27, 3 }
 0xbf6   :  { %s2705_s0 = scalar_lea.vmem %s10802_s2, %s2704_s17  ;;  %s2716_s20 = sand.u32 7, %s7220_s27  ;;  %v4184_v48 = vld [vmem:[#allocation2 + $0xc8] sm:$0xff]  ;;  %v4183_v49 = vld [vmem:[#allocation2 + $0xc0] sm:$0xff] }
 0xbf7   :  { %s7621_s12 = sshll.u32 %s2713_s22, 4  ;;  %s2722_s14 = sshra.s32 %s9909_s3, 3 }
 0xbf8   :  { %s2719_s9 = sadd.s32 %s7621_s12, %s2716_s20  ;;  %s2725_s19 = sand.u32 7, %s9909_s3 }
 0xbf9   :  { %s2720_s29 = scalar_lea.vmem %s10801_s1, %s2719_s9  ;;  %s7622_s23 = sshll.u32 %s2722_s14, 4 }
 0xbfa   :  { %s2728_s10 = sadd.s32 %s7622_s23, %s2725_s19  ;;  %s2737_s27 = sshra.s32 %s9911_s5, 3 }
 0xbfb   :  { %s2729_s21 = scalar_lea.vmem %s10802_s2, %s2728_s10  ;;  %s2740_s17 = sand.u32 7, %s9911_s5 }
 0xbfc   :  { %s7623_s3 = sshll.u32 %s2737_s27, 4  ;;  %s2746_s22 = sshra.s32 %s9913_s13, 3 }
 0xbfd   :  { %s2743_s8 = sadd.s32 %s7623_s3, %s2740_s17  ;;  %s2749_s24 = sand.u32 7, %s9913_s13 }
 0xbfe   :  { %s2744_s12 = scalar_lea.vmem %s10801_s1, %s2743_s8  ;;  %s7624_s14 = sshll.u32 %s2746_s22, 4 }
 0xbff   :  { %s2752_s9 = sadd.s32 %s7624_s14, %s2749_s24  ;;  %s2761_s5 = sshra.s32 %s9915_s7, 3 }
 0xc00   :  { %s2753_s16 = scalar_lea.vmem %s10802_s2, %s2752_s9  ;;  %s7625_s13 = sshll.u32 %s2761_s5, 4 }
 0xc01   :  { %s2770_s23 = sshra.s32 %s9917_s18, 3  ;;  %s2773_s27 = sand.u32 7, %s9917_s18 }
 0xc02   :  { %s7626_s17 = sshll.u32 %s2770_s23, 4  ;;  %s2794_s20 = sshra.s32 %s9921_s25, 3 }
 0xc03   :  { %s2776_s3 = sadd.s32 %s7626_s17, %s2773_s27  ;;  %s2797_s14 = sand.u32 7, %s9921_s25 }
 0xc04   :  { %s2777_s24 = scalar_lea.vmem %s10802_s2, %s2776_s3  ;;  %s7628_s6 = sshll.u32 %s2794_s20, 4 }
 0xc05   :  { %s2818_s26 = sshra.s32 %s9925_s11, 3  ;;  %s7250_s8 = sld [smem:[#allocation4 + $0x706]] }
 0xc06   :  { %s7256_s20 = sld [smem:[#allocation4 + $0x786]] }
 0xc73   :  { %v4108_v7 = vpop.f32.mrb[8].mxu1 }
 0xc74   :  { %v4110_v11 = vpop.f32.mrb[9].mxu1  ;;  %v4119_v36 = vadd.f32 %v4108_v7, %v4032_v20  ;;  %v2706_v20 = vld [vmem:[%s2705_s0] ss:$8 sm:$0x3]  ;;  %s2788_s0 = sand.u32 7, %s9919_s4 }
 0xc75   :  { %v9780_v12 = vadd.f32 %v4110_v11, %v4033_v5 }
 0xc76   :  { %v7387_v26 = vmul.f32 -1.442695, %v4119_v36 }
 0xc77   :  { %8012 = vtanh.f32 %v9780_v12  ;;  %v4114_v17 = vpop.f32.mrb[10].mxu1  ;;  %v7388_v4 = vmul.f32 -1.442695, %v9780_v12 }
 0xc78   :  { %v4116_v59 = vpop.f32.mrb[11].mxu1  ;;  %v4121_v28 = vadd.f32 %v4114_v17, %v4034_v25  ;;  %v2721_v25 = vld [vmem:[%s2720_s29] ss:$8 sm:$0x3]  ;;  %s2764_s29 = sand.u32 7, %s9915_s7  ;;  %s2785_s7 = sshra.s32 %s9919_s4, 3 }
 0xc79   :  { %v9783_v63 = vadd.f32 %v4116_v59, %v4035_v14  ;;  %s2767_s10 = sadd.s32 %s7625_s13, %s2764_s29  ;;  %s7627_s18 = sshll.u32 %s2785_s7, 4 }
 0xc7a   :  { %v7389_v31 = vmul.f32 -1.442695, %v4121_v28  ;;  %s2809_s29 = sshra.s32 %s9923_s28, 3  ;;  %s7630_s7 = sshll.u32 %s2818_s26, 4 }
 0xc7b   :  { %8014 = vtanh.f32 %v9783_v63  ;;  %v7390_v19 = vmul.f32 -1.442695, %v9783_v63  ;;  %v2697_v63 = vld [vmem:[%s2696_s30] ss:$8 sm:$0x3]  ;;  %s7629_s27 = sshll.u32 %s2809_s29, 4 }
 0xc7c   :  { %8016 = vpow2.f32 %v7387_v26  ;;  %v2707_v36 = vadd.f32 %v2706_v20, %v2697_v63  ;;  %v2730_v26 = vld [vmem:[%s2729_s21] ss:$8 sm:$0x3]  ;;  %s2768_s21 = scalar_lea.vmem %s10801_s1, %s2767_s10  ;;  %s2812_s10 = sand.u32 7, %s9923_s28 }
 0xc7d   :  { %8018 = vpow2.f32 %v7389_v31  ;;  %v2731_v28 = vadd.f32 %v2730_v26, %v2721_v25  ;;  %v2745_v31 = vld [vmem:[%s2744_s12] ss:$8 sm:$0x3]  ;;  %s2791_s12 = sadd.s32 %s7627_s18, %s2788_s0  ;;  %s2815_s25 = sadd.s32 %s7629_s27, %s2812_s10 }
 0xc7e   :  { %2709 = vst.msk [vmem:[#allocation2 + $0xd0] ss:$8 sm:$0x3] %vm8337_vm0, %v2707_v36  ;;  %s2792_s19 = scalar_lea.vmem %s10801_s1, %s2791_s12  ;;  %s2821_s30 = sand.u32 7, %s9925_s11 }
 0xc7f   :  { %2733 = vst.msk [vmem:[#allocation2 + $0xd1] ss:$8 sm:$0x3] %vm8337_vm0, %v2731_v28  ;;  %s2816_s3 = scalar_lea.vmem %s10801_s1, %s2815_s25  ;;  %s2824_s22 = sadd.s32 %s7630_s7, %s2821_s30 }
 0xc80   :  { %s2825_s28 = scalar_lea.vmem %s10802_s2, %s2824_s22  ;;  %s7251_s18 = sld [smem:[#allocation4 + $0x701]] }
 0xc81   :  { %v8013_v18 = vpop.eup %8012  ;;  %s7257_s11 = sld [smem:[#allocation4 + $0x781]]  ;;  %s2833_s12 = sshra.s32 %s7250_s8, 3 }
 0xc82   :  { %4153 = vrot.lane.b32.xlu0 %v8013_v18, %s10852_s15  ;;  %s7631_s9 = sshll.u32 %s2833_s12, 4  ;;  %s2857_s10 = sshra.s32 %s7256_s20, 3 }
 0xc83   :  { %s2860_s30 = sand.u32 7, %s7256_s20  ;;  %s10037_s29 = sld [smem:[#allocation4 + $0x180]] }
 0xc85   :  { %v8015_v33 = vpop.eup %8014 }
 0xc86   :  { %4155 = vrot.lane.b32.xlu1 %v8015_v33, %s10852_s15  ;;  %v8017_v32 = vpop.eup %8016  ;;  %s2842_s5 = sshra.s32 %s7251_s18, 3 }
 0xc87   :  { %v4135_v6 = vadd.f32 1.0, %v8017_v32  ;;  %v8019_v13 = vpop.eup %8018  ;;  %v2754_v32 = vld [vmem:[%s2753_s16] ss:$8 sm:$0x3]  ;;  %s2800_s16 = sadd.s32 %s7628_s6, %s2797_s14  ;;  %s2836_s14 = sand.u32 7, %s7250_s8 }
 0xc88   :  { %v4137_v34 = vadd.f32 1.0, %v8019_v13  ;;  %v2769_v13 = vld [vmem:[%s2768_s21] ss:$8 sm:$0x3]  ;;  %s2801_s23 = scalar_lea.vmem %s10802_s2, %s2800_s16  ;;  %s2845_s6 = sand.u32 7, %s7251_s18 }
 0xc89   :  { %8020 = vrcp.f32 %v4135_v6  ;;  %v2755_v6 = vadd.f32 %v2754_v32, %v2745_v31  ;;  %s7632_s13 = sshll.u32 %s2842_s5, 4  ;;  %s7633_s21 = sshll.u32 %s2857_s10, 4 }
 0xc8a   :  { %8022 = vrcp.f32 %v4137_v34  ;;  %v2778_v34 = vld [vmem:[%s2777_s24] ss:$8 sm:$0x3]  ;;  %s2866_s17 = sshra.s32 %s7257_s11, 3  ;;  %s2869_s7 = sand.u32 7, %s7257_s11 }
 0xc8b   :  { %2757 = vst.msk [vmem:[#allocation2 + $0xd2] ss:$8 sm:$0x3] %vm8337_vm0, %v2755_v6  ;;  %s7634_s0 = sshll.u32 %s2866_s17, 4  ;;  %s7262_s11 = sld [smem:[#allocation4 + $0x7]] }
 0xc8c   :  { %s10029_s5 = sld [smem:[#allocation4 + $0x80]]  ;;  %s10035_s16 = sld [smem:[#allocation4 + $0x187]] }
 0xc8d   :  { %s10045_s10 = sld [smem:[#allocation4 + $0x280]] }
 0xc91   :  { %s2881_s27 = sshra.s32 %s7262_s11, 3  ;;  %s2884_s26 = sand.u32 7, %s7262_s11 }
 0xc93   :  { %v8021_v35 = vpop.eup %8020 }
 0xc94   :  { %v8023_v38 = vpop.eup %8022  ;;  %v4149_v30 = vmul.f32 %v8021_v35, %v9554_v50 }
 0xc95   :  { %v4150_v51 = vmul.f32 %v8023_v38, %v9558_v2 }
 0xcf4   :  { %v4154_v41 = vpop.permute.xlu0 %4153 }
 0xcf5   :  { %v4159_v37 = vmul.f32 %v8021_v35, %v4154_v41  ;;  %v2779_v35 = vadd.f32 %v2778_v34, %v2769_v13  ;;  %v2793_v41 = vld [vmem:[%s2792_s19] ss:$8 sm:$0x3]  ;;  %s2839_s19 = sadd.s32 %s7631_s9, %s2836_s14  ;;  %s2880_s14 = sld [smem:[#allocation4]] }
 0xcf6   :  { %s2840_s4 = scalar_lea.vmem %s10801_s1, %s2839_s19  ;;  %s10027_s9 = sld [smem:[#allocation4 + $0x87]] }
 0xcf7   :  { %4163 = vrot.lane.b32.xlu0 %v4159_v37, %s10852_s15  ;;  %2781 = vst.msk [vmem:[#allocation2 + $0xd3] ss:$8 sm:$0x3] %vm8337_vm0, %v2779_v35  ;;  %v2802_v37 = vld [vmem:[%s2801_s23] ss:$8 sm:$0x3]  ;;  %s2848_s23 = sadd.s32 %s7632_s13, %s2845_s6 }
 0xcf8   :  { %v4156_v39 = vpop.permute.xlu1 %4155  ;;  %s2849_s25 = scalar_lea.vmem %s10802_s2, %s2848_s23  ;;  %s10031_s19 = sld [smem:[#allocation4 + $0x107]] }
 0xcf9   :  { %v4160_v24 = vmul.f32 %v8023_v38, %v4156_v39  ;;  %v2803_v38 = vadd.f32 %v2802_v37, %v2793_v41  ;;  %v2817_v39 = vld [vmem:[%s2816_s3] ss:$8 sm:$0x3]  ;;  %s2863_s3 = sadd.s32 %s7633_s21, %s2860_s30  ;;  %s10033_s6 = sld [smem:[#allocation4 + $0x100]] }
 0xcfa   :  { %s2864_s24 = scalar_lea.vmem %s10801_s1, %s2863_s3  ;;  %s10041_s13 = sld [smem:[#allocation4 + $0x200]] }
 0xcfb   :  { %4165 = vrot.lane.b32.xlu1 %v4160_v24, %s10852_s15  ;;  %2805 = vst.msk [vmem:[#allocation2 + $0xd4] ss:$8 sm:$0x3] %vm8337_vm0, %v2803_v38  ;;  %v2826_v24 = vld [vmem:[%s2825_s28] ss:$8 sm:$0x3]  ;;  %s2872_s28 = sadd.s32 %s7634_s0, %s2869_s7 }
 0xcfc   :  { %s2873_s20 = scalar_lea.vmem %s10802_s2, %s2872_s28  ;;  %s10043_s23 = sld [smem:[#allocation4 + $0x287]] }
 0xcfd   :  { %s2890_s30 = sshra.s32 %s2880_s14, 3  ;;  %s2893_s17 = sand.u32 7, %s2880_s14 }
 0xcfe   :  { %s7636_s8 = sshll.u32 %s2890_s30, 4  ;;  %s2905_s0 = sshra.s32 %s10027_s9, 3 }
 0xcff   :  { %s7637_s11 = sshll.u32 %s2905_s0, 4  ;;  %s2914_s14 = sshra.s32 %s10029_s5, 3 }
 0xd00   :  { %s2938_s0 = sshra.s32 %s10033_s6, 3  ;;  %s2941_s18 = sand.u32 7, %s10033_s6 }
 0xd01   :  { %s3010_s7 = sshra.s32 %s10045_s10, 3 }
 0xd69   :  { %v4164_v42 = vpop.permute.xlu0 %4163 }
 0xd6a   :  { %v9791_v43 = vadd.f32 %v4164_v42, %v4149_v30  ;;  %v2827_v30 = vadd.f32 %v2826_v24, %v2817_v39  ;;  %v2841_v42 = vld [vmem:[%s2840_s4] ss:$8 sm:$0x3]  ;;  %s10039_s4 = sld [smem:[#allocation4 + $0x207]] }
 0xd6c   :  { %8024 = vtanh.f32 %v9791_v43  ;;  %2829 = vst.msk [vmem:[#allocation2 + $0xd5] ss:$8 sm:$0x3] %vm8337_vm0, %v2827_v30 }
 0xd6d   :  { %v4166_v54 = vpop.permute.xlu1 %4165 }
 0xd6e   :  { %v9795_v45 = vadd.f32 %v4166_v54, %v4150_v51  ;;  %v2850_v51 = vld [vmem:[%s2849_s25] ss:$8 sm:$0x3]  ;;  %s7635_s25 = sshll.u32 %s2881_s27, 4 }
 0xd6f   :  { %v2851_v54 = vadd.f32 %v2850_v51, %v2841_v42  ;;  %s2887_s21 = sadd.s32 %s7635_s25, %s2884_s26  ;;  %s2917_s26 = sand.u32 7, %s10029_s5 }
 0xd70   :  { %8026 = vtanh.f32 %v9795_v45  ;;  %s2888_s22 = scalar_lea.vmem %s10801_s1, %s2887_s21 }
 0xd71   :  { %8028 = vpow2.f32 %v7388_v4  ;;  %2853 = vst.msk [vmem:[#allocation2 + $0xd6] ss:$8 sm:$0x3] %vm8337_vm0, %v2851_v54 }
 0xd72   :  { %8030 = vpow2.f32 %v7390_v19 }
 0xd76   :  { %v8025_v50 = vpop.eup %8024 }
 0xd77   :  { %4175 = vrot.lane.b32.xlu0 %v8025_v50, %s10852_s15  ;;  %v2865_v50 = vld [vmem:[%s2864_s24] ss:$8 sm:$0x3]  ;;  %s2896_s24 = sadd.s32 %s7636_s8, %s2893_s17  ;;  %s7638_s17 = sshll.u32 %s2914_s14, 4 }
 0xd78   :  { %s2897_s12 = scalar_lea.vmem %s10802_s2, %s2896_s24  ;;  %s2920_s3 = sadd.s32 %s7638_s17, %s2917_s26 }
 0xd79   :  { %s2921_s8 = scalar_lea.vmem %s10802_s2, %s2920_s3  ;;  %s2932_s24 = sand.u32 7, %s10031_s19 }
 0xd7a   :  { %v8027_v2 = vpop.eup %8026  ;;  %v2922_v20 = vld [vmem:[%s2921_s8] ss:$8 sm:$0x3]  ;;  %s7640_s14 = sshll.u32 %s2938_s0, 4  ;;  %s2962_s17 = sshra.s32 %s10037_s29, 3 }
 0xd7b   :  { %4177 = vrot.lane.b32.xlu1 %v8027_v2, %s10852_s15  ;;  %v8029_v3 = vpop.eup %8028  ;;  %v2874_v2 = vld [vmem:[%s2873_s20] ss:$8 sm:$0x3]  ;;  %s2908_s20 = sand.u32 7, %s10027_s9  ;;  %s2929_s9 = sshra.s32 %s10031_s19, 3 }
 0xd7c   :  { %v4136_v5 = vadd.f32 1.0, %v8029_v3  ;;  %v8031_v7 = vpop.eup %8030  ;;  %v2875_v47 = vadd.f32 %v2874_v2, %v2865_v50  ;;  %s2911_s27 = sadd.s32 %s7637_s11, %s2908_s20  ;;  %s7639_s5 = sshll.u32 %s2929_s9, 4 }
 0xd7d   :  { %v4138_v11 = vadd.f32 1.0, %v8031_v7  ;;  %s2912_s21 = scalar_lea.vmem %s10801_s1, %s2911_s27  ;;  %s2935_s28 = sadd.s32 %s7639_s5, %s2932_s24 }
 0xd7e   :  { %8032 = vrcp.f32 %v4136_v5  ;;  %2877 = vst.msk [vmem:[#allocation2 + $0xd7] ss:$8 sm:$0x3] %vm8337_vm0, %v2875_v47  ;;  %v2913_v63 = vld [vmem:[%s2912_s21] ss:$8 sm:$0x3]  ;;  %s2936_s11 = scalar_lea.vmem %s10801_s1, %s2935_s28  ;;  %s2944_s27 = sadd.s32 %s7640_s14, %s2941_s18 }
 0xd7f   :  { %8034 = vrcp.f32 %v4138_v11  ;;  %v2923_v36 = vadd.f32 %v2922_v20, %v2913_v63  ;;  %v2937_v25 = vld [vmem:[%s2936_s11] ss:$8 sm:$0x3]  ;;  %s2953_s19 = sshra.s32 %s10035_s16, 3  ;;  %s2945_s30 = scalar_lea.vmem %s10802_s2, %s2944_s27 }
 0xd80   :  { %s2956_s21 = sand.u32 7, %s10035_s16  ;;  %v2946_v26 = vld [vmem:[%s2945_s30] ss:$8 sm:$0x3]  ;;  %s7641_s6 = sshll.u32 %s2953_s19, 4 }
 0xd81   :  { %2925 = vst.msk [vmem:[#allocation2 + $0xe1] ss:$8 sm:$0x3] %vm8337_vm0, %v2923_v36  ;;  %v2947_v28 = vadd.f32 %v2946_v26, %v2937_v25  ;;  %s2959_s3 = sadd.s32 %s7641_s6, %s2956_s21  ;;  %s2965_s9 = sand.u32 7, %s10037_s29 }
 0xd82   :  { %s2960_s8 = scalar_lea.vmem %s10801_s1, %s2959_s3  ;;  %s7642_s24 = sshll.u32 %s2962_s17, 4 }
 0xd83   :  { %2949 = vst.msk [vmem:[#allocation2 + $0xe2] ss:$8 sm:$0x3] %vm8337_vm0, %v2947_v28  ;;  %v2961_v31 = vld [vmem:[%s2960_s8] ss:$8 sm:$0x3]  ;;  %s2968_s5 = sadd.s32 %s7642_s24, %s2965_s9 }
 0xd84   :  { %s2977_s16 = sshra.s32 %s10039_s4, 3  ;;  %s2969_s18 = scalar_lea.vmem %s10802_s2, %s2968_s5 }
 0xd85   :  { %v4186_v15 = vld [vmem:[#allocation2 + $0xd8] sm:$0xff]  ;;  %v4185_v53 = vld [vmem:[#allocation2 + $0xd0] sm:$0xff]  ;;  %v2970_v32 = vld [vmem:[%s2969_s18] ss:$8 sm:$0x3]  ;;  %s7643_s29 = sshll.u32 %s2977_s16, 4 }
 0xd86   :  { %s2986_s20 = sshra.s32 %s10041_s13, 3  ;;  %v2971_v6 = vadd.f32 %v2970_v32, %v2961_v31  ;;  %s2989_s14 = sand.u32 7, %s10041_s13 }
 0xd87   :  { %s7644_s25 = sshll.u32 %s2986_s20, 4  ;;  %s3001_s21 = sshra.s32 %s10043_s23, 3 }
 0xd88   :  { %v8033_v14 = vpop.eup %8032  ;;  %2973 = vst.msk [vmem:[#allocation2 + $0xe3] ss:$8 sm:$0x3] %vm8337_vm0, %v2971_v6  ;;  %s2992_s30 = sadd.s32 %s7644_s25, %s2989_s14  ;;  %s3004_s3 = sand.u32 7, %s10043_s23 }
 0xd89   :  { %v8035_v18 = vpop.eup %8034  ;;  %s2993_s17 = scalar_lea.vmem %s10802_s2, %s2992_s30  ;;  %s7645_s9 = sshll.u32 %s3001_s21, 4 }
 0xd8a   :  { %v2994_v34 = vld [vmem:[%s2993_s17] ss:$8 sm:$0x3]  ;;  %s3007_s13 = sadd.s32 %s7645_s9, %s3004_s3  ;;  %s7646_s16 = sshll.u32 %s3010_s7, 4 }
 0xd8b   :  { %s3008_s5 = scalar_lea.vmem %s10801_s1, %s3007_s13  ;;  %s7297_s28 = sld [smem:[#allocation4 + $0x307]] }
 0xd8c   :  { %v3009_v41 = vld [vmem:[%s3008_s5] ss:$8 sm:$0x3]  ;;  %s7303_s20 = sld [smem:[#allocation4 + $0x387]]  ;;  %s10146_s21 = sld [smem:[#allocation4 + $0x580]] }
 0xd8d   :  { %s10144_s30 = sld [smem:[#allocation4 + $0x587]] }
 0xd91   :  { %s3028_s14 = sand.u32 7, %s7297_s28 }
 0xd92   :  { %s3049_s3 = sshra.s32 %s7303_s20, 3 }
 0xd93   :  { %s7649_s8 = sshll.u32 %s3049_s3, 4  ;;  %s10154_s3 = sld [smem:[#allocation4 + $0x680]] }
 0xde9   :  { %v4176_v17 = vpop.permute.xlu0 %4175 }
 0xdea   :  { %v4181_v59 = vmul.f32 %v8033_v14, %v4176_v17 }
 0xdec   :  { %7391 = vmatmul.mubr.msk.f32.vlgmr.msra.gmra.mrb[12].mxu0 %vm3283_vm1, %v4181_v59 }
 0xded   :  { %v4178_v33 = vpop.permute.xlu1 %4177  ;;  %4263 = vmatprep.mubr.f32.mxu0 %v8163_v8 }
 0xdee   :  { %v4182_v12 = vmul.f32 %v8035_v18, %v4178_v33  ;;  %v2889_v18 = vld [vmem:[%s2888_s22] ss:$8 sm:$0x3]  ;;  %s3013_s22 = sand.u32 7, %s10045_s10  ;;  %s7304_s10 = sld [smem:[#allocation4 + $0x380]] }
 0xdef   :  { %v2898_v33 = vld [vmem:[%s2897_s12] ss:$8 sm:$0x3]  ;;  %s2980_s12 = sand.u32 7, %s10039_s4  ;;  %s3016_s0 = sadd.s32 %s7646_s16, %s3013_s22 }
 0xdf0   :  { %7392 = vmatmul.mubr.msk.f32.gmra.mrb[14].mxu0 %vm3283_vm1, %v4182_v12  ;;  %v2899_v12 = vadd.f32 %v2898_v33, %v2889_v18  ;;  %s2983_s11 = sadd.s32 %s7643_s29, %s2980_s12  ;;  %s3017_s23 = scalar_lea.vmem %s10802_s2, %s3016_s0 }
 0xdf1   :  { %s2984_s26 = scalar_lea.vmem %s10801_s1, %s2983_s11  ;;  %s7298_s29 = sld [smem:[#allocation4 + $0x300]]  ;;  %v3018_v37 = vld [vmem:[%s3017_s23] ss:$8 sm:$0x3] }
 0xdf2   :  { %2901 = vst.msk [vmem:[#allocation2 + $0xe0] ss:$8 sm:$0x3] %vm8337_vm0, %v2899_v12  ;;  %v2985_v13 = vld [vmem:[%s2984_s26] ss:$8 sm:$0x3]  ;;  %v3019_v38 = vadd.f32 %v3018_v37, %v3009_v41 }
 0xdf3   :  { %v2995_v35 = vadd.f32 %v2994_v34, %v2985_v13  ;;  %s3025_s11 = sshra.s32 %s7297_s28, 3  ;;  %s3052_s22 = sand.u32 7, %s7303_s20 }
 0xdf4   :  { %3021 = vst.msk [vmem:[#allocation2 + $0xe5] ss:$8 sm:$0x3] %vm8337_vm0, %v3019_v38  ;;  %s7647_s27 = sshll.u32 %s3025_s11, 4  ;;  %s3058_s24 = sshra.s32 %s7304_s10, 3 }
 0xdf5   :  { %2997 = vst.msk [vmem:[#allocation2 + $0xe4] ss:$8 sm:$0x3] %vm8337_vm0, %v2995_v35  ;;  %s3031_s26 = sadd.s32 %s7647_s27, %s3028_s14  ;;  %s3055_s5 = sadd.s32 %s7649_s8, %s3052_s22 }
 0xdf6   :  { %s3032_s4 = scalar_lea.vmem %s10801_s1, %s3031_s26  ;;  %s3061_s16 = sand.u32 7, %s7304_s10 }
 0xdf7   :  { %s3034_s19 = sshra.s32 %s7298_s29, 3  ;;  %s3037_s25 = sand.u32 7, %s7298_s29  ;;  %v3033_v39 = vld [vmem:[%s3032_s4] ss:$8 sm:$0x3] }
 0xdf8   :  { %s7648_s6 = sshll.u32 %s3034_s19, 4  ;;  %s3056_s18 = scalar_lea.vmem %s10801_s1, %s3055_s5 }
 0xdf9   :  { %s3040_s17 = sadd.s32 %s7648_s6, %s3037_s25  ;;  %s7650_s12 = sshll.u32 %s3058_s24, 4  ;;  %v3057_v42 = vld [vmem:[%s3056_s18] ss:$8 sm:$0x3] }
 0xdfa   :  { %s3041_s13 = scalar_lea.vmem %s10802_s2, %s3040_s17  ;;  %s3064_s23 = sadd.s32 %s7650_s12, %s3061_s16 }
 0xdfb   :  { %v3042_v24 = vld [vmem:[%s3041_s13] ss:$8 sm:$0x3]  ;;  %s3065_s20 = scalar_lea.vmem %s10802_s2, %s3064_s23  ;;  %s7309_s10 = sld [smem:[#allocation4 + $0x407]] }
 0xdfc   :  { %v3043_v30 = vadd.f32 %v3042_v24, %v3033_v39  ;;  %v3066_v51 = vld [vmem:[%s3065_s20] ss:$8 sm:$0x3]  ;;  %s7310_s14 = sld [smem:[#allocation4 + $0x400]]  ;;  %s7315_s27 = sld [smem:[#allocation4 + $0x487]] }
 0xdfd   :  { %v3067_v54 = vadd.f32 %v3066_v51, %v3057_v42  ;;  %s10138_s19 = sld [smem:[#allocation4 + $0x480]]  ;;  %s10140_s26 = sld [smem:[#allocation4 + $0x507]] }
 0xdfe   :  { %3045 = vst.msk [vmem:[#allocation2 + $0xe6] ss:$8 sm:$0x3] %vm8337_vm0, %v3043_v30  ;;  %s10142_s25 = sld [smem:[#allocation4 + $0x500]]  ;;  %s10148_s4 = sld [smem:[#allocation4 + $0x607]] }
 0xdff   :  { %3069 = vst.msk [vmem:[#allocation2 + $0xe7] ss:$8 sm:$0x3] %vm8337_vm0, %v3067_v54  ;;  %s10150_s6 = sld [smem:[#allocation4 + $0x600]]  ;;  %s10152_s17 = sld [smem:[#allocation4 + $0x687]] }
 0xe00   :  { %s3202_s16 = sshra.s32 %s10154_s3, 3 }
 0xe01   :  { %s3073_s9 = sshra.s32 %s7309_s10, 3  ;;  %s3076_s13 = sand.u32 7, %s7309_s10 }
 0xe02   :  { %s3082_s7 = sshra.s32 %s7310_s14, 3  ;;  %s7651_s22 = sshll.u32 %s3073_s9, 4 }
 0xe03   :  { %s3079_s8 = sadd.s32 %s7651_s22, %s3076_s13  ;;  %s3085_s24 = sand.u32 7, %s7310_s14 }
 0xe04   :  { %s3080_s0 = scalar_lea.vmem %s10801_s1, %s3079_s8  ;;  %s7652_s28 = sshll.u32 %s3082_s7, 4 }
 0xe05   :  { %s3088_s18 = sadd.s32 %s7652_s28, %s3085_s24  ;;  %s3097_s12 = sshra.s32 %s7315_s27, 3 }
 0xe06   :  { %s3089_s11 = scalar_lea.vmem %s10802_s2, %s3088_s18  ;;  %s3100_s20 = sand.u32 7, %s7315_s27  ;;  %v4335_v18 = vld [vmem:[#allocation2 + $0xe8] sm:$0xff]  ;;  %v4334_v29 = vld [vmem:[#allocation2 + $0xe0] sm:$0xff] }
 0xe07   :  { %s7653_s10 = sshll.u32 %s3097_s12, 4  ;;  %s3106_s9 = sshra.s32 %s10138_s19, 3 }
 0xe08   :  { %s3103_s14 = sadd.s32 %s7653_s10, %s3100_s20  ;;  %s3109_s13 = sand.u32 7, %s10138_s19 }
 0xe09   :  { %s3104_s8 = scalar_lea.vmem %s10801_s1, %s3103_s14  ;;  %s7654_s24 = sshll.u32 %s3106_s9, 4 }
 0xe0a   :  { %s3112_s5 = sadd.s32 %s7654_s24, %s3109_s13  ;;  %s3121_s27 = sshra.s32 %s10140_s26, 3 }
 0xe0b   :  { %s3113_s28 = scalar_lea.vmem %s10802_s2, %s3112_s5  ;;  %s3124_s18 = sand.u32 7, %s10140_s26 }
 0xe0c   :  { %s7655_s19 = sshll.u32 %s3121_s27, 4  ;;  %s3130_s12 = sshra.s32 %s10142_s25, 3 }
 0xe0d   :  { %s3127_s23 = sadd.s32 %s7655_s19, %s3124_s18  ;;  %s3133_s29 = sand.u32 7, %s10142_s25 }
 0xe0e   :  { %s3128_s10 = scalar_lea.vmem %s10801_s1, %s3127_s23  ;;  %s7656_s9 = sshll.u32 %s3130_s12, 4 }
 0xe0f   :  { %s3136_s14 = sadd.s32 %s7656_s9, %s3133_s29  ;;  %s3145_s26 = sshra.s32 %s10144_s30, 3 }
 0xe10   :  { %s3137_s7 = scalar_lea.vmem %s10802_s2, %s3136_s14  ;;  %s7657_s25 = sshll.u32 %s3145_s26, 4 }
 0xe11   :  { %s3154_s24 = sshra.s32 %s10146_s21, 3  ;;  %s3157_s27 = sand.u32 7, %s10146_s21 }
 0xe12   :  { %s7658_s18 = sshll.u32 %s3154_s24, 4  ;;  %s3178_s20 = sshra.s32 %s10150_s6, 3 }
 0xe13   :  { %s3160_s19 = sadd.s32 %s7658_s18, %s3157_s27  ;;  %s3181_s9 = sand.u32 7, %s10150_s6 }
 0xe14   :  { %s3161_s29 = scalar_lea.vmem %s10802_s2, %s3160_s19  ;;  %s7660_s22 = sshll.u32 %s3178_s20, 4 }
 0xe15   :  { %s7345_s23 = sld [smem:[#allocation4 + $0x707]] }
 0xe16   :  { %s7351_s20 = sld [smem:[#allocation4 + $0x787]] }
 0xebf   :  { %v4259_v44 = vpop.f32.mrb[12].mxu0 }
 0xec0   :  { %v4261_v9 = vpop.f32.mrb[13].mxu0  ;;  %v4270_v52 = vadd.f32 %v4259_v44, %v4183_v49 }
 0xec1   :  { %v10009_v10 = vadd.f32 %v4261_v9, %v4184_v48 }
 0xec2   :  { %v7393_v55 = vmul.f32 -1.442695, %v4270_v52  ;;  %v3105_v52 = vld [vmem:[%s3104_s8] ss:$8 sm:$0x3]  ;;  %s3148_s8 = sand.u32 7, %s10144_s30 }
 0xec3   :  { %8036 = vtanh.f32 %v10009_v10  ;;  %v4265_v16 = vpop.f32.mrb[14].mxu0  ;;  %v7394_v50 = vmul.f32 -1.442695, %v10009_v10  ;;  %s3151_s5 = sadd.s32 %s7657_s25, %s3148_s8  ;;  %s3169_s30 = sshra.s32 %s10148_s4, 3 }
 0xec4   :  { %v4267_v21 = vpop.f32.mrb[15].mxu0  ;;  %v4272_v56 = vadd.f32 %v4265_v16, %v4185_v53  ;;  %v3114_v53 = vld [vmem:[%s3113_s28] ss:$8 sm:$0x3]  ;;  %s3152_s28 = scalar_lea.vmem %s10801_s1, %s3151_s5  ;;  %s7659_s21 = sshll.u32 %s3169_s30, 4 }
 0xec5   :  { %v10012_v23 = vadd.f32 %v4267_v21, %v4186_v15  ;;  %s3193_s8 = sshra.s32 %s10152_s17, 3  ;;  %s3196_s5 = sand.u32 7, %s10152_s17 }
 0xec6   :  { %v7395_v57 = vmul.f32 -1.442695, %v4272_v56  ;;  %v3129_v56 = vld [vmem:[%s3128_s10] ss:$8 sm:$0x3]  ;;  %s7661_s27 = sshll.u32 %s3193_s8, 4 }
 0xec7   :  { %8038 = vtanh.f32 %v10012_v23  ;;  %v7396_v2 = vmul.f32 -1.442695, %v10012_v23  ;;  %v3090_v23 = vld [vmem:[%s3089_s11] ss:$8 sm:$0x3]  ;;  %s3172_s11 = sand.u32 7, %s10148_s4  ;;  %s3199_s6 = sadd.s32 %s7661_s27, %s3196_s5 }
 0xec8   :  { %8040 = vpow2.f32 %v7393_v55  ;;  %v3115_v55 = vadd.f32 %v3114_v53, %v3105_v52  ;;  %s3175_s10 = sadd.s32 %s7659_s21, %s3172_s11  ;;  %s3200_s19 = scalar_lea.vmem %s10801_s1, %s3199_s6 }
 0xec9   :  { %8042 = vpow2.f32 %v7395_v57  ;;  %v3138_v57 = vld [vmem:[%s3137_s7] ss:$8 sm:$0x3]  ;;  %s3176_s13 = scalar_lea.vmem %s10801_s1, %s3175_s10  ;;  %s3184_s7 = sadd.s32 %s7660_s22, %s3181_s9 }
 0xeca   :  { %3117 = vst.msk [vmem:[#allocation2 + $0xf1] ss:$8 sm:$0x3] %vm8337_vm0, %v3115_v55  ;;  %s3185_s24 = scalar_lea.vmem %s10802_s2, %s3184_s7  ;;  %s7662_s30 = sshll.u32 %s3202_s16, 4 }
 0xecb   :  { %s7346_s21 = sld [smem:[#allocation4 + $0x700]]  ;;  %s3217_s10 = sshra.s32 %s7345_s23, 3 }
 0xecc   :  { %s3220_s9 = sand.u32 7, %s7345_s23  ;;  %s7663_s14 = sshll.u32 %s3217_s10, 4 }
 0xecd   :  { %v8037_v27 = vpop.eup %8036  ;;  %s3241_s5 = sshra.s32 %s7351_s20, 3  ;;  %s10905_s23 = sld [smem:[#allocation35_spill]] }
 0xece   :  { %4304 = vrot.lane.b32.xlu0 %v8037_v27, %s10852_s15 }
 0xed1   :  { %v8039_v40 = vpop.eup %8038  ;;  %s3226_s26 = sshra.s32 %s7346_s21, 3  ;;  %s3229_s22 = sand.u32 7, %s7346_s21 }
 0xed2   :  { %4306 = vrot.lane.b32.xlu1 %v8039_v40, %s10852_s15  ;;  %v8041_v58 = vpop.eup %8040  ;;  %s7664_s25 = sshll.u32 %s3226_s26, 4 }
 0xed3   :  { %v4286_v60 = vadd.f32 1.0, %v8041_v58  ;;  %v8043_v61 = vpop.eup %8042  ;;  %v3139_v58 = vadd.f32 %v3138_v57, %v3129_v56 }
 0xed4   :  { %v4288_v62 = vadd.f32 1.0, %v8043_v61  ;;  %v3162_v61 = vld [vmem:[%s3161_s29] ss:$8 sm:$0x3] }
 0xed5   :  { %8044 = vrcp.f32 %v4286_v60  ;;  %3141 = vst.msk [vmem:[#allocation2 + $0xf2] ss:$8 sm:$0x3] %vm8337_vm0, %v3139_v58  ;;  %v3153_v60 = vld [vmem:[%s3152_s28] ss:$8 sm:$0x3] }
 0xed6   :  { %8046 = vrcp.f32 %v4288_v62  ;;  %v3163_v62 = vadd.f32 %v3162_v61, %v3153_v60  ;;  %s7665_s28 = sshll.u32 %s3241_s5, 4  ;;  %s10907_s5 = sld [smem:[#allocation37_spill]] }
 0xed8   :  { %3165 = vst.msk [vmem:[#allocation2 + $0xf3] ss:$8 sm:$0x3] %vm8337_vm0, %v3163_v62 }
 0xedf   :  { %v8045_v46 = vpop.eup %8044 }
 0xee0   :  { %v8047_v4 = vpop.eup %8046  ;;  %v4300_v5 = vmul.f32 %v8045_v46, %v9791_v43 }
 0xee1   :  { %v4301_v14 = vmul.f32 %v8047_v4, %v9795_v45 }
 0xf40   :  { %v4305_v0 = vpop.permute.xlu0 %4304 }
 0xf41   :  { %v4310_v1 = vmul.f32 %v8045_v46, %v4305_v0  ;;  %v3177_v46 = vld [vmem:[%s3176_s13] ss:$8 sm:$0x3]  ;;  %s3223_s13 = sadd.s32 %s7663_s14, %s3220_s9 }
 0xf42   :  { %v3186_v0 = vld [vmem:[%s3185_s24] ss:$8 sm:$0x3]  ;;  %s3224_s4 = scalar_lea.vmem %s10801_s1, %s3223_s13  ;;  %s3232_s24 = sadd.s32 %s7664_s25, %s3229_s22 }
 0xf43   :  { %4314 = vrot.lane.b32.xlu0 %v4310_v1, %s10852_s15  ;;  %v3187_v1 = vadd.f32 %v3186_v0, %v3177_v46  ;;  %s3233_s6 = scalar_lea.vmem %s10802_s2, %s3232_s24 }
 0xf44   :  { %v4307_v19 = vpop.permute.xlu1 %4306 }
 0xf45   :  { %v4311_v3 = vmul.f32 %v8047_v4, %v4307_v19  ;;  %3189 = vst.msk [vmem:[#allocation2 + $0xf4] ss:$8 sm:$0x3] %vm8337_vm0, %v3187_v1  ;;  %v3201_v4 = vld [vmem:[%s3200_s19] ss:$8 sm:$0x3] }
 0xf47   :  { %4316 = vrot.lane.b32.xlu1 %v4311_v3, %s10852_s15 }
 0xfb5   :  { %v4315_v7 = vpop.permute.xlu0 %4314 }
 0xfb6   :  { %v10020_v11 = vadd.f32 %v4315_v7, %v4300_v5  ;;  %v3225_v5 = vld [vmem:[%s3224_s4] ss:$8 sm:$0x3]  ;;  %s10906_s4 = sld [smem:[#allocation36_spill]] }
 0xfb7   :  { %v3234_v7 = vld [vmem:[%s3233_s6] ss:$8 sm:$0x3]  ;;  %s10909_s6 = sld [smem:[#allocation38_spill]] }
 0xfb8   :  { %8048 = vtanh.f32 %v10020_v11 }
 0xfb9   :  { %v4317_v17 = vpop.permute.xlu1 %4316 }
 0xfba   :  { %v10024_v59 = vadd.f32 %v4317_v17, %v4301_v14  ;;  %v3235_v14 = vadd.f32 %v3234_v7, %v3225_v5  ;;  %v8165_v7 = vmov 1966171168  }
 0xfbc   :  { %8050 = vtanh.f32 %v10024_v59  ;;  %3237 = vst.msk [vmem:[#allocation2 + $0xf6] ss:$8 sm:$0x3] %vm8337_vm0, %v3235_v14  ;;  %v4603_v14 = vunpack.c.l.s4 %v8165_v7 }
 0xfbd   :  { %8052 = vpow2.f32 %v7394_v50 }
 0xfbe   :  { %8054 = vpow2.f32 %v7396_v2 }
 0xfc2   :  { %v8049_v43 = vpop.eup %8048 }
 0xfc3   :  { %4326 = vrot.lane.b32.xlu0 %v8049_v43, %s10852_s15 }
 0xfc6   :  { %v8051_v45 = vpop.eup %8050 }
 0xfc7   :  { %4328 = vrot.lane.b32.xlu1 %v8051_v45, %s10852_s15  ;;  %v8053_v47 = vpop.eup %8052 }
 0xfc8   :  { %v4287_v48 = vadd.f32 1.0, %v8053_v47  ;;  %v8055_v44 = vpop.eup %8054 }
 0xfc9   :  { %v4289_v9 = vadd.f32 1.0, %v8055_v44 }
 0xfca   :  { %8056 = vrcp.f32 %v4287_v48 }
 0xfcb   :  { %8058 = vrcp.f32 %v4289_v9 }
 0xfd4   :  { %v8057_v15 = vpop.eup %8056 }
 0xfd5   :  { %v8059_v27 = vpop.eup %8058 }
0x1035   :  { %v4327_v16 = vpop.permute.xlu0 %4326 }
0x1036   :  { %v4332_v21 = vmul.f32 %v8057_v15, %v4327_v16 }
0x1038   :  { %7397 = vmatmul.mubr.msk.f32.vlgmr.msra.gmra.mrb[12].mxu1 %vm3283_vm1, %v4332_v21 }
0x1039   :  { %v4329_v40 = vpop.permute.xlu1 %4328  ;;  %4414 = vmatprep.mubr.f32.mxu1 %v8163_v8  ;;  %v3081_v8 = vld [vmem:[%s3080_s0] ss:$8 sm:$0x3]  ;;  %s3205_s0 = sand.u32 7, %s10154_s3  ;;  %s7352_s3 = sld [smem:[#allocation4 + $0x780]] }
0x103a   :  { %v4333_v10 = vmul.f32 %v8059_v27, %v4329_v40  ;;  %v3091_v49 = vadd.f32 %v3090_v23, %v3081_v8  ;;  %s3208_s12 = sadd.s32 %s7662_s30, %s3205_s0  ;;  %s3244_s0 = sand.u32 7, %s7351_s20 }
0x103b   :  { %s3209_s17 = scalar_lea.vmem %s10802_s2, %s3208_s12  ;;  %s3247_s19 = sadd.s32 %s7665_s28, %s3244_s0 }
0x103c   :  { %7398 = vmatmul.mubr.msk.f32.gmra.mrb[14].mxu1 %vm3283_vm1, %v4333_v10  ;;  %3093 = vst.msk [vmem:[#allocation2 + $0xf0] ss:$8 sm:$0x3] %vm8337_vm0, %v3091_v49  ;;  %v3210_v19 = vld [vmem:[%s3209_s17] ss:$8 sm:$0x3]  ;;  %s3248_s29 = scalar_lea.vmem %s10801_s1, %s3247_s19 }
0x103d   :  { %v3211_v3 = vadd.f32 %v3210_v19, %v3201_v4  ;;  %v3249_v17 = vld [vmem:[%s3248_s29] ss:$8 sm:$0x3]  ;;  %s10903_s28 = sld [smem:[#allocation34_spill]] }
0x103f   :  { %3213 = vst.msk [vmem:[#allocation2 + $0xf5] ss:$8 sm:$0x3] %vm8337_vm0, %v3211_v3  ;;  %s3250_s18 = sshra.s32 %s7352_s3, 3  ;;  %s3253_s30 = sand.u32 7, %s7352_s3 }
0x1040   :  { %s7666_s11 = sshll.u32 %s3250_s18, 4  ;;  %s10901_s3 = sld [smem:[#allocation33_spill]] }
0x1041   :  { %s3256_s17 = sadd.s32 %s7666_s11, %s3253_s30  ;;  %s10904_s30 = sld [smem:[#allocation32_spill]] }
0x1042   :  { %s3257_s20 = scalar_lea.vmem %s10802_s2, %s3256_s17 }
0x1043   :  { %v3258_v43 = vld [vmem:[%s3257_s20] ss:$8 sm:$0x3] }
0x1044   :  { %v3259_v45 = vadd.f32 %v3258_v43, %v3249_v17  ;;  %v4604_v17 = vunpack.c.0.s8 %v4603_v14  ;;  %v10283_v43 = vshrl.u32 %v68_v22, 7 }
0x1046   :  { %3261 = vst.msk [vmem:[#allocation2 + $0xf7] ss:$8 sm:$0x3] %vm8337_vm0, %v3259_v45  ;;  %v4501_v2 = vld [vmem:[%s10901_s3] sm:$0xff]  ;;  %v4502_v47 = vld [vmem:[%s10901_s3 + $0x8] sm:$0xff]  ;;  %v4503_v48 = vld [vmem:[%s10901_s3 + $0x10] sm:$0xff] }
0x1047   :  { %v7853_v44 = vpack.c.bf16 %v4502_v47, %v4501_v2  ;;  %v4504_v9 = vld [vmem:[%s10901_s3 + $0x18] sm:$0xff]  ;;  %v4505_v16 = vld [vmem:[%s10901_s3 + $0x20] sm:$0xff]  ;;  %v4506_v21 = vld [vmem:[%s10901_s3 + $0x28] sm:$0xff] }
0x1048   :  { %v7857_v15 = vpack.c.bf16 %v4504_v9, %v4503_v48  ;;  %v7861_v27 = vpack.c.bf16 %v4506_v21, %v4505_v16  ;;  %v4507_v8 = vld [vmem:[%s10901_s3 + $0x30] sm:$0xff]  ;;  %v4508_v23 = vld [vmem:[%s10901_s3 + $0x38] sm:$0xff]  ;;  %v7403_v45 = vld [vmem:[%s10903_s28] ss:$0 sm:$0xff] }
0x1049   :  { %7854 = vmatprep.subr.bf16.mxu0 %v7853_v44  ;;  %v7865_v52 = vpack.c.bf16 %v4508_v23, %v4507_v8  ;;  %v10336_v8 = vld [vmem:[%s10904_s30 + $0x10] sm:$0xff] }
0x104a   :  { %7856 = vmatpush3.bf16.msra.mxu0 %v7853_v44 }
0x104b   :  { %7858 = vmatprep.subr.bf16.mxu0 %v7857_v15 }
0x104d   :  { %v4337_v20 = vld [vmem:[#allocation2 + $0xf8] sm:$0xff]  ;;  %v4336_v6 = vld [vmem:[#allocation2 + $0xf0] sm:$0xff] }
0x104e   :  { %7860 = vmatpush3.bf16.msra.mxu0 %v7857_v15  ;;  %v10326_v15 = vld [vmem:[%s10904_s30 + $0x50] sm:$0xff] }
0x104f   :  { %7862 = vmatprep.subr.bf16.mxu0 %v7861_v27 }
0x1052   :  { %7864 = vmatpush3.bf16.msra.mxu0 %v7861_v27 }
0x1053   :  { %7866 = vmatprep.subr.bf16.mxu0 %v7865_v52 }
0x1056   :  { %7868 = vmatpush3.bf16.msra.mxu0 %v7865_v52 }
0x110b   :  { %v4410_v33 = vpop.f32.mrb[12].mxu1 }
0x110c   :  { %v4412_v12 = vpop.f32.mrb[13].mxu1  ;;  %v4421_v32 = vadd.f32 %v4410_v33, %v4334_v29 }
0x110d   :  { %v10238_v63 = vadd.f32 %v4412_v12, %v4335_v18  ;;  %v10289_v12 = vsub.s32 %v4604_v17, %v10283_v43  ;;  %v10369_v17 = vld [vmem:[%s10904_s30 + $0x18] sm:$0xff] }
0x110e   :  { %v7399_v13 = vmul.f32 -1.442695, %v4421_v32 }
0x110f   :  { %8060 = vtanh.f32 %v10238_v63  ;;  %v4416_v36 = vpop.f32.mrb[14].mxu1  ;;  %v7400_v58 = vmul.f32 -1.442695, %v10238_v63 }
0x1110   :  { %v4418_v25 = vpop.f32.mrb[15].mxu1  ;;  %v4423_v34 = vadd.f32 %v4416_v36, %v4336_v6 }
0x1111   :  { %v4424_v26 = vadd.f32 %v4418_v25, %v4337_v20 }
0x1112   :  { %v7401_v35 = vmul.f32 -1.442695, %v4423_v34 }
0x1113   :  { %8062 = vtanh.f32 %v4424_v26  ;;  %v7402_v60 = vmul.f32 -1.442695, %v4424_v26 }
0x1114   :  { %8064 = vpow2.f32 %v7399_v13 }
0x1115   :  { %8066 = vpow2.f32 %v7401_v35 }
0x1119   :  { %v8061_v28 = vpop.eup %8060 }
0x111a   :  { %4455 = vrot.lane.b32.xlu0 %v8061_v28, %s10852_s15 }
0x111d   :  { %v8063_v31 = vpop.eup %8062 }
0x111e   :  { %4457 = vrot.lane.b32.xlu1 %v8063_v31, %s10852_s15  ;;  %v8065_v41 = vpop.eup %8064  ;;  %v10293_v31 = vsub.s32 0, %v10283_v43 }
0x111f   :  { %v4437_v37 = vadd.f32 1.0, %v8065_v41  ;;  %v8067_v38 = vpop.eup %8066 }
0x1120   :  { %v4439_v39 = vadd.f32 1.0, %v8067_v38 }
0x1121   :  { %8068 = vrcp.f32 %v4437_v37  ;;  %v10303_v37 = vld [vmem:[%s10904_s30 + $0x40] sm:$0xff] }
0x1122   :  { %8070 = vrcp.f32 %v4439_v39 }
0x112b   :  { %v8069_v24 = vpop.eup %8068 }
0x112c   :  { %v8071_v51 = vpop.eup %8070  ;;  %v4451_v40 = vmul.f32 %v8069_v24, %v10020_v11 }
0x112d   :  { %v4452_v53 = vmul.f32 %v8071_v51, %v10024_v59 }
0x118c   :  { %v4456_v30 = vpop.permute.xlu0 %4455 }
0x118d   :  { %v4461_v42 = vmul.f32 %v8069_v24, %v4456_v30  ;;  %v10310_v30 = vld [vmem:[%s10904_s30] sm:$0xff] }
0x118f   :  { %4465 = vrot.lane.b32.xlu0 %v4461_v42, %s10852_s15 }
0x1190   :  { %v4458_v54 = vpop.permute.xlu1 %4457 }
0x1191   :  { %v4462_v50 = vmul.f32 %v8071_v51, %v4458_v54  ;;  %v10315_v51 = vld [vmem:[%s10904_s30 + $0x48] sm:$0xff] }
0x1193   :  { %4467 = vrot.lane.b32.xlu1 %v4462_v50, %s10852_s15 }
0x1201   :  { %v4466_v10 = vpop.permute.xlu0 %4465 }
0x1202   :  { %v4471_v49 = vadd.f32 %v4466_v10, %v4451_v40 }
0x1204   :  { %8072 = vtanh.f32 %v4471_v49 }
0x1205   :  { %v4468_v55 = vpop.permute.xlu1 %4467 }
0x1206   :  { %v4472_v56 = vadd.f32 %v4468_v55, %v4452_v53  ;;  %v10344_v55 = vld [vmem:[%s10904_s30 + $0x60] sm:$0xff] }
0x1208   :  { %8074 = vtanh.f32 %v4472_v56 }
0x1209   :  { %8076 = vpow2.f32 %v7400_v58 }
0x120a   :  { %8078 = vpow2.f32 %v7402_v60 }
0x120e   :  { %v8073_v11 = vpop.eup %8072 }
0x120f   :  { %4477 = vrot.lane.b32.xlu0 %v8073_v11, %s10852_s15 }
0x1212   :  { %v8075_v57 = vpop.eup %8074 }
0x1213   :  { %4479 = vrot.lane.b32.xlu1 %v8075_v57, %s10852_s15  ;;  %v8077_v61 = vpop.eup %8076 }
0x1214   :  { %v4438_v62 = vadd.f32 1.0, %v8077_v61  ;;  %v8079_v46 = vpop.eup %8078  ;;  %v10352_v61 = vld [vmem:[%s10904_s30 + $0x20] sm:$0xff] }
0x1215   :  { %v4440_v59 = vadd.f32 1.0, %v8079_v46 }
0x1216   :  { %8080 = vrcp.f32 %v4438_v62 }
0x1217   :  { %8082 = vrcp.f32 %v4440_v59 }
0x1220   :  { %v8081_v0 = vpop.eup %8080 }
0x1221   :  { %v8083_v19 = vpop.eup %8082 }
0x1281   :  { %v4478_v1 = vpop.permute.xlu0 %4477 }
0x1282   :  { %v10274_v4 = vmul.f32 %v8081_v0, %v4478_v1  ;;  %v10360_v1 = vld [vmem:[%s10904_s30 + $0x8] sm:$0xff] }
0x1284   :  { %10902 = vst [vmem:[#allocation31_spill] sm:$0xff] %v10274_v4  ;;  %7703 = vmatprep.mubr.msk.f32.mxu0 %vm3283_vm1, %v10274_v4 }
0x1285   :  { %v4480_v3 = vpop.permute.xlu1 %4479 }
0x1286   :  { %v10278_v5 = vmul.f32 %v8083_v19, %v4480_v3 }
0x1288   :  { %7704 = vmatmul.mubr.msk.f32.vlgmr.msra.gmra.mrb[16].mxu0 %vm3283_vm1, %v10278_v5 }
0x135b   :  { %v7705_v18 = vpop.f32.mrb[16].mxu0 }
0x135c   :  { %v4594_v33 = vadd.f32 %v7705_v18, %v7403_v45  ;;  %v4588_v63 = vpop.f32.mrb[17].mxu0 }
0x135d   :  { %v4589_v20 = vadd.f32 %v7403_v45, %v4588_v63 }
0x135e   :  { %v4598_v36 = vmax.f32 %v4594_v33, 0.0 }
0x135f   :  { %v4597_v25 = vmax.f32 %v4589_v20, 0.0  ;;  %v10378_v20 = vld [vmem:[%s10904_s30 + $0x58] sm:$0xff] }
0x1360   :  { %v4650_v26 = vcombine.high %v4598_v36, %v4598_v36  ;;  %v4657_v28 = vrot.slane %v4598_v36, %v10289_v12 }
0x1361   :  { %v4601_v29 = vcombine.high %v4597_v25, %v4597_v25  ;;  %v4608_v32 = vrot.slane %v4597_v25, %v10289_v12 }
0x1362   :  { %v4664_v6 = vrot.slane %v4650_v26, %v10289_v12  ;;  %v4665_v13 = vcombine.high %v4657_v28, %v4657_v28  ;;  %v4673_v34 = vrot.slane %v4657_v28, %v10289_v12 }
0x1363   :  { %v4615_v35 = vrot.slane %v4601_v29, %v10289_v12  ;;  %v4624_v41 = vrot.slane %v4608_v32, %v10289_v12  ;;  %v4616_v38 = vcombine.high %v4608_v32, %v4608_v32  ;;  %v10386_v29 = vld [vmem:[%s10904_s30 + $0x28] sm:$0xff] }
0x1364   :  { %v4734_v39 = vrot.slane %v4673_v34, %v10293_v31  ;;  %v4687_v24 = vrot.slane %v4665_v13, %v10289_v12  ;;  %v4695_v42 = vcombine.high %v4673_v34, %v4673_v34  ;;  %v4680_v44 = vrot.slane %v4664_v6, %v10289_v12  ;;  %v10394_v34 = vld [vmem:[%s10904_s30 + $0x68] sm:$0xff] }
0x1365   :  { %v4702_v54 = vrot.slane %v4624_v41, %v10293_v31  ;;  %v4646_v50 = vcombine.high %v4624_v41, %v4624_v41  ;;  %v4631_v16 = vrot.slane %v4615_v35, %v10289_v12  ;;  %v4638_v10 = vrot.slane %v4616_v38, %v10289_v12 }
0x1366   :  { %v4787_v2 = vmul.f32 %v4734_v39, %v10303_v37  ;;  %v4738_v47 = vrot.slane %v4687_v24, %v10293_v31  ;;  %v4742_v48 = vrot.slane %v4695_v42, %v10293_v31  ;;  %v4750_v52 = vrot.slane %v4680_v44, %v10293_v31 }
0x1367   :  { %v4779_v9 = vmul.f32 %v4702_v54, %v10310_v30  ;;  %v4710_v40 = vrot.slane %v4646_v50, %v10293_v31  ;;  %v4617_v53 = vcombine.high %v4615_v35, %v4615_v35  ;;  %v4718_v57 = vrot.slane %v4631_v16, %v10293_v31 }
0x1368   :  { %v4819_v21 = vsel %vm3283_vm1, %v4787_v2, 0.0  ;;  %v4788_v27 = vmul.f32 %v4738_v47, %v10315_v51  ;;  %v4789_v49 = vmul.f32 %v4742_v48, %v10326_v15  ;;  %v4648_v58 = vcombine.high %v4638_v10, %v4638_v10  ;;  %v10410_v2 = vld [vmem:[%s10904_s30 + $0x70] sm:$0xff] }
0x1369   :  { %4820 = vadd.xlane.f32.xlu0 %v4819_v21  ;;  %v4795_v56 = vsel %vm3283_vm1, %v4779_v9, 0.0  ;;  %v4781_v11 = vmul.f32 %v4710_v40, %v10336_v8  ;;  %v4666_v60 = vcombine.high %v4664_v6, %v4664_v6  ;;  %v4791_v46 = vmul.f32 %v4750_v52, %v10344_v55 }
0x136a   :  { %v4822_v23 = vsel %vm3283_vm1, %v4788_v27, 0.0  ;;  %v4825_v62 = vsel %vm3283_vm1, %v4789_v49, 0.0  ;;  %v4706_v59 = vrot.slane %v4638_v10, %v10293_v31  ;;  %v4697_v0 = vcombine.high %v4687_v24, %v4687_v24  ;;  %v10402_v24 = vld [vmem:[%s10904_s30 + $0x30] sm:$0xff]  ;;  %v10428_v49 = vld [vmem:[%s10904_s30 + $0x78] sm:$0xff] }
0x136b   :  { %4823 = vadd.xlane.f32.xlu1 %v4822_v23  ;;  %v4801_v19 = vsel %vm3283_vm1, %v4781_v11, 0.0  ;;  %v4783_v3 = vmul.f32 %v4718_v57, %v10352_v61  ;;  %v4714_v7 = vrot.slane %v4648_v58, %v10293_v31  ;;  %v4645_v14 = vrot.slane %v4617_v53, %v10289_v12 }
0x136c   :  { %v4831_v45 = vsel %vm3283_vm1, %v4791_v46, 0.0  ;;  %v4780_v18 = vmul.f32 %v4706_v59, %v10360_v1  ;;  %v4746_v33 = vrot.slane %v4697_v0, %v10293_v31  ;;  %v4694_v63 = vrot.slane %v4666_v60, %v10289_v12 }
0x136d   :  { %4796 = vadd.xlane.f32.xlu0 %v4795_v56  ;;  %v4807_v36 = vsel %vm3283_vm1, %v4783_v3, 0.0  ;;  %v4782_v25 = vmul.f32 %v4714_v7, %v10369_v17  ;;  %v4722_v26 = vrot.slane %v4645_v14, %v10293_v31  ;;  %v4647_v28 = vcombine.high %v4631_v16, %v4631_v16  ;;  %v10418_v16 = vld [vmem:[%s10904_s30 + $0x38] sm:$0xff] }
0x136e   :  { %v4798_v12 = vsel %vm3283_vm1, %v4780_v18, 0.0  ;;  %v4790_v32 = vmul.f32 %v4746_v33, %v10378_v20  ;;  %v4754_v6 = vrot.slane %v4694_v63, %v10293_v31  ;;  %v4696_v13 = vcombine.high %v4680_v44, %v4680_v44 }
0x136f   :  { %4826 = vadd.xlane.f32.xlu1 %v4825_v62  ;;  %v4804_v35 = vsel %vm3283_vm1, %v4782_v25, 0.0  ;;  %v4784_v41 = vmul.f32 %v4722_v26, %v10386_v29  ;;  %v4726_v38 = vrot.slane %v4647_v28, %v10293_v31  ;;  %v4649_v39 = vcombine.high %v4645_v14, %v4645_v14 }
0x1370   :  { %v4828_v42 = vsel %vm3283_vm1, %v4790_v32, 0.0  ;;  %v4792_v54 = vmul.f32 %v4754_v6, %v10394_v34  ;;  %v4758_v50 = vrot.slane %v4696_v13, %v10293_v31  ;;  %v4698_v9 = vcombine.high %v4694_v63, %v4694_v63 }
0x1371   :  { %4802 = vadd.xlane.f32.xlu0 %v4801_v19  ;;  %v4810_v47 = vsel %vm3283_vm1, %v4784_v41, 0.0  ;;  %v4785_v48 = vmul.f32 %v4726_v38, %v10402_v24  ;;  %v4730_v44 = vrot.slane %v4649_v39, %v10293_v31  ;;  %v4860_v59 = vand.u32 127, %v68_v22 }
0x1372   :  { %v4834_v21 = vsel %vm3283_vm1, %v4792_v54, 0.0  ;;  %v4793_v27 = vmul.f32 %v4758_v50, %v10410_v2  ;;  %v4762_v23 = vrot.slane %v4698_v9, %v10293_v31 }
0x1373   :  { %4832 = vadd.xlane.f32.xlu1 %v4831_v45  ;;  %v4813_v40 = vsel %vm3283_vm1, %v4785_v48, 0.0  ;;  %v4786_v10 = vmul.f32 %v4730_v44, %v10418_v16  ;;  %v10450_v3 = vsub.s32 %v4860_v59, %v10283_v43 }
0x1374   :  { %v4837_v52 = vsel %vm3283_vm1, %v4793_v27, 0.0  ;;  %v4794_v56 = vmul.f32 %v4762_v23, %v10428_v49 }
0x1375   :  { %4808 = vadd.xlane.f32.xlu0 %v4807_v36  ;;  %v4816_v53 = vsel %vm3283_vm1, %v4786_v10, 0.0 }
0x1376   :  { %v4840_v11 = vsel %vm3283_vm1, %v4794_v56, 0.0 }
0x1377   :  { %4799 = vadd.xlane.f32.xlu1 %v4798_v12 }
0x1379   :  { %4805 = vadd.xlane.f32.xlu0 %v4804_v35 }
0x137b   :  { %4829 = vadd.xlane.f32.xlu1 %v4828_v42 }
0x137d   :  { %4811 = vadd.xlane.f32.xlu0 %v4810_v47 }
0x137f   :  { %4835 = vadd.xlane.f32.xlu1 %v4834_v21 }
0x1381   :  { %4814 = vadd.xlane.f32.xlu0 %v4813_v40 }
0x1383   :  { %4838 = vadd.xlane.f32.xlu1 %v4837_v52 }
0x1385   :  { %4817 = vadd.xlane.f32.xlu0 %v4816_v53 }
0x1389   :  { %4841 = vadd.xlane.f32.xlu0 %v4840_v11 }
0x13f6   :  { %v10434_v57 = vpop.xlane.xlu0 %4820 }
0x13f7   :  { %v4896_v13 = vrot.slane %v10434_v57, %v10450_v3 }
0x13f8   :  { %v10436_v58 = vpop.xlane.xlu1 %4823 }
0x13f9   :  { %v4900_v12 = vrot.slane %v10436_v58, %v10450_v3 }
0x13fa   :  { %v10438_v60 = vpop.xlane.xlu0 %4796 }
0x13fb   :  { %v4864_v18 = vrot.slane %v10438_v60, %v10450_v3  ;;  %v4939_v54 = vsel %vm4925_vm2, %v4900_v12, %v4896_v13  ;;  %v10519_v12 = vsub.s32 1, %v10283_v43 }
0x13fc   :  { %v10440_v62 = vpop.xlane.xlu1 %4826 }
0x13fd   :  { %v4904_v32 = vrot.slane %v10440_v62, %v10450_v3 }
0x13fe   :  { %v10442_v46 = vpop.xlane.xlu0 %4802 }
0x13ff   :  { %v4872_v63 = vrot.slane %v10442_v46, %v10450_v3  ;;  %v4940_v47 = vsel %vm4927_vm3, %v4904_v32, %v4939_v54 }
0x1400   :  { %v10445_v0 = vpop.xlane.xlu1 %4832 }
0x1401   :  { %v4912_v10 = vrot.slane %v10445_v0, %v10450_v3 }
0x1402   :  { %v10447_v19 = vpop.xlane.xlu0 %4808 }
0x1403   :  { %v4880_v39 = vrot.slane %v10447_v19, %v10450_v3 }
0x1404   :  { %v10452_v7 = vpop.xlane.xlu1 %4799 }
0x1405   :  { %v4868_v14 = vrot.slane %v10452_v7, %v10450_v3 }
0x1406   :  { %v10456_v45 = vpop.xlane.xlu0 %4805 }
0x1407   :  { %v4926_v22 = vsel %vm4925_vm2, %v4868_v14, %v4864_v18  ;;  %v4876_v25 = vrot.slane %v10456_v45, %v10450_v3 }
0x1408   :  { %v10460_v33 = vpop.xlane.xlu1 %4829  ;;  %v4928_v26 = vsel %vm4927_vm3, %v4872_v63, %v4926_v22 }
0x1409   :  { %v4930_v35 = vsel %vm4929_vm4, %v4876_v25, %v4928_v26  ;;  %v4908_v41 = vrot.slane %v10460_v33, %v10450_v3  ;;  %v8166_v26 = vmov 0  }
0x140a   :  { %v10465_v36 = vpop.xlane.xlu0 %4811  ;;  %v4932_v44 = vsel %vm4931_vm5, %v4880_v39, %v4930_v35  ;;  %7891 = vset.pattern.permute.xlu0 %v8166_v26  ;;  %7890 = vset.pattern.permute.xlu1 %v8166_v26  ;;  %v10526_v35 = vsub.s32 4, %v10283_v43 }
0x140b   :  { %v4884_v38 = vrot.slane %v10465_v36, %v10450_v3  ;;  %v4941_v9 = vsel %vm4929_vm4, %v4908_v41, %v4940_v47 }
0x140c   :  { %v10470_v28 = vpop.xlane.xlu1 %4835  ;;  %v4942_v59 = vsel %vm4931_vm5, %v4912_v10, %v4941_v9  ;;  %v10548_v10 = vsub.s32 5, %v10283_v43 }
0x140d   :  { %v4916_v21 = vrot.slane %v10470_v28, %v10450_v3  ;;  %v4934_v40 = vsel %vm4933_vm6, %v4884_v38, %v4932_v44 }
0x140e   :  { %v10476_v6 = vpop.xlane.xlu0 %4814 }
0x140f   :  { %v4888_v42 = vrot.slane %v10476_v6, %v10450_v3  ;;  %v4943_v18 = vsel %vm4933_vm6, %v4916_v21, %v4942_v59 }
0x1410   :  { %v10490_v50 = vpop.xlane.xlu1 %4838 }
0x1411   :  { %v4920_v23 = vrot.slane %v10490_v50, %v10450_v3  ;;  %v4936_v52 = vsel %vm4935_vm7, %v4888_v42, %v4934_v40  ;;  %v10535_v42 = vsub.s32 2, %v10283_v43 }
0x1412   :  { %v10493_v48 = vpop.xlane.xlu0 %4817 }
0x1413   :  { %v4892_v27 = vrot.slane %v10493_v48, %v10450_v3  ;;  %v4944_v22 = vsel %vm4935_vm7, %v4920_v23, %v4943_v18 }
0x1415   :  { %v4938_v53 = vsel %vm4937_vm8, %v4892_v27, %v4936_v52  ;;  %v10545_v27 = vsub.s32 3, %v10283_v43 }
0x1416   :  { %v10508_v56 = vpop.xlane.xlu0 %4841  ;;  %v4949_v11 = vsel %vm4948_vm9, %v4938_v53, -inf }
0x1417   :  { %v4924_v14 = vrot.slane %v10508_v56, %v10450_v3  ;;  %4950 = vmax.xlane.f32.xlu1 %v4949_v11  ;;  %v10557_v11 = vsub.s32 6, %v10283_v43 }
0x1419   :  { %v4945_v63 = vsel %vm4937_vm8, %v4924_v14, %v4944_v22 }
0x141a   :  { %v4952_v25 = vsel %vm4948_vm9, %v4945_v63, -inf }
0x141b   :  { %4953 = vmax.xlane.f32.xlu0 %v4952_v25 }
0x14a4   :  { %v10530_v38 = vpop.xlane.xlu1 %4950 }
0x14a5   :  { %v4964_v47 = vrot.slane %v10530_v38, %v10519_v12  ;;  %v4960_v59 = vrot.slane %v10530_v38, %v10293_v31  ;;  %v4968_v26 = vrot.slane %v10530_v38, %v10535_v42 }
0x14a7   :  { %v5038_v23 = vsub.f32 %v10452_v7, %v4964_v47 }
0x14a8   :  { %v10521_v32 = vpop.xlane.xlu0 %4953 }
0x14a9   :  { %v4992_v13 = vrot.slane %v10521_v32, %v10293_v31  ;;  %v4996_v41 = vrot.slane %v10521_v32, %v10519_v12  ;;  %v5008_v39 = vrot.slane %v10521_v32, %v10526_v35  ;;  %v5000_v9 = vrot.slane %v10521_v32, %v10535_v42 }
0x14aa   :  { %v5055_v14 = vmul.f32 1.442695, %v5038_v23  ;;  %v5016_v18 = vrot.slane %v10521_v32, %v10557_v11  ;;  %v4980_v23 = vrot.slane %v10530_v38, %v10548_v10 }
0x14ab   :  { %v5045_v54 = vsub.f32 %v10434_v57, %v4992_v13  ;;  %v5046_v44 = vsub.f32 %v10436_v58, %v4996_v41  ;;  %v5049_v21 = vsub.f32 %v10445_v0, %v5008_v39  ;;  %v5004_v57 = vrot.slane %v10521_v32, %v10545_v27 }
0x14ac   :  { %v5012_v58 = vrot.slane %v10521_v32, %v10548_v10  ;;  %v5047_v53 = vsub.f32 %v10440_v62, %v5000_v9  ;;  %v5037_v62 = vsub.f32 %v10438_v60, %v4960_v59  ;;  %v5051_v13 = vsub.f32 %v10490_v50, %v5016_v18 }
0x14ad   :  { %v5069_v40 = vmul.f32 1.442695, %v5045_v54  ;;  %v5071_v52 = vmul.f32 1.442695, %v5046_v44  ;;  %v5077_v0 = vmul.f32 1.442695, %v5049_v21  ;;  %v5048_v7 = vsub.f32 %v10460_v33, %v5004_v57 }
0x14ae   :  { %v5050_v22 = vsub.f32 %v10470_v28, %v5012_v58  ;;  %v5073_v63 = vmul.f32 1.442695, %v5047_v53  ;;  %v5053_v39 = vmul.f32 1.442695, %v5037_v62  ;;  %v4972_v28 = vrot.slane %v10530_v38, %v10545_v27 }
0x14af   :  { %8084 = vpow2.f32 %v5069_v40  ;;  %v5075_v25 = vmul.f32 1.442695, %v5048_v7  ;;  %v5039_v60 = vsub.f32 %v10442_v46, %v4968_v26  ;;  %v5081_v54 = vmul.f32 1.442695, %v5051_v13 }
0x14b0   :  { %8086 = vpow2.f32 %v5071_v52  ;;  %v5079_v41 = vmul.f32 1.442695, %v5050_v22  ;;  %v4976_v50 = vrot.slane %v10530_v38, %v10526_v35  ;;  %v5040_v9 = vsub.f32 %v10456_v45, %v4972_v28 }
0x14b1   :  { %8088 = vpow2.f32 %v5077_v0  ;;  %v5057_v21 = vmul.f32 1.442695, %v5039_v60  ;;  %v10598_v53 = vsub.s32 7, %v10283_v43  ;;  %v4984_v0 = vrot.slane %v10530_v38, %v10557_v11 }
0x14b2   :  { %8090 = vpow2.f32 %v5055_v14  ;;  %v5041_v57 = vsub.f32 %v10447_v19, %v4976_v50  ;;  %v5059_v52 = vmul.f32 1.442695, %v5040_v9  ;;  %v5042_v59 = vsub.f32 %v10465_v36, %v4980_v23 }
0x14b3   :  { %8092 = vpow2.f32 %v5073_v63  ;;  %v4988_v43 = vrot.slane %v10530_v38, %v10598_v53  ;;  %v5043_v18 = vsub.f32 %v10476_v6, %v4984_v0 }
0x14b4   :  { %8094 = vpow2.f32 %v5075_v25  ;;  %v5061_v19 = vmul.f32 1.442695, %v5041_v57  ;;  %v5063_v22 = vmul.f32 1.442695, %v5042_v59  ;;  %v5020_v25 = vrot.slane %v10521_v32, %v10598_v53 }
0x14b5   :  { %8096 = vpow2.f32 %v5079_v41  ;;  %v5044_v36 = vsub.f32 %v10493_v48, %v4988_v43  ;;  %v5065_v62 = vmul.f32 1.442695, %v5043_v18 }
0x14b6   :  { %8098 = vpow2.f32 %v5053_v39  ;;  %v5052_v6 = vsub.f32 %v10508_v56, %v5020_v25 }
0x14b7   :  { %8100 = vpow2.f32 %v5081_v54  ;;  %v5067_v38 = vmul.f32 1.442695, %v5044_v36 }
0x14b8   :  { %8102 = vpow2.f32 %v5057_v21  ;;  %v5083_v41 = vmul.f32 1.442695, %v5052_v6 }
0x14b9   :  { %v10569_v33 = vpop.eup %8084  ;;  %8104 = vpow2.f32 %v5059_v52 }
0x14ba   :  { %5126 = vperm.xlu1 %7890, %v10569_v33   ;;  %v10575_v47 = vpop.eup %8086  ;;  %8106 = vpow2.f32 %v5061_v19 }
0x14bb   :  { %v10577_v44 = vpop.eup %8088  ;;  %8108 = vpow2.f32 %v5063_v22 }
0x14bc   :  { %5138 = vperm.xlu0 %7891, %v10577_v44   ;;  %v10584_v40 = vpop.eup %8090  ;;  %8110 = vpow2.f32 %v5065_v62 }
0x14bd   :  { %v10586_v46 = vpop.eup %8092  ;;  %8112 = vpow2.f32 %v5067_v38 }
0x14be   :  { %5129 = vperm.xlu1 %7890, %v10575_v47   ;;  %v10593_v58 = vpop.eup %8094  ;;  %8114 = vpow2.f32 %v5083_v41 }
0x14bf   :  { %v10595_v45 = vpop.eup %8096 }
0x14c0   :  { %5105 = vperm.xlu0 %7891, %v10584_v40   ;;  %v10605_v14 = vpop.eup %8098 }
0x14c1   :  { %v10607_v7 = vpop.eup %8100 }
0x14c2   :  { %5132 = vperm.xlu1 %7890, %v10586_v46   ;;  %v10614_v63 = vpop.eup %8102 }
0x14c3   :  { %v10620_v26 = vpop.eup %8104 }
0x14c4   :  { %5141 = vperm.xlu0 %7891, %v10595_v45   ;;  %v10624_v13 = vpop.eup %8106 }
0x14c5   :  { %v10627_v48 = vpop.eup %8108 }
0x14c6   :  { %5135 = vperm.xlu1 %7890, %v10593_v58   ;;  %v10630_v32 = vpop.eup %8110 }
0x14c7   :  { %v10633_v39 = vpop.eup %8112 }
0x14c8   :  { %5144 = vperm.xlu0 %7891, %v10607_v7   ;;  %v10636_v56 = vpop.eup %8114 }
0x14ca   :  { %5102 = vperm.xlu1 %7890, %v10605_v14  }
0x14ce   :  { %5108 = vperm.xlu1 %7890, %v10614_v63  }
0x14d2   :  { %5111 = vperm.xlu1 %7890, %v10620_v26  }
0x14d6   :  { %5114 = vperm.xlu1 %7890, %v10624_v13  }
0x14da   :  { %5117 = vperm.xlu1 %7890, %v10627_v48  }
0x14de   :  { %5120 = vperm.xlu1 %7890, %v10630_v32  }
0x14e2   :  { %5123 = vperm.xlu1 %7890, %v10633_v39  }
0x14e6   :  { %5147 = vperm.xlu1 %7890, %v10636_v56  }
0x1539   :  { %v5127_v28 = vpop.permute.xlu1 %5126 }
0x153a   :  { %v5184_v18 = vrot.slane %v5127_v28, %v10450_v3 }
0x153b   :  { %v5139_v23 = vpop.permute.xlu0 %5138 }
0x153d   :  { %v5130_v60 = vpop.permute.xlu1 %5129 }
0x153e   :  { %v5188_v59 = vrot.slane %v5130_v60, %v10450_v3 }
0x153f   :  { %v5106_v0 = vpop.permute.xlu0 %5105 }
0x1540   :  { %v5156_v25 = vrot.slane %v5106_v0, %v10450_v3  ;;  %v5220_v38 = vsel %vm4925_vm2, %v5188_v59, %v5184_v18 }
0x1541   :  { %v5133_v54 = vpop.permute.xlu1 %5132 }
0x1542   :  { %v5192_v19 = vrot.slane %v5133_v54, %v10450_v3 }
0x1543   :  { %v5142_v6 = vpop.permute.xlu0 %5141 }
0x1544   :  { %v5221_v60 = vsel %vm4927_vm3, %v5192_v19, %v5220_v38  ;;  %v5204_v38 = vrot.slane %v5142_v6, %v10450_v3 }
0x1545   :  { %v5136_v50 = vpop.permute.xlu1 %5135 }
0x1546   :  { %v5196_v22 = vrot.slane %v5136_v50, %v10450_v3 }
0x1548   :  { %v5222_v28 = vsel %vm4929_vm4, %v5196_v22, %v5221_v60  ;;  %v5145_v22 = vpop.permute.xlu0 %5144 }
0x1549   :  { %v5103_v9 = vpop.permute.xlu1 %5102 }
0x154a   :  { %v5152_v36 = vrot.slane %v5103_v9, %v10450_v3 }
0x154c   :  { %v5213_v50 = vsel %vm4925_vm2, %v5156_v25, %v5152_v36  ;;  %v5208_v25 = vrot.slane %v5145_v22, %v10450_v3 }
0x154d   :  { %v5109_v21 = vpop.permute.xlu1 %5108 }
0x154e   :  { %v5160_v62 = vrot.slane %v5109_v21, %v10450_v3  ;;  %v5200_v21 = vrot.slane %v5139_v23, %v10450_v3 }
0x1550   :  { %v5214_v0 = vsel %vm4927_vm3, %v5160_v62, %v5213_v50 }
0x1551   :  { %v5112_v57 = vpop.permute.xlu1 %5111 }
0x1552   :  { %v5164_v41 = vrot.slane %v5112_v57, %v10450_v3  ;;  %v5223_v57 = vsel %vm4931_vm5, %v5200_v21, %v5222_v28 }
0x1554   :  { %v5215_v18 = vsel %vm4929_vm4, %v5164_v41, %v5214_v0 }
0x1555   :  { %v5115_v52 = vpop.permute.xlu1 %5114 }
0x1556   :  { %v5168_v54 = vrot.slane %v5115_v52, %v10450_v3 }
0x1558   :  { %v5216_v19 = vsel %vm4931_vm5, %v5168_v54, %v5215_v18 }
0x1559   :  { %v5118_v43 = vpop.permute.xlu1 %5117 }
0x155a   :  { %v5172_v9 = vrot.slane %v5118_v43, %v10450_v3 }
0x155c   :  { %v5217_v36 = vsel %vm4933_vm6, %v5172_v9, %v5216_v19 }
0x155d   :  { %v5121_v4 = vpop.permute.xlu1 %5120 }
0x155e   :  { %v5176_v59 = vrot.slane %v5121_v4, %v10450_v3  ;;  %v5224_v4 = vsel %vm4933_vm6, %v5204_v38, %v5223_v57 }
0x155f   :  { %v5225_v6 = vsel %vm4935_vm7, %v5208_v25, %v5224_v4 }
0x1560   :  { %v5218_v23 = vsel %vm4935_vm7, %v5176_v59, %v5217_v36 }
0x1561   :  { %v5124_v52 = vpop.permute.xlu1 %5123 }
0x1562   :  { %v5180_v43 = vrot.slane %v5124_v52, %v10450_v3 }
0x1564   :  { %v5219_v62 = vsel %vm4937_vm8, %v5180_v43, %v5218_v23 }
0x1565   :  { %v5148_v41 = vpop.permute.xlu1 %5147  ;;  %v5229_v60 = vsel %vm4948_vm9, %v5219_v62, 0.0 }
0x1566   :  { %v5212_v54 = vrot.slane %v5148_v41, %v10450_v3  ;;  %5230 = vadd.xlane.f32.xlu0 %v5229_v60 }
0x1568   :  { %v5226_v28 = vsel %vm4937_vm8, %v5212_v54, %v5225_v6 }
0x1569   :  { %v5232_v50 = vsel %vm4948_vm9, %v5226_v28, 0.0 }
0x156a   :  { %5233 = vadd.xlane.f32.xlu1 %v5232_v50 }
0x15f3   :  { %v5231_v9 = vpop.xlane.xlu0 %5230 }
0x15f4   :  { %v5244_v57 = vrot.slane %v5231_v9, %v10519_v12  ;;  %v5252_v19 = vrot.slane %v5231_v9, %v10545_v27  ;;  %v5256_v38 = vrot.slane %v5231_v9, %v10526_v35  ;;  %v5240_v36 = vrot.slane %v5231_v9, %v10293_v31 }
0x15f5   :  { %v5260_v23 = vrot.slane %v5231_v9, %v10548_v10  ;;  %v5248_v25 = vrot.slane %v5231_v9, %v10535_v42  ;;  %v5268_v6 = vrot.slane %v5231_v9, %v10598_v53 }
0x15f7   :  { %v5234_v21 = vpop.xlane.xlu1 %5233 }
0x15f8   :  { %v5276_v0 = vrot.slane %v5234_v21, %v10519_v12  ;;  %v5272_v59 = vrot.slane %v5234_v21, %v10293_v31  ;;  %v5280_v18 = vrot.slane %v5234_v21, %v10535_v42  ;;  %v5284_v3 = vrot.slane %v5234_v21, %v10545_v27 }
0x15f9   :  { %v5288_v52 = vrot.slane %v5234_v21, %v10526_v35  ;;  %v5264_v31 = vrot.slane %v5231_v9, %v10557_v11 }
0x15fa   :  { %8116 = vrcp.f32 %v5276_v0  ;;  %v5300_v0 = vrot.slane %v5234_v21, %v10598_v53 }
0x15fb   :  { %8118 = vrcp.f32 %v5272_v59 }
0x15fc   :  { %8120 = vrcp.f32 %v5280_v18 }
0x15fd   :  { %8122 = vrcp.f32 %v5244_v57 }
0x15fe   :  { %8124 = vrcp.f32 %v5284_v3 }
0x15ff   :  { %8126 = vrcp.f32 %v5252_v19 }
0x1600   :  { %8128 = vrcp.f32 %v5288_v52 }
0x1601   :  { %8130 = vrcp.f32 %v5256_v38 }
0x1602   :  { %8132 = vrcp.f32 %v5240_v36 }
0x1603   :  { %8134 = vrcp.f32 %v5260_v23 }
0x1604   :  { %v8117_v22 = vpop.eup %8116  ;;  %8136 = vrcp.f32 %v5248_v25 }
0x1605   :  { %v8119_v43 = vpop.eup %8118  ;;  %v5336_v12 = vmul.f32 %v8117_v22, %v10575_v47  ;;  %8138 = vrcp.f32 %v5264_v31  ;;  %v5562_v22 = vld [vmem:[%s10905_s23 + $0x28] sm:$0xff] }
0x1606   :  { %v8121_v62 = vpop.eup %8120  ;;  %v5334_v4 = vmul.f32 %v8119_v43, %v10569_v33  ;;  %v5292_v33 = vrot.slane %v5234_v21, %v10548_v10  ;;  %v5563_v43 = vld [vmem:[%s10905_s23 + $0x30] sm:$0xff] }
0x1607   :  { %v8123_v27 = vpop.eup %8122  ;;  %5396 = vperm.xlu0 %7891, %v5336_v12   ;;  %v5338_v35 = vmul.f32 %v8121_v62, %v10586_v46  ;;  %v5564_v12 = vld [vmem:[%s10905_s23 + $0x38] sm:$0xff] }
0x1608   :  { %5391 = vperm.xlu1 %7890, %v5334_v4   ;;  %v8125_v41 = vpop.eup %8124  ;;  %v5320_v47 = vmul.f32 %v8123_v27, %v10584_v40  ;;  %8140 = vrcp.f32 %v5292_v33  ;;  %v5296_v40 = vrot.slane %v5234_v21, %v10557_v11  ;;  %v7881_v23 = vpack.c.bf16 %v5564_v12, %v5563_v43 }
0x1609   :  { %v8127_v60 = vpop.eup %8126  ;;  %v5340_v54 = vmul.f32 %v8125_v41, %v10593_v58  ;;  %8142 = vrcp.f32 %v5268_v6 }
0x160a   :  { %v8129_v42 = vpop.eup %8128  ;;  %v5324_v46 = vmul.f32 %v8127_v60, %v10620_v26  ;;  %8144 = vrcp.f32 %v5296_v40 }
0x160b   :  { %5401 = vperm.xlu0 %7891, %v5338_v35   ;;  %v8131_v28 = vpop.eup %8130  ;;  %v5342_v50 = vmul.f32 %v8129_v42, %v10577_v44  ;;  %8146 = vrcp.f32 %v5300_v0 }
0x160c   :  { %5356 = vperm.xlu1 %7890, %v5320_v47   ;;  %v8133_v10 = vpop.eup %8132  ;;  %v5326_v58 = vmul.f32 %v8131_v28, %v10624_v13 }
0x160d   :  { %v8135_v59 = vpop.eup %8134  ;;  %v5318_v26 = vmul.f32 %v8133_v10, %v10605_v14 }
0x160e   :  { %v8137_v9 = vpop.eup %8136  ;;  %v5328_v18 = vmul.f32 %v8135_v59, %v10627_v48 }
0x160f   :  { %5406 = vperm.xlu0 %7891, %v5340_v54   ;;  %v8139_v57 = vpop.eup %8138  ;;  %v5322_v11 = vmul.f32 %v8137_v9, %v10614_v63  ;;  %v5557_v63 = vld [vmem:[%s10905_s23] sm:$0xff] }
0x1610   :  { %5366 = vperm.xlu1 %7890, %v5324_v46   ;;  %v5330_v53 = vmul.f32 %v8139_v57, %v10630_v32 }
0x1612   :  { %v8141_v44 = vpop.eup %8140 }
0x1613   :  { %5411 = vperm.xlu0 %7891, %v5342_v50   ;;  %v8143_v21 = vpop.eup %8142  ;;  %v5344_v13 = vmul.f32 %v8141_v44, %v10595_v45  ;;  %v5558_v45 = vld [vmem:[%s10905_s23 + $0x8] sm:$0xff] }
0x1614   :  { %5371 = vperm.xlu1 %7890, %v5326_v58   ;;  %v8145_v3 = vpop.eup %8144  ;;  %v5332_v14 = vmul.f32 %v8143_v21, %v10633_v39  ;;  %v7869_v32 = vpack.c.bf16 %v5558_v45, %v5557_v63  ;;  %v5559_v39 = vld [vmem:[%s10905_s23 + $0x10] sm:$0xff] }
0x1615   :  { %v8147_v19 = vpop.eup %8146  ;;  %v5346_v48 = vmul.f32 %v8145_v3, %v10607_v7  ;;  %v5560_v7 = vld [vmem:[%s10905_s23 + $0x18] sm:$0xff] }
0x1616   :  { %v5348_v52 = vmul.f32 %v8147_v19, %v10636_v56  ;;  %7870 = vmatprep.subr.bf16.mxu1 %v7869_v32  ;;  %v5561_v56 = vld [vmem:[%s10905_s23 + $0x20] sm:$0xff]  ;;  %v7873_v38 = vpack.c.bf16 %v5560_v7, %v5559_v39 }
0x1617   :  { %5351 = vperm.xlu0 %7891, %v5318_v26   ;;  %7872 = vmatpush3.bf16.msra.mxu1 %v7869_v32  ;;  %v7877_v36 = vpack.c.bf16 %v5562_v22, %v5561_v56 }
0x1618   :  { %5376 = vperm.xlu1 %7890, %v5328_v18   ;;  %7874 = vmatprep.subr.bf16.mxu1 %v7873_v38 }
0x161b   :  { %5361 = vperm.xlu0 %7891, %v5322_v11   ;;  %7876 = vmatpush3.bf16.msra.mxu1 %v7873_v38 }
0x161c   :  { %5381 = vperm.xlu1 %7890, %v5330_v53   ;;  %7878 = vmatprep.subr.bf16.mxu1 %v7877_v36 }
0x161f   :  { %5416 = vperm.xlu0 %7891, %v5344_v13   ;;  %7880 = vmatpush3.bf16.msra.mxu1 %v7877_v36 }
0x1620   :  { %5386 = vperm.xlu1 %7890, %v5332_v14   ;;  %7882 = vmatprep.subr.bf16.mxu1 %v7881_v23 }
0x1623   :  { %5421 = vperm.xlu0 %7891, %v5346_v48   ;;  %7884 = vmatpush3.bf16.msra.mxu1 %v7881_v23 }
0x1624   :  { %5426 = vperm.xlu1 %7890, %v5348_v52  }
0x1686   :  { %v5397_v62 = vpop.permute.xlu0 %5396 }
0x1687   :  { %v5438_v4 = vmul.f32 %v5397_v62, %v10315_v51  ;;  %v5392_v27 = vpop.permute.xlu1 %5391 }
0x1688   :  { %v5437_v25 = vmul.f32 %v5392_v27, %v10303_v37 }
0x1689   :  { %v5508_v35 = vsel %vm3283_vm1, %v5438_v4, 0.0 }
0x168a   :  { %v5509_v31 = vrot.slane %v5508_v35, 4  ;;  %v5501_v41 = vsel %vm3283_vm1, %v5437_v25, 0.0  ;;  %v5402_v47 = vpop.permute.xlu0 %5401 }
0x168b   :  { %v5502_v60 = vrot.slane %v5501_v41, 4  ;;  %v5439_v33 = vmul.f32 %v5402_v47, %v10326_v15  ;;  %v5357_v54 = vpop.permute.xlu1 %5356 }
0x168c   :  { %v5510_v6 = vadd.f32 %v5509_v31, %v5508_v35  ;;  %v5430_v42 = vmul.f32 %v5357_v54, %v10360_v1 }
0x168d   :  { %v5503_v46 = vadd.f32 %v5502_v60, %v5501_v41  ;;  %v5515_v28 = vsel %vm3283_vm1, %v5439_v33, 0.0 }
0x168e   :  { %v5516_v51 = vrot.slane %v5515_v28, 4  ;;  %v5452_v40 = vsel %vm3283_vm1, %v5430_v42, 0.0  ;;  %v5407_v37 = vpop.permute.xlu0 %5406  ;;  %v5511_v50 = vrot.slane %v5510_v6, 2 }
0x168f   :  { %v5453_v0 = vrot.slane %v5452_v40, 4  ;;  %v5440_v10 = vmul.f32 %v5407_v37, %v10378_v20  ;;  %v5367_v58 = vpop.permute.xlu1 %5366  ;;  %v5504_v59 = vrot.slane %v5503_v46, 2 }
0x1690   :  { %v5517_v26 = vadd.f32 %v5516_v51, %v5515_v28  ;;  %v5432_v15 = vmul.f32 %v5367_v58, %v10369_v17  ;;  %v5512_v53 = vadd.f32 %v5511_v50, %v5510_v6 }
0x1691   :  { %v5454_v9 = vadd.f32 %v5453_v0, %v5452_v40  ;;  %v5522_v18 = vsel %vm3283_vm1, %v5440_v10, 0.0  ;;  %v5505_v20 = vadd.f32 %v5504_v59, %v5503_v46 }
0x1692   :  { %v5518_v1 = vrot.slane %v5517_v26, 2  ;;  %v5523_v57 = vrot.slane %v5522_v18, 4  ;;  %v5466_v11 = vsel %vm3283_vm1, %v5432_v15, 0.0  ;;  %v5412_v44 = vpop.permute.xlu0 %5411  ;;  %v5513_v56 = vrot.slane %v5512_v53, 1 }
0x1693   :  { %v5455_v21 = vrot.slane %v5454_v9, 2  ;;  %v5467_v13 = vrot.slane %v5466_v11, 4  ;;  %v5441_v3 = vmul.f32 %v5412_v44, %v10344_v55  ;;  %v5372_v14 = vpop.permute.xlu1 %5371  ;;  %v5506_v43 = vrot.slane %v5505_v20, 1 }
0x1694   :  { %v5524_v19 = vadd.f32 %v5523_v57, %v5522_v18  ;;  %v5433_v48 = vmul.f32 %v5372_v14, %v10352_v61  ;;  %v5519_v52 = vadd.f32 %v5518_v1, %v5517_v26  ;;  %v10746_v31 = vadd.f32 %v5513_v56, %v5512_v53 }
0x1695   :  { %v5468_v17 = vadd.f32 %v5467_v13, %v5466_v11  ;;  %v5529_v63 = vsel %vm3283_vm1, %v5441_v3, 0.0  ;;  %v5456_v38 = vadd.f32 %v5455_v21, %v5454_v9  ;;  %v10749_v54 = vadd.f32 %v5506_v43, %v5505_v20 }
0x1696   :  { %v5525_v45 = vrot.slane %v5524_v19, 2  ;;  %v5530_v32 = vrot.slane %v5529_v63, 4  ;;  %v5473_v39 = vsel %vm3283_vm1, %v5433_v48, 0.0  ;;  %v5352_v7 = vpop.permute.xlu0 %5351  ;;  %v5520_v23 = vrot.slane %v5519_v52, 1 }
0x1697   :  { %v5474_v22 = vrot.slane %v5473_v39, 4  ;;  %v5377_v36 = vpop.permute.xlu1 %5376  ;;  %v5469_v55 = vrot.slane %v5468_v17, 2  ;;  %v5429_v12 = vmul.f32 %v5352_v7, %v10310_v30  ;;  %v5457_v41 = vrot.slane %v5456_v38, 1 }
0x1698   :  { %v5434_v61 = vmul.f32 %v5377_v36, %v10386_v29  ;;  %v5526_v4 = vadd.f32 %v5525_v45, %v5524_v19  ;;  %v5531_v27 = vadd.f32 %v5530_v32, %v5529_v63  ;;  %v10752_v46 = vadd.f32 %v5520_v23, %v5519_v52 }
0x1699   :  { %v5475_v62 = vadd.f32 %v5474_v22, %v5473_v39  ;;  %v5445_v25 = vsel %vm3283_vm1, %v5429_v12, 0.0  ;;  %v5470_v6 = vadd.f32 %v5469_v55, %v5468_v17  ;;  %v5458_v58 = vadd.f32 %v5457_v41, %v5456_v38 }
0x169a   :  { %v5362_v35 = vpop.permute.xlu0 %5361  ;;  %v5446_v47 = vrot.slane %v5445_v25, 4  ;;  %v5480_v60 = vsel %vm3283_vm1, %v5434_v61, 0.0  ;;  %v5527_v40 = vrot.slane %v5526_v4, 1  ;;  %v5532_v37 = vrot.slane %v5531_v27, 2 }
0x169b   :  { %v5382_v33 = vpop.permute.xlu1 %5381  ;;  %v5481_v30 = vrot.slane %v5480_v60, 4  ;;  %v5431_v42 = vmul.f32 %v5362_v35, %v10336_v8  ;;  %v5476_v29 = vrot.slane %v5475_v62, 2  ;;  %v5471_v18 = vrot.slane %v5470_v6, 1 }
0x169c   :  { %v5447_v28 = vadd.f32 %v5446_v47, %v5445_v25  ;;  %v5435_v51 = vmul.f32 %v5382_v33, %v10402_v24  ;;  %v5528_v21 = vadd.f32 %v5527_v40, %v5526_v4  ;;  %v5533_v13 = vadd.f32 %v5532_v37, %v5531_v27 }
0x169d   :  { %v5482_v50 = vadd.f32 %v5481_v30, %v5480_v60  ;;  %v5459_v0 = vsel %vm3283_vm1, %v5431_v42, 0.0  ;;  %v5477_v11 = vadd.f32 %v5476_v29, %v5475_v62  ;;  %v5472_v33 = vadd.f32 %v5471_v18, %v5470_v6 }
0x169e   :  { %v5417_v10 = vpop.permute.xlu0 %5416  ;;  %v5448_v59 = vrot.slane %v5447_v28, 2  ;;  %v5460_v26 = vrot.slane %v5459_v0, 4  ;;  %v5487_v15 = vsel %vm3283_vm1, %v5435_v51, 0.0  ;;  %v5534_v12 = vrot.slane %v5533_v13, 1 }
0x169f   :  { %v5387_v9 = vpop.permute.xlu1 %5386  ;;  %v5483_v8 = vrot.slane %v5482_v50, 2  ;;  %v5488_v1 = vrot.slane %v5487_v15, 4  ;;  %v5442_v57 = vmul.f32 %v5417_v10, %v10394_v34  ;;  %v5478_v7 = vrot.slane %v5477_v11, 1 }
0x16a0   :  { %v5449_v44 = vadd.f32 %v5448_v59, %v5447_v28  ;;  %v5461_v24 = vadd.f32 %v5460_v26, %v5459_v0  ;;  %v5436_v53 = vmul.f32 %v5387_v9, %v10418_v16  ;;  %v5535_v37 = vadd.f32 %v5534_v12, %v5533_v13 }
0x16a1   :  { %v5489_v3 = vadd.f32 %v5488_v1, %v5487_v15  ;;  %v5536_v14 = vsel %vm3283_vm1, %v5442_v57, 0.0  ;;  %v5484_v45 = vadd.f32 %v5483_v8, %v5482_v50  ;;  %v5595_v6 = vsel %vm4925_vm2, %v10746_v31, %v10749_v54 }
0x16a2   :  { %v5422_v20 = vpop.permute.xlu0 %5421  ;;  %v5450_v19 = vrot.slane %v5449_v44, 1  ;;  %v5462_v48 = vrot.slane %v5461_v24, 2  ;;  %v5537_v52 = vrot.slane %v5536_v14, 4  ;;  %v5494_v17 = vsel %vm3283_vm1, %v5436_v53, 0.0 }
0x16a3   :  { %v5427_v63 = vpop.permute.xlu1 %5426  ;;  %v5490_v32 = vrot.slane %v5489_v3, 2  ;;  %v5495_v34 = vrot.slane %v5494_v17, 4  ;;  %v5443_v39 = vmul.f32 %v5422_v20, %v10410_v2  ;;  %v5485_v4 = vrot.slane %v5484_v45, 1 }
0x16a4   :  { %v5463_v56 = vadd.f32 %v5462_v48, %v5461_v24  ;;  %v5538_v16 = vadd.f32 %v5537_v52, %v5536_v14  ;;  %v5444_v38 = vmul.f32 %v5427_v63, %v10428_v49  ;;  %v5451_v22 = vadd.f32 %v5450_v19, %v5449_v44 }
0x16a5   :  { %v5491_v36 = vadd.f32 %v5490_v32, %v5489_v3  ;;  %v5496_v43 = vadd.f32 %v5495_v34, %v5494_v17  ;;  %v5543_v55 = vsel %vm3283_vm1, %v5443_v39, 0.0  ;;  %v5479_v49 = vadd.f32 %v5478_v7, %v5477_v11  ;;  %v7409_v32 = vld [vmem:[%s10907_s5] ss:$0 sm:$0xff]  ;;  %v10908_v39 = vld [vmem:[#allocation31_spill] sm:$0xff] }
0x16a6   :  { %v5464_v23 = vrot.slane %v5463_v56, 1  ;;  %v5539_v62 = vrot.slane %v5538_v16, 2  ;;  %v5544_v61 = vrot.slane %v5543_v55, 4  ;;  %v5550_v35 = vsel %vm3283_vm1, %v5444_v38, 0.0 }
0x16a7   :  { %v5492_v27 = vrot.slane %v5491_v36, 1  ;;  %v5497_v25 = vrot.slane %v5496_v43, 2  ;;  %v5551_v60 = vrot.slane %v5550_v35, 4  ;;  %v5588_v30 = vsel %vm4925_vm2, %v5458_v58, %v5451_v22 }
0x16a8   :  { %v5465_v2 = vadd.f32 %v5464_v23, %v5463_v56  ;;  %v5540_v41 = vadd.f32 %v5539_v62, %v5538_v16  ;;  %v5545_v47 = vadd.f32 %v5544_v61, %v5543_v55  ;;  %v5486_v50 = vadd.f32 %v5485_v4, %v5484_v45 }
0x16a9   :  { %v5498_v42 = vadd.f32 %v5497_v25, %v5496_v43  ;;  %v5552_v40 = vadd.f32 %v5551_v60, %v5550_v35  ;;  %v5493_v59 = vadd.f32 %v5492_v27, %v5491_v36  ;;  %v5596_v1 = vsel %vm4927_vm3, %v10752_v46, %v5595_v6  ;;  %v7410_v36 = vld [vmem:[#allocation5] ss:$0 sm:$0xff] }
0x16aa   :  { %v5589_v29 = vsel %vm4927_vm3, %v5465_v2, %v5588_v30  ;;  %v5541_v28 = vrot.slane %v5540_v41, 1  ;;  %v5546_v51 = vrot.slane %v5545_v47, 2  ;;  %v5597_v24 = vsel %vm4929_vm4, %v5528_v21, %v5596_v1  ;;  %v7406_v21 = vld [vmem:[%s10906_s4] ss:$0 sm:$0xff] }
0x16ab   :  { %v5499_v0 = vrot.slane %v5498_v42, 1  ;;  %v5590_v10 = vsel %vm4929_vm4, %v5472_v33, %v5589_v29  ;;  %v5553_v15 = vrot.slane %v5552_v40, 2  ;;  %v5598_v13 = vsel %vm4931_vm5, %v5535_v37, %v5597_v24 }
0x16ac   :  { %v5547_v26 = vadd.f32 %v5546_v51, %v5545_v47  ;;  %v5591_v9 = vsel %vm4931_vm5, %v5479_v49, %v5590_v10  ;;  %v5542_v58 = vadd.f32 %v5541_v28, %v5540_v41 }
0x16ad   :  { %v5500_v18 = vadd.f32 %v5499_v0, %v5498_v42  ;;  %v5592_v8 = vsel %vm4933_vm6, %v5486_v50, %v5591_v9  ;;  %v5554_v11 = vadd.f32 %v5553_v15, %v5552_v40 }
0x16ae   :  { %v5548_v57 = vrot.slane %v5547_v26, 1  ;;  %v5593_v44 = vsel %vm4935_vm7, %v5493_v59, %v5592_v8  ;;  %v5599_v31 = vsel %vm4933_vm6, %v5542_v58, %v5598_v13 }
0x16af   :  { %v5594_v53 = vsel %vm4937_vm8, %v5500_v18, %v5593_v44  ;;  %v5555_v14 = vrot.slane %v5554_v11, 1 }
0x16b0   :  { %v5549_v3 = vadd.f32 %v5548_v57, %v5547_v26  ;;  %7722 = vmatprep.mubr.msk.f32.mxu1 %vm3283_vm1, %v5594_v53 }
0x16b1   :  { %v5556_v54 = vadd.f32 %v5555_v14, %v5554_v11 }
0x16b2   :  { %v5600_v20 = vsel %vm4935_vm7, %v5549_v3, %v5599_v31 }
0x16b3   :  { %v5601_v46 = vsel %vm4937_vm8, %v5556_v54, %v5600_v20 }
0x16b4   :  { %7723 = vmatmul.mubr.msk.f32.vlgmr.msra.gmra.mrb[16].mxu1 %vm3283_vm1, %v5601_v46 }
0x1787   :  { %v7724_v19 = vpop.f32.mrb[16].mxu1 }
0x1788   :  { %v5678_v48 = vadd.f32 %v7724_v19, %v7406_v21  ;;  %v5672_v52 = vpop.f32.mrb[17].mxu1 }
0x1789   :  { %v5673_v17 = vadd.f32 %v7406_v21, %v5672_v52 }
0x178a   :  { %v5682_v63 = vmax.f32 %v5678_v48, 0.0 }
0x178b   :  { %v5681_v45 = vmax.f32 %v5673_v17, 0.0 }
0x178c   :  { %v5684_v34 = vmul.f32 %v5682_v63, %v10278_v5 }
0x178d   :  { %v5683_v7 = vmul.f32 %v5681_v45, %v10908_v39 }
0x178e   :  { %v5693_v56 = vmul.f32 %v7409_v32, %v5684_v34 }
0x178f   :  { %v5692_v16 = vmul.f32 %v7409_v32, %v5683_v7 }
0x1790   :  { %v5697_v38 = vsel %vm3283_vm1, %v5693_v56, 0.0 }
0x1791   :  { %5698 = vadd.xlane.f32.xlu1 %v5697_v38  ;;  %v5694_v22 = vsel %vm3283_vm1, %v5692_v16, 0.0 }
0x1792   :  { %5695 = vadd.xlane.f32.xlu0 %v5694_v22 }
0x181e   :  { %v5699_v43 = vpop.xlane.xlu1 %5698 }
0x181f   :  { %v5708_v55 = vadd.f32 %v7410_v36, %v5699_v43  ;;  %v5696_v12 = vpop.xlane.xlu0 %5695 }
0x1820   :  { %v5707_v23 = vadd.f32 %v7410_v36, %v5696_v12 }
0x1821   :  { %v5710_v62 = vmax.f32 %v5708_v55, 0.0 }
0x1822   :  { %v5709_v61 = vmax.f32 %v5707_v23, 0.0 }
0x1823   :  { %5713 = vst.msk [vmem:[%s10909_s6 + $0x8] sm:$0xff] %vm5711_vm10, %v5710_v62 }
0x1824   :  { %5712 = vst.msk [vmem:[%s10909_s6] sm:$0xff] %vm5711_vm10, %v5709_v61 }

</bundles_post_ra>
